<compile_context>
chip_gen: v7x
topology: tpu7x:2x2x1
jax: 0.10.0
libtpu: 0.0.40
codegen_flags: <defaults>
</compile_context>

<pallas_src>
import functools

import jax
import jax.numpy as jnp
from jax.experimental import pallas as pl
from jax.experimental.pallas import tpu as pltpu


# ------------------------------ fused kernel -------------------------------- #

def _irb_kernel(x_ref, w1_ref, bi1_ref, w2a_ref, bi2a_ref,
                w2b_ref, bi2b_ref, w2c_ref, bi2c_ref,
                wo1_ref, wo2_ref, bio_ref,
                o_ref, t2a_ref, t2b_ref, *, b, h, w):
    """B images per grid step.  x_ref: (B, H*W, C) bf16, o_ref: (B, H*W, C) bf16."""
    m = b * h * w
    c = x_ref.shape[-1]
    xf = x_ref[...].reshape(m, c)                                       # (M, C) bf16

    # ---- branch_1: 1x1 conv -> 192 (BN + ReLU folded) ------------------------
    b1 = jnp.maximum(
        jnp.dot(xf, w1_ref[...], preferred_element_type=jnp.float32)
        + bi1_ref[...], 0.0).astype(jnp.bfloat16)                       # (M, 192)

    # ---- branch_2a: 1x1 conv -> 128 ------------------------------------------
    b2a = jnp.maximum(
        jnp.dot(xf, w2a_ref[...], preferred_element_type=jnp.float32)
        + bi2a_ref[...], 0.0).astype(jnp.bfloat16)                      # (M, 128)

    # SAME padding along W in VMEM scratch (bf16).  Only the 3-col pad borders
    # are zeroed; the interior is overwritten in full every step.
    t2a_ref[:, :, pl.ds(0, 3), :] = jnp.zeros((b, h, 3, 128), jnp.bfloat16)
    t2a_ref[:, :, pl.ds(w + 3, 3), :] = jnp.zeros((b, h, 3, 128), jnp.bfloat16)
    t2a_ref[:, :, pl.ds(3, w), :] = b2a.reshape(b, h, w, 128)

    # ---- branch_2b: 1x7 conv (slides along W) -> 160: 7 shifted MXU matmuls --
    acc = jnp.dot(t2a_ref[:, :, pl.ds(0, w), :].reshape(m, 128), w2b_ref[0],
                  preferred_element_type=jnp.float32)
    for dx in range(1, 7):
        acc = acc + jnp.dot(t2a_ref[:, :, pl.ds(dx, w), :].reshape(m, 128),
                            w2b_ref[dx], preferred_element_type=jnp.float32)
    b2b = jnp.maximum(acc + bi2b_ref[...], 0.0).astype(jnp.bfloat16)    # (M, 160)

    # SAME padding along H in VMEM scratch (bf16); H is a non-tiled leading dim,
    # so these slices are alignment-free.
    t2b_ref[:, pl.ds(0, 3), :, :] = jnp.zeros((b, 3, w, 160), jnp.bfloat16)
    t2b_ref[:, pl.ds(h + 3, 3), :, :] = jnp.zeros((b, 3, w, 160), jnp.bfloat16)
    t2b_ref[:, pl.ds(3, h), :, :] = b2b.reshape(b, h, w, 160)

    # ---- branch_2c: 7x1 conv (slides along H) -> 192 -------------------------
    acc2 = jnp.dot(t2b_ref[:, pl.ds(0, h), :, :].reshape(m, 160), w2c_ref[0],
                   preferred_element_type=jnp.float32)
    for dy in range(1, 7):
        acc2 = acc2 + jnp.dot(t2b_ref[:, pl.ds(dy, h), :, :].reshape(m, 160),
                              w2c_ref[dy], preferred_element_type=jnp.float32)
    b2c = jnp.maximum(acc2 + bi2c_ref[...], 0.0).astype(jnp.bfloat16)   # (M, 192)

    # ---- out_conv (1x1, 384 -> C, bias, scale pre-folded), concat replaced by
    # ---- split weights, residual add + final ReLU, bf16 lane-dense store ------
    y = jnp.dot(b1, wo1_ref[...], preferred_element_type=jnp.float32)
    y = y + jnp.dot(b2c, wo2_ref[...], preferred_element_type=jnp.float32)
    y = y + bio_ref[...]
    out = jnp.maximum(xf.astype(jnp.float32) + y, 0.0)
    o_ref[...] = out.reshape(o_ref.shape).astype(o_ref.dtype)


def _pick_block_batch(n, h, w, c, budget_bytes=20 << 20):
    """Pick B (images per grid step): fill the MXU M-dim, fit VMEM, keep >=2 steps."""
    m = h * w
    per_b = 4 * m * c * 2 + (h * (w + 6) * 128 + (h + 6) * w * 160) * 2
    b_cap = max(1, budget_bytes // per_b)
    target = max(1, -(-512 // m))                       # ceil(512 / m)
    divs = [d for d in range(1, n + 1) if n % d == 0]
    cands = [d for d in divs if d <= b_cap and n // d >= 2]
    if not cands:
        cands = [d for d in divs if d <= b_cap] or [1]
    geq = [d for d in cands if d >= target]
    return min(geq) if geq else max(cands)


def inception_resnet_b(x_nchw, p, scale=1.0, block_batch=None):
    """Matches InceptionResNetB.forward; x is NCHW with C == 1088.  Returns bf16 NCHW."""
    N, C, H, W = x_nchw.shape
    M = H * W
    B = _pick_block_batch(N, H, W, C) if block_batch is None else block_batch
    assert N % B == 0, (N, B)

    # layout plumbing done once by XLA: NCHW -> (N, H*W, C) bf16
    x = jnp.transpose(x_nchw, (0, 2, 3, 1)).reshape(N, M, C).astype(jnp.bfloat16)

    # fold `scale` into out_conv weights/bias on the host (outside the kernel)
    wo1 = (p['w_out1'].astype(jnp.float32) * scale).astype(jnp.bfloat16)
    wo2 = (p['w_out2'].astype(jnp.float32) * scale).astype(jnp.bfloat16)
    bio = p['bias_out'] * scale

    # explicit VMEM limit: 2x-buffered x/out tiles + weights + scratches + headroom
    x_tile = B * M * C * 2
    w_bytes = (C * 192 + C * 128 + 7 * 128 * 160 + 7 * 160 * 192 + 2 * 192 * C) * 2
    scr_bytes = (B * H * (W + 6) * 128 + B * (H + 6) * W * 160) * 2
    vmem_limit = 2 * (2 * x_tile) + 2 * w_bytes + scr_bytes + (8 << 20)
    vmem_limit = int(min(max(vmem_limit, 16 << 20), 64 << 20))

    out = pl.pallas_call(
        functools.partial(_irb_kernel, b=B, h=H, w=W),
        out_shape=jax.ShapeDtypeStruct((N, M, C), jnp.bfloat16),
        grid=(N // B,),
        in_specs=[
            pl.BlockSpec((B, M, C), lambda n: (n, 0, 0)),          # x (B images)
            pl.BlockSpec((C, 192), lambda n: (0, 0)),              # w_b1
            pl.BlockSpec((1, 192), lambda n: (0, 0)),              # bias_b1
            pl.BlockSpec((C, 128), lambda n: (0, 0)),              # w_b2a
            pl.BlockSpec((1, 128), lambda n: (0, 0)),              # bias_b2a
            pl.BlockSpec((7, 128, 160), lambda n: (0, 0, 0)),      # w_b2b (1x7)
            pl.BlockSpec((1, 160), lambda n: (0, 0)),              # bias_b2b
            pl.BlockSpec((7, 160, 192), lambda n: (0, 0, 0)),      # w_b2c (7x1)
            pl.BlockSpec((1, 192), lambda n: (0, 0)),              # bias_b2c
            pl.BlockSpec((192, C), lambda n: (0, 0)),              # w_out[:192]*scale
            pl.BlockSpec((192, C), lambda n: (0, 0)),              # w_out[192:]*scale
            pl.BlockSpec((1, C), lambda n: (0, 0)),                # bias_out*scale
        ],
        out_specs=pl.BlockSpec((B, M, C), lambda n: (n, 0, 0)),
        scratch_shapes=[
            pltpu.VMEM((B, H, W + 6, 128), jnp.bfloat16),   # W-padded branch_2a
            pltpu.VMEM((B, H + 6, W, 160), jnp.bfloat16),   # H-padded branch_2b
        ],
        compiler_params=pltpu.CompilerParams(
            dimension_semantics=("parallel",),
            vmem_limit_bytes=vmem_limit),
    )(x, p['w_b1'], p['bias_b1'], p['w_b2a'], p['bias_b2a'],
      p['w_b2b'], p['bias_b2b'], p['w_b2c'], p['bias_b2c'],
      wo1, wo2, bio)

    return jnp.transpose(out.reshape(N, H, W, C), (0, 3, 1, 2))


# ------------------------------ parameters ---------------------------------- #

def _folded_conv_bn(key, cin, cout, taps=1, eps=1e-5):
    """Conv2d(bias=False) + BatchNorm2d(eval) folded to (bf16 weight, f32 bias).

    `taps` is the spatial kernel length (1 for 1x1, 7 for 1x7 / 7x1); the weight
    is stored as (cin, cout) or (taps, cin, cout), tap index == kernel position.
    """
    kw, kg, kb, km, kv = jax.random.split(key, 5)
    shape = (cin, cout) if taps == 1 else (taps, cin, cout)
    fan_in = float(cin * taps)
    w = jax.random.normal(kw, shape, jnp.float32) / jnp.sqrt(fan_in)
    gamma = 1.0 + 0.1 * jax.random.normal(kg, (cout,), jnp.float32)
    beta = 0.1 * jax.random.normal(kb, (cout,), jnp.float32)
    mean = 0.1 * jax.random.normal(km, (cout,), jnp.float32)
    var = 1.0 + 0.1 * jnp.abs(jax.random.normal(kv, (cout,), jnp.float32))
    s = gamma * jax.lax.rsqrt(var + eps)
    return (w * s).astype(jnp.bfloat16), (beta - mean * s).reshape(1, cout)


def init_params(key, in_channels, out_channels=1088):
    ks = jax.random.split(key, 6)
    p = {}
    p['w_b1'],  p['bias_b1']  = _folded_conv_bn(ks[0], in_channels, 192)         # 1x1
    p['w_b2a'], p['bias_b2a'] = _folded_conv_bn(ks[1], in_channels, 128)         # 1x1
    p['w_b2b'], p['bias_b2b'] = _folded_conv_bn(ks[2], 128, 160, taps=7)         # 1x7
    p['w_b2c'], p['bias_b2c'] = _folded_conv_bn(ks[3], 160, 192, taps=7)         # 7x1
    # out_conv: plain Conv2d(192+192 -> 1088, 1x1) WITH bias (PyTorch default),
    # split along the concat axis so the kernel never materializes the concat.
    w_out = jax.random.normal(ks[4], (384, out_channels), jnp.float32) / jnp.sqrt(384.0)
    p['w_out1'] = w_out[:192].astype(jnp.bfloat16)   # consumes branch_1 (192 ch)
    p['w_out2'] = w_out[192:].astype(jnp.bfloat16)   # consumes branch_2 (192 ch)
    p['bias_out'] = 0.1 * jax.random.normal(ks[5], (1, out_channels), jnp.float32)
    return p


# -------------------------- reference (plain JAX) ---------------------------- #

def _ref_conv(x, w_hwio, b, relu=True):
    y = jax.lax.conv_general_dilated(
        x, w_hwio, window_strides=(1, 1), padding='SAME',
        dimension_numbers=('NHWC', 'HWIO', 'NHWC'),
        preferred_element_type=jnp.float32)
    y = y + b
    return jnp.maximum(y, 0.0) if relu else y


def ref_forward(x_nchw, p, scale):
    x = jnp.transpose(x_nchw, (0, 2, 3, 1)).astype(jnp.bfloat16)      # NHWC bf16
    N, H, W, C = x.shape
    b1 = _ref_conv(x, p['w_b1'][None, None], p['bias_b1'])                       # 1x1
    t = _ref_conv(x, p['w_b2a'][None, None], p['bias_b2a']).astype(jnp.bfloat16) # 1x1
    t = _ref_conv(t, p['w_b2b'][None], p['bias_b2b']).astype(jnp.bfloat16)       # 1x7
    b2 = _ref_conv(t, p['w_b2c'][:, None], p['bias_b2c'])                        # 7x1
    y = (jnp.dot(b1.reshape(-1, 192).astype(jnp.bfloat16), p['w_out1'],
                 preferred_element_type=jnp.float32)
         + jnp.dot(b2.reshape(-1, 192).astype(jnp.bfloat16), p['w_out2'],
                   preferred_element_type=jnp.float32)
         + p['bias_out'])
    out = jnp.maximum(x.astype(jnp.float32) + scale * y.reshape(N, H, W, C), 0.0)
    return jnp.transpose(out, (0, 3, 1, 2))


# ------------------------------------ main ----------------------------------- #

if __name__ == "__main__":
    key = jax.random.PRNGKey(0)
    kx, kp = jax.random.split(key)

    # InceptionResNetB: the residual `x + scale * out_conv(...)` requires C == 1088.
    N, C, H, W = 4, 1088, 8, 8
    scale = 0.17

    x = jax.random.normal(kx, (N, C, H, W), jnp.float32)
    params = init_params(kp, C)

    fwd = jax.jit(inception_resnet_b, static_argnames=('scale',))
    out = jax.block_until_ready(fwd(x, params, scale=scale))
    assert out.shape == (N, C, H, W)

    ref = ref_forward(x, params, scale)
    out_f32 = out.astype(jnp.float32)
    err = float(jnp.max(jnp.abs(out_f32 - ref)))
    tol = 2e-2 + 2e-2 * float(jnp.max(jnp.abs(ref)))   # bf16-output tolerance
    if err > tol:
        raise AssertionError(f"Pallas output mismatch vs reference, max|diff|={err} tol={tol}")

    print("KERNEL_OK")
</pallas_src>

<mosaic_0001>
module attributes {stable_mosaic.version = 11 : i64} {
  func.func @_irb_kernel(%arg0: i32, %arg1: memref<2x64x1088xbf16, #tpu.memory_space<vmem>>, %arg2: memref<1088x192xbf16, #tpu.memory_space<vmem>>, %arg3: memref<1x192xf32, #tpu.memory_space<vmem>>, %arg4: memref<1088x128xbf16, #tpu.memory_space<vmem>>, %arg5: memref<1x128xf32, #tpu.memory_space<vmem>>, %arg6: memref<7x128x160xbf16, #tpu.memory_space<vmem>>, %arg7: memref<1x160xf32, #tpu.memory_space<vmem>>, %arg8: memref<7x160x192xbf16, #tpu.memory_space<vmem>>, %arg9: memref<1x192xf32, #tpu.memory_space<vmem>>, %arg10: memref<192x1088xbf16, #tpu.memory_space<vmem>>, %arg11: memref<192x1088xbf16, #tpu.memory_space<vmem>>, %arg12: memref<1x1088xf32, #tpu.memory_space<vmem>>, %arg13: memref<2x64x1088xbf16, #tpu.memory_space<vmem>>, %arg14: memref<2x8x14x128xbf16, #tpu.memory_space<vmem>>, %arg15: memref<2x14x8x160xbf16, #tpu.memory_space<vmem>>) attributes {dimension_semantics = [#tpu.dimension_semantics<parallel>], iteration_bounds = array<i64: 2>, scalar_prefetch = 0 : i64, scratch_operands = 2 : i64, tpu.core_type = #tpu.core_type<tc>, window_params = [{transform_indices = @transform_0, window_bounds = array<i64: 2, 64, 1088>}, {pipeline_mode = #tpu.pipeline_mode<synchronous>, transform_indices = @transform_1, window_bounds = array<i64: 1088, 192>}, {pipeline_mode = #tpu.pipeline_mode<synchronous>, transform_indices = @transform_2, window_bounds = array<i64: 1, 192>}, {pipeline_mode = #tpu.pipeline_mode<synchronous>, transform_indices = @transform_3, window_bounds = array<i64: 1088, 128>}, {pipeline_mode = #tpu.pipeline_mode<synchronous>, transform_indices = @transform_4, window_bounds = array<i64: 1, 128>}, {pipeline_mode = #tpu.pipeline_mode<synchronous>, transform_indices = @transform_5, window_bounds = array<i64: 7, 128, 160>}, {pipeline_mode = #tpu.pipeline_mode<synchronous>, transform_indices = @transform_6, window_bounds = array<i64: 1, 160>}, {pipeline_mode = #tpu.pipeline_mode<synchronous>, transform_indices = @transform_7, window_bounds = array<i64: 7, 160, 192>}, {pipeline_mode = #tpu.pipeline_mode<synchronous>, transform_indices = @transform_8, window_bounds = array<i64: 1, 192>}, {pipeline_mode = #tpu.pipeline_mode<synchronous>, transform_indices = @transform_9, window_bounds = array<i64: 192, 1088>}, {pipeline_mode = #tpu.pipeline_mode<synchronous>, transform_indices = @transform_10, window_bounds = array<i64: 192, 1088>}, {pipeline_mode = #tpu.pipeline_mode<synchronous>, transform_indices = @transform_11, window_bounds = array<i64: 1, 1088>}, {transform_indices = @transform_12, window_bounds = array<i64: 2, 64, 1088>}]} {
    %c0 = arith.constant 0 : index
    %c0_0 = arith.constant 0 : index
    %c0_1 = arith.constant 0 : index
    %0 = vector.load %arg1[%c0, %c0_0, %c0_1] : memref<2x64x1088xbf16, #tpu.memory_space<vmem>>, vector<2x64x1088xbf16>
    %1 = vector.shape_cast %0 : vector<2x64x1088xbf16> to vector<128x1088xbf16>
    %c0_2 = arith.constant 0 : index
    %c0_3 = arith.constant 0 : index
    %2 = vector.load %arg2[%c0_2, %c0_3] : memref<1088x192xbf16, #tpu.memory_space<vmem>>, vector<1088x192xbf16>
    %cst = arith.constant dense<0.000000e+00> : vector<128x192xf32>
    %3 = tpu.matmul %1, %2, %cst {dimension_numbers = #tpu.dot_dimension_numbers<[1], [0], [0], [1], [0, 0, 1, 1], [], []>} : vector<128x1088xbf16>, vector<1088x192xbf16>, vector<128x192xf32> -> vector<128x192xf32>
    %c0_4 = arith.constant 0 : index
    %c0_5 = arith.constant 0 : index
    %4 = vector.load %arg3[%c0_4, %c0_5] : memref<1x192xf32, #tpu.memory_space<vmem>>, vector<1x192xf32>
    %5 = vector.broadcast %4 : vector<1x192xf32> to vector<128x192xf32>
    %6 = arith.addf %3, %5 : vector<128x192xf32>
    %cst_6 = arith.constant 0.000000e+00 : f32
    %7 = vector.broadcast %cst_6 : f32 to vector<128x192xf32>
    %8 = arith.maximumf %6, %7 : vector<128x192xf32>
    %9 = arith.truncf %8 : vector<128x192xf32> to vector<128x192xbf16>
    %c0_7 = arith.constant 0 : index
    %c0_8 = arith.constant 0 : index
    %10 = vector.load %arg4[%c0_7, %c0_8] : memref<1088x128xbf16, #tpu.memory_space<vmem>>, vector<1088x128xbf16>
    %cst_9 = arith.constant dense<0.000000e+00> : vector<128x128xf32>
    %11 = tpu.matmul %1, %10, %cst_9 {dimension_numbers = #tpu.dot_dimension_numbers<[1], [0], [0], [1], [0, 0, 1, 1], [], []>} : vector<128x1088xbf16>, vector<1088x128xbf16>, vector<128x128xf32> -> vector<128x128xf32>
    %c0_10 = arith.constant 0 : index
    %c0_11 = arith.constant 0 : index
    %12 = vector.load %arg5[%c0_10, %c0_11] : memref<1x128xf32, #tpu.memory_space<vmem>>, vector<1x128xf32>
    %13 = vector.broadcast %12 : vector<1x128xf32> to vector<128x128xf32>
    %14 = arith.addf %11, %13 : vector<128x128xf32>
    %cst_12 = arith.constant 0.000000e+00 : f32
    %15 = vector.broadcast %cst_12 : f32 to vector<128x128xf32>
    %16 = arith.maximumf %14, %15 : vector<128x128xf32>
    %17 = arith.truncf %16 : vector<128x128xf32> to vector<128x128xbf16>
    %cst_13 = arith.constant 0.000000e+00 : bf16
    %18 = vector.broadcast %cst_13 : bf16 to vector<2x8x3x128xbf16>
    %c0_14 = arith.constant 0 : index
    %c0_15 = arith.constant 0 : index
    %c0_16 = arith.constant 0 : index
    %c0_17 = arith.constant 0 : index
    %19 = vector.load %arg14[%c0_14, %c0_15, %c0_16, %c0_17] : memref<2x8x14x128xbf16, #tpu.memory_space<vmem>>, vector<2x8x3x128xbf16>
    tpu.vector_store %arg14[%c0_14, %c0_15, %c0_16, %c0_17], %18 {strides = array<i32>} : memref<2x8x14x128xbf16, #tpu.memory_space<vmem>>, vector<2x8x3x128xbf16>,
    %cst_18 = arith.constant 0.000000e+00 : bf16
    %20 = vector.broadcast %cst_18 : bf16 to vector<2x8x3x128xbf16>
    %c0_19 = arith.constant 0 : index
    %c0_20 = arith.constant 0 : index
    %c11 = arith.constant 11 : index
    %c0_21 = arith.constant 0 : index
    %21 = vector.load %arg14[%c0_19, %c0_20, %c11, %c0_21] : memref<2x8x14x128xbf16, #tpu.memory_space<vmem>>, vector<2x8x3x128xbf16>
    tpu.vector_store %arg14[%c0_19, %c0_20, %c11, %c0_21], %20 {strides = array<i32>} : memref<2x8x14x128xbf16, #tpu.memory_space<vmem>>, vector<2x8x3x128xbf16>,
    %22 = vector.shape_cast %17 : vector<128x128xbf16> to vector<2x8x8x128xbf16>
    %c0_22 = arith.constant 0 : index
    %c0_23 = arith.constant 0 : index
    %c3 = arith.constant 3 : index
    %c0_24 = arith.constant 0 : index
    %23 = vector.load %arg14[%c0_22, %c0_23, %c3, %c0_24] : memref<2x8x14x128xbf16, #tpu.memory_space<vmem>>, vector<2x8x8x128xbf16>
    tpu.vector_store %arg14[%c0_22, %c0_23, %c3, %c0_24], %22 {strides = array<i32>} : memref<2x8x14x128xbf16, #tpu.memory_space<vmem>>, vector<2x8x8x128xbf16>,
    %c0_25 = arith.constant 0 : index
    %c0_26 = arith.constant 0 : index
    %c0_27 = arith.constant 0 : index
    %c0_28 = arith.constant 0 : index
    %24 = vector.load %arg14[%c0_25, %c0_26, %c0_27, %c0_28] : memref<2x8x14x128xbf16, #tpu.memory_space<vmem>>, vector<2x8x8x128xbf16>
    %25 = vector.shape_cast %24 : vector<2x8x8x128xbf16> to vector<128x128xbf16>
    %c0_29 = arith.constant 0 : index
    %c0_30 = arith.constant 0 : index
    %c0_31 = arith.constant 0 : index
    %26 = vector.load %arg6[%c0_29, %c0_30, %c0_31] : memref<7x128x160xbf16, #tpu.memory_space<vmem>>, vector<1x128x160xbf16>
    %27 = vector.shape_cast %26 : vector<1x128x160xbf16> to vector<128x160xbf16>
    %cst_32 = arith.constant dense<0.000000e+00> : vector<128x160xf32>
    %28 = tpu.matmul %25, %27, %cst_32 {dimension_numbers = #tpu.dot_dimension_numbers<[1], [0], [0], [1], [0, 0, 1, 1], [], []>} : vector<128x128xbf16>, vector<128x160xbf16>, vector<128x160xf32> -> vector<128x160xf32>
    %c0_33 = arith.constant 0 : index
    %c0_34 = arith.constant 0 : index
    %c1 = arith.constant 1 : index
    %c0_35 = arith.constant 0 : index
    %29 = vector.load %arg14[%c0_33, %c0_34, %c1, %c0_35] : memref<2x8x14x128xbf16, #tpu.memory_space<vmem>>, vector<2x8x8x128xbf16>
    %30 = vector.shape_cast %29 : vector<2x8x8x128xbf16> to vector<128x128xbf16>
    %c1_36 = arith.constant 1 : index
    %c0_37 = arith.constant 0 : index
    %c0_38 = arith.constant 0 : index
    %31 = vector.load %arg6[%c1_36, %c0_37, %c0_38] : memref<7x128x160xbf16, #tpu.memory_space<vmem>>, vector<1x128x160xbf16>
    %32 = vector.shape_cast %31 : vector<1x128x160xbf16> to vector<128x160xbf16>
    %cst_39 = arith.constant dense<0.000000e+00> : vector<128x160xf32>
    %33 = tpu.matmul %30, %32, %cst_39 {dimension_numbers = #tpu.dot_dimension_numbers<[1], [0], [0], [1], [0, 0, 1, 1], [], []>} : vector<128x128xbf16>, vector<128x160xbf16>, vector<128x160xf32> -> vector<128x160xf32>
    %34 = arith.addf %28, %33 : vector<128x160xf32>
    %c0_40 = arith.constant 0 : index
    %c0_41 = arith.constant 0 : index
    %c2 = arith.constant 2 : index
    %c0_42 = arith.constant 0 : index
    %35 = vector.load %arg14[%c0_40, %c0_41, %c2, %c0_42] : memref<2x8x14x128xbf16, #tpu.memory_space<vmem>>, vector<2x8x8x128xbf16>
    %36 = vector.shape_cast %35 : vector<2x8x8x128xbf16> to vector<128x128xbf16>
    %c2_43 = arith.constant 2 : index
    %c0_44 = arith.constant 0 : index
    %c0_45 = arith.constant 0 : index
    %37 = vector.load %arg6[%c2_43, %c0_44, %c0_45] : memref<7x128x160xbf16, #tpu.memory_space<vmem>>, vector<1x128x160xbf16>
    %38 = vector.shape_cast %37 : vector<1x128x160xbf16> to vector<128x160xbf16>
    %cst_46 = arith.constant dense<0.000000e+00> : vector<128x160xf32>
    %39 = tpu.matmul %36, %38, %cst_46 {dimension_numbers = #tpu.dot_dimension_numbers<[1], [0], [0], [1], [0, 0, 1, 1], [], []>} : vector<128x128xbf16>, vector<128x160xbf16>, vector<128x160xf32> -> vector<128x160xf32>
    %40 = arith.addf %34, %39 : vector<128x160xf32>
    %c0_47 = arith.constant 0 : index
    %c0_48 = arith.constant 0 : index
    %c3_49 = arith.constant 3 : index
    %c0_50 = arith.constant 0 : index
    %41 = vector.load %arg14[%c0_47, %c0_48, %c3_49, %c0_50] : memref<2x8x14x128xbf16, #tpu.memory_space<vmem>>, vector<2x8x8x128xbf16>
    %42 = vector.shape_cast %41 : vector<2x8x8x128xbf16> to vector<128x128xbf16>
    %c3_51 = arith.constant 3 : index
    %c0_52 = arith.constant 0 : index
    %c0_53 = arith.constant 0 : index
    %43 = vector.load %arg6[%c3_51, %c0_52, %c0_53] : memref<7x128x160xbf16, #tpu.memory_space<vmem>>, vector<1x128x160xbf16>
    %44 = vector.shape_cast %43 : vector<1x128x160xbf16> to vector<128x160xbf16>
    %cst_54 = arith.constant dense<0.000000e+00> : vector<128x160xf32>
    %45 = tpu.matmul %42, %44, %cst_54 {dimension_numbers = #tpu.dot_dimension_numbers<[1], [0], [0], [1], [0, 0, 1, 1], [], []>} : vector<128x128xbf16>, vector<128x160xbf16>, vector<128x160xf32> -> vector<128x160xf32>
    %46 = arith.addf %40, %45 : vector<128x160xf32>
    %c0_55 = arith.constant 0 : index
    %c0_56 = arith.constant 0 : index
    %c4 = arith.constant 4 : index
    %c0_57 = arith.constant 0 : index
    %47 = vector.load %arg14[%c0_55, %c0_56, %c4, %c0_57] : memref<2x8x14x128xbf16, #tpu.memory_space<vmem>>, vector<2x8x8x128xbf16>
    %48 = vector.shape_cast %47 : vector<2x8x8x128xbf16> to vector<128x128xbf16>
    %c4_58 = arith.constant 4 : index
    %c0_59 = arith.constant 0 : index
    %c0_60 = arith.constant 0 : index
    %49 = vector.load %arg6[%c4_58, %c0_59, %c0_60] : memref<7x128x160xbf16, #tpu.memory_space<vmem>>, vector<1x128x160xbf16>
    %50 = vector.shape_cast %49 : vector<1x128x160xbf16> to vector<128x160xbf16>
    %cst_61 = arith.constant dense<0.000000e+00> : vector<128x160xf32>
    %51 = tpu.matmul %48, %50, %cst_61 {dimension_numbers = #tpu.dot_dimension_numbers<[1], [0], [0], [1], [0, 0, 1, 1], [], []>} : vector<128x128xbf16>, vector<128x160xbf16>, vector<128x160xf32> -> vector<128x160xf32>
    %52 = arith.addf %46, %51 : vector<128x160xf32>
    %c0_62 = arith.constant 0 : index
    %c0_63 = arith.constant 0 : index
    %c5 = arith.constant 5 : index
    %c0_64 = arith.constant 0 : index
    %53 = vector.load %arg14[%c0_62, %c0_63, %c5, %c0_64] : memref<2x8x14x128xbf16, #tpu.memory_space<vmem>>, vector<2x8x8x128xbf16>
    %54 = vector.shape_cast %53 : vector<2x8x8x128xbf16> to vector<128x128xbf16>
    %c5_65 = arith.constant 5 : index
    %c0_66 = arith.constant 0 : index
    %c0_67 = arith.constant 0 : index
    %55 = vector.load %arg6[%c5_65, %c0_66, %c0_67] : memref<7x128x160xbf16, #tpu.memory_space<vmem>>, vector<1x128x160xbf16>
    %56 = vector.shape_cast %55 : vector<1x128x160xbf16> to vector<128x160xbf16>
    %cst_68 = arith.constant dense<0.000000e+00> : vector<128x160xf32>
    %57 = tpu.matmul %54, %56, %cst_68 {dimension_numbers = #tpu.dot_dimension_numbers<[1], [0], [0], [1], [0, 0, 1, 1], [], []>} : vector<128x128xbf16>, vector<128x160xbf16>, vector<128x160xf32> -> vector<128x160xf32>
    %58 = arith.addf %52, %57 : vector<128x160xf32>
    %c0_69 = arith.constant 0 : index
    %c0_70 = arith.constant 0 : index
    %c6 = arith.constant 6 : index
    %c0_71 = arith.constant 0 : index
    %59 = vector.load %arg14[%c0_69, %c0_70, %c6, %c0_71] : memref<2x8x14x128xbf16, #tpu.memory_space<vmem>>, vector<2x8x8x128xbf16>
    %60 = vector.shape_cast %59 : vector<2x8x8x128xbf16> to vector<128x128xbf16>
    %c6_72 = arith.constant 6 : index
    %c0_73 = arith.constant 0 : index
    %c0_74 = arith.constant 0 : index
    %61 = vector.load %arg6[%c6_72, %c0_73, %c0_74] : memref<7x128x160xbf16, #tpu.memory_space<vmem>>, vector<1x128x160xbf16>
    %62 = vector.shape_cast %61 : vector<1x128x160xbf16> to vector<128x160xbf16>
    %cst_75 = arith.constant dense<0.000000e+00> : vector<128x160xf32>
    %63 = tpu.matmul %60, %62, %cst_75 {dimension_numbers = #tpu.dot_dimension_numbers<[1], [0], [0], [1], [0, 0, 1, 1], [], []>} : vector<128x128xbf16>, vector<128x160xbf16>, vector<128x160xf32> -> vector<128x160xf32>
    %64 = arith.addf %58, %63 : vector<128x160xf32>
    %c0_76 = arith.constant 0 : index
    %c0_77 = arith.constant 0 : index
    %65 = vector.load %arg7[%c0_76, %c0_77] : memref<1x160xf32, #tpu.memory_space<vmem>>, vector<1x160xf32>
    %66 = vector.broadcast %65 : vector<1x160xf32> to vector<128x160xf32>
    %67 = arith.addf %64, %66 : vector<128x160xf32>
    %cst_78 = arith.constant 0.000000e+00 : f32
    %68 = vector.broadcast %cst_78 : f32 to vector<128x160xf32>
    %69 = arith.maximumf %67, %68 : vector<128x160xf32>
    %70 = arith.truncf %69 : vector<128x160xf32> to vector<128x160xbf16>
    %cst_79 = arith.constant 0.000000e+00 : bf16
    %71 = vector.broadcast %cst_79 : bf16 to vector<2x3x8x160xbf16>
    %c0_80 = arith.constant 0 : index
    %c0_81 = arith.constant 0 : index
    %c0_82 = arith.constant 0 : index
    %c0_83 = arith.constant 0 : index
    %72 = vector.load %arg15[%c0_80, %c0_81, %c0_82, %c0_83] : memref<2x14x8x160xbf16, #tpu.memory_space<vmem>>, vector<2x3x8x160xbf16>
    tpu.vector_store %arg15[%c0_80, %c0_81, %c0_82, %c0_83], %71 {strides = array<i32>} : memref<2x14x8x160xbf16, #tpu.memory_space<vmem>>, vector<2x3x8x160xbf16>,
    %cst_84 = arith.constant 0.000000e+00 : bf16
    %73 = vector.broadcast %cst_84 : bf16 to vector<2x3x8x160xbf16>
    %c0_85 = arith.constant 0 : index
    %c11_86 = arith.constant 11 : index
    %c0_87 = arith.constant 0 : index
    %c0_88 = arith.constant 0 : index
    %74 = vector.load %arg15[%c0_85, %c11_86, %c0_87, %c0_88] : memref<2x14x8x160xbf16, #tpu.memory_space<vmem>>, vector<2x3x8x160xbf16>
    tpu.vector_store %arg15[%c0_85, %c11_86, %c0_87, %c0_88], %73 {strides = array<i32>} : memref<2x14x8x160xbf16, #tpu.memory_space<vmem>>, vector<2x3x8x160xbf16>,
    %75 = vector.shape_cast %70 : vector<128x160xbf16> to vector<2x8x8x160xbf16>
    %c0_89 = arith.constant 0 : index
    %c3_90 = arith.constant 3 : index
    %c0_91 = arith.constant 0 : index
    %c0_92 = arith.constant 0 : index
    %76 = vector.load %arg15[%c0_89, %c3_90, %c0_91, %c0_92] : memref<2x14x8x160xbf16, #tpu.memory_space<vmem>>, vector<2x8x8x160xbf16>
    tpu.vector_store %arg15[%c0_89, %c3_90, %c0_91, %c0_92], %75 {strides = array<i32>} : memref<2x14x8x160xbf16, #tpu.memory_space<vmem>>, vector<2x8x8x160xbf16>,
    %c0_93 = arith.constant 0 : index
    %c0_94 = arith.constant 0 : index
    %c0_95 = arith.constant 0 : index
    %c0_96 = arith.constant 0 : index
    %77 = vector.load %arg15[%c0_93, %c0_94, %c0_95, %c0_96] : memref<2x14x8x160xbf16, #tpu.memory_space<vmem>>, vector<2x8x8x160xbf16>
    %78 = vector.shape_cast %77 : vector<2x8x8x160xbf16> to vector<128x160xbf16>
    %c0_97 = arith.constant 0 : index
    %c0_98 = arith.constant 0 : index
    %c0_99 = arith.constant 0 : index
    %79 = vector.load %arg8[%c0_97, %c0_98, %c0_99] : memref<7x160x192xbf16, #tpu.memory_space<vmem>>, vector<1x160x192xbf16>
    %80 = vector.shape_cast %79 : vector<1x160x192xbf16> to vector<160x192xbf16>
    %cst_100 = arith.constant dense<0.000000e+00> : vector<128x192xf32>
    %81 = tpu.matmul %78, %80, %cst_100 {dimension_numbers = #tpu.dot_dimension_numbers<[1], [0], [0], [1], [0, 0, 1, 1], [], []>} : vector<128x160xbf16>, vector<160x192xbf16>, vector<128x192xf32> -> vector<128x192xf32>
    %c0_101 = arith.constant 0 : index
    %c1_102 = arith.constant 1 : index
    %c0_103 = arith.constant 0 : index
    %c0_104 = arith.constant 0 : index
    %82 = vector.load %arg15[%c0_101, %c1_102, %c0_103, %c0_104] : memref<2x14x8x160xbf16, #tpu.memory_space<vmem>>, vector<2x8x8x160xbf16>
    %83 = vector.shape_cast %82 : vector<2x8x8x160xbf16> to vector<128x160xbf16>
    %c1_105 = arith.constant 1 : index
    %c0_106 = arith.constant 0 : index
    %c0_107 = arith.constant 0 : index
    %84 = vector.load %arg8[%c1_105, %c0_106, %c0_107] : memref<7x160x192xbf16, #tpu.memory_space<vmem>>, vector<1x160x192xbf16>
    %85 = vector.shape_cast %84 : vector<1x160x192xbf16> to vector<160x192xbf16>
    %cst_108 = arith.constant dense<0.000000e+00> : vector<128x192xf32>
    %86 = tpu.matmul %83, %85, %cst_108 {dimension_numbers = #tpu.dot_dimension_numbers<[1], [0], [0], [1], [0, 0, 1, 1], [], []>} : vector<128x160xbf16>, vector<160x192xbf16>, vector<128x192xf32> -> vector<128x192xf32>
    %87 = arith.addf %81, %86 : vector<128x192xf32>
    %c0_109 = arith.constant 0 : index
    %c2_110 = arith.constant 2 : index
    %c0_111 = arith.constant 0 : index
    %c0_112 = arith.constant 0 : index
    %88 = vector.load %arg15[%c0_109, %c2_110, %c0_111, %c0_112] : memref<2x14x8x160xbf16, #tpu.memory_space<vmem>>, vector<2x8x8x160xbf16>
    %89 = vector.shape_cast %88 : vector<2x8x8x160xbf16> to vector<128x160xbf16>
    %c2_113 = arith.constant 2 : index
    %c0_114 = arith.constant 0 : index
    %c0_115 = arith.constant 0 : index
    %90 = vector.load %arg8[%c2_113, %c0_114, %c0_115] : memref<7x160x192xbf16, #tpu.memory_space<vmem>>, vector<1x160x192xbf16>
    %91 = vector.shape_cast %90 : vector<1x160x192xbf16> to vector<160x192xbf16>
    %cst_116 = arith.constant dense<0.000000e+00> : vector<128x192xf32>
    %92 = tpu.matmul %89, %91, %cst_116 {dimension_numbers = #tpu.dot_dimension_numbers<[1], [0], [0], [1], [0, 0, 1, 1], [], []>} : vector<128x160xbf16>, vector<160x192xbf16>, vector<128x192xf32> -> vector<128x192xf32>
    %93 = arith.addf %87, %92 : vector<128x192xf32>
    %c0_117 = arith.constant 0 : index
    %c3_118 = arith.constant 3 : index
    %c0_119 = arith.constant 0 : index
    %c0_120 = arith.constant 0 : index
    %94 = vector.load %arg15[%c0_117, %c3_118, %c0_119, %c0_120] : memref<2x14x8x160xbf16, #tpu.memory_space<vmem>>, vector<2x8x8x160xbf16>
    %95 = vector.shape_cast %94 : vector<2x8x8x160xbf16> to vector<128x160xbf16>
    %c3_121 = arith.constant 3 : index
    %c0_122 = arith.constant 0 : index
    %c0_123 = arith.constant 0 : index
    %96 = vector.load %arg8[%c3_121, %c0_122, %c0_123] : memref<7x160x192xbf16, #tpu.memory_space<vmem>>, vector<1x160x192xbf16>
    %97 = vector.shape_cast %96 : vector<1x160x192xbf16> to vector<160x192xbf16>
    %cst_124 = arith.constant dense<0.000000e+00> : vector<128x192xf32>
    %98 = tpu.matmul %95, %97, %cst_124 {dimension_numbers = #tpu.dot_dimension_numbers<[1], [0], [0], [1], [0, 0, 1, 1], [], []>} : vector<128x160xbf16>, vector<160x192xbf16>, vector<128x192xf32> -> vector<128x192xf32>
    %99 = arith.addf %93, %98 : vector<128x192xf32>
    %c0_125 = arith.constant 0 : index
    %c4_126 = arith.constant 4 : index
    %c0_127 = arith.constant 0 : index
    %c0_128 = arith.constant 0 : index
    %100 = vector.load %arg15[%c0_125, %c4_126, %c0_127, %c0_128] : memref<2x14x8x160xbf16, #tpu.memory_space<vmem>>, vector<2x8x8x160xbf16>
    %101 = vector.shape_cast %100 : vector<2x8x8x160xbf16> to vector<128x160xbf16>
    %c4_129 = arith.constant 4 : index
    %c0_130 = arith.constant 0 : index
    %c0_131 = arith.constant 0 : index
    %102 = vector.load %arg8[%c4_129, %c0_130, %c0_131] : memref<7x160x192xbf16, #tpu.memory_space<vmem>>, vector<1x160x192xbf16>
    %103 = vector.shape_cast %102 : vector<1x160x192xbf16> to vector<160x192xbf16>
    %cst_132 = arith.constant dense<0.000000e+00> : vector<128x192xf32>
    %104 = tpu.matmul %101, %103, %cst_132 {dimension_numbers = #tpu.dot_dimension_numbers<[1], [0], [0], [1], [0, 0, 1, 1], [], []>} : vector<128x160xbf16>, vector<160x192xbf16>, vector<128x192xf32> -> vector<128x192xf32>
    %105 = arith.addf %99, %104 : vector<128x192xf32>
    %c0_133 = arith.constant 0 : index
    %c5_134 = arith.constant 5 : index
    %c0_135 = arith.constant 0 : index
    %c0_136 = arith.constant 0 : index
    %106 = vector.load %arg15[%c0_133, %c5_134, %c0_135, %c0_136] : memref<2x14x8x160xbf16, #tpu.memory_space<vmem>>, vector<2x8x8x160xbf16>
    %107 = vector.shape_cast %106 : vector<2x8x8x160xbf16> to vector<128x160xbf16>
    %c5_137 = arith.constant 5 : index
    %c0_138 = arith.constant 0 : index
    %c0_139 = arith.constant 0 : index
    %108 = vector.load %arg8[%c5_137, %c0_138, %c0_139] : memref<7x160x192xbf16, #tpu.memory_space<vmem>>, vector<1x160x192xbf16>
    %109 = vector.shape_cast %108 : vector<1x160x192xbf16> to vector<160x192xbf16>
    %cst_140 = arith.constant dense<0.000000e+00> : vector<128x192xf32>
    %110 = tpu.matmul %107, %109, %cst_140 {dimension_numbers = #tpu.dot_dimension_numbers<[1], [0], [0], [1], [0, 0, 1, 1], [], []>} : vector<128x160xbf16>, vector<160x192xbf16>, vector<128x192xf32> -> vector<128x192xf32>
    %111 = arith.addf %105, %110 : vector<128x192xf32>
    %c0_141 = arith.constant 0 : index
    %c6_142 = arith.constant 6 : index
    %c0_143 = arith.constant 0 : index
    %c0_144 = arith.constant 0 : index
    %112 = vector.load %arg15[%c0_141, %c6_142, %c0_143, %c0_144] : memref<2x14x8x160xbf16, #tpu.memory_space<vmem>>, vector<2x8x8x160xbf16>
    %113 = vector.shape_cast %112 : vector<2x8x8x160xbf16> to vector<128x160xbf16>
    %c6_145 = arith.constant 6 : index
    %c0_146 = arith.constant 0 : index
    %c0_147 = arith.constant 0 : index
    %114 = vector.load %arg8[%c6_145, %c0_146, %c0_147] : memref<7x160x192xbf16, #tpu.memory_space<vmem>>, vector<1x160x192xbf16>
    %115 = vector.shape_cast %114 : vector<1x160x192xbf16> to vector<160x192xbf16>
    %cst_148 = arith.constant dense<0.000000e+00> : vector<128x192xf32>
    %116 = tpu.matmul %113, %115, %cst_148 {dimension_numbers = #tpu.dot_dimension_numbers<[1], [0], [0], [1], [0, 0, 1, 1], [], []>} : vector<128x160xbf16>, vector<160x192xbf16>, vector<128x192xf32> -> vector<128x192xf32>
    %117 = arith.addf %111, %116 : vector<128x192xf32>
    %c0_149 = arith.constant 0 : index
    %c0_150 = arith.constant 0 : index
    %118 = vector.load %arg9[%c0_149, %c0_150] : memref<1x192xf32, #tpu.memory_space<vmem>>, vector<1x192xf32>
    %119 = vector.broadcast %118 : vector<1x192xf32> to vector<128x192xf32>
    %120 = arith.addf %117, %119 : vector<128x192xf32>
    %cst_151 = arith.constant 0.000000e+00 : f32
    %121 = vector.broadcast %cst_151 : f32 to vector<128x192xf32>
    %122 = arith.maximumf %120, %121 : vector<128x192xf32>
    %123 = arith.truncf %122 : vector<128x192xf32> to vector<128x192xbf16>
    %c0_152 = arith.constant 0 : index
    %c0_153 = arith.constant 0 : index
    %124 = vector.load %arg10[%c0_152, %c0_153] : memref<192x1088xbf16, #tpu.memory_space<vmem>>, vector<192x1088xbf16>
    %cst_154 = arith.constant dense<0.000000e+00> : vector<128x1088xf32>
    %125 = tpu.matmul %9, %124, %cst_154 {dimension_numbers = #tpu.dot_dimension_numbers<[1], [0], [0], [1], [0, 0, 1, 1], [], []>} : vector<128x192xbf16>, vector<192x1088xbf16>, vector<128x1088xf32> -> vector<128x1088xf32>
    %c0_155 = arith.constant 0 : index
    %c0_156 = arith.constant 0 : index
    %126 = vector.load %arg11[%c0_155, %c0_156] : memref<192x1088xbf16, #tpu.memory_space<vmem>>, vector<192x1088xbf16>
    %cst_157 = arith.constant dense<0.000000e+00> : vector<128x1088xf32>
    %127 = tpu.matmul %123, %126, %cst_157 {dimension_numbers = #tpu.dot_dimension_numbers<[1], [0], [0], [1], [0, 0, 1, 1], [], []>} : vector<128x192xbf16>, vector<192x1088xbf16>, vector<128x1088xf32> -> vector<128x1088xf32>
    %128 = arith.addf %125, %127 : vector<128x1088xf32>
    %c0_158 = arith.constant 0 : index
    %c0_159 = arith.constant 0 : index
    %129 = vector.load %arg12[%c0_158, %c0_159] : memref<1x1088xf32, #tpu.memory_space<vmem>>, vector<1x1088xf32>
    %130 = vector.broadcast %129 : vector<1x1088xf32> to vector<128x1088xf32>
    %131 = arith.addf %128, %130 : vector<128x1088xf32>
    %132 = arith.extf %1 : vector<128x1088xbf16> to vector<128x1088xf32>
    %133 = arith.addf %132, %131 : vector<128x1088xf32>
    %cst_160 = arith.constant 0.000000e+00 : f32
    %134 = vector.broadcast %cst_160 : f32 to vector<128x1088xf32>
    %135 = arith.maximumf %133, %134 : vector<128x1088xf32>
    %136 = vector.shape_cast %135 : vector<128x1088xf32> to vector<2x64x1088xf32>
    %137 = arith.truncf %136 : vector<2x64x1088xf32> to vector<2x64x1088xbf16>
    %c0_161 = arith.constant 0 : index
    %c0_162 = arith.constant 0 : index
    %c0_163 = arith.constant 0 : index
    %138 = vector.load %arg13[%c0_161, %c0_162, %c0_163] : memref<2x64x1088xbf16, #tpu.memory_space<vmem>>, vector<2x64x1088xbf16>
    tpu.vector_store %arg13[%c0_161, %c0_162, %c0_163], %137 {strides = array<i32>} : memref<2x64x1088xbf16, #tpu.memory_space<vmem>>, vector<2x64x1088xbf16>,
    return
  }
  func.func @transform_0(%arg0: i32) -> (i32, i32, i32) {
    %c0_i32 = arith.constant 0 : i32
    %c0_i32_0 = arith.constant 0 : i32
    %c0_i32_1 = arith.constant 0 : i32
    return %arg0, %c0_i32, %c0_i32_0 : i32, i32, i32
  }
  func.func @transform_1(%arg0: i32) -> (i32, i32) {
    %c0_i32 = arith.constant 0 : i32
    %c0_i32_0 = arith.constant 0 : i32
    %c0_i32_1 = arith.constant 0 : i32
    return %c0_i32, %c0_i32_0 : i32, i32
  }
  func.func @transform_2(%arg0: i32) -> (i32, i32) {
    %c0_i32 = arith.constant 0 : i32
    %c0_i32_0 = arith.constant 0 : i32
    %c0_i32_1 = arith.constant 0 : i32
    return %c0_i32, %c0_i32_0 : i32, i32
  }
  func.func @transform_3(%arg0: i32) -> (i32, i32) {
    %c0_i32 = arith.constant 0 : i32
    %c0_i32_0 = arith.constant 0 : i32
    %c0_i32_1 = arith.constant 0 : i32
    return %c0_i32, %c0_i32_0 : i32, i32
  }
  func.func @transform_4(%arg0: i32) -> (i32, i32) {
    %c0_i32 = arith.constant 0 : i32
    %c0_i32_0 = arith.constant 0 : i32
    %c0_i32_1 = arith.constant 0 : i32
    return %c0_i32, %c0_i32_0 : i32, i32
  }
  func.func @transform_5(%arg0: i32) -> (i32, i32, i32) {
    %c0_i32 = arith.constant 0 : i32
    %c0_i32_0 = arith.constant 0 : i32
    %c0_i32_1 = arith.constant 0 : i32
    %c0_i32_2 = arith.constant 0 : i32
    return %c0_i32, %c0_i32_0, %c0_i32_1 : i32, i32, i32
  }
  func.func @transform_6(%arg0: i32) -> (i32, i32) {
    %c0_i32 = arith.constant 0 : i32
    %c0_i32_0 = arith.constant 0 : i32
    %c0_i32_1 = arith.constant 0 : i32
    return %c0_i32, %c0_i32_0 : i32, i32
  }
  func.func @transform_7(%arg0: i32) -> (i32, i32, i32) {
    %c0_i32 = arith.constant 0 : i32
    %c0_i32_0 = arith.constant 0 : i32
    %c0_i32_1 = arith.constant 0 : i32
    %c0_i32_2 = arith.constant 0 : i32
    return %c0_i32, %c0_i32_0, %c0_i32_1 : i32, i32, i32
  }
  func.func @transform_8(%arg0: i32) -> (i32, i32) {
    %c0_i32 = arith.constant 0 : i32
    %c0_i32_0 = arith.constant 0 : i32
    %c0_i32_1 = arith.constant 0 : i32
    return %c0_i32, %c0_i32_0 : i32, i32
  }
  func.func @transform_9(%arg0: i32) -> (i32, i32) {
    %c0_i32 = arith.constant 0 : i32
    %c0_i32_0 = arith.constant 0 : i32
    %c0_i32_1 = arith.constant 0 : i32
    return %c0_i32, %c0_i32_0 : i32, i32
  }
  func.func @transform_10(%arg0: i32) -> (i32, i32) {
    %c0_i32 = arith.constant 0 : i32
    %c0_i32_0 = arith.constant 0 : i32
    %c0_i32_1 = arith.constant 0 : i32
    return %c0_i32, %c0_i32_0 : i32, i32
  }
  func.func @transform_11(%arg0: i32) -> (i32, i32) {
    %c0_i32 = arith.constant 0 : i32
    %c0_i32_0 = arith.constant 0 : i32
    %c0_i32_1 = arith.constant 0 : i32
    return %c0_i32, %c0_i32_0 : i32, i32
  }
  func.func @transform_12(%arg0: i32) -> (i32, i32, i32) {
    %c0_i32 = arith.constant 0 : i32
    %c0_i32_0 = arith.constant 0 : i32
    %c0_i32_1 = arith.constant 0 : i32
    return %arg0, %c0_i32, %c0_i32_0 : i32, i32, i32
  }
}

</mosaic_0001>

<bundles_post_ra>
// kernel: inception_resnet_b.1
= control target key start
LH: loop header
LB: loop body
LE: loop exit
PB: predicated region body
PF: predicated region fallthrough
CT: control target
= control target key end

     0   :  { %17 = vsyncpa [#allocation5], 0  ;;  %s22843_s0 = inlined_call_operand.vmem [shape: bf16[4,64,1088], index: 0, kind: input, shape index: {}]   ;;  %s22844_s1 = inlined_call_operand.vmem [shape: bf16[1088,192], index: 1, kind: input, shape index: {}]   ;;  %s22845_s2 = inlined_call_operand.vmem [shape: f32[1,192], index: 2, kind: input, shape index: {}]   ;;  %s22846_s3 = inlined_call_operand.vmem [shape: bf16[1088,128], index: 3, kind: input, shape index: {}]   ;;  %s22847_s4 = inlined_call_operand.vmem [shape: f32[1,128], index: 4, kind: input, shape index: {}]   ;;  %s22848_s5 = inlined_call_operand.vmem [shape: bf16[7,128,160], index: 5, kind: input, shape index: {}]   ;;  %s22849_s6 = inlined_call_operand.vmem [shape: f32[1,160], index: 6, kind: input, shape index: {}]   ;;  %s22850_s7 = inlined_call_operand.vmem [shape: bf16[7,160,192], index: 7, kind: input, shape index: {}]   ;;  %s22851_s8 = inlined_call_operand.vmem [shape: f32[1,192], index: 8, kind: input, shape index: {}]   ;;  %s22852_s9 = inlined_call_operand.vmem [shape: bf16[192,1088], index: 9, kind: input, shape index: {}]   ;;  %s22853_s10 = inlined_call_operand.vmem [shape: bf16[192,1088], index: 10, kind: input, shape index: {}]   ;;  %s22854_s11 = inlined_call_operand.vmem [shape: f32[1,1088], index: 11, kind: input, shape index: {}]   ;;  %s22855_s12 = inlined_call_operand.hbm [shape: bf16[4,64,1088], index: 12, kind: output, shape index: {}]  }
   0x1   :  { %19 = vsyncpa [#allocation5 + $0x1], 0  ;;  %s17429_s21 = smov 0   ;;  %s17431_s22 = smov 0  }
   0x2   :  { %s17433_s23 = smov 0   ;;  %s17435_s24 = smov 0  }
   0x3 LB: > { %22933 = sst [smem:[#allocation7_spill]] %s17354_s23  ;;  %s17450_s25 = sadd.s32 4294967295, %s17358_s24   ;;  %s17358_s24 = sphi %s17435_s24, %s23165_s24   ;;  %s17354_s23 = sphi %s17433_s23, %s23170_s23   ;;  %s17350_s22 = sphi %s17431_s22, %s23169_s22   ;;  %s17346_s21 = sphi %s17429_s21, %s23168_s21  }
   0x4   : > { %s13491_s26 = sadd.s32 4294967294, %s17358_s24   ;;  %s17454_s27 = sadd.s32 1, %s17358_s24  }
   0x5   : > { %22934 = sst [smem:[#allocation8_spill]] %s17454_s27  ;;  %s289_s28 = sadd.s32 1, %s17354_s23 }
   0x6   : > { %s286_s29 = ssub.s32 %s17358_s24, %s17454_s27  ;;  %p299_p0 = scmp.ne.s32.totalorder %s17354_s23, %s17350_s22 }
   0x7   : > { %p287_p1 = scmp.eq.s32.totalorder %s286_s29, 0  ;;  %p300_p2 = scmp.eq.s32.totalorder %s17450_s25, 1 }
   0x8   : > { %p305_p3 = scmp.ne.s32.totalorder %s17350_s22, %s17346_s21  ;;  %p306_p4 = scmp.eq.s32.totalorder %s13491_s26, 1 }
   0x9   : > { %s17465_s30 = scalar_select %p287_p1, %s17354_s23, %s289_s28  }
   0xa   : > { %p17467_p5 = por %p300_p2, %p299_p0  ;;  %p17471_p6 = por %p306_p4, %p305_p3 }
   0xb   : > { %22935 = sst [smem:[#allocation9_spill]] %s17465_s30  ;;  %p13494_p7 = scmp.ge.s32.totalorder %s17358_s24, 1 }
   0xc   : > { %s22937_s14 = scalar_select %p17471_p6, 1, 0 }
   0xd   : > { %p367_p8 = scmp.lt.s32.totalorder %s17358_s24, 3 }
   0xe   : > { %22938 = sst [smem:[#allocation10_spill]] %s22937_s14 }
   0xf   : > { %p368_p9 = pnand %p13494_p7, %p367_p8 }
  0x11   : > { %371 = sbr.rel (%p368_p9) target bundleno = 2387 (0x953), region = 68 }
  0x18   : > { %v16089_v0 = vld [vmem:[%s22846_s3 + $0x40] sm:$0xff]   ;;  %s13495_s17 = sshll.u32 %s17450_s25, 1  ;;  %v16091_v2 = vld [vmem:[%s22846_s3 + $0x48] sm:$0xff]   ;;  %v16093_v4 = vld [vmem:[%s22846_s3 + $0x50] sm:$0xff]   ;;  %vm1687_vm0 = vcmask 523264   ;;  %vm3385_vm1 = vcmask 1041408  }
  0x19   : > { %v16090_v1 = vld [vmem:[%s22846_s3] sm:$0xff]   ;;  %p411_p10 = scmp.lt.s32.totalorder %s13495_s17, 3  ;;  %15056 = vmatprep.subr.bf16.mxu1 %v16089_v0  ;;  %v16092_v3 = vld [vmem:[%s22846_s3 + $0x8] sm:$0xff]   ;;  %v16094_v5 = vld [vmem:[%s22846_s3 + $0x10] sm:$0xff]   ;;  %vm3386_vm2 = vsmask.f32 1280 }
  0x1a   : > { %15057 = vmatpush3.bf16.msra.mxu1 %v16090_v1  ;;  %v16095_v6 = vld [vmem:[%s22846_s3 + $0x58] sm:$0xff]   ;;  %v16097_v8 = vld [vmem:[%s22846_s3 + $0x60] sm:$0xff]   ;;  %v16099_v10 = vld [vmem:[%s22846_s3 + $0x68] sm:$0xff]   ;;  %vm3436_vm4 = vcmask 1042433   ;;  %vm3437_vm5 = vsmask.f32 7942 }
  0x1b   : > { %15058 = vmatprep.subr.bf16.mxu1 %v16091_v2  ;;  %s23172_s17 = smov (!%p411_p10, %s13495_s17), 3  ;;  %v16096_v7 = vld [vmem:[%s22846_s3 + $0x18] sm:$0xff]   ;;  %v16098_v9 = vld [vmem:[%s22846_s3 + $0x20] sm:$0xff]   ;;  %v16100_v14 = vld [vmem:[%s22846_s3 + $0x28] sm:$0xff]   ;;  %vm3703_vm7 = vcmask 1043457   ;;  %vm4607_vm12 = vcmask 1042432  }
  0x1c   : > { %s16045_s26 = smul.u32 288, %s23172_s17  ;;  %v16101_v15 = vld [vmem:[%s22846_s3 + $0x70] sm:$0xff]   ;;  %v16103_v17 = vld [vmem:[%s22846_s3 + $0x78] sm:$0xff]   ;;  %v16107_v19 = vld [vmem:[%s22846_s3 + $0xc0] sm:$0xff]   ;;  %vm3849_vm9 = vsmask.f32 3328 }
  0x1d   : > { %v16102_v16 = vld [vmem:[%s22846_s3 + $0x30] sm:$0xff]   ;;  %v16104_v18 = vld [vmem:[%s22846_s3 + $0x38] sm:$0xff]   ;;  %v16108_v23 = vld [vmem:[%s22846_s3 + $0x80] sm:$0xff]   ;;  %vm3850_vm10 = vsmask.f32 7440  ;;  %vm4608_vm13 = vcmask 1046532  }
  0x1e   : > { %15059 = vmatpush3.bf16.msra.mxu1 %v16092_v3  ;;  %s17508_s18 = scalar_lea.vmem %s22843_s0, %s16045_s26  ;;  %v16111_v25 = vld [vmem:[%s22846_s3 + $0xc8] sm:$0xff]   ;;  %v16115_v29 = vld [vmem:[%s22846_s3 + $0xd0] sm:$0xff]   ;;  %v16119_v33 = vld [vmem:[%s22846_s3 + $0xd8] sm:$0xff]   ;;  %vm5577_vm15 = vcmask 1045508   ;;  %s407_s23 = sand.u32 1, %s17350_s22  }
  0x1f   : > { %15060 = vmatprep.subr.bf16.mxu1 %v16093_v4  ;;  %v419_v11 = vld [vmem:[%s17508_s18] sm:$0xff]  ;;  %v429_v20 = vld [vmem:[%s17508_s18 + $0x48] sm:$0xff]  ;;  %v439_v27 = vld [vmem:[%s17508_s18 + $0x90] sm:$0xff]  ;;  %s16044_s27 = smul.u32 576, %s407_s23 }
  0x20   : > { %v424_v12 = vld [vmem:[%s17508_s18 + $0x24] sm:$0xff]  ;;  %v434_v21 = vld [vmem:[%s17508_s18 + $0x6c] sm:$0xff]  ;;  %v444_v28 = vld [vmem:[%s17508_s18 + $0xb4] sm:$0xff]  ;;  %s16046_s15 = smul.u32 9216, %s17450_s25  ;;  %s22802_s25 = scalar_lea.sflag [#allocation5], %s407_s23 }
  0x21   : > { %v13498_v13 = vcombine.high %v419_v11, %v424_v12  ;;  %v17538_v22 = vcombine.low %v419_v11, %v424_v12  ;;  %v17543_v24 = vcombine.high %v429_v20, %v434_v21  ;;  %v16112_v26 = vld [vmem:[%s22846_s3 + $0x88] sm:$0xff]   ;;  %v17558_v30 = vcombine.low %v429_v20, %v434_v21  ;;  %v16116_v32 = vld [vmem:[%s22846_s3 + $0x90] sm:$0xff]   ;;  %v449_v34 = vld [vmem:[%s17508_s18 + $0xd8] sm:$0xff]  ;;  %s22118_s14 = scalar_lea.vmem [#allocation4], %s16044_s27  ;;  %s17361_s27 = smov [#allocation4]  }
  0x22   : > { %15061 = vmatpush3.bf16.msra.mxu1 %v16094_v5  ;;  %v17560_v31 = vcombine.high %v439_v27, %v444_v28  ;;  %v454_v35 = vld [vmem:[%s17508_s18 + $0xfc] sm:$0xff]  ;;  %v17578_v38 = vcombine.low %v439_v27, %v444_v28  ;;  %v16127_v41 = vld [vmem:[%s22846_s3 + $0xe8] sm:$0xff]   ;;  %v16131_v45 = vld [vmem:[%s22846_s3 + $0xf0] sm:$0xff]   ;;  %s13429_s16 = sshll.u32 %s22118_s14, 4  ;;  %s17300_s20 = sshll.u32 %s17361_s27, 4  ;;  %s22796_s16 = int_to_ptr.vmem [resolvable:$true] %s13429_s16  ;;  %s17301_s20 = int_to_ptr.vmem [resolvable:$false] %s17300_s20 }
  0x23   : > { %15062 = vmatprep.subr.bf16.mxu1 %v16095_v6  ;;  %2908 = vmatprep.mubr.bf16.mxu1 %v13498_v13  ;;  %v16120_v36 = vld [vmem:[%s22846_s3 + $0x98] sm:$0xff]   ;;  %v16123_v37 = vld [vmem:[%s22846_s3 + $0xe0] sm:$0xff]   ;;  %v17580_v39 = vcombine.high %v449_v34, %v454_v35  ;;  %v16128_v44 = vld [vmem:[%s22846_s3 + $0xa8] sm:$0xff]   ;;  %v17598_v46 = vcombine.low %v449_v34, %v454_v35  ;;  %s17296_s17 = scalar_lea.vmem %s22796_s16, 9216  ;;  %s17302_s26 = scalar_lea.vmem %s17301_s20, 18432 }
  0x24   : > { %1744 = vmatprep.mubr.bf16.mxu0 %v13498_v13  ;;  %v16124_v40 = vld [vmem:[%s22846_s3 + $0xa0] sm:$0xff]   ;;  %v16132_v48 = vld [vmem:[%s22846_s3 + $0xb0] sm:$0xff]   ;;  %v16135_v49 = vld [vmem:[%s22846_s3 + $0xf8] sm:$0xff]   ;;  %p17297_p11 = scmp.ne.s32.totalorder %s22796_s16, %s17296_s17  ;;  %p17303_p0 = scmp.lt.s32.totalorder %s22796_s16, %s17301_s20 }
  0x25   : > { %v459_v42 = vld [vmem:[%s17508_s18 + $0x120] sm:$0xff]  ;;  %v469_v50 = vld [vmem:[%s17508_s18 + $0x168] sm:$0xff]  ;;  %v16136_v52 = vld [vmem:[%s22846_s3 + $0xb8] sm:$0xff]   ;;  %p17304_p1 = scmp.lt.s32.totalorder %s17302_s26, %s17296_s17 }
  0x26   : > { %15063 = vmatpush3.bf16.msra.mxu1 %v16096_v7  ;;  %v464_v43 = vld [vmem:[%s17508_s18 + $0x144] sm:$0xff]  ;;  %v474_v51 = vld [vmem:[%s17508_s18 + $0x18c] sm:$0xff]  ;;  %v484_v57 = vld [vmem:[%s17508_s18 + $0x1d4] sm:$0xff]  ;;  %p17298_p12 = pnand %p17297_p11, %p17467_p5 }
  0x27   : > { %15064 = vmatprep.subr.bf16.mxu1 %v16097_v8  ;;  %v17600_v47 = vcombine.high %v459_v42, %v464_v43  ;;  %v16139_v53 = vld [vmem:[%s22846_s3 + $0x140] sm:$0xff]   ;;  %v17618_v54 = vcombine.low %v459_v42, %v464_v43  ;;  %v17620_v55 = vcombine.high %v469_v50, %v474_v51  ;;  %v479_v56 = vld [vmem:[%s17508_s18 + $0x1b0] sm:$0xff]  ;;  %v17626_v58 = vcombine.low %v469_v50, %v474_v51  ;;  %v489_v60 = vld [vmem:[%s17508_s18 + $0x1f8] sm:$0xff]  ;;  %p17305_p2 = por %p17304_p1, %p17303_p0 }
  0x28   : > { %v17628_v59 = vcombine.high %v479_v56, %v484_v57  ;;  %v494_v61 = vld [vmem:[%s17508_s18 + $0x21c] sm:$0xff]  ;;  %v17634_v62 = vcombine.low %v479_v56, %v484_v57  ;;  %v420_v0 = vld [vmem:[%s17508_s18 + $0x8] sm:$0xff]  ;;  %v430_v4 = vld [vmem:[%s17508_s18 + $0x50] sm:$0xff]  ;;  %p17299_p13 = pneg %p17298_p12 }
  0x29   : > { %v17636_v63 = vcombine.high %v489_v60, %v494_v61  ;;  %v425_v1 = vld [vmem:[%s17508_s18 + $0x2c] sm:$0xff]  ;;  %v17642_v2 = vcombine.low %v489_v60, %v494_v61  ;;  %v435_v5 = vld [vmem:[%s17508_s18 + $0x74] sm:$0xff]  ;;  %v16140_v6 = vld [vmem:[%s22846_s3 + $0x100] sm:$0xff]  }
  0x2a   : > { %15065 = vmatpush3.bf16.msra.mxu1 %v16098_v9  ;;  %v17644_v3 = vcombine.high %v420_v0, %v425_v1  ;;  %v17653_v7 = vcombine.low %v420_v0, %v425_v1  ;;  %v16143_v8 = vld [vmem:[%s22846_s3 + $0x148] sm:$0xff]   ;;  %v17658_v9 = vcombine.high %v430_v4, %v435_v5  ;;  %v440_v11 = vld [vmem:[%s17508_s18 + $0x98] sm:$0xff]  ;;  %v16147_v13 = vld [vmem:[%s22846_s3 + $0x150] sm:$0xff]   ;;  %p17306_p3 = pnand %p17305_p2, %p17299_p13 }
  0x2b   : > { %15066 = vmatprep.subr.bf16.mxu1 %v16099_v10  ;;  %v16144_v10 = vld [vmem:[%s22846_s3 + $0x108] sm:$0xff]   ;;  %v445_v12 = vld [vmem:[%s17508_s18 + $0xbc] sm:$0xff]  ;;  %v16164_v35 = vld [vmem:[%s22846_s3 + $0x130] sm:$0xff]  }
  0x2c   : > { %v16152_v20 = vld [vmem:[%s22846_s3 + $0x118] sm:$0xff]   ;;  %v16155_v21 = vld [vmem:[%s22846_s3 + $0x160] sm:$0xff]   ;;  %v16160_v28 = vld [vmem:[%s22846_s3 + $0x128] sm:$0xff]  }
  0x2d   : > { %v475_v42 = vld [vmem:[%s17508_s18 + $0x194] sm:$0xff]  ;;  %v16171_v43 = vld [vmem:[%s22846_s3 + $0x1c0] sm:$0xff]   ;;  %vm18100_vm3 = vmand %vm3385_vm1, %vm3386_vm2 }
  0x2e   : > { %15067 = vmatpush3.bf16.msra.mxu1 %v16100_v14  ;;  %v16148_v14 = vld [vmem:[%s22846_s3 + $0x110] sm:$0xff]   ;;  %vm18110_vm6 = vmand %vm3436_vm4, %vm3437_vm5  ;;  %vm6546_vm4 = vcmask 1044484  }
  0x2f   : > { %15068 = vmatprep.subr.bf16.mxu1 %v16101_v15  ;;  %v17673_v15 = vcombine.low %v430_v4, %v435_v5  ;;  %v421_v60 = vld [vmem:[%s17508_s18 + $0x10] sm:$0xff]  ;;  %v431_v4 = vld [vmem:[%s17508_s18 + $0x58] sm:$0xff]  ;;  %vm18504_vm8 = vmand %vm3703_vm7, %vm3437_vm5  ;;  %vm4965_vm7 = vsmask.f32 6416 }
  0x30   : > { %v426_v61 = vld [vmem:[%s17508_s18 + $0x34] sm:$0xff]  ;;  %v436_v5 = vld [vmem:[%s17508_s18 + $0x7c] sm:$0xff]  ;;  %vm18678_vm11 = vmor %vm3849_vm9, %vm3850_vm10  ;;  %vm5933_vm9 = vsmask.f32 5392 }
  0x31   : > { %v17756_v1 = vcombine.high %v421_v60, %v426_v61  ;;  %vm18938_vm14 = vmor %vm4607_vm12, %vm4608_vm13  ;;  %vm7337_vm13 = vcmask 261120  }
  0x32   : > { %15069 = vmatpush3.bf16.msra.mxu1 %v16102_v16  ;;  %v16151_v16 = vld [vmem:[%s22846_s3 + $0x158] sm:$0xff]   ;;  %vm19932_vm10 = vmor %vm3386_vm2, %vm5933_vm9  ;;  %vm6978_vm2 = vcmask 1043456  }
  0x33   : > { %15070 = vmatprep.subr.bf16.mxu1 %v16103_v17  ;;  %v17678_v17 = vcombine.high %v440_v11, %v445_v12  ;;  %22940 = vst [vmem:[#allocation12_spill] sm:$0xff] %v17756_v1 }
  0x36   : > { %15071 = vmatpush3.bf16.msra.mxu1 %v16104_v18  ;;  %v450_v18 = vld [vmem:[%s17508_s18 + $0xe0] sm:$0xff] }
  0x37   : > { %15120 = vmatprep.subr.bf16.mxu1 %v16107_v19  ;;  %v455_v19 = vld [vmem:[%s17508_s18 + $0x104] sm:$0xff] }
  0x38   : > { %v17698_v27 = vcombine.high %v450_v18, %v455_v19  ;;  %v17710_v34 = vcombine.low %v450_v18, %v455_v19  ;;  %v17782_v18 = vcombine.low %v431_v4, %v436_v5 }
  0x39   : > { %2909 = vmatmul.mubr.bf16.vlgmr.msra.gmra.mrb[0].mxu1 %v17538_v22 }
  0x3a   : > { %15121 = vmatpush3.bf16.msra.mxu1 %v16108_v23  ;;  %2916 = vmatprep.mubr.bf16.mxu1 %v17543_v24  ;;  %v16156_v23 = vld [vmem:[%s22846_s3 + $0x120] sm:$0xff]   ;;  %22943 = vst [vmem:[#allocation15_spill] sm:$0xff] %v17782_v18 }
  0x3b   : > { %15122 = vmatprep.subr.bf16.mxu1 %v16111_v25  ;;  %v17693_v25 = vcombine.low %v440_v11, %v445_v12  ;;  %v16175_v11 = vld [vmem:[%s22846_s3 + $0x1c8] sm:$0xff]  }
  0x3c   : > { %v16176_v12 = vld [vmem:[%s22846_s3 + $0x188] sm:$0xff]  }
  0x3e   : > { %15123 = vmatpush3.bf16.msra.mxu1 %v16112_v26  ;;  %v16159_v26 = vld [vmem:[%s22846_s3 + $0x168] sm:$0xff]  }
  0x3f   : > { %15124 = vmatprep.subr.bf16.mxu1 %v16115_v29  ;;  %v460_v29 = vld [vmem:[%s17508_s18 + $0x128] sm:$0xff] }
  0x41   : > { %2917 = vmatmul.mubr.bf16.gmra.mrb[4].mxu1 %v17558_v30 }
  0x42   : > { %2924 = vmatprep.mubr.bf16.mxu1 %v17560_v31  ;;  %15125 = vmatpush3.bf16.msra.mxu1 %v16116_v32  ;;  %v465_v32 = vld [vmem:[%s17508_s18 + $0x14c] sm:$0xff] }
  0x43   : > { %15126 = vmatprep.subr.bf16.mxu1 %v16119_v33  ;;  %v16163_v33 = vld [vmem:[%s22846_s3 + $0x170] sm:$0xff]  }
  0x46   : > { %15127 = vmatpush3.bf16.msra.mxu1 %v16120_v36  ;;  %v17715_v36 = vcombine.high %v460_v29, %v465_v32 }
  0x47   : > { %15128 = vmatprep.subr.bf16.mxu1 %v16123_v37  ;;  %v16167_v37 = vld [vmem:[%s22846_s3 + $0x178] sm:$0xff]  }
  0x49   : > { %2925 = vmatmul.mubr.bf16.gmra.mrb[8].mxu1 %v17578_v38 }
  0x4a   : > { %2932 = vmatprep.mubr.bf16.mxu1 %v17580_v39  ;;  %15129 = vmatpush3.bf16.msra.mxu1 %v16124_v40  ;;  %v16168_v40 = vld [vmem:[%s22846_s3 + $0x138] sm:$0xff]  }
  0x4b   : > { %15130 = vmatprep.subr.bf16.mxu1 %v16127_v41  ;;  %v470_v41 = vld [vmem:[%s17508_s18 + $0x170] sm:$0xff] }
  0x4c   : > { %v17738_v50 = vcombine.low %v470_v41, %v475_v42 }
  0x4e   : > { %15131 = vmatpush3.bf16.msra.mxu1 %v16128_v44  ;;  %v17730_v44 = vcombine.low %v460_v29, %v465_v32  ;;  %v16187_v29 = vld [vmem:[%s22846_s3 + $0x1e0] sm:$0xff]  }
  0x4f   : > { %15132 = vmatprep.subr.bf16.mxu1 %v16131_v45  ;;  %v17732_v45 = vcombine.high %v470_v41, %v475_v42  ;;  %v461_v41 = vld [vmem:[%s17508_s18 + $0x130] sm:$0xff] }
  0x50   : > { %v466_v42 = vld [vmem:[%s17508_s18 + $0x154] sm:$0xff] }
  0x51   : > { %2933 = vmatmul.mubr.bf16.gmra.mrb[12].mxu1 %v17598_v46 }
  0x52   : > { %2940 = vmatprep.mubr.bf16.mxu1 %v17600_v47  ;;  %15133 = vmatpush3.bf16.msra.mxu1 %v16132_v48  ;;  %v480_v48 = vld [vmem:[%s17508_s18 + $0x1b8] sm:$0xff] }
  0x53   : > { %15134 = vmatprep.subr.bf16.mxu1 %v16135_v49  ;;  %v485_v49 = vld [vmem:[%s17508_s18 + $0x1dc] sm:$0xff] }
  0x54   : > { %v17740_v51 = vcombine.high %v480_v48, %v485_v49  ;;  %v17746_v56 = vcombine.low %v480_v48, %v485_v49  ;;  %v17824_v49 = vcombine.high %v461_v41, %v466_v42 }
  0x56   : > { %15135 = vmatpush3.bf16.msra.mxu1 %v16136_v52  ;;  %v490_v52 = vld [vmem:[%s17508_s18 + $0x200] sm:$0xff]  ;;  %22948 = vst [vmem:[#allocation20_spill] sm:$0xff] %v17824_v49 }
  0x57   : > { %15184 = vmatprep.subr.bf16.mxu1 %v16139_v53  ;;  %v495_v53 = vld [vmem:[%s17508_s18 + $0x224] sm:$0xff] }
  0x58   : > { %v17748_v57 = vcombine.high %v490_v52, %v495_v53  ;;  %v17754_v0 = vcombine.low %v490_v52, %v495_v53  ;;  %v16196_v52 = vld [vmem:[%s22846_s3 + $0x1b0] sm:$0xff]   ;;  %v16199_v53 = vld [vmem:[%s22846_s3 + $0x1f8] sm:$0xff]  }
  0x59   : > { %2941 = vmatmul.mubr.bf16.gmra.mrb[16].mxu1 %v17618_v54 }
  0x5a   : > { %2948 = vmatprep.mubr.bf16.mxu1 %v17620_v55  ;;  %22939 = vst [vmem:[#allocation11_spill] sm:$0xff] %v17754_v0 }
  0x61   : > { %2949 = vmatmul.mubr.bf16.gmra.mrb[20].mxu1 %v17626_v58 }
  0x62   : > { %2956 = vmatprep.mubr.bf16.mxu1 %v17628_v59 }
  0x69   : > { %2957 = vmatmul.mubr.bf16.gmra.mrb[24].mxu1 %v17634_v62 }
  0x6a   : > { %2964 = vmatprep.mubr.bf16.mxu1 %v17636_v63 }
  0x71   : > { %2965 = vmatmul.mubr.bf16.gmra.mrb[28].mxu1 %v17642_v2 }
  0x72   : > { %3005 = vmatprep.mubr.bf16.mxu1 %v17644_v3 }
  0x79   : > { %3006 = vmatmul.mubr.bf16.vlgmr.msra.gmra.mrb[32].mxu1 %v17653_v7 }
  0x7a   : > { %15185 = vmatpush3.bf16.msra.mxu1 %v16140_v6  ;;  %3013 = vmatprep.mubr.bf16.mxu1 %v17658_v9  ;;  %v17762_v6 = vcombine.low %v421_v60, %v426_v61  ;;  %v16200_v60 = vld [vmem:[%s22846_s3 + $0x1b8] sm:$0xff]  }
  0x7b   : > { %15186 = vmatprep.subr.bf16.mxu1 %v16143_v8  ;;  %v16172_v8 = vld [vmem:[%s22846_s3 + $0x180] sm:$0xff]   ;;  %v471_v61 = vld [vmem:[%s17508_s18 + $0x178] sm:$0xff] }
  0x7c   : > { %22941 = vst [vmem:[#allocation13_spill] sm:$0xff] %v17762_v6 }
  0x7e   : > { %15187 = vmatpush3.bf16.msra.mxu1 %v16144_v10  ;;  %v17767_v10 = vcombine.high %v431_v4, %v436_v5  ;;  %v476_v4 = vld [vmem:[%s17508_s18 + $0x19c] sm:$0xff] }
  0x7f   : > { %15188 = vmatprep.subr.bf16.mxu1 %v16147_v13  ;;  %v441_v13 = vld [vmem:[%s17508_s18 + $0xa0] sm:$0xff] }
  0x80   : > { %22942 = vst [vmem:[#allocation14_spill] sm:$0xff] %v17767_v10  ;;  %v16203_v5 = vld [vmem:[%s22846_s3 + $0x200] sm:$0xff]  }
  0x81   : > { %3014 = vmatmul.mubr.bf16.gmra.mrb[36].mxu1 %v17673_v15 }
  0x82   : > { %3021 = vmatprep.mubr.bf16.mxu1 %v17678_v17  ;;  %15189 = vmatpush3.bf16.msra.mxu1 %v16148_v14  ;;  %v446_v14 = vld [vmem:[%s17508_s18 + $0xc4] sm:$0xff] }
  0x83   : > { %15190 = vmatprep.subr.bf16.mxu1 %v16151_v16  ;;  %v16179_v16 = vld [vmem:[%s22846_s3 + $0x1d0] sm:$0xff]   ;;  %v17784_v19 = vcombine.high %v441_v13, %v446_v14  ;;  %v17802_v32 = vcombine.low %v441_v13, %v446_v14  ;;  %v486_v13 = vld [vmem:[%s17508_s18 + $0x1e4] sm:$0xff]  ;;  %v17850_v14 = vcombine.low %v471_v61, %v476_v4 }
  0x85   : > { %22944 = vst [vmem:[#allocation16_spill] sm:$0xff] %v17784_v19  ;;  %22945 = vst [vmem:[#allocation17_spill] sm:$0xff] %v17802_v32 }
  0x86   : > { %15191 = vmatpush3.bf16.msra.mxu1 %v16152_v20  ;;  %v16180_v20 = vld [vmem:[%s22846_s3 + $0x190] sm:$0xff]   ;;  %22951 = vst [vmem:[#allocation23_spill] sm:$0xff] %v17850_v14 }
  0x87   : > { %15192 = vmatprep.subr.bf16.mxu1 %v16155_v21  ;;  %v16183_v21 = vld [vmem:[%s22846_s3 + $0x1d8] sm:$0xff]  }
  0x89   : > { %3022 = vmatmul.mubr.bf16.gmra.mrb[40].mxu1 %v17693_v25 }
  0x8a   : > { %3029 = vmatprep.mubr.bf16.mxu1 %v17698_v27  ;;  %15193 = vmatpush3.bf16.msra.mxu1 %v16156_v23  ;;  %v16184_v23 = vld [vmem:[%s22846_s3 + $0x198] sm:$0xff]  }
  0x8b   : > { %15194 = vmatprep.subr.bf16.mxu1 %v16159_v26  ;;  %v451_v26 = vld [vmem:[%s17508_s18 + $0xe8] sm:$0xff] }
  0x8e   : > { %15195 = vmatpush3.bf16.msra.mxu1 %v16160_v28  ;;  %v456_v28 = vld [vmem:[%s17508_s18 + $0x10c] sm:$0xff] }
  0x8f   : > { %15196 = vmatprep.subr.bf16.mxu1 %v16163_v33  ;;  %v17804_v33 = vcombine.high %v451_v26, %v456_v28  ;;  %v17822_v48 = vcombine.low %v451_v26, %v456_v28  ;;  %v422_v28 = vld [vmem:[%s17508_s18 + $0x18] sm:$0xff] }
  0x91   : > { %3030 = vmatmul.mubr.bf16.gmra.mrb[44].mxu1 %v17710_v34  ;;  %22946 = vst [vmem:[#allocation18_spill] sm:$0xff] %v17804_v33  ;;  %22947 = vst [vmem:[#allocation19_spill] sm:$0xff] %v17822_v48 }
  0x92   : > { %3037 = vmatprep.mubr.bf16.mxu1 %v17715_v36  ;;  %15197 = vmatpush3.bf16.msra.mxu1 %v16164_v35  ;;  %v16188_v35 = vld [vmem:[%s22846_s3 + $0x1a0] sm:$0xff]  }
  0x93   : > { %15198 = vmatprep.subr.bf16.mxu1 %v16167_v37  ;;  %v16191_v37 = vld [vmem:[%s22846_s3 + $0x1e8] sm:$0xff]  }
  0x96   : > { %15199 = vmatpush3.bf16.msra.mxu1 %v16168_v40  ;;  %v16192_v40 = vld [vmem:[%s22846_s3 + $0x1a8] sm:$0xff]  }
  0x97   : > { %15248 = vmatprep.subr.bf16.mxu1 %v16171_v43  ;;  %v16195_v43 = vld [vmem:[%s22846_s3 + $0x1f0] sm:$0xff]  }
  0x99   : > { %3038 = vmatmul.mubr.bf16.gmra.mrb[48].mxu1 %v17730_v44 }
  0x9a   : > { %3045 = vmatprep.mubr.bf16.mxu1 %v17732_v45 }
  0xa1   : > { %3046 = vmatmul.mubr.bf16.gmra.mrb[52].mxu1 %v17738_v50 }
  0xa2   : > { %3053 = vmatprep.mubr.bf16.mxu1 %v17740_v51 }
  0xa9   : > { %3054 = vmatmul.mubr.bf16.gmra.mrb[56].mxu1 %v17746_v56 }
  0xaa   : > { %3061 = vmatprep.mubr.bf16.mxu1 %v17748_v57 }
  0xb1   : > { %3062 = vmatmul.mubr.bf16.gmra.mrb[60].mxu1 %v17754_v0 }
  0xb2   : > { %3102 = vmatprep.mubr.bf16.mxu1 %v17756_v1 }
  0xb9   : > { %3103 = vmatmul.mubr.bf16.vlgmr.msra.gmra.mrb[64].mxu1 %v17762_v6 }
  0xba   : > { %15249 = vmatpush3.bf16.msra.mxu1 %v16172_v8  ;;  %3110 = vmatprep.mubr.bf16.mxu1 %v17767_v10  ;;  %v17842_v8 = vcombine.low %v461_v41, %v466_v42  ;;  %v437_v41 = vld [vmem:[%s17508_s18 + $0x84] sm:$0xff] }
  0xbb   : > { %15250 = vmatprep.subr.bf16.mxu1 %v16175_v11  ;;  %v17844_v11 = vcombine.high %v471_v61, %v476_v4  ;;  %v16213_v61 = vld [vmem:[%s22846_s3 + $0x210] sm:$0xff]  }
  0xbc   : > { %22949 = vst [vmem:[#allocation21_spill] sm:$0xff] %v17842_v8 }
  0xbd   : > { %22950 = vst [vmem:[#allocation22_spill] sm:$0xff] %v17844_v11 }
  0xbe   : > { %15251 = vmatpush3.bf16.msra.mxu1 %v16176_v12  ;;  %v481_v12 = vld [vmem:[%s17508_s18 + $0x1c0] sm:$0xff] }
  0xbf   : > { %15252 = vmatprep.subr.bf16.mxu1 %v16179_v16  ;;  %v17852_v16 = vcombine.high %v481_v12, %v486_v13 }
  0xc1   : > { %3111 = vmatmul.mubr.bf16.gmra.mrb[68].mxu1 %v17782_v18  ;;  %22952 = vst [vmem:[#allocation24_spill] sm:$0xff] %v17852_v16 }
  0xc2   : > { %3118 = vmatprep.mubr.bf16.mxu1 %v17784_v19  ;;  %15253 = vmatpush3.bf16.msra.mxu1 %v16180_v20  ;;  %v491_v20 = vld [vmem:[%s17508_s18 + $0x208] sm:$0xff] }
  0xc3   : > { %15254 = vmatprep.subr.bf16.mxu1 %v16183_v21  ;;  %v496_v21 = vld [vmem:[%s17508_s18 + $0x22c] sm:$0xff] }
  0xc4   : > { %v17860_v26 = vcombine.high %v491_v20, %v496_v21 }
  0xc6   : > { %15255 = vmatpush3.bf16.msra.mxu1 %v16184_v23  ;;  %v17858_v23 = vcombine.low %v481_v12, %v486_v13  ;;  %22954 = vst [vmem:[#allocation26_spill] sm:$0xff] %v17860_v26  ;;  %v16218_v12 = vld [vmem:[%s22846_s3 + $0x218] sm:$0xff]  }
  0xc7   : > { %15256 = vmatprep.subr.bf16.mxu1 %v16187_v29  ;;  %v427_v29 = vld [vmem:[%s17508_s18 + $0x3c] sm:$0xff] }
  0xc8   : > { %22953 = vst [vmem:[#allocation25_spill] sm:$0xff] %v17858_v23  ;;  %v17874_v42 = vcombine.low %v422_v28, %v427_v29 }
  0xc9   : > { %3119 = vmatmul.mubr.bf16.gmra.mrb[72].mxu1 %v17802_v32  ;;  %v488_v32 = vld [vmem:[%s17508_s18 + $0x1f4] sm:$0xf] }
  0xca   : > { %3126 = vmatprep.mubr.bf16.mxu1 %v17804_v33  ;;  %15257 = vmatpush3.bf16.msra.mxu1 %v16188_v35  ;;  %v17866_v35 = vcombine.low %v491_v20, %v496_v21  ;;  %22957 = vst [vmem:[#allocation29_spill] sm:$0xff] %v17874_v42  ;;  %v452_v20 = vld [vmem:[%s17508_s18 + $0xf0] sm:$0xff]  ;;  %v473_v33 = vld [vmem:[%s17508_s18 + $0x188] sm:$0xf] }
  0xcb   : > { %15258 = vmatprep.subr.bf16.mxu1 %v16191_v37  ;;  %v17868_v37 = vcombine.high %v422_v28, %v427_v29  ;;  %v457_v21 = vld [vmem:[%s17508_s18 + $0x114] sm:$0xff] }
  0xcc   : > { %22955 = vst [vmem:[#allocation27_spill] sm:$0xff] %v17866_v35  ;;  %v17901_v28 = vcombine.high %v452_v20, %v457_v21  ;;  %v462_v29 = vld [vmem:[%s17508_s18 + $0x138] sm:$0xff] }
  0xcd   : > { %22956 = vst [vmem:[#allocation28_spill] sm:$0xff] %v17868_v37 }
  0xce   : > { %15259 = vmatpush3.bf16.msra.mxu1 %v16192_v40  ;;  %v432_v40 = vld [vmem:[%s17508_s18 + $0x60] sm:$0xff]  ;;  %22962 = vst [vmem:[#allocation34_spill] sm:$0xff] %v17901_v28 }
  0xcf   : > { %15260 = vmatprep.subr.bf16.mxu1 %v16195_v43  ;;  %v16208_v43 = vld [vmem:[%s22846_s3 + $0x208] sm:$0xff]   ;;  %v17888_v4 = vcombine.low %v432_v40, %v437_v41 }
  0xd1   : > { %3127 = vmatmul.mubr.bf16.gmra.mrb[76].mxu1 %v17822_v48  ;;  %22959 = vst [vmem:[#allocation31_spill] sm:$0xff] %v17888_v4 }
  0xd2   : > { %3134 = vmatprep.mubr.bf16.mxu1 %v17824_v49  ;;  %15261 = vmatpush3.bf16.msra.mxu1 %v16196_v52  ;;  %v17879_v52 = vcombine.high %v432_v40, %v437_v41  ;;  %v467_v40 = vld [vmem:[%s17508_s18 + $0x15c] sm:$0xff] }
  0xd3   : > { %15262 = vmatprep.subr.bf16.mxu1 %v16199_v53  ;;  %v442_v53 = vld [vmem:[%s17508_s18 + $0xa8] sm:$0xff]  ;;  %v458_v49 = vld [vmem:[%s17508_s18 + $0x11c] sm:$0xf] }
  0xd4   : > { %22958 = vst [vmem:[#allocation30_spill] sm:$0xff] %v17879_v52 }
  0xd6   : > { %15263 = vmatpush3.bf16.msra.mxu1 %v16200_v60  ;;  %v447_v60 = vld [vmem:[%s17508_s18 + $0xcc] sm:$0xff] }
  0xd7   : > { %15324 = vmatprep.subr.bf16.mxu1 %v16203_v5  ;;  %v17893_v13 = vcombine.high %v442_v53, %v447_v60 }
  0xd9   : > { %3135 = vmatmul.mubr.bf16.gmra.mrb[80].mxu1 %v17842_v8  ;;  %22960 = vst [vmem:[#allocation32_spill] sm:$0xff] %v17893_v13 }
  0xda   : > { %3142 = vmatprep.mubr.bf16.mxu1 %v17844_v11 }
  0xe1   : > { %3143 = vmatmul.mubr.bf16.gmra.mrb[84].mxu1 %v17850_v14 }
  0xe2   : > { %3150 = vmatprep.mubr.bf16.mxu1 %v17852_v16 }
  0xe9   : > { %3151 = vmatmul.mubr.bf16.gmra.mrb[88].mxu1 %v17858_v23 }
  0xea   : > { %3158 = vmatprep.mubr.bf16.mxu1 %v17860_v26 }
  0xf1   : > { %3159 = vmatmul.mubr.bf16.gmra.mrb[92].mxu1 %v17866_v35 }
  0xf2   : > { %3199 = vmatprep.mubr.bf16.mxu1 %v17868_v37 }
  0xf9   : > { %3200 = vmatmul.mubr.bf16.vlgmr.msra.gmra.mrb[96].mxu1 %v17874_v42 }
  0xfa   : > { %15325 = vmatpush3.bf16.msra.mxu1 %v16203_v5  ;;  %3207 = vmatprep.mubr.bf16.mxu1 %v17879_v52  ;;  %v17899_v5 = vcombine.low %v442_v53, %v447_v60  ;;  %v17911_v53 = vcombine.high %v462_v29, %v467_v40 }
  0xfb   : > { %15326 = vmatprep.subr.bf16.mxu1 %v16208_v43 }
  0xfc   : > { %22961 = vst [vmem:[#allocation33_spill] sm:$0xff] %v17899_v5  ;;  %22964 = vst [vmem:[#allocation36_spill] sm:$0xff] %v17911_v53 }
  0xfe   : > { %15327 = vmatpush3.bf16.msra.mxu1 %v16208_v43 }
  0xff   : > { %15328 = vmatprep.subr.bf16.mxu1 %v16213_v61 }
 0x101   : > { %3208 = vmatmul.mubr.bf16.gmra.mrb[100].mxu1 %v17888_v4  ;;  %v17907_v4 = vcombine.low %v452_v20, %v457_v21  ;;  %v17919_v20 = vcombine.low %v462_v29, %v467_v40 }
 0x102   : > { %3215 = vmatprep.mubr.bf16.mxu1 %v17893_v13  ;;  %15329 = vmatpush3.bf16.msra.mxu1 %v16213_v61 }
 0x103   : > { %15330 = vmatprep.subr.bf16.mxu1 %v16218_v12  ;;  %22963 = vst [vmem:[#allocation35_spill] sm:$0xff] %v17907_v4  ;;  %22965 = vst [vmem:[#allocation37_spill] sm:$0xff] %v17919_v20 }
 0x106   : > { %15331 = vmatpush3.bf16.msra.mxu1 %v16218_v12  ;;  %v472_v12 = vld [vmem:[%s17508_s18 + $0x180] sm:$0xff] }
 0x109   : > { %3216 = vmatmul.mubr.bf16.gmra.mrb[104].mxu1 %v17899_v5  ;;  %v477_v5 = vld [vmem:[%s17508_s18 + $0x1a4] sm:$0xff] }
 0x10a   : > { %3223 = vmatprep.mubr.bf16.mxu1 %v17901_v28  ;;  %v17931_v29 = vcombine.low %v472_v12, %v477_v5 }
 0x10c   : > { %v15072_v41 = vpop.f32.mrb[0].mxu1  ;;  %22967 = vst [vmem:[#allocation39_spill] sm:$0xff] %v17931_v29 }
 0x10d   : > { %v15073_v43 = vpop.f32.mrb[1].mxu1 }
 0x10e   : > { %v17909_v13 = vadd.f32 %v15073_v43, %v15072_v41  ;;  %v15075_v61 = vpop.f32.mrb[2].mxu1  ;;  %v17923_v43 = vcombine.high %v472_v12, %v477_v5 }
 0x10f   : > { %v15076_v60 = vpop.f32.mrb[3].mxu1 }
 0x110   : > { %v17913_v52 = vadd.f32 %v15076_v60, %v15075_v61  ;;  %22966 = vst [vmem:[#allocation38_spill] sm:$0xff] %v17923_v43  ;;  %v482_v60 = vld [vmem:[%s17508_s18 + $0x1c8] sm:$0xff] }
 0x111   : > { %3224 = vmatmul.mubr.bf16.gmra.mrb[108].mxu1 %v17907_v4  ;;  %v487_v4 = vld [vmem:[%s17508_s18 + $0x1ec] sm:$0xff] }
 0x112   : > { %3231 = vmatprep.mubr.bf16.mxu1 %v17911_v53  ;;  %v17935_v40 = vcombine.high %v482_v60, %v487_v4  ;;  %v17943_v5 = vcombine.low %v482_v60, %v487_v4 }
 0x114   : > { %v15078_v28 = vpop.f32.mrb[4].mxu1  ;;  %22968 = vst [vmem:[#allocation40_spill] sm:$0xff] %v17935_v40  ;;  %22969 = vst [vmem:[#allocation41_spill] sm:$0xff] %v17943_v5 }
 0x115   : > { %v15079_v42 = vpop.f32.mrb[5].mxu1 }
 0x116   : > { %v17921_v21 = vadd.f32 %v15079_v42, %v15078_v28  ;;  %v15081_v41 = vpop.f32.mrb[6].mxu1 }
 0x117   : > { %v15082_v37 = vpop.f32.mrb[7].mxu1 }
 0x118   : > { %v17925_v61 = vadd.f32 %v15082_v37, %v15081_v41  ;;  %v492_v41 = vld [vmem:[%s17508_s18 + $0x210] sm:$0xff] }
 0x119   : > { %3232 = vmatmul.mubr.bf16.gmra.mrb[112].mxu1 %v17919_v20  ;;  %v497_v20 = vld [vmem:[%s17508_s18 + $0x234] sm:$0xff] }
 0x11a   : > { %3239 = vmatprep.mubr.bf16.mxu1 %v17923_v43  ;;  %v17947_v12 = vcombine.high %v492_v41, %v497_v20 }
 0x11c   : > { %v15084_v53 = vpop.f32.mrb[8].mxu1  ;;  %22970 = vst [vmem:[#allocation42_spill] sm:$0xff] %v17947_v12 }
 0x11d   : > { %v15085_v35 = vpop.f32.mrb[9].mxu1 }
 0x11e   : > { %v17933_v42 = vadd.f32 %v15085_v35, %v15084_v53  ;;  %v15087_v28 = vpop.f32.mrb[10].mxu1 }
 0x11f   : > { %v15088_v26 = vpop.f32.mrb[11].mxu1 }
 0x120   : > { %v17937_v37 = vadd.f32 %v15088_v26, %v15087_v28  ;;  %v423_v28 = vld [vmem:[%s17508_s18 + $0x20] sm:$0xf] }
 0x121   : > { %3240 = vmatmul.mubr.bf16.gmra.mrb[116].mxu1 %v17931_v29 }
 0x122   : > { %3247 = vmatprep.mubr.bf16.mxu1 %v17935_v40  ;;  %v428_v40 = vld [vmem:[%s17508_s18 + $0x44] sm:$0xf] }
 0x123   : > { %v17959_v14 = vcombine.low %v423_v28, %v428_v40 }
 0x124   : > { %v15090_v43 = vpop.f32.mrb[12].mxu1 }
 0x125   : > { %v15091_v23 = vpop.f32.mrb[13].mxu1  ;;  %22972 = vst [vmem:[#allocation44_spill] sm:$0xff] %v17959_v14 }
 0x126   : > { %v17945_v35 = vadd.f32 %v15091_v23, %v15090_v43  ;;  %v15093_v53 = vpop.f32.mrb[14].mxu1  ;;  %v17955_v23 = vcombine.low %v492_v41, %v497_v20  ;;  %v448_v20 = vld [vmem:[%s17508_s18 + $0xd4] sm:$0xf] }
 0x127   : > { %v15094_v16 = vpop.f32.mrb[15].mxu1 }
 0x128   : > { %v17949_v26 = vadd.f32 %v15094_v16, %v15093_v53  ;;  %22971 = vst [vmem:[#allocation43_spill] sm:$0xff] %v17955_v23  ;;  %v433_v53 = vld [vmem:[%s17508_s18 + $0x68] sm:$0xf] }
 0x129   : > { %3248 = vmatmul.mubr.bf16.gmra.mrb[120].mxu1 %v17943_v5  ;;  %v438_v5 = vld [vmem:[%s17508_s18 + $0x8c] sm:$0xf] }
 0x12a   : > { %3255 = vmatprep.mubr.bf16.mxu1 %v17947_v12  ;;  %v443_v12 = vld [vmem:[%s17508_s18 + $0xb0] sm:$0xf]  ;;  %v17970_v28 = vcombine.low %v433_v53, %v438_v5  ;;  %v468_v5 = vld [vmem:[%s17508_s18 + $0x164] sm:$0xf] }
 0x12c   : > { %v15096_v4 = vpop.f32.mrb[16].mxu1  ;;  %22973 = vst [vmem:[#allocation45_spill] sm:$0xff] %v17970_v28 }
 0x12d   : > { %v15097_v60 = vpop.f32.mrb[17].mxu1 }
 0x12e   : > { %v17957_v43 = vadd.f32 %v15097_v60, %v15096_v4  ;;  %v15099_v29 = vpop.f32.mrb[18].mxu1 }
 0x12f   : > { %v15100_v11 = vpop.f32.mrb[19].mxu1 }
 0x130   : > { %v17961_v16 = vadd.f32 %v15100_v11, %v15099_v29  ;;  %v17974_v29 = vcombine.low %v443_v12, %v448_v20 }
 0x131   : > { %3256 = vmatmul.mubr.bf16.gmra.mrb[124].mxu1 %v17955_v23  ;;  %v453_v23 = vld [vmem:[%s17508_s18 + $0xf8] sm:$0xf] }
 0x132   : > { %15332 = vmatprep.mubr.msk.bf16.mxu1 %vm1687_vm0, %v17959_v14  ;;  %22974 = vst [vmem:[#allocation46_spill] sm:$0xff] %v17974_v29  ;;  %v463_v14 = vld [vmem:[%s17508_s18 + $0x140] sm:$0xf]  ;;  %v17986_v20 = vcombine.low %v453_v23, %v458_v49 }
 0x134   : > { %v15102_v41 = vpop.f32.mrb[20].mxu1  ;;  %22975 = vst [vmem:[#allocation47_spill] sm:$0xff] %v17986_v20 }
 0x135   : > { %v15103_v40 = vpop.f32.mrb[21].mxu1 }
 0x136   : > { %v17972_v4 = vadd.f32 %v15103_v40, %v15102_v41  ;;  %v15105_v11 = vpop.f32.mrb[22].mxu1 }
 0x137   : > { %v15106_v60 = vpop.f32.mrb[23].mxu1 }
 0x138   : > { %v17976_v8 = vadd.f32 %v15106_v60, %v15105_v11  ;;  %v17990_v11 = vcombine.low %v463_v14, %v468_v5 }
 0x139   : > { %15333 = vmatmul.mubr.msk.bf16.vlgmr.msra.gmra.mrb[128].mxu1 %vm1687_vm0, %v17970_v28  ;;  %v478_v28 = vld [vmem:[%s17508_s18 + $0x1ac] sm:$0xf] }
 0x13a   : > { %15336 = vmatprep.mubr.msk.bf16.mxu1 %vm1687_vm0, %v17974_v29  ;;  %22976 = vst [vmem:[#allocation48_spill] sm:$0xff] %v17990_v11  ;;  %v483_v29 = vld [vmem:[%s17508_s18 + $0x1d0] sm:$0xf] }
 0x13c   : > { %v15108_v53 = vpop.f32.mrb[24].mxu1 }
 0x13d   : > { %v15109_v12 = vpop.f32.mrb[25].mxu1 }
 0x13e   : > { %v17988_v41 = vadd.f32 %v15109_v12, %v15108_v53  ;;  %v15111_v40 = vpop.f32.mrb[26].mxu1  ;;  %v18002_v53 = vcombine.low %v473_v33, %v478_v28  ;;  %v18006_v12 = vcombine.low %v483_v29, %v488_v32  ;;  %v18019_v33 = vld [vmem:[%s22847_s4] ss:$0 sm:$0xff] }
 0x13f   : > { %v15112_v60 = vpop.f32.mrb[27].mxu1  ;;  %v2911_v29 = vadd.f32 %v17909_v13, %v18019_v33 }
 0x140   : > { %v17992_v48 = vadd.f32 %v15112_v60, %v15111_v40  ;;  %22977 = vst [vmem:[#allocation49_spill] sm:$0xff] %v18002_v53  ;;  %22978 = vst [vmem:[#allocation50_spill] sm:$0xff] %v18006_v12 }
 0x141   : > { %15337 = vmatmul.mubr.msk.bf16.gmra.mrb[132].mxu1 %vm1687_vm0, %v17986_v20  ;;  %v493_v20 = vld [vmem:[%s17508_s18 + $0x218] sm:$0xf] }
 0x142   : > { %15340 = vmatprep.mubr.msk.bf16.mxu1 %vm1687_vm0, %v17990_v11  ;;  %v498_v11 = vld [vmem:[%s17508_s18 + $0x23c] sm:$0xf] }
 0x143   : > { %v18021_v32 = vcombine.low %v493_v20, %v498_v11  ;;  %v2919_v11 = vadd.f32 %v17921_v21, %v18019_v33 }
 0x144   : > { %v15114_v49 = vpop.f32.mrb[28].mxu1 }
 0x145   : > { %v15115_v23 = vpop.f32.mrb[29].mxu1  ;;  %22979 = vst [vmem:[#allocation51_spill] sm:$0xff] %v18021_v32 }
 0x146   : > { %v18004_v14 = vadd.f32 %v15115_v23, %v15114_v49  ;;  %v15117_v5 = vpop.f32.mrb[30].mxu1 }
 0x147   : > { %v15118_v40 = vpop.f32.mrb[31].mxu1 }
 0x148   : > { %v18008_v60 = vadd.f32 %v15118_v40, %v15117_v5 }
 0x149   : > { %15341 = vmatmul.mubr.msk.bf16.gmra.mrb[136].mxu1 %vm1687_vm0, %v18002_v53 }
 0x14a   : > { %15344 = vmatprep.mubr.msk.bf16.mxu1 %vm1687_vm0, %v18006_v12  ;;  %v2914_v12 = vadd.f32 %v17913_v52, %v18019_v33 }
 0x14c   : > { %v15136_v28 = vpop.f32.mrb[32].mxu1 }
 0x14d   : > { %v15137_v49 = vpop.f32.mrb[33].mxu1 }
 0x14e   : > { %v15138_v23 = vadd.f32 %v15137_v49, %v15136_v28  ;;  %v15139_v5 = vpop.f32.mrb[34].mxu1 }
 0x14f   : > { %v15140_v40 = vpop.f32.mrb[35].mxu1 }
 0x150   : > { %v18025_v53 = vadd.f32 %v15138_v23, %v2911_v29  ;;  %v15141_v19 = vadd.f32 %v15140_v40, %v15139_v5  ;;  %v2922_v29 = vadd.f32 %v17925_v61, %v18019_v33 }
 0x151   : > { %15345 = vmatmul.mubr.msk.bf16.gmra.mrb[140].mxu1 %vm1687_vm0, %v18021_v32 }
 0x152   : > { %v18031_v18 = vadd.f32 %v15141_v19, %v2914_v12  ;;  %v2927_v19 = vadd.f32 %v17933_v42, %v18019_v33 }
 0x154   : > { %v15142_v10 = vpop.f32.mrb[36].mxu1 }
 0x155   : > { %v15143_v20 = vpop.f32.mrb[37].mxu1 }
 0x156   : > { %v15144_v13 = vadd.f32 %v15143_v20, %v15142_v10  ;;  %v15145_v28 = vpop.f32.mrb[38].mxu1  ;;  %v2930_v10 = vadd.f32 %v17937_v37, %v18019_v33 }
 0x157   : > { %v15146_v49 = vpop.f32.mrb[39].mxu1 }
 0x158   : > { %v18035_v6 = vadd.f32 %v15144_v13, %v2919_v11  ;;  %v15147_v52 = vadd.f32 %v15146_v49, %v15145_v28  ;;  %v2935_v28 = vadd.f32 %v17945_v35, %v18019_v33 }
 0x15a   : > { %v18039_v23 = vadd.f32 %v15147_v52, %v2922_v29 }
 0x15c   : > { %v15148_v5 = vpop.f32.mrb[40].mxu1 }
 0x15d   : > { %v15149_v40 = vpop.f32.mrb[41].mxu1 }
 0x15e   : > { %v15150_v12 = vadd.f32 %v15149_v40, %v15148_v5  ;;  %v15151_v32 = vpop.f32.mrb[42].mxu1  ;;  %v2938_v5 = vadd.f32 %v17949_v26, %v18019_v33 }
 0x15f   : > { %v15152_v1 = vpop.f32.mrb[43].mxu1 }
 0x160   : > { %v18043_v21 = vadd.f32 %v15150_v12, %v2927_v19  ;;  %v15153_v20 = vadd.f32 %v15152_v1, %v15151_v32  ;;  %v2943_v32 = vadd.f32 %v17957_v43, %v18019_v33 }
 0x162   : > { %v18047_v11 = vadd.f32 %v15153_v20, %v2930_v10 }
 0x164   : > { %v15154_v61 = vpop.f32.mrb[44].mxu1 }
 0x165   : > { %v15155_v13 = vpop.f32.mrb[45].mxu1 }
 0x166   : > { %v15156_v49 = vadd.f32 %v15155_v13, %v15154_v61  ;;  %v15157_v29 = vpop.f32.mrb[46].mxu1  ;;  %v2946_v61 = vadd.f32 %v17961_v16, %v18019_v33 }
 0x167   : > { %v15158_v52 = vpop.f32.mrb[47].mxu1 }
 0x168   : > { %v18051_v42 = vadd.f32 %v15156_v49, %v2935_v28  ;;  %v15159_v40 = vadd.f32 %v15158_v52, %v15157_v29  ;;  %v2951_v29 = vadd.f32 %v17972_v4, %v18019_v33 }
 0x16a   : > { %v18055_v19 = vadd.f32 %v15159_v40, %v2938_v5 }
 0x16c   : > { %v15160_v37 = vpop.f32.mrb[48].mxu1 }
 0x16d   : > { %v15161_v1 = vpop.f32.mrb[49].mxu1 }
 0x16e   : > { %v15162_v12 = vadd.f32 %v15161_v1, %v15160_v37  ;;  %v15163_v10 = vpop.f32.mrb[50].mxu1  ;;  %v2954_v37 = vadd.f32 %v17976_v8, %v18019_v33 }
 0x16f   : > { %v15164_v20 = vpop.f32.mrb[51].mxu1 }
 0x170   : > { %v18059_v35 = vadd.f32 %v15162_v12, %v2943_v32  ;;  %v15165_v13 = vadd.f32 %v15164_v20, %v15163_v10  ;;  %v2959_v10 = vadd.f32 %v17988_v41, %v18019_v33 }
 0x172   : > { %v18063_v28 = vadd.f32 %v15165_v13, %v2946_v61 }
 0x174   : > { %v15166_v26 = vpop.f32.mrb[52].mxu1 }
 0x175   : > { %v15167_v49 = vpop.f32.mrb[53].mxu1 }
 0x176   : > { %v15168_v52 = vadd.f32 %v15167_v49, %v15166_v26  ;;  %v15169_v5 = vpop.f32.mrb[54].mxu1  ;;  %v2962_v26 = vadd.f32 %v17992_v48, %v18019_v33  ;;  %v16229_v48 = vld [vmem:[%s22844_s1 + $0x4] ss:$8 sps:$4 sm:$0xff]  }
 0x177   : > { %v15170_v40 = vpop.f32.mrb[55].mxu1  ;;  %1712 = vmatprep.subr.bf16.mxu0 %v16229_v48  ;;  %v3397_v48 = vld [vmem:[#allocation2 + $0x18] sm:$0x3] }
 0x178   : > { %v18067_v43 = vadd.f32 %v15168_v52, %v2951_v29  ;;  %v15171_v1 = vadd.f32 %v15170_v40, %v15169_v5  ;;  %v2967_v5 = vadd.f32 %v18004_v14, %v18019_v33  ;;  %v16231_v14 = vld [vmem:[%s22844_s1] ss:$8 sps:$4 sm:$0xff]  }
 0x179   : > { %1713 = vmatpush1.bf16.msra.mxu0 %v16231_v14 }
 0x17a   : > { %v18071_v32 = vadd.f32 %v15171_v1, %v2954_v37 }
 0x17c   : > { %v15172_v16 = vpop.f32.mrb[56].mxu1 }
 0x17d   : > { %v15173_v12 = vpop.f32.mrb[57].mxu1 }
 0x17e   : > { %v15174_v20 = vadd.f32 %v15173_v12, %v15172_v16  ;;  %v15175_v61 = vpop.f32.mrb[58].mxu1  ;;  %v2970_v16 = vadd.f32 %v18008_v60, %v18019_v33  ;;  %v16234_v60 = vld [vmem:[%s22848_s5 + $0x84] ss:$8 sps:$4 sm:$0xff]  }
 0x17f   : > { %v15176_v13 = vpop.f32.mrb[59].mxu1  ;;  %4205 = vmatprep.subr.bf16.mxu1 %v16234_v60 }
 0x180   : > { %v18075_v4 = vadd.f32 %v15174_v20, %v2959_v10  ;;  %v15177_v49 = vadd.f32 %v15176_v13, %v15175_v61 }
 0x182   : > { %v18079_v29 = vadd.f32 %v15177_v49, %v2962_v26 }
 0x184   : > { %v15178_v8 = vpop.f32.mrb[60].mxu1 }
 0x185   : > { %v15179_v52 = vpop.f32.mrb[61].mxu1 }
 0x186   : > { %v15180_v40 = vadd.f32 %v15179_v52, %v15178_v8  ;;  %v15181_v37 = vpop.f32.mrb[62].mxu1  ;;  %v3394_v8 = vld [vmem:[#allocation2 + $0x10] sm:$0x3] }
 0x187   : > { %v15182_v1 = vpop.f32.mrb[63].mxu1 }
 0x188   : > { %v18083_v41 = vadd.f32 %v15180_v40, %v2967_v5  ;;  %v15183_v12 = vadd.f32 %v15182_v1, %v15181_v37  ;;  %v3395_v40 = vsel %vm18100_vm3, 0, %v3394_v8  ;;  %v3445_v1 = vld [vmem:[#allocation2 + $0x14] sm:$0x6] }
 0x189   : > { %3396 = vst [vmem:[#allocation2 + $0x10] sm:$0x3] %v3395_v40  ;;  %v16276_v37 = vld [vmem:[%s22848_s5 + $0xf4] ss:$8 sps:$4 sm:$0xff]  }
 0x18a   : > { %v18087_v10 = vadd.f32 %v15183_v12, %v2970_v16  ;;  %v3388_v16 = vld [vmem:[#allocation2] sm:$0x3]  ;;  %v3446_v12 = vsel %vm18110_vm6, 0, %v3445_v1  ;;  %v3442_v1 = vld [vmem:[#allocation2 + $0xc] sm:$0x6] }
 0x18b   : > { %3447 = vst [vmem:[#allocation2 + $0x14] sm:$0x6] %v3446_v12 }
 0x18c   : > { %v15200_v20 = vpop.f32.mrb[64].mxu1 }
 0x18d   : > { %v15201_v61 = vpop.f32.mrb[65].mxu1 }
 0x18e   : > { %v15202_v13 = vadd.f32 %v15201_v61, %v15200_v20  ;;  %v15203_v26 = vpop.f32.mrb[66].mxu1  ;;  %v16232_v20 = vld [vmem:[%s22848_s5 + $0x80] ss:$8 sps:$4 sm:$0xff]   ;;  %v3439_v61 = vld [vmem:[#allocation2 + $0x4] sm:$0x6] }
 0x18f   : > { %v15204_v33 = vpop.f32.mrb[67].mxu1  ;;  %v3440_v60 = vsel %vm18110_vm6, 0, %v3439_v61  ;;  %4206 = vmatpush1.bf16.msra.mxu1 %v16232_v20  ;;  %v16240_v20 = vld [vmem:[%s22848_s5 + $0x94] ss:$8 sps:$4 sm:$0xff]  }
 0x190   : > { %v18105_v52 = vadd.f32 %v15202_v13, %v18025_v53  ;;  %v15205_v5 = vadd.f32 %v15204_v33, %v15203_v26  ;;  %v3389_v53 = vsel %vm18100_vm3, 0, %v3388_v16  ;;  %v3398_v13 = vsel %vm18100_vm3, 0, %v3397_v48  ;;  %v3391_v26 = vld [vmem:[#allocation2 + $0x8] sm:$0x3]  ;;  %v3448_v33 = vld [vmem:[#allocation2 + $0x1c] sm:$0x6]  ;;  %4207 = vmatprep.subr.bf16.mxu1 %v16240_v20 }
 0x191   : > { %3390 = vst [vmem:[#allocation2] sm:$0x3] %v3389_v53  ;;  %3399 = vst [vmem:[#allocation2 + $0x18] sm:$0x3] %v3398_v13  ;;  %v3392_v8 = vsel %vm18100_vm3, 0, %v3391_v26  ;;  %v3449_v40 = vsel %vm18110_vm6, 0, %v3448_v33 }
 0x192   : > { %v18122_v14 = vadd.f32 %v15205_v5, %v18031_v18  ;;  %v16235_v18 = vld [vmem:[%s22844_s1 + $0x14] ss:$8 sps:$4 sm:$0xff]   ;;  %3441 = vst [vmem:[#allocation2 + $0x4] sm:$0x6] %v3440_v60  ;;  %3393 = vst [vmem:[#allocation2 + $0x8] sm:$0x3] %v3392_v8 }
 0x193   : > { %v16237_v16 = vld [vmem:[%s22844_s1 + $0x10] ss:$8 sps:$4 sm:$0xff]   ;;  %3450 = vst [vmem:[#allocation2 + $0x1c] sm:$0x6] %v3449_v40  ;;  %v3443_v53 = vsel %vm18110_vm6, 0, %v3442_v1  ;;  %1714 = vmatprep.subr.bf16.mxu0 %v16235_v18 }
 0x194   : > { %v15206_v5 = vpop.f32.mrb[68].mxu1  ;;  %v16238_v48 = vld [vmem:[%s22848_s5 + $0x90] ss:$8 sps:$4 sm:$0xff]   ;;  %3444 = vst [vmem:[#allocation2 + $0xc] sm:$0x6] %v3443_v53  ;;  %1715 = vmatpush1.bf16.msra.mxu0 %v16237_v16 }
 0x195   : > { %v15207_v12 = vpop.f32.mrb[69].mxu1  ;;  %v16241_v26 = vld [vmem:[%s22844_s1 + $0x24] ss:$8 sps:$4 sm:$0xff]   ;;  %4208 = vmatpush1.bf16.msra.mxu1 %v16238_v48  ;;  %v3406_v18 = vld [vmem:[#allocation2 + $0x30] sm:$0x3] }
 0x196   : > { %v15208_v61 = vadd.f32 %v15207_v12, %v15206_v5  ;;  %v15209_v13 = vpop.f32.mrb[70].mxu1  ;;  %1716 = vmatprep.subr.bf16.mxu0 %v16241_v26  ;;  %v3407_v5 = vsel %vm18100_vm3, 0, %v3406_v18  ;;  %v3457_v1 = vld [vmem:[#allocation2 + $0x34] sm:$0x6]  ;;  %v3400_v53 = vld [vmem:[#allocation2 + $0x20] sm:$0x3] }
 0x197   : > { %v15210_v60 = vpop.f32.mrb[71].mxu1  ;;  %3408 = vst [vmem:[#allocation2 + $0x30] sm:$0x3] %v3407_v5  ;;  %v3458_v12 = vsel %vm18110_vm6, 0, %v3457_v1  ;;  %v3451_v48 = vld [vmem:[#allocation2 + $0x24] sm:$0x6] }
 0x198   : > { %v18150_v33 = vadd.f32 %v15208_v61, %v18035_v6  ;;  %v15211_v8 = vadd.f32 %v15210_v60, %v15209_v13  ;;  %3459 = vst [vmem:[#allocation2 + $0x34] sm:$0x6] %v3458_v12  ;;  %v3401_v6 = vsel %vm18100_vm3, 0, %v3400_v53  ;;  %v16243_v26 = vld [vmem:[%s22844_s1 + $0x20] ss:$8 sps:$4 sm:$0xff]  }
 0x199   : > { %3402 = vst [vmem:[#allocation2 + $0x20] sm:$0x3] %v3401_v6  ;;  %v16244_v60 = vld [vmem:[%s22848_s5 + $0xa0] ss:$8 sps:$4 sm:$0xff]   ;;  %v3409_v18 = vld [vmem:[#allocation2 + $0x38] sm:$0x3]  ;;  %1717 = vmatpush1.bf16.msra.mxu0 %v16243_v26 }
 0x19a   : > { %v18153_v40 = vadd.f32 %v15211_v8, %v18039_v23  ;;  %v3452_v23 = vsel %vm18110_vm6, 0, %v3451_v48  ;;  %v16246_v5 = vld [vmem:[%s22848_s5 + $0xa4] ss:$8 sps:$4 sm:$0xff]   ;;  %v3410_v12 = vsel %vm18100_vm3, 0, %v3409_v18  ;;  %v3403_v53 = vld [vmem:[#allocation2 + $0x28] sm:$0x3] }
 0x19b   : > { %3453 = vst [vmem:[#allocation2 + $0x24] sm:$0x6] %v3452_v23  ;;  %3411 = vst [vmem:[#allocation2 + $0x38] sm:$0x3] %v3410_v12  ;;  %v3460_v6 = vld [vmem:[#allocation2 + $0x3c] sm:$0x6]  ;;  %4209 = vmatprep.subr.bf16.mxu1 %v16246_v5 }
 0x19c   : > { %v15212_v16 = vpop.f32.mrb[72].mxu1  ;;  %v3404_v48 = vsel %vm18100_vm3, 0, %v3403_v53  ;;  %v3454_v23 = vld [vmem:[#allocation2 + $0x2c] sm:$0x6]  ;;  %4210 = vmatpush1.bf16.msra.mxu1 %v16244_v60 }
 0x19d   : > { %v15213_v20 = vpop.f32.mrb[73].mxu1  ;;  %3405 = vst [vmem:[#allocation2 + $0x28] sm:$0x3] %v3404_v48  ;;  %v3455_v26 = vsel %vm18110_vm6, 0, %v3454_v23  ;;  %v16253_v60 = vld [vmem:[%s22844_s1 + $0x44] ss:$8 sps:$4 sm:$0xff]  }
 0x19e   : > { %v15214_v61 = vadd.f32 %v15213_v20, %v15212_v16  ;;  %v15215_v13 = vpop.f32.mrb[74].mxu1  ;;  %v16247_v20 = vld [vmem:[%s22844_s1 + $0x34] ss:$8 sps:$4 sm:$0xff]   ;;  %3456 = vst [vmem:[#allocation2 + $0x2c] sm:$0x6] %v3455_v26 }
 0x19f   : > { %v15216_v8 = vpop.f32.mrb[75].mxu1  ;;  %1718 = vmatprep.subr.bf16.mxu0 %v16247_v20  ;;  %v3421_v23 = vld [vmem:[#allocation2 + $0x58] sm:$0x3] }
 0x1a0   : > { %v18173_v1 = vadd.f32 %v15214_v61, %v18043_v21  ;;  %v15217_v16 = vadd.f32 %v15216_v8, %v15215_v13  ;;  %v16249_v21 = vld [vmem:[%s22844_s1 + $0x30] ss:$8 sps:$4 sm:$0xff]   ;;  %v3461_v13 = vsel %vm18110_vm6, 0, %v3460_v6  ;;  %v3412_v6 = vld [vmem:[#allocation2 + $0x40] sm:$0x3] }
 0x1a1   : > { %3462 = vst [vmem:[#allocation2 + $0x3c] sm:$0x6] %v3461_v13  ;;  %v16250_v8 = vld [vmem:[%s22848_s5 + $0xb0] ss:$8 sps:$4 sm:$0xff]   ;;  %1719 = vmatpush1.bf16.msra.mxu0 %v16249_v21  ;;  %v3469_v13 = vld [vmem:[#allocation2 + $0x54] sm:$0x6] }
 0x1a2   : > { %v18186_v61 = vadd.f32 %v15217_v16, %v18047_v11  ;;  %v16252_v11 = vld [vmem:[%s22848_s5 + $0xb4] ss:$8 sps:$4 sm:$0xff]   ;;  %v3418_v16 = vld [vmem:[#allocation2 + $0x50] sm:$0x3]  ;;  %1720 = vmatprep.subr.bf16.mxu0 %v16253_v60  ;;  %v3413_v21 = vsel %vm18100_vm3, 0, %v3412_v6 }
 0x1a3   : > { %4211 = vmatprep.subr.bf16.mxu1 %v16252_v11  ;;  %v3419_v20 = vsel %vm18100_vm3, 0, %v3418_v16  ;;  %v3470_v11 = vsel %vm18110_vm6, 0, %v3469_v13  ;;  %3414 = vst [vmem:[#allocation2 + $0x40] sm:$0x3] %v3413_v21 }
 0x1a4   : > { %v15218_v18 = vpop.f32.mrb[76].mxu1  ;;  %4212 = vmatpush1.bf16.msra.mxu1 %v16250_v8  ;;  %3420 = vst [vmem:[#allocation2 + $0x50] sm:$0x3] %v3419_v20  ;;  %v3422_v8 = vsel %vm18100_vm3, 0, %v3421_v23  ;;  %3471 = vst [vmem:[#allocation2 + $0x54] sm:$0x6] %v3470_v11 }
 0x1a5   : > { %v15219_v5 = vpop.f32.mrb[77].mxu1  ;;  %3423 = vst [vmem:[#allocation2 + $0x58] sm:$0x3] %v3422_v8  ;;  %v16256_v20 = vld [vmem:[%s22848_s5 + $0xc0] ss:$8 sps:$4 sm:$0xff]  }
 0x1a6   : > { %v15220_v12 = vadd.f32 %v15219_v5, %v15218_v18  ;;  %v15221_v53 = vpop.f32.mrb[78].mxu1  ;;  %v3463_v18 = vld [vmem:[#allocation2 + $0x44] sm:$0x6]  ;;  %v3472_v5 = vld [vmem:[#allocation2 + $0x5c] sm:$0x6] }
 0x1a7   : > { %v15222_v48 = vpop.f32.mrb[79].mxu1  ;;  %v3464_v60 = vsel %vm18110_vm6, 0, %v3463_v18  ;;  %v16259_v23 = vld [vmem:[%s22844_s1 + $0x54] ss:$8 sps:$4 sm:$0xff]   ;;  %v16261_v11 = vld [vmem:[%s22844_s1 + $0x50] ss:$8 sps:$4 sm:$0xff]  }
 0x1a8   : > { %v18206_v26 = vadd.f32 %v15220_v12, %v18051_v42  ;;  %v15223_v0 = vadd.f32 %v15222_v48, %v15221_v53  ;;  %3465 = vst [vmem:[#allocation2 + $0x44] sm:$0x6] %v3464_v60  ;;  %v3473_v42 = vsel %vm18110_vm6, 0, %v3472_v5  ;;  %v16255_v12 = vld [vmem:[%s22844_s1 + $0x40] ss:$8 sps:$4 sm:$0xff]  }
 0x1a9   : > { %3474 = vst [vmem:[#allocation2 + $0x5c] sm:$0x6] %v3473_v42  ;;  %v3415_v53 = vld [vmem:[#allocation2 + $0x48] sm:$0x3]  ;;  %1721 = vmatpush1.bf16.msra.mxu0 %v16255_v12  ;;  %v16258_v48 = vld [vmem:[%s22848_s5 + $0xc4] ss:$8 sps:$4 sm:$0xff]  }
 0x1aa   : > { %v18215_v16 = vadd.f32 %v15223_v0, %v18055_v19  ;;  %v3416_v0 = vsel %vm18100_vm3, 0, %v3415_v53  ;;  %v3466_v19 = vld [vmem:[#allocation2 + $0x4c] sm:$0x6]  ;;  %4213 = vmatprep.subr.bf16.mxu1 %v16258_v48  ;;  %1722 = vmatprep.subr.bf16.mxu0 %v16259_v23  ;;  %v3430_v5 = vld [vmem:[#allocation2 + $0x70] sm:$0x3] }
 0x1ab   : > { %3417 = vst [vmem:[#allocation2 + $0x48] sm:$0x3] %v3416_v0  ;;  %v3467_v21 = vsel %vm18110_vm6, 0, %v3466_v19  ;;  %4214 = vmatpush1.bf16.msra.mxu1 %v16256_v20  ;;  %v16262_v42 = vld [vmem:[%s22848_s5 + $0xd0] ss:$8 sps:$4 sm:$0xff]   ;;  %v3431_v0 = vsel %vm18100_vm3, 0, %v3430_v5 }
 0x1ac   : > { %v15224_v6 = vpop.f32.mrb[80].mxu1  ;;  %3468 = vst [vmem:[#allocation2 + $0x4c] sm:$0x6] %v3467_v21  ;;  %3432 = vst [vmem:[#allocation2 + $0x70] sm:$0x3] %v3431_v0 }
 0x1ad   : > { %v15225_v13 = vpop.f32.mrb[81].mxu1  ;;  %1723 = vmatpush1.bf16.msra.mxu0 %v16261_v11  ;;  %v3481_v20 = vld [vmem:[#allocation2 + $0x74] sm:$0x6]  ;;  %v3424_v19 = vld [vmem:[#allocation2 + $0x60] sm:$0x3] }
 0x1ae   : > { %v15226_v18 = vadd.f32 %v15225_v13, %v15224_v6  ;;  %v15227_v8 = vpop.f32.mrb[82].mxu1  ;;  %v16264_v6 = vld [vmem:[%s22848_s5 + $0xd4] ss:$8 sps:$4 sm:$0xff]   ;;  %v3482_v13 = vsel %vm18110_vm6, 0, %v3481_v20  ;;  %v3475_v21 = vld [vmem:[#allocation2 + $0x64] sm:$0x6] }
 0x1af   : > { %v15228_v60 = vpop.f32.mrb[83].mxu1  ;;  %4215 = vmatprep.subr.bf16.mxu1 %v16264_v6  ;;  %3483 = vst [vmem:[#allocation2 + $0x74] sm:$0x6] %v3482_v13  ;;  %v3476_v23 = vsel %vm18110_vm6, 0, %v3475_v21  ;;  %v16265_v11 = vld [vmem:[%s22844_s1 + $0x64] ss:$8 sps:$4 sm:$0xff]  }
 0x1b0   : > { %v18242_v12 = vadd.f32 %v15226_v18, %v18059_v35  ;;  %v15229_v53 = vadd.f32 %v15228_v60, %v15227_v8  ;;  %v3425_v35 = vsel %vm18100_vm3, 0, %v3424_v19  ;;  %4216 = vmatpush1.bf16.msra.mxu1 %v16262_v42  ;;  %3477 = vst [vmem:[#allocation2 + $0x64] sm:$0x6] %v3476_v23  ;;  %1724 = vmatprep.subr.bf16.mxu0 %v16265_v11  ;;  %v3433_v60 = vld [vmem:[#allocation2 + $0x78] sm:$0x3] }
 0x1b1   : > { %3426 = vst [vmem:[#allocation2 + $0x60] sm:$0x3] %v3425_v35  ;;  %v3434_v0 = vsel %vm18100_vm3, 0, %v3433_v60  ;;  %v3427_v42 = vld [vmem:[#allocation2 + $0x68] sm:$0x3] }
 0x1b2   : > { %v18250_v48 = vadd.f32 %v15229_v53, %v18063_v28  ;;  %v16267_v28 = vld [vmem:[%s22844_s1 + $0x60] ss:$8 sps:$4 sm:$0xff]   ;;  %3435 = vst [vmem:[#allocation2 + $0x78] sm:$0x3] %v3434_v0  ;;  %v3484_v19 = vld [vmem:[#allocation2 + $0x7c] sm:$0x6] }
 0x1b3   : > { %1725 = vmatpush1.bf16.msra.mxu0 %v16267_v28  ;;  %v16268_v6 = vld [vmem:[%s22848_s5 + $0xe0] ss:$8 sps:$4 sm:$0xff]   ;;  %v3428_v13 = vsel %vm18100_vm3, 0, %v3427_v42  ;;  %v16270_v35 = vld [vmem:[%s22848_s5 + $0xe4] ss:$8 sps:$4 sm:$0xff]   ;;  %v3485_v11 = vsel %vm18110_vm6, 0, %v3484_v19 }
 0x1b4   : > { %v15230_v18 = vpop.f32.mrb[84].mxu1  ;;  %3429 = vst [vmem:[#allocation2 + $0x68] sm:$0x3] %v3428_v13  ;;  %v3478_v28 = vld [vmem:[#allocation2 + $0x6c] sm:$0x6]  ;;  %4217 = vmatprep.subr.bf16.mxu1 %v16270_v35  ;;  %v22901_v19 = vmov 0  }
 0x1b5   : > { %v15231_v8 = vpop.f32.mrb[85].mxu1  ;;  %3486 = vst [vmem:[#allocation2 + $0x7c] sm:$0x6] %v3485_v11  ;;  %4218 = vmatpush1.bf16.msra.mxu1 %v16268_v6  ;;  %4237 = vmatprep.mubr.bf16.mxu1 %v22901_v19 }
 0x1b6   : > { %v15232_v5 = vadd.f32 %v15231_v8, %v15230_v18  ;;  %v15233_v53 = vpop.f32.mrb[86].mxu1  ;;  %v3479_v18 = vsel %vm18110_vm6, 0, %v3478_v28  ;;  %v16271_v8 = vld [vmem:[%s22844_s1 + $0x74] ss:$8 sps:$4 sm:$0xff]   ;;  %4219 = vmatprep.subr.bf16.mxu1 %v16276_v37  ;;  %vm4964_vm6 = vsmask.f32 2304 }
 0x1b7   : > { %v15234_v20 = vpop.f32.mrb[87].mxu1  ;;  %3480 = vst [vmem:[#allocation2 + $0x6c] sm:$0x6] %v3479_v18  ;;  %1726 = vmatprep.subr.bf16.mxu0 %v16271_v8 }
 0x1b8   : > { %v18275_v21 = vadd.f32 %v15232_v5, %v18067_v43  ;;  %v15235_v23 = vadd.f32 %v15234_v20, %v15233_v53  ;;  %v16273_v43 = vld [vmem:[%s22844_s1 + $0x70] ss:$8 sps:$4 sm:$0xff]   ;;  %v16277_v53 = vld [vmem:[%s22844_s1 + $0x84] ss:$8 sps:$4 sm:$0xff]  }
 0x1b9   : > { %v16274_v5 = vld [vmem:[%s22848_s5 + $0xf0] ss:$8 sps:$4 sm:$0xff]   ;;  %1727 = vmatpush1.bf16.msra.mxu0 %v16273_v43 }
 0x1ba   : > { %v18288_v60 = vadd.f32 %v15235_v23, %v18071_v32  ;;  %v16279_v32 = vld [vmem:[%s22844_s1 + $0x80] ss:$8 sps:$4 sm:$0xff]   ;;  %1728 = vmatprep.subr.bf16.mxu0 %v16277_v53  ;;  %4220 = vmatpush1.bf16.msra.mxu1 %v16274_v5  ;;  %v16283_v5 = vld [vmem:[%s22844_s1 + $0x94] ss:$8 sps:$4 sm:$0xff]  }
 0x1bc   : > { %v15236_v0 = vpop.f32.mrb[88].mxu1 }
 0x1bd   : > { %v15237_v42 = vpop.f32.mrb[89].mxu1  ;;  %1729 = vmatpush1.bf16.msra.mxu0 %v16279_v32  ;;  %v16286_v32 = vld [vmem:[%s22844_s1 + $0xa4] ss:$8 sps:$4 sm:$0xff]  }
 0x1be   : > { %v15238_v6 = vadd.f32 %v15237_v42, %v15236_v0  ;;  %v15239_v20 = vpop.f32.mrb[90].mxu1  ;;  %1730 = vmatprep.subr.bf16.mxu0 %v16283_v5 }
 0x1bf   : > { %v15240_v13 = vpop.f32.mrb[91].mxu1 }
 0x1c0   : > { %v18304_v35 = vadd.f32 %v15238_v6, %v18075_v4  ;;  %v15241_v23 = vadd.f32 %v15240_v13, %v15239_v20  ;;  %v16282_v4 = vld [vmem:[%s22848_s5 + $0x4] ss:$8 sps:$4 sm:$0xff]  }
 0x1c1   : > { %4446 = vmatprep.subr.bf16.mxu1 %v16282_v4 }
 0x1c2   : > { %v18307_v11 = vadd.f32 %v15241_v23, %v18079_v29  ;;  %v16285_v29 = vld [vmem:[%s22844_s1 + $0x90] ss:$8 sps:$4 sm:$0xff]  }
 0x1c3   : > { %1731 = vmatpush1.bf16.msra.mxu0 %v16285_v29 }
 0x1c4   : > { %v15242_v28 = vpop.f32.mrb[92].mxu1  ;;  %1732 = vmatprep.subr.bf16.mxu0 %v16286_v32 }
 0x1c5   : > { %v15243_v18 = vpop.f32.mrb[93].mxu1 }
 0x1c6   : > { %v15244_v8 = vadd.f32 %v15243_v18, %v15242_v28  ;;  %v15245_v43 = vpop.f32.mrb[94].mxu1 }
 0x1c7   : > { %v15246_v37 = vpop.f32.mrb[95].mxu1 }
 0x1c8   : > { %v18313_v53 = vadd.f32 %v15244_v8, %v18083_v41  ;;  %v15247_v0 = vadd.f32 %v15246_v37, %v15245_v43  ;;  %v16288_v41 = vld [vmem:[%s22844_s1 + $0xa0] ss:$8 sps:$4 sm:$0xff]   ;;  %v16294_v43 = vld [vmem:[%s22844_s1 + $0xb0] ss:$8 sps:$4 sm:$0xff]   ;;  %v16295_v37 = vld [vmem:[%s22844_s1 + $0xc4] ss:$8 sps:$4 sm:$0xff]  }
 0x1c9   : > { %1733 = vmatpush1.bf16.msra.mxu0 %v16288_v41 }
 0x1ca   : > { %v18325_v42 = vadd.f32 %v15247_v0, %v18087_v10  ;;  %v16292_v10 = vld [vmem:[%s22844_s1 + $0xb4] ss:$8 sps:$4 sm:$0xff]  }
 0x1cb   : > { %1734 = vmatprep.subr.bf16.mxu0 %v16292_v10 }
 0x1cc   : > { %v15264_v6 = vpop.f32.mrb[96].mxu1 }
 0x1cd   : > { %v15265_v20 = vpop.f32.mrb[97].mxu1  ;;  %1735 = vmatpush1.bf16.msra.mxu0 %v16294_v43 }
 0x1ce   : > { %v15266_v13 = vadd.f32 %v15265_v20, %v15264_v6  ;;  %v15267_v23 = vpop.f32.mrb[98].mxu1  ;;  %1736 = vmatprep.subr.bf16.mxu0 %v16295_v37 }
 0x1cf   : > { %v15268_v28 = vpop.f32.mrb[99].mxu1 }
 0x1d0   : > { %v15269_v18 = vadd.f32 %v15268_v28, %v15267_v23  ;;  %v18331_v8 = vadd.f32 %v15266_v13, %v18105_v52  ;;  %v16297_v52 = vld [vmem:[%s22844_s1 + $0xc0] ss:$8 sps:$4 sm:$0xff]   ;;  %v16303_v13 = vld [vmem:[%s22844_s1 + $0xd0] ss:$8 sps:$4 sm:$0xff]   ;;  %v16304_v23 = vld [vmem:[%s22844_s1 + $0xe4] ss:$8 sps:$4 sm:$0xff]  }
 0x1d1   : > { %1737 = vmatpush1.bf16.msra.mxu0 %v16297_v52 }
 0x1d2   : > { %v18343_v5 = vadd.f32 %v15269_v18, %v18122_v14  ;;  %v16301_v14 = vld [vmem:[%s22844_s1 + $0xd4] ss:$8 sps:$4 sm:$0xff]  }
 0x1d3   : > { %1738 = vmatprep.subr.bf16.mxu0 %v16301_v14 }
 0x1d4   : > { %v15270_v0 = vpop.f32.mrb[100].mxu1 }
 0x1d5   : > { %v15271_v4 = vpop.f32.mrb[101].mxu1  ;;  %1739 = vmatpush1.bf16.msra.mxu0 %v16303_v13 }
 0x1d6   : > { %v15272_v29 = vadd.f32 %v15271_v4, %v15270_v0  ;;  %v15273_v32 = vpop.f32.mrb[102].mxu1  ;;  %1740 = vmatprep.subr.bf16.mxu0 %v16304_v23 }
 0x1d7   : > { %v15274_v41 = vpop.f32.mrb[103].mxu1 }
 0x1d8   : > { %v15275_v6 = vadd.f32 %v15274_v41, %v15273_v32  ;;  %v18349_v20 = vadd.f32 %v15272_v29, %v18150_v33  ;;  %v16306_v33 = vld [vmem:[%s22844_s1 + $0xe0] ss:$8 sps:$4 sm:$0xff]   ;;  %v16312_v29 = vld [vmem:[%s22844_s1 + $0xf0] ss:$8 sps:$4 sm:$0xff]   ;;  %v16315_v32 = vld [vmem:[%s22844_s1 + $0x104] ss:$8 sps:$4 sm:$0xff]  }
 0x1d9   : > { %1741 = vmatpush1.bf16.msra.mxu0 %v16306_v33 }
 0x1da   : > { %v18361_v28 = vadd.f32 %v15275_v6, %v18153_v40  ;;  %v16310_v40 = vld [vmem:[%s22844_s1 + $0xf4] ss:$8 sps:$4 sm:$0xff]  }
 0x1db   : > { %1742 = vmatprep.subr.bf16.mxu0 %v16310_v40 }
 0x1dc   : > { %v15276_v18 = vpop.f32.mrb[104].mxu1 }
 0x1dd   : > { %v15277_v10 = vpop.f32.mrb[105].mxu1  ;;  %1743 = vmatpush1.bf16.msra.mxu0 %v16312_v29 }
 0x1de   : > { %v15278_v43 = vadd.f32 %v15277_v10, %v15276_v18  ;;  %v15279_v37 = vpop.f32.mrb[106].mxu1  ;;  %1825 = vmatprep.subr.bf16.mxu0 %v16315_v32  ;;  %v16319_v10 = vld [vmem:[%s22844_s1 + $0x110] ss:$8 sps:$4 sm:$0xff]  }
 0x1df   : > { %v15280_v52 = vpop.f32.mrb[107].mxu1 }
 0x1e0   : > { %v15281_v0 = vadd.f32 %v15280_v52, %v15279_v37  ;;  %v18367_v4 = vadd.f32 %v15278_v43, %v18173_v1  ;;  %v16313_v1 = vld [vmem:[%s22844_s1 + $0x100] ss:$8 sps:$4 sm:$0xff]   ;;  %1745 = vmatmul.mubr.bf16.vlgmr.msra.gmra.mrb[0].mxu0 %v17538_v22  ;;  %v16321_v43 = vld [vmem:[%s22844_s1 + $0x114] ss:$8 sps:$4 sm:$0xff]   ;;  %v16324_v22 = vld [vmem:[%s22844_s1 + $0x124] ss:$8 sps:$4 sm:$0xff]  }
 0x1e1   : > { %1826 = vmatpush1.bf16.msra.mxu0 %v16313_v1  ;;  %1754 = vmatprep.mubr.bf16.mxu0 %v17543_v24  ;;  %v16328_v1 = vld [vmem:[%s22844_s1 + $0x130] ss:$8 sps:$4 sm:$0xff]  }
 0x1e2   : > { %v18379_v41 = vadd.f32 %v15281_v0, %v18186_v61  ;;  %1827 = vmatprep.subr.bf16.mxu0 %v16321_v43  ;;  %v16337_v43 = vld [vmem:[%s22844_s1 + $0x150] ss:$8 sps:$4 sm:$0xff]  }
 0x1e4   : > { %v15282_v6 = vpop.f32.mrb[108].mxu1 }
 0x1e5   : > { %v15283_v14 = vpop.f32.mrb[109].mxu1  ;;  %1828 = vmatpush1.bf16.msra.mxu0 %v16319_v10 }
 0x1e6   : > { %v15284_v13 = vadd.f32 %v15283_v14, %v15282_v6  ;;  %v15285_v23 = vpop.f32.mrb[110].mxu1  ;;  %1829 = vmatprep.subr.bf16.mxu0 %v16324_v22  ;;  %v16330_v6 = vld [vmem:[%s22844_s1 + $0x134] ss:$8 sps:$4 sm:$0xff]  }
 0x1e7   : > { %v15286_v33 = vpop.f32.mrb[111].mxu1  ;;  %v16339_v22 = vld [vmem:[%s22844_s1 + $0x154] ss:$8 sps:$4 sm:$0xff]  }
 0x1e8   : > { %v15287_v18 = vadd.f32 %v15286_v33, %v15285_v23  ;;  %v18387_v61 = vadd.f32 %v15284_v13, %v18206_v26  ;;  %v16322_v26 = vld [vmem:[%s22844_s1 + $0x120] ss:$8 sps:$4 sm:$0xff]   ;;  %1755 = vmatmul.mubr.bf16.gmra.mrb[4].mxu0 %v17558_v30  ;;  %v16333_v30 = vld [vmem:[%s22844_s1 + $0x144] ss:$8 sps:$4 sm:$0xff]  }
 0x1e9   : > { %1764 = vmatprep.mubr.bf16.mxu0 %v17560_v31  ;;  %1830 = vmatpush1.bf16.msra.mxu0 %v16322_v26 }
 0x1ea   : > { %v18399_v37 = vadd.f32 %v15287_v18, %v18215_v16  ;;  %1831 = vmatprep.subr.bf16.mxu0 %v16330_v6 }
 0x1ec   : > { %v15288_v24 = vpop.f32.mrb[112].mxu1 }
 0x1ed   : > { %v15289_v52 = vpop.f32.mrb[113].mxu1  ;;  %1832 = vmatpush1.bf16.msra.mxu0 %v16328_v1  ;;  %v16348_v1 = vld [vmem:[%s22844_s1 + $0x174] ss:$8 sps:$4 sm:$0xff]  }
 0x1ee   : > { %v15290_v0 = vadd.f32 %v15289_v52, %v15288_v24  ;;  %v15291_v40 = vpop.f32.mrb[114].mxu1  ;;  %1833 = vmatprep.subr.bf16.mxu0 %v16333_v30 }
 0x1ef   : > { %v15292_v29 = vpop.f32.mrb[115].mxu1 }
 0x1f0   : > { %v15293_v32 = vadd.f32 %v15292_v29, %v15291_v40  ;;  %v18407_v16 = vadd.f32 %v15290_v0, %v18242_v12  ;;  %v16331_v12 = vld [vmem:[%s22844_s1 + $0x140] ss:$8 sps:$4 sm:$0xff]   ;;  %1765 = vmatmul.mubr.bf16.gmra.mrb[8].mxu0 %v17578_v38  ;;  %v16342_v38 = vld [vmem:[%s22844_s1 + $0x164] ss:$8 sps:$4 sm:$0xff]  }
 0x1f1   : > { %1774 = vmatprep.mubr.bf16.mxu0 %v17580_v39  ;;  %1834 = vmatpush1.bf16.msra.mxu0 %v16331_v12 }
 0x1f2   : > { %v18419_v14 = vadd.f32 %v15293_v32, %v18250_v48  ;;  %1835 = vmatprep.subr.bf16.mxu0 %v16339_v22  ;;  %v16346_v32 = vld [vmem:[%s22844_s1 + $0x170] ss:$8 sps:$4 sm:$0xff]  }
 0x1f4   : > { %v15294_v31 = vpop.f32.mrb[116].mxu1 }
 0x1f5   : > { %v15295_v13 = vpop.f32.mrb[117].mxu1  ;;  %1836 = vmatpush1.bf16.msra.mxu0 %v16337_v43 }
 0x1f6   : > { %v15296_v23 = vadd.f32 %v15295_v13, %v15294_v31  ;;  %v15297_v33 = vpop.f32.mrb[118].mxu1  ;;  %1837 = vmatprep.subr.bf16.mxu0 %v16342_v38 }
 0x1f7   : > { %v15298_v18 = vpop.f32.mrb[119].mxu1 }
 0x1f8   : > { %v15299_v10 = vadd.f32 %v15298_v18, %v15297_v33  ;;  %v18427_v48 = vadd.f32 %v15296_v23, %v18275_v21  ;;  %v16340_v21 = vld [vmem:[%s22844_s1 + $0x160] ss:$8 sps:$4 sm:$0xff]   ;;  %1775 = vmatmul.mubr.bf16.gmra.mrb[12].mxu0 %v17598_v46  ;;  %v16351_v46 = vld [vmem:[%s22844_s1 + $0x184] ss:$8 sps:$4 sm:$0xff]   ;;  %v16356_v33 = vld [vmem:[%s22844_s1 + $0x190] ss:$8 sps:$4 sm:$0xff]  }
 0x1f9   : > { %1784 = vmatprep.mubr.bf16.mxu0 %v17600_v47  ;;  %1838 = vmatpush1.bf16.msra.mxu0 %v16340_v21  ;;  %v16358_v18 = vld [vmem:[%s22844_s1 + $0x194] ss:$8 sps:$4 sm:$0xff]  }
 0x1fa   : > { %v18439_v24 = vadd.f32 %v15299_v10, %v18288_v60  ;;  %1839 = vmatprep.subr.bf16.mxu0 %v16348_v1 }
 0x1fc   : > { %v15300_v39 = vpop.f32.mrb[120].mxu1 }
 0x1fd   : > { %v15301_v26 = vpop.f32.mrb[121].mxu1  ;;  %1840 = vmatpush1.bf16.msra.mxu0 %v16346_v32 }
 0x1fe   : > { %v15302_v52 = vadd.f32 %v15301_v26, %v15300_v39  ;;  %v15303_v0 = vpop.f32.mrb[122].mxu1  ;;  %1841 = vmatprep.subr.bf16.mxu0 %v16351_v46  ;;  %v3717_v46 = vld [vmem:[#allocation2 + $0x10] sm:$0xe] }
 0x1ff   : > { %v15304_v40 = vpop.f32.mrb[123].mxu1 }
 0x200   : > { %v15305_v29 = vadd.f32 %v15304_v40, %v15303_v0  ;;  %v18447_v60 = vadd.f32 %v15302_v52, %v18304_v35  ;;  %v16349_v35 = vld [vmem:[%s22844_s1 + $0x180] ss:$8 sps:$4 sm:$0xff]   ;;  %1785 = vmatmul.mubr.bf16.gmra.mrb[16].mxu0 %v17618_v54  ;;  %v16361_v54 = vld [vmem:[%s22844_s1 + $0x1a4] ss:$8 sps:$4 sm:$0xff]  }
 0x201   : > { %1794 = vmatprep.mubr.bf16.mxu0 %v17620_v55  ;;  %1842 = vmatpush1.bf16.msra.mxu0 %v16349_v35 }
 0x202   : > { %v18459_v6 = vadd.f32 %v15305_v29, %v18307_v11  ;;  %1843 = vmatprep.subr.bf16.mxu0 %v16358_v18 }
 0x204   : > { %v15306_v47 = vpop.f32.mrb[124].mxu1 }
 0x205   : > { %v15307_v30 = vpop.f32.mrb[125].mxu1  ;;  %1844 = vmatpush1.bf16.msra.mxu0 %v16356_v33  ;;  %v3705_v33 = vld [vmem:[#allocation2] sm:$0xe] }
 0x206   : > { %v15308_v31 = vadd.f32 %v15307_v30, %v15306_v47  ;;  %v15309_v12 = vpop.f32.mrb[126].mxu1  ;;  %1845 = vmatprep.subr.bf16.mxu0 %v16361_v54 }
 0x207   : > { %v15310_v13 = vpop.f32.mrb[127].mxu1 }
 0x208   : > { %v15311_v23 = vadd.f32 %v15310_v13, %v15309_v12  ;;  %v18467_v11 = vadd.f32 %v15308_v31, %v18313_v53  ;;  %v16359_v53 = vld [vmem:[%s22844_s1 + $0x1a0] ss:$8 sps:$4 sm:$0xff]   ;;  %1795 = vmatmul.mubr.bf16.gmra.mrb[20].mxu0 %v17626_v58  ;;  %v16368_v58 = vld [vmem:[%s22844_s1 + $0x1b4] ss:$8 sps:$4 sm:$0xff]  }
 0x209   : > { %1804 = vmatprep.mubr.bf16.mxu0 %v17628_v59  ;;  %1846 = vmatpush1.bf16.msra.mxu0 %v16359_v53  ;;  %v16371_v59 = vld [vmem:[%s22844_s1 + $0x1c4] ss:$8 sps:$4 sm:$0xff]   ;;  %v16369_v12 = vld [vmem:[%s22844_s1 + $0x1c0] ss:$8 sps:$4 sm:$0xff]  }
 0x20a   : > { %v18476_v10 = vadd.f32 %v15311_v23, %v18325_v42  ;;  %1847 = vmatprep.subr.bf16.mxu0 %v16368_v58 }
 0x20c   : > { %v15334_v55 = vpop.f32.mrb[128].mxu1 }
 0x20d   : > { %v3307_v43 = vadd.f32 %v15334_v55, %v18349_v20  ;;  %v3298_v22 = vpop.f32.mrb[129].mxu1  ;;  %v16366_v20 = vld [vmem:[%s22844_s1 + $0x1b0] ss:$8 sps:$4 sm:$0xff]  }
 0x20e   : > { %v3299_v38 = vadd.f32 %v3298_v22, %v18331_v8  ;;  %v15335_v39 = vpop.f32.mrb[130].mxu1  ;;  %1848 = vmatpush1.bf16.msra.mxu0 %v16366_v20 }
 0x20f   : > { %v3363_v42 = vmax.f32 %v3307_v43, 0.0  ;;  %v3310_v21 = vadd.f32 %v15335_v39, %v18361_v28  ;;  %v3301_v26 = vpop.f32.mrb[131].mxu1  ;;  %1849 = vmatprep.subr.bf16.mxu0 %v16371_v59  ;;  %v3720_v43 = vld [vmem:[#allocation2 + $0x14] sm:$0x3] }
 0x210   : > { %v3361_v52 = vmax.f32 %v3299_v38, 0.0  ;;  %v3302_v0 = vadd.f32 %v3301_v26, %v18343_v5  ;;  %1805 = vmatmul.mubr.bf16.gmra.mrb[24].mxu0 %v17634_v62 }
 0x211   : > { %v14946_v40 = vpack.c.bf16 %v3363_v42, %v3363_v42  ;;  %v3364_v29 = vmax.f32 %v3310_v21, 0.0  ;;  %1814 = vmatprep.mubr.bf16.mxu0 %v17636_v63  ;;  %v16378_v63 = vld [vmem:[%s22844_s1 + $0x1d4] ss:$8 sps:$4 sm:$0xff]  }
 0x212   : > { %v14944_v8 = vpack.c.bf16 %v3361_v52, %v3361_v52  ;;  %v3362_v32 = vmax.f32 %v3302_v0, 0.0  ;;  %1850 = vmatpush1.bf16.msra.mxu0 %v16369_v12 }
 0x213   : > { %v3546_v28 = vshrl.u32 %v14946_v40, 16  ;;  %v3549_v1 = vshll.u32 %v14946_v40, 16  ;;  %v14947_v5 = vpack.c.bf16 %v3364_v29, %v3364_v29  ;;  %v3723_v40 = vld [vmem:[#allocation2 + $0x18] sm:$0xe]  ;;  %1851 = vmatprep.subr.bf16.mxu0 %v16378_v63 }
 0x214   : > { %v3528_v47 = vshrl.u32 %v14944_v8, 16  ;;  %v3531_v35 = vshll.u32 %v14944_v8, 16  ;;  %v14945_v30 = vpack.c.bf16 %v3362_v32, %v3362_v32  ;;  %v15338_v31 = vpop.f32.mrb[132].mxu1  ;;  %v3708_v8 = vld [vmem:[#allocation2 + $0x4] sm:$0x3] }
 0x215   : > { %v3548_v13 = vrot.slane %v3546_v28, 6  ;;  %v3551_v23 = vrot.slane %v3549_v1, 7  ;;  %v3555_v18 = vshrl.u32 %v14947_v5, 16  ;;  %v3558_v54 = vshll.u32 %v14947_v5, 16  ;;  %v3314_v55 = vpop.f32.mrb[133].mxu1 }
 0x216   : > { %v3530_v22 = vrot.slane %v3528_v47, 6  ;;  %v3533_v38 = vrot.slane %v3531_v35, 7  ;;  %v3537_v39 = vshrl.u32 %v14945_v30, 16  ;;  %v3540_v42 = vshll.u32 %v14945_v30, 16  ;;  %v15339_v21 = vpop.f32.mrb[134].mxu1 }
 0x217   : > { %v3552_v26 = vor.u32 %v3551_v23, %v3548_v13  ;;  %v3557_v52 = vrot.slane %v3555_v18, 6  ;;  %v3560_v0 = vrot.slane %v3558_v54, 7  ;;  %v3323_v29 = vadd.f32 %v15338_v31, %v18387_v61  ;;  %v3317_v20 = vpop.f32.mrb[135].mxu1  ;;  %v3711_v28 = vld [vmem:[#allocation2 + $0x8] sm:$0xe] }
 0x218   : > { %v3534_v58 = vor.u32 %v3533_v38, %v3530_v22  ;;  %v3539_v32 = vrot.slane %v3537_v39, 6  ;;  %v3542_v59 = vrot.slane %v3540_v42, 7  ;;  %v3315_v1 = vadd.f32 %v3314_v55, %v18367_v4  ;;  %v16376_v61 = vld [vmem:[%s22844_s1 + $0x1d0] ss:$8 sps:$4 sm:$0xff]   ;;  %v3726_v31 = vld [vmem:[#allocation2 + $0x1c] sm:$0x3]  ;;  %1815 = vmatmul.mubr.bf16.gmra.mrb[28].mxu0 %v17642_v2 }
 0x219   : > { %v3553_v5 = vrot.slane %v3552_v26, 4  ;;  %v3718_v62 = vsel %vm18504_vm8, %v3552_v26, %v3717_v46  ;;  %v3561_v47 = vor.u32 %v3560_v0, %v3557_v52  ;;  %v3367_v35 = vmax.f32 %v3323_v29, 0.0  ;;  %v16381_v46 = vld [vmem:[%s22844_s1 + $0x1e4] ss:$8 sps:$4 sm:$0xff]   ;;  %1852 = vmatpush1.bf16.msra.mxu0 %v16376_v61  ;;  %1857 = vmatprep.mubr.bf16.mxu0 %v17644_v3 }
 0x21a   : > { %3719 = vst [vmem:[#allocation2 + $0x10] sm:$0xe] %v3718_v62  ;;  %v3535_v30 = vrot.slane %v3534_v58, 4  ;;  %v3706_v4 = vsel %vm18504_vm8, %v3534_v58, %v3705_v33  ;;  %v3543_v12 = vor.u32 %v3542_v59, %v3539_v32  ;;  %v3365_v13 = vmax.f32 %v3315_v1, 0.0  ;;  %v3714_v55 = vld [vmem:[#allocation2 + $0xc] sm:$0x3]  ;;  %1853 = vmatprep.subr.bf16.mxu0 %v16381_v46 }
 0x21b   : > { %v3721_v23 = vsel %vm18100_vm3, %v3553_v5, %v3720_v43  ;;  %3707 = vst [vmem:[#allocation2] sm:$0xe] %v3706_v4  ;;  %v3562_v18 = vrot.slane %v3561_v47, 4  ;;  %v3724_v54 = vsel %vm18504_vm8, %v3561_v47, %v3723_v40  ;;  %v14950_v22 = vpack.c.bf16 %v3367_v35, %v3367_v35  ;;  %v16379_v43 = vld [vmem:[%s22844_s1 + $0x1e0] ss:$8 sps:$4 sm:$0xff]  }
 0x21c   : > { %3722 = vst [vmem:[#allocation2 + $0x14] sm:$0x3] %v3721_v23  ;;  %v3709_v33 = vsel %vm18100_vm3, %v3535_v30, %v3708_v8  ;;  %3725 = vst [vmem:[#allocation2 + $0x18] sm:$0xe] %v3724_v54  ;;  %v3544_v38 = vrot.slane %v3543_v12, 4  ;;  %v3712_v39 = vsel %vm18504_vm8, %v3543_v12, %v3711_v28  ;;  %v14948_v42 = vpack.c.bf16 %v3365_v13, %v3365_v13  ;;  %v15342_v26 = vpop.f32.mrb[136].mxu1 }
 0x21d   : > { %3710 = vst [vmem:[#allocation2 + $0x4] sm:$0x3] %v3709_v33  ;;  %v3727_v52 = vsel %vm18100_vm3, %v3562_v18, %v3726_v31  ;;  %3713 = vst [vmem:[#allocation2 + $0x8] sm:$0xe] %v3712_v39  ;;  %v3582_v0 = vshrl.u32 %v14950_v22, 16  ;;  %v3585_v40 = vshll.u32 %v14950_v22, 16  ;;  %v3326_v29 = vadd.f32 %v15339_v21, %v18399_v37  ;;  %1854 = vmatpush1.bf16.msra.mxu0 %v16379_v43 }
 0x21e   : > { %v3330_v58 = vpop.f32.mrb[137].mxu1  ;;  %3728 = vst [vmem:[#allocation2 + $0x1c] sm:$0x3] %v3727_v52  ;;  %v3715_v8 = vsel %vm18100_vm3, %v3544_v38, %v3714_v55  ;;  %v3564_v32 = vshrl.u32 %v14948_v42, 16  ;;  %v3567_v59 = vshll.u32 %v14948_v42, 16  ;;  %v3318_v28 = vadd.f32 %v3317_v20, %v18379_v41 }
 0x21f   : > { %v15343_v1 = vpop.f32.mrb[138].mxu1  ;;  %3716 = vst [vmem:[#allocation2 + $0xc] sm:$0x3] %v3715_v8  ;;  %v3584_v5 = vrot.slane %v3582_v0, 6  ;;  %v3587_v62 = vrot.slane %v3585_v40, 7  ;;  %v3368_v47 = vmax.f32 %v3326_v29, 0.0  ;;  %v3339_v35 = vadd.f32 %v15342_v26, %v18427_v48 }
 0x220   : > { %v3333_v37 = vpop.f32.mrb[139].mxu1  ;;  %v3741_v21 = vld [vmem:[#allocation2 + $0x30] sm:$0xe]  ;;  %v3566_v61 = vrot.slane %v3564_v32, 6  ;;  %v3569_v63 = vrot.slane %v3567_v59, 7  ;;  %v3366_v30 = vmax.f32 %v3318_v28, 0.0  ;;  %v3331_v4 = vadd.f32 %v3330_v58, %v18407_v16 }
 0x221   : > { %v3588_v41 = vor.u32 %v3587_v62, %v3584_v5  ;;  %v3729_v20 = vld [vmem:[#allocation2 + $0x20] sm:$0xe]  ;;  %v14951_v31 = vpack.c.bf16 %v3368_v47, %v3368_v47  ;;  %v3371_v2 = vmax.f32 %v3339_v35, 0.0  ;;  %v3342_v12 = vadd.f32 %v15343_v1, %v18439_v24  ;;  %v3744_v13 = vld [vmem:[#allocation2 + $0x34] sm:$0x3] }
 0x222   : > { %v3570_v46 = vor.u32 %v3569_v63, %v3566_v61  ;;  %v14949_v23 = vpack.c.bf16 %v3366_v30, %v3366_v30  ;;  %v3369_v48 = vmax.f32 %v3331_v4, 0.0  ;;  %v3334_v18 = vadd.f32 %v3333_v37, %v18419_v14  ;;  %v3732_v55 = vld [vmem:[#allocation2 + $0x24] sm:$0x3]  ;;  %v3747_v39 = vld [vmem:[#allocation2 + $0x38] sm:$0xe] }
 0x223   : > { %v3589_v3 = vrot.slane %v3588_v41, 4  ;;  %v3742_v54 = vsel %vm18504_vm8, %v3588_v41, %v3741_v21  ;;  %v3591_v22 = vshrl.u32 %v14951_v31, 16  ;;  %v3594_v16 = vshll.u32 %v14951_v31, 16  ;;  %v3735_v0 = vld [vmem:[#allocation2 + $0x28] sm:$0xe] }
 0x224   : > { %3743 = vst [vmem:[#allocation2 + $0x30] sm:$0xe] %v3742_v54  ;;  %v3571_v33 = vrot.slane %v3570_v46, 4  ;;  %v3730_v38 = vsel %vm18504_vm8, %v3570_v46, %v3729_v20  ;;  %v3573_v24 = vshrl.u32 %v14949_v23, 16  ;;  %v3576_v42 = vshll.u32 %v14949_v23, 16  ;;  %v15346_v26 = vpop.f32.mrb[140].mxu1 }
 0x225   : > { %v3745_v43 = vsel %vm18100_vm3, %v3589_v3, %v3744_v13  ;;  %3731 = vst [vmem:[#allocation2 + $0x20] sm:$0xe] %v3730_v38  ;;  %v3593_v14 = vrot.slane %v3591_v22, 6  ;;  %v3596_v52 = vrot.slane %v3594_v16, 7  ;;  %v14954_v40 = vpack.c.bf16 %v3371_v2, %v3371_v2  ;;  %v3346_v29 = vpop.f32.mrb[141].mxu1 }
 0x226   : > { %3746 = vst [vmem:[#allocation2 + $0x34] sm:$0x3] %v3745_v43  ;;  %v3733_v58 = vsel %vm18100_vm3, %v3571_v33, %v3732_v55  ;;  %v3750_v8 = vld [vmem:[#allocation2 + $0x3c] sm:$0x3]  ;;  %v3575_v32 = vrot.slane %v3573_v24, 6  ;;  %v3578_v59 = vrot.slane %v3576_v42, 7  ;;  %v14952_v28 = vpack.c.bf16 %v3369_v48, %v3369_v48 }
 0x227   : > { %v18556_v1 = vpop.f32.mrb[142].mxu1  ;;  %3734 = vst [vmem:[#allocation2 + $0x24] sm:$0x3] %v3733_v58  ;;  %v3597_v5 = vor.u32 %v3596_v52, %v3593_v14  ;;  %v3738_v62 = vld [vmem:[#allocation2 + $0x2c] sm:$0x3]  ;;  %v3618_v47 = vshrl.u32 %v14954_v40, 16  ;;  %v3355_v43 = vadd.f32 %v15346_v26, %v18467_v11  ;;  %v3347_v14 = vadd.f32 %v3346_v29, %v18447_v60 }
 0x228   : > { %v3621_v35 = vshll.u32 %v14954_v40, 16  ;;  %v3372_v37 = vmax.f32 %v3342_v12, 0.0  ;;  %v18558_v21 = vpop.f32.mrb[143].mxu1  ;;  %v3579_v61 = vor.u32 %v3578_v59, %v3575_v32  ;;  %v3600_v63 = vshrl.u32 %v14952_v28, 16  ;;  %v16386_v41 = vld [vmem:[%s22844_s1 + $0x1f0] ss:$8 sps:$4 sm:$0xff]  }
 0x229   : > { %v3603_v30 = vshll.u32 %v14952_v28, 16  ;;  %v3370_v4 = vmax.f32 %v3334_v18, 0.0  ;;  %v3598_v20 = vrot.slane %v3597_v5, 4  ;;  %v3748_v31 = vsel %vm18504_vm8, %v3597_v5, %v3747_v39  ;;  %v16388_v12 = vld [vmem:[%s22844_s1 + $0x1f4] ss:$8 sps:$4 sm:$0xff]  }
 0x22a   : > { %v3620_v2 = vrot.slane %v3618_v47, 6  ;;  %v3623_v13 = vrot.slane %v3621_v35, 7  ;;  %3749 = vst [vmem:[#allocation2 + $0x38] sm:$0xe] %v3748_v31  ;;  %v3580_v46 = vrot.slane %v3579_v61, 4  ;;  %v3736_v23 = vsel %vm18504_vm8, %v3579_v61, %v3735_v0  ;;  %1855 = vmatprep.subr.bf16.mxu0 %v16388_v12 }
 0x22b   : > { %v3765_v48 = vld [vmem:[#allocation2 + $0x50] sm:$0xe]  ;;  %v3602_v18 = vrot.slane %v3600_v63, 6  ;;  %v3605_v3 = vrot.slane %v3603_v30, 7  ;;  %v3751_v54 = vsel %vm18100_vm3, %v3598_v20, %v3750_v8  ;;  %3737 = vst [vmem:[#allocation2 + $0x28] sm:$0xe] %v3736_v23  ;;  %v14955_v16 = vpack.c.bf16 %v3372_v37, %v3372_v37  ;;  %1856 = vmatpush1.bf16.msra.mxu0 %v16386_v41 }
 0x22c   : > { %v3624_v55 = vor.u32 %v3623_v13, %v3620_v2  ;;  %v3753_v22 = vld [vmem:[#allocation2 + $0x40] sm:$0xe]  ;;  %v14953_v33 = vpack.c.bf16 %v3370_v4, %v3370_v4  ;;  %v16391_v38 = vld [vmem:[%s22844_s1 + $0x204] ss:$8 sps:$4 sm:$0xff]   ;;  %3752 = vst [vmem:[#allocation2 + $0x3c] sm:$0x3] %v3751_v54  ;;  %v3739_v39 = vsel %vm18100_vm3, %v3580_v46, %v3738_v62  ;;  %v3358_v2 = vadd.f32 %v18556_v1, %v18476_v10 }
 0x22d   : > { %v3768_v24 = vld [vmem:[#allocation2 + $0x54] sm:$0x3]  ;;  %v3606_v42 = vor.u32 %v3605_v3, %v3602_v18  ;;  %v16389_v52 = vld [vmem:[%s22844_s1 + $0x200] ss:$8 sps:$4 sm:$0xff]   ;;  %3740 = vst [vmem:[#allocation2 + $0x2c] sm:$0x3] %v3739_v39  ;;  %1938 = vmatprep.subr.bf16.mxu0 %v16391_v38  ;;  %v3350_v13 = vadd.f32 %v18558_v21, %v18459_v6 }
 0x22e   : > { %v3625_v0 = vrot.slane %v3624_v55, 4  ;;  %v3766_v40 = vsel %vm18504_vm8, %v3624_v55, %v3765_v48  ;;  %v3756_v58 = vld [vmem:[#allocation2 + $0x44] sm:$0x3]  ;;  %v3627_v8 = vshrl.u32 %v14955_v16, 16  ;;  %v3630_v32 = vshll.u32 %v14955_v16, 16  ;;  %1858 = vmatmul.mubr.bf16.vlgmr.msra.gmra.mrb[0].mxu0 %v17653_v7 }
 0x22f   : > { %3767 = vst [vmem:[#allocation2 + $0x50] sm:$0xe] %v3766_v40  ;;  %v3607_v59 = vrot.slane %v3606_v42, 4  ;;  %v3754_v11 = vsel %vm18504_vm8, %v3606_v42, %v3753_v22  ;;  %v3771_v60 = vld [vmem:[#allocation2 + $0x58] sm:$0xe]  ;;  %v3609_v26 = vshrl.u32 %v14953_v33, 16  ;;  %1939 = vmatpush1.bf16.msra.mxu0 %v16389_v52  ;;  %1867 = vmatprep.mubr.bf16.mxu0 %v17658_v9 }
 0x230   : > { %v3612_v29 = vshll.u32 %v14953_v33, 16  ;;  %v18586_v28 = vld [vmem:[#allocation2] sm:$0xf]  ;;  %v3769_v5 = vsel %vm18100_vm3, %v3625_v0, %v3768_v24  ;;  %3755 = vst [vmem:[#allocation2 + $0x40] sm:$0xe] %v3754_v11  ;;  %v3629_v62 = vrot.slane %v3627_v8, 6 }
 0x231   : > { %v3632_v47 = vrot.slane %v3630_v32, 7  ;;  %v3375_v35 = vmax.f32 %v3355_v43, 0.0  ;;  %v16398_v37 = vld [vmem:[%s22844_s1 + $0x214] ss:$8 sps:$4 sm:$0xff]   ;;  %3770 = vst [vmem:[#allocation2 + $0x54] sm:$0x3] %v3769_v5  ;;  %v3757_v61 = vsel %vm18100_vm3, %v3607_v59, %v3756_v58 }
 0x232   : > { %v3611_v63 = vrot.slane %v3609_v26, 6  ;;  %v3614_v30 = vrot.slane %v3612_v29, 7  ;;  %v3373_v4 = vmax.f32 %v3347_v14, 0.0  ;;  %v16396_v41 = vld [vmem:[%s22844_s1 + $0x210] ss:$8 sps:$4 sm:$0xff]   ;;  %1940 = vmatprep.subr.bf16.mxu0 %v16398_v37  ;;  %v3853_v9 = vshrl.u32 %v18586_v28, 16 }
 0x233   : > { %3758 = vst [vmem:[#allocation2 + $0x44] sm:$0x3] %v3757_v61  ;;  %v3633_v7 = vor.u32 %v3632_v47, %v3629_v62  ;;  %v3759_v20 = vld [vmem:[#allocation2 + $0x48] sm:$0xe]  ;;  %v14958_v31 = vpack.c.bf16 %v3375_v35, %v3375_v35  ;;  %v16401_v12 = vld [vmem:[%s22844_s1 + $0x224] ss:$8 sps:$4 sm:$0xff]   ;;  %1941 = vmatpush1.bf16.msra.mxu0 %v16396_v41 }
 0x234   : > { %v3774_v46 = vld [vmem:[#allocation2 + $0x5c] sm:$0x3]  ;;  %v3615_v23 = vor.u32 %v3614_v30, %v3611_v63  ;;  %v14956_v48 = vpack.c.bf16 %v3373_v4, %v3373_v4  ;;  %v3856_v18 = vshll.u32 %v18586_v28, 16  ;;  %v3762_v10 = vld [vmem:[#allocation2 + $0x4c] sm:$0x3]  ;;  %v3376_v43 = vmax.f32 %v3358_v2, 0.0  ;;  %1942 = vmatprep.subr.bf16.mxu0 %v16401_v12 }
 0x235   : > { %v3634_v3 = vrot.slane %v3633_v7, 4  ;;  %v3772_v54 = vsel %vm18504_vm8, %v3633_v7, %v3771_v60  ;;  %v3654_v1 = vshrl.u32 %v14958_v31, 16  ;;  %v3657_v55 = vshll.u32 %v14958_v31, 16  ;;  %v3789_v22 = vld [vmem:[#allocation2 + $0x70] sm:$0xe] }
 0x236   : > { %3773 = vst [vmem:[#allocation2 + $0x58] sm:$0xe] %v3772_v54  ;;  %v3616_v6 = vrot.slane %v3615_v23, 4  ;;  %v3760_v21 = vsel %vm18504_vm8, %v3615_v23, %v3759_v20  ;;  %v3636_v16 = vshrl.u32 %v14956_v48, 16  ;;  %v3639_v33 = vshll.u32 %v14956_v48, 16  ;;  %1868 = vmatmul.mubr.bf16.gmra.mrb[4].mxu0 %v17673_v15 }
 0x237   : > { %v16399_v38 = vld [vmem:[%s22844_s1 + $0x220] ss:$8 sps:$4 sm:$0xff]   ;;  %v3775_v39 = vsel %vm18100_vm3, %v3634_v3, %v3774_v46  ;;  %3761 = vst [vmem:[#allocation2 + $0x48] sm:$0xe] %v3760_v21  ;;  %v3656_v24 = vrot.slane %v3654_v1, 6  ;;  %v3659_v42 = vrot.slane %v3657_v55, 7  ;;  %v14959_v11 = vpack.c.bf16 %v3376_v43, %v3376_v43  ;;  %1877 = vmatprep.mubr.bf16.mxu0 %v17678_v17 }
 0x238   : > { %v18618_v14 = vld [vmem:[#allocation2 + $0x8] sm:$0xf]  ;;  %3776 = vst [vmem:[#allocation2 + $0x5c] sm:$0x3] %v3775_v39  ;;  %v3763_v52 = vsel %vm18100_vm3, %v3616_v6, %v3762_v10  ;;  %v3792_v0 = vld [vmem:[#allocation2 + $0x74] sm:$0x3]  ;;  %1943 = vmatpush1.bf16.msra.mxu0 %v16399_v38 }
 0x239   : > { %v3638_v40 = vrot.slane %v3636_v16, 6  ;;  %v3641_v58 = vrot.slane %v3639_v33, 7  ;;  %v3374_v8 = vmax.f32 %v3350_v13, 0.0  ;;  %3764 = vst [vmem:[#allocation2 + $0x4c] sm:$0x3] %v3763_v52  ;;  %v3660_v32 = vor.u32 %v3659_v42, %v3656_v24 }
 0x23a   : > { %v3777_v59 = vld [vmem:[#allocation2 + $0x60] sm:$0xe]  ;;  %v3855_v60 = vrot.slane %v3853_v9, 4  ;;  %v3858_v5 = vrot.slane %v3856_v18, 5  ;;  %v3867_v62 = vshrl.u32 %v18618_v14, 16  ;;  %v3663_v63 = vshrl.u32 %v14959_v11, 16 }
 0x23b   : > { %v3642_v26 = vor.u32 %v3641_v58, %v3638_v40  ;;  %v14957_v29 = vpack.c.bf16 %v3374_v8, %v3374_v8  ;;  %v16406_v47 = vld [vmem:[%s22844_s1 + $0x230] ss:$8 sps:$4 sm:$0xff]   ;;  %v16408_v35 = vld [vmem:[%s22844_s1 + $0x234] ss:$8 sps:$4 sm:$0xff]   ;;  %v3661_v37 = vrot.slane %v3660_v32, 4  ;;  %v3790_v15 = vsel %vm18504_vm8, %v3660_v32, %v3789_v22 }
 0x23c   : > { %v3780_v61 = vld [vmem:[#allocation2 + $0x64] sm:$0x3]  ;;  %v3666_v30 = vshll.u32 %v14959_v11, 16  ;;  %3791 = vst [vmem:[#allocation2 + $0x70] sm:$0xe] %v3790_v15  ;;  %1944 = vmatprep.subr.bf16.mxu0 %v16408_v35  ;;  %v3665_v13 = vrot.slane %v3663_v63, 6  ;;  %v3859_v54 = vor.u32 %v3858_v5, %v3855_v60 }
 0x23d   : > { %v3643_v4 = vrot.slane %v3642_v26, 4  ;;  %v3778_v41 = vsel %vm18504_vm8, %v3642_v26, %v3777_v59  ;;  %v3795_v7 = vld [vmem:[#allocation2 + $0x78] sm:$0xe]  ;;  %v3645_v20 = vshrl.u32 %v14957_v29, 16  ;;  %v3648_v31 = vshll.u32 %v14957_v29, 16  ;;  %1945 = vmatpush1.bf16.msra.mxu0 %v16406_v47 }
 0x23e   : > { %v16411_v17 = vld [vmem:[%s22844_s1 + $0x244] ss:$8 sps:$4 sm:$0xff]   ;;  %v3793_v2 = vsel %vm18100_vm3, %v3661_v37, %v3792_v0  ;;  %3779 = vst [vmem:[#allocation2 + $0x60] sm:$0xe] %v3778_v41  ;;  %v3668_v12 = vrot.slane %v3666_v30, 7  ;;  %v3869_v21 = vrot.slane %v3867_v62, 4  ;;  %1878 = vmatmul.mubr.bf16.gmra.mrb[8].mxu0 %v17693_v25 }
 0x23f   : > { %v18640_v46 = vld [vmem:[#allocation2 + $0x4] sm:$0x1]  ;;  %v18642_v23 = vld [vmem:[#allocation2 + $0x10] sm:$0xf]  ;;  %3794 = vst [vmem:[#allocation2 + $0x74] sm:$0x3] %v3793_v2  ;;  %v3781_v48 = vsel %vm18100_vm3, %v3643_v4, %v3780_v61  ;;  %1946 = vmatprep.subr.bf16.mxu0 %v16411_v17  ;;  %1887 = vmatprep.mubr.bf16.mxu0 %v17698_v27 }
 0x240   : > { %v3647_v9 = vrot.slane %v3645_v20, 6  ;;  %v3650_v18 = vrot.slane %v3648_v31, 7  ;;  %v18646_v3 = vld [vmem:[#allocation2 + $0xc] sm:$0x1]  ;;  %v16409_v10 = vld [vmem:[%s22844_s1 + $0x240] ss:$8 sps:$4 sm:$0xff]   ;;  %v3669_v1 = vor.u32 %v3668_v12, %v3665_v13 }
 0x241   : > { %3782 = vst [vmem:[#allocation2 + $0x64] sm:$0x3] %v3781_v48  ;;  %v3798_v55 = vld [vmem:[#allocation2 + $0x7c] sm:$0x3]  ;;  %v3783_v6 = vld [vmem:[#allocation2 + $0x68] sm:$0xe]  ;;  %1947 = vmatpush1.bf16.msra.mxu0 %v16409_v10 }
 0x242   : > { %v3870_v22 = vshll.u32 %v18618_v14, 16  ;;  %v3651_v16 = vor.u32 %v3650_v18, %v3647_v9  ;;  %v3786_v33 = vld [vmem:[#allocation2 + $0x6c] sm:$0x3]  ;;  %v3862_v38 = vshll.u32 %v18640_v46, 16  ;;  %v3881_v39 = vshrl.u32 %v18642_v23, 16 }
 0x243   : > { %v3884_v24 = vshll.u32 %v18642_v23, 16  ;;  %v3670_v42 = vrot.slane %v3669_v1, 4  ;;  %v3796_v43 = vsel %vm18504_vm8, %v3669_v1, %v3795_v7  ;;  %v3876_v0 = vshll.u32 %v18646_v3, 16  ;;  %v18658_v40 = vld [vmem:[#allocation2 + $0x18] sm:$0xf] }
 0x244   : > { %v3872_v52 = vrot.slane %v3870_v22, 5  ;;  %3797 = vst [vmem:[#allocation2 + $0x78] sm:$0xe] %v3796_v43  ;;  %v3652_v58 = vrot.slane %v3651_v16, 4  ;;  %v3784_v8 = vsel %vm18504_vm8, %v3651_v16, %v3783_v6  ;;  %v3860_v32 = vrot.slane %v3859_v54, 4  ;;  %vm19666_vm8 = vmor %vm4964_vm6, %vm4965_vm7 }
 0x245   : > { %v16416_v59 = vld [vmem:[%s22844_s1 + $0x250] ss:$8 sps:$4 sm:$0xff]   ;;  %v16418_v11 = vld [vmem:[%s22844_s1 + $0x254] ss:$8 sps:$4 sm:$0xff]   ;;  %v3799_v25 = vsel %vm18100_vm3, %v3670_v42, %v3798_v55  ;;  %3785 = vst [vmem:[#allocation2 + $0x68] sm:$0xe] %v3784_v8 }
 0x246   : > { %v3873_v60 = vor.u32 %v3872_v52, %v3869_v21  ;;  %v3883_v26 = vrot.slane %v3881_v39, 4  ;;  %v3886_v53 = vrot.slane %v3884_v24, 5  ;;  %v18672_v29 = vld [vmem:[#allocation2 + $0x20] sm:$0xf]  ;;  %3800 = vst [vmem:[#allocation2 + $0x7c] sm:$0x3] %v3799_v25  ;;  %v3787_v5 = vsel %vm18100_vm3, %v3652_v58, %v3786_v33  ;;  %1948 = vmatprep.subr.bf16.mxu0 %v16418_v11  ;;  %1888 = vmatmul.mubr.bf16.gmra.mrb[12].mxu0 %v17710_v34  ;;  %vm19275_vm3 = vmor %vm3385_vm1, %vm5577_vm15 }
 0x247   : > { %v18682_v27 = vld [vmem:[#allocation2 + $0x14] sm:$0x1]  ;;  %v18684_v47 = vld [vmem:[#allocation2 + $0x1c] sm:$0x1]  ;;  %v3895_v35 = vshrl.u32 %v18658_v40, 16  ;;  %v3898_v37 = vshll.u32 %v18658_v40, 16  ;;  %1949 = vmatpush1.bf16.msra.mxu0 %v16416_v59  ;;  %1897 = vmatprep.mubr.bf16.mxu0 %v17715_v36 }
 0x248   : > { %3788 = vst [vmem:[#allocation2 + $0x6c] sm:$0x3] %v3787_v5  ;;  %v3864_v15 = vrot.slane %v3862_v38, 5  ;;  %v3874_v61 = vrot.slane %v3873_v60, 4  ;;  %v3878_v49 = vrot.slane %v3876_v0, 5  ;;  %v3909_v41 = vshrl.u32 %v18672_v29, 16 }
 0x249   : > { %v18688_v63 = vld [vmem:[#allocation2 + $0x28] sm:$0xf]  ;;  %v3897_v30 = vrot.slane %v3895_v35, 4  ;;  %v3900_v4 = vrot.slane %v3898_v37, 5  ;;  %v3912_v7 = vshll.u32 %v18672_v29, 16  ;;  %v3887_v13 = vor.u32 %v3886_v53, %v3883_v26 }
 0x24a   : > { %v16419_v20 = vld [vmem:[%s22844_s1 + $0x260] ss:$8 sps:$4 sm:$0xff]   ;;  %v3865_v31 = vsel %vm18678_vm11, %v3860_v32, %v3864_v15  ;;  %v3879_v17 = vsel %vm18678_vm11, %v3874_v61, %v3878_v49  ;;  %v3904_v12 = vshll.u32 %v18684_v47, 16  ;;  %v16421_v48 = vld [vmem:[%s22844_s1 + $0x264] ss:$8 sps:$4 sm:$0xff]   ;;  %v3890_v18 = vshll.u32 %v18682_v27, 16 }
 0x24b   : > { %v16280_v2 = vld [vmem:[%s22848_s5] ss:$8 sps:$4 sm:$0xff]   ;;  %v13822_v9 = vcombine.low %v3865_v31, %v3879_v17  ;;  %v3901_v54 = vor.u32 %v3900_v4, %v3897_v30  ;;  %v16291_v10 = vld [vmem:[%s22848_s5 + $0x14] ss:$8 sps:$4 sm:$0xff]   ;;  %v3923_v1 = vshrl.u32 %v18688_v63, 16  ;;  %v3926_v6 = vshll.u32 %v18688_v63, 16  ;;  %1950 = vmatprep.subr.bf16.mxu0 %v16421_v48 }
 0x24c   : > { %v16289_v55 = vld [vmem:[%s22848_s5 + $0x10] ss:$8 sps:$4 sm:$0xff]   ;;  %v18720_v33 = vld [vmem:[#allocation2 + $0x2c] sm:$0x1]  ;;  %v3911_v38 = vrot.slane %v3909_v41, 4  ;;  %v3914_v39 = vrot.slane %v3912_v7, 5  ;;  %1951 = vmatpush1.bf16.msra.mxu0 %v16419_v20 }
 0x24d   : > { %v18715_v21 = vld [vmem:[#allocation2 + $0x30] sm:$0xf]  ;;  %v18717_v22 = vld [vmem:[#allocation2 + $0x38] sm:$0xf]  ;;  %4238 = vmatmul.mubr.bf16.vlgmr.msra.gmra.mrb[144].mxu1 %v13822_v9  ;;  %v3902_v16 = vrot.slane %v3901_v54, 4  ;;  %v3925_v24 = vrot.slane %v3923_v1, 4 }
 0x24e   : > { %v16300_v42 = vld [vmem:[%s22848_s5 + $0x24] ss:$8 sps:$4 sm:$0xff]   ;;  %4447 = vmatpush1.bf16.msra.mxu1 %v16280_v2  ;;  %4247 = vmatprep.mubr.bf16.mxu1 %v22901_v19  ;;  %v3888_v43 = vrot.slane %v3887_v13, 4  ;;  %v3906_v52 = vrot.slane %v3904_v12, 5  ;;  %v3928_v34 = vrot.slane %v3926_v6, 5  ;;  %v3892_v58 = vrot.slane %v3890_v18, 5 }
 0x24f   : > { %v18726_v0 = vld [vmem:[#allocation2 + $0x24] sm:$0x1]  ;;  %4448 = vmatprep.subr.bf16.mxu1 %v16291_v10  ;;  %v18728_v8 = vld [vmem:[#allocation2 + $0x40] sm:$0xf]  ;;  %v18730_v32 = vld [vmem:[#allocation2 + $0x48] sm:$0xf]  ;;  %v3915_v5 = vor.u32 %v3914_v39, %v3911_v38  ;;  %1898 = vmatmul.mubr.bf16.gmra.mrb[16].mxu0 %v17730_v44 }
 0x250   : > { %v3907_v59 = vsel %vm18678_vm11, %v3902_v16, %v3906_v52  ;;  %v3929_v11 = vor.u32 %v3928_v34, %v3925_v24  ;;  %v3932_v25 = vshll.u32 %v18720_v33, 16  ;;  %v3951_v60 = vshrl.u32 %v18717_v22, 16  ;;  %v16426_v26 = vld [vmem:[%s22844_s1 + $0x270] ss:$8 sps:$4 sm:$0xff]   ;;  %v16428_v53 = vld [vmem:[%s22844_s1 + $0x274] ss:$8 sps:$4 sm:$0xff]   ;;  %1907 = vmatprep.mubr.bf16.mxu0 %v17732_v45 }
 0x251   : > { %v16298_v36 = vld [vmem:[%s22848_s5 + $0x20] ss:$8 sps:$4 sm:$0xff]   ;;  %v3937_v35 = vshrl.u32 %v18715_v21, 16  ;;  %v3940_v37 = vshll.u32 %v18715_v21, 16  ;;  %v3954_v15 = vshll.u32 %v18717_v22, 16  ;;  %v3893_v61 = vsel %vm18678_vm11, %v3888_v43, %v3892_v58  ;;  %1952 = vmatprep.subr.bf16.mxu0 %v16428_v53 }
 0x252   : > { %4449 = vmatpush1.bf16.msra.mxu1 %v16289_v55  ;;  %v16309_v49 = vld [vmem:[%s22848_s5 + $0x34] ss:$8 sps:$4 sm:$0xff]   ;;  %v3965_v30 = vshrl.u32 %v18728_v8, 16  ;;  %v3968_v4 = vshll.u32 %v18728_v8, 16  ;;  %v16431_v41 = vld [vmem:[%s22844_s1 + $0x284] ss:$8 sps:$4 sm:$0xff]   ;;  %v13823_v7 = vcombine.low %v3893_v61, %v3907_v59  ;;  %1953 = vmatpush1.bf16.msra.mxu0 %v16426_v26 }
 0x253   : > { %v3918_v20 = vshll.u32 %v18726_v0, 16  ;;  %4450 = vmatprep.subr.bf16.mxu1 %v16300_v42  ;;  %v18760_v31 = vld [vmem:[#allocation2 + $0x34] sm:$0x1]  ;;  %v3979_v17 = vshrl.u32 %v18730_v32, 16  ;;  %v16429_v2 = vld [vmem:[%s22844_s1 + $0x280] ss:$8 sps:$4 sm:$0xff]   ;;  %1954 = vmatprep.subr.bf16.mxu0 %v16431_v41 }
 0x254   : > { %v3930_v13 = vrot.slane %v3929_v11, 4  ;;  %v3953_v12 = vrot.slane %v3951_v60, 4  ;;  %v3956_v48 = vrot.slane %v3954_v15, 5  ;;  %v16307_v9 = vld [vmem:[%s22848_s5 + $0x30] ss:$8 sps:$4 sm:$0xff]   ;;  %v3916_v54 = vrot.slane %v3915_v5, 4 }
 0x255   : > { %v18769_v18 = vld [vmem:[#allocation2 + $0x50] sm:$0xf]  ;;  %4248 = vmatmul.mubr.bf16.gmra.mrb[148].mxu1 %v13823_v7  ;;  %v3934_v10 = vrot.slane %v3932_v25, 5  ;;  %v18772_v1 = vld [vmem:[#allocation2 + $0x3c] sm:$0x1]  ;;  %v18774_v55 = vrot.slane %v3937_v35, 4 }
 0x256   : > { %v3942_v6 = vrot.slane %v3940_v37, 5  ;;  %v16318_v16 = vld [vmem:[%s22848_s5 + $0x44] ss:$8 sps:$4 sm:$0xff]   ;;  %v18779_v38 = vld [vmem:[#allocation2 + $0x58] sm:$0xf]  ;;  %4257 = vmatprep.mubr.bf16.mxu1 %v22901_v19  ;;  %4451 = vmatpush1.bf16.msra.mxu1 %v16298_v36  ;;  %v3967_v44 = vrot.slane %v3965_v30, 4  ;;  %v3957_v25 = vor.u32 %v3956_v48, %v3953_v12 }
 0x257   : > { %v3970_v39 = vrot.slane %v3968_v4, 5  ;;  %v3981_v24 = vrot.slane %v3979_v17, 4  ;;  %v3982_v42 = vshll.u32 %v18730_v32, 16  ;;  %v16437_v43 = vld [vmem:[%s22844_s1 + $0x294] ss:$8 sps:$4 sm:$0xff]   ;;  %v3920_v52 = vrot.slane %v3918_v20, 5  ;;  %4452 = vmatprep.subr.bf16.mxu1 %v16309_v49  ;;  %1955 = vmatpush1.bf16.msra.mxu0 %v16429_v2 }
 0x258   : > { %v3946_v34 = vshll.u32 %v18760_v31, 16  ;;  %v3993_v58 = vshrl.u32 %v18769_v18, 16  ;;  %v3996_v45 = vshll.u32 %v18769_v18, 16  ;;  %v16435_v59 = vld [vmem:[%s22844_s1 + $0x290] ss:$8 sps:$4 sm:$0xff]   ;;  %v3935_v11 = vsel %vm18678_vm11, %v3930_v13, %v3934_v10  ;;  %1956 = vmatprep.subr.bf16.mxu0 %v16437_v43  ;;  %1908 = vmatmul.mubr.bf16.gmra.mrb[20].mxu0 %v17738_v50 }
 0x259   : > { %v18795_v60 = vld [vmem:[#allocation2 + $0x4c] sm:$0x1]  ;;  %v3984_v26 = vrot.slane %v3982_v42, 5  ;;  %v16316_v53 = vld [vmem:[%s22848_s5 + $0x40] ss:$8 sps:$4 sm:$0xff]   ;;  %v4007_v5 = vshrl.u32 %v18779_v38, 16  ;;  %v3921_v35 = vsel %vm18678_vm11, %v3916_v54, %v3920_v52  ;;  %v3943_v30 = vor.u32 %v3942_v6, %v18774_v55  ;;  %1917 = vmatprep.mubr.bf16.mxu0 %v17740_v51 }
 0x25a   : > { %v16440_v36 = vld [vmem:[%s22844_s1 + $0x2a4] ss:$8 sps:$4 sm:$0xff]   ;;  %v3995_v37 = vrot.slane %v3993_v58, 4  ;;  %v3998_v15 = vrot.slane %v3996_v45, 5  ;;  %v16327_v61 = vld [vmem:[%s22848_s5 + $0x54] ss:$8 sps:$4 sm:$0xff]   ;;  %4453 = vmatpush1.bf16.msra.mxu1 %v16307_v9  ;;  %v3971_v7 = vor.u32 %v3970_v39, %v3967_v44  ;;  %v13824_v2 = vcombine.low %v3921_v35, %v3935_v11 }
 0x25b   : > { %v18809_v49 = vld [vmem:[#allocation2 + $0x60] sm:$0xf]  ;;  %v3960_v4 = vshll.u32 %v18772_v1, 16  ;;  %v18813_v41 = vld [vmem:[#allocation2 + $0x44] sm:$0x1]  ;;  %v3985_v20 = vor.u32 %v3984_v26, %v3981_v24  ;;  %v3988_v13 = vshll.u32 %v18795_v60, 16  ;;  %4454 = vmatprep.subr.bf16.mxu1 %v16318_v16  ;;  %1957 = vmatpush1.bf16.msra.mxu0 %v16435_v59 }
 0x25c   : > { %v18815_v17 = vld [vmem:[#allocation2 + $0x54] sm:$0x1]  ;;  %v18818_v12 = vld [vmem:[#allocation2 + $0x5c] sm:$0x1]  ;;  %v4009_v48 = vrot.slane %v4007_v5, 4  ;;  %v4010_v54 = vshll.u32 %v18779_v38, 16  ;;  %1958 = vmatprep.subr.bf16.mxu0 %v16440_v36  ;;  %v3999_v43 = vor.u32 %v3998_v15, %v3995_v37 }
 0x25d   : > { %v16438_v9 = vld [vmem:[%s22844_s1 + $0x2a0] ss:$8 sps:$4 sm:$0xff]   ;;  %v3948_v10 = vrot.slane %v3946_v34, 5  ;;  %v3958_v55 = vrot.slane %v3957_v25, 4  ;;  %v16325_v6 = vld [vmem:[%s22848_s5 + $0x50] ss:$8 sps:$4 sm:$0xff]   ;;  %4258 = vmatmul.mubr.bf16.gmra.mrb[152].mxu1 %v13824_v2 }
 0x25e   : > { %v18827_v44 = vld [vmem:[#allocation2 + $0x68] sm:$0xf]  ;;  %v4021_v16 = vshrl.u32 %v18809_v49, 16  ;;  %v4024_v39 = vshll.u32 %v18809_v49, 16  ;;  %v3974_v24 = vshll.u32 %v18813_v41, 16  ;;  %v3986_v42 = vrot.slane %v3985_v20, 4  ;;  %4267 = vmatprep.mubr.bf16.mxu1 %v22901_v19  ;;  %4455 = vmatpush1.bf16.msra.mxu1 %v16316_v53 }
 0x25f   : > { %v4012_v52 = vrot.slane %v4010_v54, 5  ;;  %v16446_v34 = vld [vmem:[%s22844_s1 + $0x2b4] ss:$8 sps:$4 sm:$0xff]   ;;  %v3944_v58 = vrot.slane %v3943_v30, 4  ;;  %v3962_v45 = vrot.slane %v3960_v4, 5  ;;  %v3972_v59 = vrot.slane %v3971_v7, 4  ;;  %4456 = vmatprep.subr.bf16.mxu1 %v16327_v61  ;;  %1959 = vmatpush1.bf16.msra.mxu0 %v16438_v9 }
 0x260   : > { %v4002_v50 = vshll.u32 %v18815_v17, 16  ;;  %v16336_v11 = vld [vmem:[%s22848_s5 + $0x64] ss:$8 sps:$4 sm:$0xff]   ;;  %v3990_v25 = vrot.slane %v3988_v13, 5  ;;  %v4035_v5 = vshrl.u32 %v18827_v44, 16  ;;  %v4038_v51 = vshll.u32 %v18827_v44, 16  ;;  %1960 = vmatprep.subr.bf16.mxu0 %v16446_v34  ;;  %1918 = vmatmul.mubr.bf16.gmra.mrb[24].mxu0 %v17746_v56 }
 0x261   : > { %v4013_v26 = vor.u32 %v4012_v52, %v4009_v48  ;;  %v16444_v53 = vld [vmem:[%s22844_s1 + $0x2b0] ss:$8 sps:$4 sm:$0xff]   ;;  %v3963_v36 = vsel %vm18678_vm11, %v3958_v55, %v3962_v45  ;;  %v4016_v35 = vshll.u32 %v18818_v12, 16  ;;  %v4023_v37 = vrot.slane %v4021_v16, 4  ;;  %v16449_v61 = vld [vmem:[%s22844_s1 + $0x2c4] ss:$8 sps:$4 sm:$0xff]   ;;  %1927 = vmatprep.mubr.bf16.mxu0 %v17748_v57 }
 0x262   : > { %v4026_v15 = vrot.slane %v4024_v39, 5  ;;  %v3976_v30 = vrot.slane %v3974_v24, 5  ;;  %v3991_v4 = vsel %vm18678_vm11, %v3986_v42, %v3990_v25  ;;  %v4000_v7 = vrot.slane %v3999_v43, 4  ;;  %v16334_v20 = vld [vmem:[%s22848_s5 + $0x60] ss:$8 sps:$4 sm:$0xff]   ;;  %4457 = vmatpush1.bf16.msra.mxu1 %v16325_v6 }
 0x263   : > { %v18858_v2 = vld [vmem:[#allocation2 + $0x78] sm:$0xf]  ;;  %v3949_v13 = vsel %vm18678_vm11, %v3944_v58, %v3948_v10  ;;  %v4004_v48 = vrot.slane %v4002_v50, 5  ;;  %v4014_v54 = vrot.slane %v4013_v26, 4  ;;  %v18862_v9 = vld [vmem:[#allocation2 + $0x64] sm:$0x1]  ;;  %4458 = vmatprep.subr.bf16.mxu1 %v16336_v11  ;;  %1961 = vmatpush1.bf16.msra.mxu0 %v16444_v53 }
 0x264   : > { %v16345_v55 = vld [vmem:[%s22848_s5 + $0x74] ss:$8 sps:$4 sm:$0xff]   ;;  %v13825_v16 = vcombine.low %v3949_v13, %v3963_v36  ;;  %v3977_v39 = vsel %vm18678_vm11, %v3972_v59, %v3976_v30  ;;  %v18869_v24 = vld [vmem:[#allocation2 + $0x6c] sm:$0x1]  ;;  %v4037_v42 = vrot.slane %v4035_v5, 4  ;;  %v4040_v43 = vrot.slane %v4038_v51, 5  ;;  %1962 = vmatprep.subr.bf16.mxu0 %v16449_v61 }
 0x265   : > { %v16447_v10 = vld [vmem:[%s22844_s1 + $0x2c0] ss:$8 sps:$4 sm:$0xff]   ;;  %v18874_v6 = vcombine.low %v3977_v39, %v3991_v4  ;;  %v4018_v52 = vrot.slane %v4016_v35, 5  ;;  %v4027_v34 = vor.u32 %v4026_v15, %v4023_v37  ;;  %v18876_v58 = vld [vmem:[#allocation2 + $0x70] sm:$0xf]  ;;  %v4063_v45 = vshrl.u32 %v18858_v2, 16 }
 0x266   : > { %v16343_v59 = vld [vmem:[%s22848_s5 + $0x70] ss:$8 sps:$4 sm:$0xff]   ;;  %v16455_v50 = vld [vmem:[%s22844_s1 + $0x2d4] ss:$8 sps:$4 sm:$0xff]   ;;  %4268 = vmatmul.mubr.bf16.gmra.mrb[156].mxu1 %v13825_v16  ;;  %v4005_v11 = vsel %vm18678_vm11, %v4000_v7, %v4004_v48  ;;  %v16355_v5 = vld [vmem:[%s22848_s5 + $0x104] ss:$8 sps:$4 sm:$0xff]   ;;  %v4041_v4 = vor.u32 %v4040_v43, %v4037_v42 }
 0x267   : > { %v18896_v51 = vld [vmem:[#allocation2] sm:$0xe]  ;;  %v18898_v53 = vld [vmem:[#allocation2 + $0x8] sm:$0xe]  ;;  %4277 = vmatprep.mubr.bf16.mxu1 %v22901_v19  ;;  %v4019_v36 = vsel %vm18678_vm11, %v4014_v54, %v4018_v52  ;;  %v4044_v35 = vshll.u32 %v18869_v24, 16  ;;  %4459 = vmatpush1.bf16.msra.mxu1 %v16334_v20  ;;  %v4049_v57 = vshrl.u32 %v18876_v58, 16 }
 0x268   : > { %v18909_v61 = vld [vmem:[#allocation2 + $0x10] sm:$0xe]  ;;  %v18911_v30 = vld [vmem:[#allocation2 + $0x18] sm:$0xe]  ;;  %4460 = vmatprep.subr.bf16.mxu1 %v16345_v55  ;;  %1963 = vmatpush1.bf16.msra.mxu0 %v16447_v10  ;;  %v4563_v13 = vld [vmem:[#allocation2 + $0x20] sm:$0xe]  ;;  %v18931_v43 = vcombine.low %v4005_v11, %v4019_v36 }
 0x269   : > { %v16453_v48 = vld [vmem:[%s22844_s1 + $0x2d0] ss:$8 sps:$4 sm:$0xff]   ;;  %v18921_v54 = vrot.slane %v4027_v34, 4  ;;  %v18924_v39 = vrot.slane %v4063_v45, 4  ;;  %1964 = vmatprep.subr.bf16.mxu0 %v16455_v50  ;;  %v16458_v42 = vld [vmem:[%s22844_s1 + $0x2e4] ss:$8 sps:$4 sm:$0xff]  }
 0x26a   : > { %v4066_v10 = vshll.u32 %v18858_v2, 16  ;;  %v4612_v45 = vrot.slane %v18640_v46, 5  ;;  %v4564_v50 = vld [vmem:[#allocation2 + $0x28] sm:$0xe]  ;;  %v13870_v11 = vrot.slane %v18896_v51, 9  ;;  %v13871_v36 = vrot.slane %v18898_v53, 9 }
 0x26b   : > { %v16456_v55 = vld [vmem:[%s22844_s1 + $0x2e0] ss:$8 sps:$4 sm:$0xff]   ;;  %4461 = vmatpush1.bf16.msra.mxu1 %v16343_v59  ;;  %v4616_v52 = vrot.slane %v18646_v3, 5  ;;  %v4620_v20 = vrot.slane %v18682_v27, 5  ;;  %v4565_v7 = vld [vmem:[#allocation2 + $0x30] sm:$0xe] }
 0x26c   : > { %v18950_v15 = vrot.slane %v4041_v4, 4  ;;  %4803 = vmatprep.subr.bf16.mxu1 %v16355_v5  ;;  %v13872_v46 = vrot.slane %v18909_v61, 9  ;;  %v13873_v37 = vrot.slane %v18911_v30, 9  ;;  %v4624_v56 = vrot.slane %v18684_v47, 5  ;;  %1965 = vmatpush1.bf16.msra.mxu0 %v16453_v48  ;;  %v4566_v59 = vld [vmem:[#allocation2 + $0x38] sm:$0xe] }
 0x26d   : > { %v18957_v26 = vsel %vm18938_vm14, %v13870_v11, %v4612_v45  ;;  %v18961_v3 = vsel %vm18938_vm14, %v13871_v36, %v4616_v52  ;;  %v13874_v27 = vrot.slane %v4563_v13, 9  ;;  %v4628_v4 = vrot.slane %v18726_v0, 5  ;;  %v22990_v5 = vld [vmem:[#allocation11_spill] sm:$0xff]  ;;  %1966 = vmatprep.subr.bf16.mxu0 %v16458_v42  ;;  %v16464_v47 = vld [vmem:[%s22844_s1 + $0x2f4] ss:$8 sps:$4 sm:$0xff]   ;;  %v22991_v42 = vld [vmem:[#allocation12_spill] sm:$0xff] }
 0x26e   : > { %1928 = vmatmul.mubr.bf16.gmra.mrb[28].mxu0 %v22990_v5  ;;  %v4567_v48 = vld [vmem:[#allocation2 + $0x40] sm:$0xe]  ;;  %4278 = vmatmul.mubr.bf16.gmra.mrb[160].mxu1 %v18874_v6  ;;  %v18973_v52 = vsel %vm18938_vm14, %v13872_v46, %v4620_v20  ;;  %v18977_v0 = vsel %vm18938_vm14, %v13873_v37, %v4624_v56  ;;  %v13875_v13 = vrot.slane %v4564_v50, 9  ;;  %v4568_v11 = vld [vmem:[#allocation2 + $0x48] sm:$0xe]  ;;  %v4632_v20 = vrot.slane %v18720_v33, 5 }
 0x26f   : > { %1970 = vmatprep.mubr.bf16.mxu0 %v22991_v42  ;;  %4287 = vmatprep.mubr.bf16.mxu1 %v22901_v19  ;;  %v18985_v36 = vsel %vm18938_vm14, %v13874_v27, %v4628_v4  ;;  %v13876_v46 = vrot.slane %v4565_v7, 9  ;;  %v16462_v56 = vld [vmem:[%s22844_s1 + $0x2f0] ss:$8 sps:$4 sm:$0xff]   ;;  %v16467_v37 = vld [vmem:[%s22844_s1 + $0x304] ss:$8 sps:$4 sm:$0xff]   ;;  %v4636_v50 = vrot.slane %v18760_v31, 5 }
 0x270   : > { %1967 = vmatpush1.bf16.msra.mxu0 %v16456_v55  ;;  %v13877_v5 = vrot.slane %v4566_v59, 9  ;;  %v4640_v42 = vrot.slane %v18772_v1, 5  ;;  %v13878_v6 = vrot.slane %v4567_v48, 9  ;;  %v4569_v27 = vld [vmem:[#allocation2 + $0x50] sm:$0xe]  ;;  %v18998_v33 = vsel %vm18938_vm14, %v13875_v13, %v4632_v20 }
 0x271   : > { %1968 = vmatprep.subr.bf16.mxu0 %v16464_v47  ;;  %v4644_v7 = vrot.slane %v18813_v41, 5  ;;  %v13879_v4 = vrot.slane %v4568_v11, 9  ;;  %v4648_v45 = vrot.slane %v18795_v60, 5  ;;  %v4570_v25 = vld [vmem:[#allocation2 + $0x58] sm:$0xe]  ;;  %v4068_v16 = vrot.slane %v4066_v10, 5 }
 0x272   : > { %v19006_v1 = vsel %vm18938_vm14, %v13876_v46, %v4636_v50  ;;  %v19010_v55 = vsel %vm18938_vm14, %v13877_v5, %v4640_v42  ;;  %v4571_v59 = vld [vmem:[#allocation2 + $0x60] sm:$0xe]  ;;  %v4572_v47 = vld [vmem:[#allocation2 + $0x68] sm:$0xe]  ;;  %v19012_v48 = vld [vmem:[#allocation2 + $0x74] sm:$0x1] }
 0x273   : > { %v19018_v41 = vsel %vm18938_vm14, %v13878_v6, %v4644_v7  ;;  %v19022_v10 = vsel %vm18938_vm14, %v13879_v4, %v4648_v45  ;;  %v4652_v13 = vrot.slane %v18815_v17, 5  ;;  %v3848_v11 = vld [vmem:[#allocation2 + $0x7c] sm:$0x1]  ;;  %v16465_v20 = vld [vmem:[%s22844_s1 + $0x300] ss:$8 sps:$4 sm:$0xff]   ;;  %v13880_v50 = vrot.slane %v4569_v27, 9 }
 0x274   : > { %1969 = vmatpush1.bf16.msra.mxu0 %v16462_v56  ;;  %v13881_v5 = vrot.slane %v4570_v25, 9  ;;  %v4656_v6 = vrot.slane %v18818_v12, 5  ;;  %v16473_v45 = vld [vmem:[%s22844_s1 + $0x314] ss:$8 sps:$4 sm:$0xff]   ;;  %v13882_v42 = vrot.slane %v4571_v59, 9  ;;  %v4660_v17 = vrot.slane %v18862_v9, 5 }
 0x275   : > { %2051 = vmatprep.subr.bf16.mxu0 %v16467_v37  ;;  %v13883_v56 = vrot.slane %v4572_v47, 9  ;;  %v4664_v7 = vrot.slane %v18869_v24, 5  ;;  %v4046_v4 = vrot.slane %v4044_v35, 5  ;;  %v4051_v25 = vrot.slane %v4049_v57, 4  ;;  %v4573_v27 = vld [vmem:[#allocation2 + $0x70] sm:$0xe] }
 0x276   : > { %4288 = vmatmul.mubr.bf16.gmra.mrb[164].mxu1 %v18931_v43  ;;  %v19043_v12 = vsel %vm18938_vm14, %v13880_v50, %v4652_v13  ;;  %v19047_v37 = vsel %vm18938_vm14, %v13881_v5, %v4656_v6  ;;  %v4574_v59 = vld [vmem:[#allocation2 + $0x78] sm:$0xe]  ;;  %v22992_v43 = vshll.u32 %v18876_v58, 16  ;;  %v22993_v24 = vld [vmem:[#allocation13_spill] sm:$0xff]  ;;  %v19057_v57 = vsel %vm18938_vm14, %v13882_v42, %v4660_v17  ;;  %v5541_v60 = vld [vmem:[#allocation2 + $0x60] sm:$0xc] }
 0x277   : > { %4297 = vmatprep.mubr.bf16.mxu1 %v22901_v19  ;;  %1971 = vmatmul.mubr.bf16.vlgmr.msra.gmra.mrb[0].mxu0 %v22993_v24  ;;  %v19061_v13 = vsel %vm18938_vm14, %v13883_v56, %v4664_v7  ;;  %v22994_v50 = vshll.u32 %v18862_v9, 16  ;;  %v4047_v6 = vsel %vm18678_vm11, %v18950_v15, %v4046_v4  ;;  %v22995_v24 = vld [vmem:[#allocation14_spill] sm:$0xff]  ;;  %v4668_v17 = vrot.slane %v19012_v48, 5  ;;  %v16476_v9 = vld [vmem:[%s22844_s1 + $0x324] ss:$8 sps:$4 sm:$0xff]  }
 0x278   : > { %v4054_v47 = vrot.slane %v22992_v43, 5  ;;  %2052 = vmatpush1.bf16.msra.mxu0 %v16465_v20  ;;  %v16471_v43 = vld [vmem:[%s22844_s1 + $0x310] ss:$8 sps:$4 sm:$0xff]   ;;  %1980 = vmatprep.mubr.bf16.mxu0 %v22995_v24  ;;  %v4069_v56 = vor.u32 %v4068_v16, %v18924_v39  ;;  %v13884_v15 = vrot.slane %v4573_v27, 9  ;;  %v13885_v20 = vrot.slane %v4574_v59, 9 }
 0x279   : > { %v4032_v5 = vrot.slane %v22994_v50, 5  ;;  %2053 = vmatprep.subr.bf16.mxu0 %v16473_v45  ;;  %v4672_v7 = vrot.slane %v3848_v11, 5  ;;  %v4072_v24 = vshll.u32 %v3848_v11, 16  ;;  %v16474_v45 = vld [vmem:[%s22844_s1 + $0x320] ss:$8 sps:$4 sm:$0xff]   ;;  %vm6545_vm1 = vcmask 1040384  }
 0x27a   : > { %v4055_v50 = vor.u32 %v4054_v47, %v4051_v25  ;;  %v19084_v42 = vsel %vm18938_vm14, %v13884_v15, %v4668_v17  ;;  %v4070_v11 = vrot.slane %v4069_v56, 4  ;;  %v16482_v25 = vld [vmem:[%s22844_s1 + $0x334] ss:$8 sps:$4 sm:$0xff]   ;;  %v22996_v47 = vld [vmem:[#allocation15_spill] sm:$0xff]  ;;  %v16489_v62 = vld [vmem:[%s22844_s1 + $0x350] ss:$8 sps:$4 sm:$0xff]  }
 0x27b   : > { %v4033_v4 = vsel %vm18678_vm11, %v18921_v54, %v4032_v5  ;;  %v19088_v16 = vsel %vm18938_vm14, %v13885_v20, %v4672_v7  ;;  %v4058_v54 = vshll.u32 %v19012_v48, 16  ;;  %v4074_v59 = vrot.slane %v4072_v24, 5  ;;  %v16480_v5 = vld [vmem:[%s22844_s1 + $0x330] ss:$8 sps:$4 sm:$0xff]   ;;  %v16485_v17 = vld [vmem:[%s22844_s1 + $0x344] ss:$8 sps:$4 sm:$0xff]   ;;  %vm19569_vm5 = vmor %vm6545_vm1, %vm6546_vm4 }
 0x27c   : > { %v13828_v39 = vcombine.low %v4033_v4, %v4047_v6  ;;  %2054 = vmatpush1.bf16.msra.mxu0 %v16471_v43  ;;  %v4056_v34 = vrot.slane %v4055_v50, 4  ;;  %v22997_v6 = vld [vmem:[#allocation16_spill] sm:$0xff]  ;;  %v16491_v20 = vld [vmem:[%s22844_s1 + $0x354] ss:$8 sps:$4 sm:$0xff]  }
 0x27d   : > { %2055 = vmatprep.subr.bf16.mxu0 %v16476_v9  ;;  %v4060_v48 = vrot.slane %v4058_v54, 5  ;;  %v4075_v43 = vsel %vm18678_vm11, %v4070_v11, %v4074_v59  ;;  %v16483_v15 = vld [vmem:[%s22844_s1 + $0x340] ss:$8 sps:$4 sm:$0xff]   ;;  %v22998_v7 = vld [vmem:[#allocation17_spill] sm:$0xff]  ;;  %v22999_v4 = vld [vmem:[#allocation18_spill] sm:$0xff]  ;;  %v23000_v54 = vcombine.low %v18586_v28, %v18618_v14 }
 0x27e   : > { %4298 = vmatmul.mubr.bf16.gmra.mrb[168].mxu1 %v13828_v39  ;;  %v16494_v50 = vld [vmem:[%s22844_s1 + $0x364] ss:$8 sps:$4 sm:$0xff]   ;;  %v16353_v24 = vld [vmem:[%s22848_s5 + $0x100] ss:$8 sps:$4 sm:$0xff]   ;;  %v16365_v39 = vld [vmem:[%s22848_s5 + $0x114] ss:$8 sps:$4 sm:$0xff]  }
 0x27f   : > { %4307 = vmatprep.mubr.bf16.mxu1 %v22901_v19  ;;  %1981 = vmatmul.mubr.bf16.gmra.mrb[4].mxu0 %v22996_v47  ;;  %v4061_v56 = vsel %vm18678_vm11, %v4056_v34, %v4060_v48  ;;  %v16500_v11 = vld [vmem:[%s22844_s1 + $0x374] ss:$8 sps:$4 sm:$0xff]   ;;  %v16375_v34 = vld [vmem:[%s22848_s5 + $0x124] ss:$8 sps:$4 sm:$0xff]   ;;  %v16498_v28 = vld [vmem:[%s22844_s1 + $0x370] ss:$8 sps:$4 sm:$0xff]  }
 0x280   : > { %2056 = vmatpush1.bf16.msra.mxu0 %v16474_v45  ;;  %1990 = vmatprep.mubr.bf16.mxu0 %v22997_v6  ;;  %v13829_v9 = vcombine.low %v4061_v56, %v4075_v43  ;;  %v16492_v45 = vld [vmem:[%s22844_s1 + $0x360] ss:$8 sps:$4 sm:$0xff]   ;;  %v16503_v47 = vld [vmem:[%s22844_s1 + $0x384] ss:$8 sps:$4 sm:$0xff]   ;;  %v16385_v6 = vld [vmem:[%s22848_s5 + $0x134] ss:$8 sps:$4 sm:$0xff]   ;;  %v23003_v43 = vcombine.low %v18642_v23, %v18658_v40 }
 0x281   : > { %2057 = vmatprep.subr.bf16.mxu0 %v16482_v25  ;;  %v16363_v25 = vld [vmem:[%s22848_s5 + $0x110] ss:$8 sps:$4 sm:$0xff]   ;;  %v23001_v59 = vld [vmem:[#allocation19_spill] sm:$0xff]  ;;  %v23002_v14 = vld [vmem:[#allocation20_spill] sm:$0xff]  ;;  %vm6979_vm11 = vcmask 261124  }
 0x282   : > { %v16501_v48 = vld [vmem:[%s22844_s1 + $0x380] ss:$8 sps:$4 sm:$0xff]   ;;  %v16383_v56 = vld [vmem:[%s22848_s5 + $0x130] ss:$8 sps:$4 sm:$0xff]   ;;  %v19343_v35 = vld [vmem:[#allocation2 + $0x74] sm:$0x3] }
 0x283   : > { %v16507_v23 = vld [vmem:[%s22844_s1 + $0x390] ss:$8 sps:$4 sm:$0xff]   ;;  %vm20189_vm12 = vmor %vm6979_vm11, %vm6978_vm2 }
 0x284   : > { %2058 = vmatpush1.bf16.msra.mxu0 %v16480_v5  ;;  %v16373_v5 = vld [vmem:[%s22848_s5 + $0x120] ss:$8 sps:$4 sm:$0xff]   ;;  %v23005_v40 = vld [vmem:[#allocation22_spill] sm:$0xff] }
 0x285   : > { %2059 = vmatprep.subr.bf16.mxu0 %v16485_v17  ;;  %v16509_v17 = vld [vmem:[%s22844_s1 + $0x394] ss:$8 sps:$4 sm:$0xff]  }
 0x286   : > { %4308 = vmatmul.mubr.bf16.gmra.mrb[172].mxu1 %v13829_v9  ;;  %v16395_v9 = vld [vmem:[%s22848_s5 + $0x144] ss:$8 sps:$4 sm:$0xff]  }
 0x287   : > { %4478 = vmatprep.mubr.bf16.mxu1 %v22901_v19  ;;  %1991 = vmatmul.mubr.bf16.gmra.mrb[8].mxu0 %v22998_v7  ;;  %v16393_v7 = vld [vmem:[%s22848_s5 + $0x140] ss:$8 sps:$4 sm:$0xff]  }
 0x288   : > { %2060 = vmatpush1.bf16.msra.mxu0 %v16483_v15  ;;  %2000 = vmatprep.mubr.bf16.mxu0 %v22999_v4  ;;  %v23004_v15 = vld [vmem:[#allocation21_spill] sm:$0xff]  ;;  %v16510_v4 = vld [vmem:[%s22844_s1 + $0x3a0] ss:$8 sps:$4 sm:$0xff]  }
 0x289   : > { %2061 = vmatprep.subr.bf16.mxu0 %v16491_v20  ;;  %v16512_v20 = vld [vmem:[%s22844_s1 + $0x3a4] ss:$8 sps:$4 sm:$0xff]  }
 0x28c   : > { %2062 = vmatpush1.bf16.msra.mxu0 %v16489_v62  ;;  %v16405_v62 = vld [vmem:[%s22848_s5 + $0x154] ss:$8 sps:$4 sm:$0xff]  }
 0x28d   : > { %2063 = vmatprep.subr.bf16.mxu0 %v16494_v50  ;;  %v23006_v50 = vcombine.low %v18672_v29, %v18688_v63  ;;  %v16516_v29 = vld [vmem:[%s22844_s1 + $0x3b0] ss:$8 sps:$4 sm:$0xff]   ;;  %v23008_v63 = vld [vmem:[#allocation24_spill] sm:$0xff] }
 0x28e   : > { %4479 = vmatmul.mubr.bf16.vlgmr.msra.gmra.mrb[144].mxu1 %v23000_v54  ;;  %v23007_v54 = vld [vmem:[#allocation23_spill] sm:$0xff] }
 0x28f   : > { %4804 = vmatpush1.bf16.msra.mxu1 %v16353_v24  ;;  %4488 = vmatprep.mubr.bf16.mxu1 %v22901_v19  ;;  %v16518_v24 = vld [vmem:[%s22844_s1 + $0x3b4] ss:$8 sps:$4 sm:$0xff]  }
 0x290   : > { %4805 = vmatprep.subr.bf16.mxu1 %v16365_v39  ;;  %2001 = vmatmul.mubr.bf16.gmra.mrb[12].mxu0 %v23001_v59  ;;  %v16403_v39 = vld [vmem:[%s22848_s5 + $0x150] ss:$8 sps:$4 sm:$0xff]   ;;  %v16519_v59 = vld [vmem:[%s22844_s1 + $0x3c0] ss:$8 sps:$4 sm:$0xff]  }
 0x291   : > { %2064 = vmatpush1.bf16.msra.mxu0 %v16492_v45  ;;  %2010 = vmatprep.mubr.bf16.mxu0 %v23002_v14  ;;  %v16415_v45 = vld [vmem:[%s22848_s5 + $0x164] ss:$8 sps:$4 sm:$0xff]   ;;  %v16527_v14 = vld [vmem:[%s22844_s1 + $0x3d4] ss:$8 sps:$4 sm:$0xff]  }
 0x292   : > { %2065 = vmatprep.subr.bf16.mxu0 %v16500_v11  ;;  %v16521_v11 = vld [vmem:[%s22844_s1 + $0x3c4] ss:$8 sps:$4 sm:$0xff]  }
 0x293   : > { %4806 = vmatpush1.bf16.msra.mxu1 %v16363_v25  ;;  %v16413_v25 = vld [vmem:[%s22848_s5 + $0x160] ss:$8 sps:$4 sm:$0xff]  }
 0x294   : > { %4807 = vmatprep.subr.bf16.mxu1 %v16375_v34  ;;  %v16425_v34 = vld [vmem:[%s22848_s5 + $0x174] ss:$8 sps:$4 sm:$0xff]  }
 0x295   : > { %2066 = vmatpush1.bf16.msra.mxu0 %v16498_v28  ;;  %v23009_v28 = vcombine.low %v18715_v21, %v18717_v22  ;;  %v16525_v21 = vld [vmem:[%s22844_s1 + $0x3d0] ss:$8 sps:$4 sm:$0xff]  }
 0x296   : > { %4489 = vmatmul.mubr.bf16.gmra.mrb[148].mxu1 %v23003_v43  ;;  %2067 = vmatprep.subr.bf16.mxu0 %v16503_v47  ;;  %v16423_v47 = vld [vmem:[%s22848_s5 + $0x170] ss:$8 sps:$4 sm:$0xff]   ;;  %v16528_v43 = vld [vmem:[%s22844_s1 + $0x3e0] ss:$8 sps:$4 sm:$0xff]  }
 0x297   : > { %4498 = vmatprep.mubr.bf16.mxu1 %v22901_v19  ;;  %4808 = vmatpush1.bf16.msra.mxu1 %v16373_v5  ;;  %v16434_v5 = vld [vmem:[%s22848_s5 + $0x184] ss:$8 sps:$4 sm:$0xff]   ;;  %v23011_v22 = vld [vmem:[#allocation26_spill] sm:$0xff] }
 0x298   : > { %4809 = vmatprep.subr.bf16.mxu1 %v16385_v6  ;;  %2011 = vmatmul.mubr.bf16.gmra.mrb[16].mxu0 %v23004_v15  ;;  %v23010_v6 = vld [vmem:[#allocation25_spill] sm:$0xff]  ;;  %v19259_v15 = vld [vmem:[#allocation2 + $0xc] sm:$0x3] }
 0x299   : > { %2068 = vmatpush1.bf16.msra.mxu0 %v16501_v48  ;;  %2020 = vmatprep.mubr.bf16.mxu0 %v23005_v40  ;;  %v16530_v48 = vld [vmem:[%s22844_s1 + $0x3e4] ss:$8 sps:$4 sm:$0xff]   ;;  %v5529_v40 = vld [vmem:[#allocation2] sm:$0xc] }
 0x29a   : > { %2069 = vmatprep.subr.bf16.mxu0 %v16509_v17  ;;  %v23012_v17 = vcombine.low %v18728_v8, %v18730_v32  ;;  %v16534_v8 = vld [vmem:[%s22844_s1 + $0x3f0] ss:$8 sps:$4 sm:$0xff]   ;;  %v23014_v32 = vld [vmem:[#allocation28_spill] sm:$0xff] }
 0x29b   : > { %4810 = vmatpush1.bf16.msra.mxu1 %v16383_v56  ;;  %v16536_v56 = vld [vmem:[%s22844_s1 + $0x3f4] ss:$8 sps:$4 sm:$0xff]  }
 0x29c   : > { %4811 = vmatprep.subr.bf16.mxu1 %v16395_v9  ;;  %v19257_v9 = vld [vmem:[#allocation2 + $0x4] sm:$0x3] }
 0x29d   : > { %2070 = vmatpush1.bf16.msra.mxu0 %v16507_v23  ;;  %v23013_v23 = vld [vmem:[#allocation27_spill] sm:$0xff] }
 0x29e   : > { %4499 = vmatmul.mubr.bf16.gmra.mrb[152].mxu1 %v23006_v50  ;;  %2071 = vmatprep.subr.bf16.mxu0 %v16512_v20  ;;  %v5530_v20 = vld [vmem:[#allocation2 + $0x8] sm:$0xc]  ;;  %v19270_v50 = vld [vmem:[#allocation2 + $0x24] sm:$0x3] }
 0x29f   : > { %4508 = vmatprep.mubr.bf16.mxu1 %v22901_v19  ;;  %4812 = vmatpush1.bf16.msra.mxu1 %v16393_v7  ;;  %v19266_v7 = vld [vmem:[#allocation2 + $0x14] sm:$0x3] }
 0x2a0   : > { %4813 = vmatprep.subr.bf16.mxu1 %v16405_v62  ;;  %2021 = vmatmul.mubr.bf16.gmra.mrb[20].mxu0 %v23007_v54  ;;  %v19268_v62 = vld [vmem:[#allocation2 + $0x1c] sm:$0x3]  ;;  %v5532_v54 = vld [vmem:[#allocation2 + $0x18] sm:$0xc] }
 0x2a1   : > { %2072 = vmatpush1.bf16.msra.mxu0 %v16510_v4  ;;  %2030 = vmatprep.mubr.bf16.mxu0 %v23008_v63  ;;  %v5531_v4 = vld [vmem:[#allocation2 + $0x10] sm:$0xc]  ;;  %v13967_v63 = vrot.slane %v5530_v20, 10 }
 0x2a2   : > { %2073 = vmatprep.subr.bf16.mxu0 %v16518_v24  ;;  %v19272_v24 = vld [vmem:[#allocation2 + $0x2c] sm:$0x3] }
 0x2a3   : > { %4814 = vmatpush1.bf16.msra.mxu1 %v16403_v39  ;;  %v16443_v39 = vld [vmem:[%s22848_s5 + $0x194] ss:$8 sps:$4 sm:$0xff]  }
 0x2a4   : > { %4815 = vmatprep.subr.bf16.mxu1 %v16415_v45  ;;  %v5581_v45 = vrot.slane %v19257_v9, 6 }
 0x2a5   : > { %2074 = vmatpush1.bf16.msra.mxu0 %v16516_v29  ;;  %v13966_v29 = vrot.slane %v5529_v40, 10  ;;  %v19310_v40 = vld [vmem:[#allocation2 + $0x54] sm:$0x3] }
 0x2a6   : > { %4509 = vmatmul.mubr.bf16.gmra.mrb[156].mxu1 %v23009_v28  ;;  %2075 = vmatprep.subr.bf16.mxu0 %v16521_v11  ;;  %v5585_v11 = vrot.slane %v19259_v15, 6  ;;  %v5589_v28 = vrot.slane %v19266_v7, 6 }
 0x2a7   : > { %4518 = vmatprep.mubr.bf16.mxu1 %v22901_v19  ;;  %4816 = vmatpush1.bf16.msra.mxu1 %v16413_v25  ;;  %v5533_v25 = vld [vmem:[#allocation2 + $0x20] sm:$0xc] }
 0x2a8   : > { %4817 = vmatprep.subr.bf16.mxu1 %v16425_v34  ;;  %2031 = vmatmul.mubr.bf16.gmra.mrb[24].mxu0 %v23010_v6  ;;  %v19281_v34 = vld [vmem:[#allocation2 + $0x34] sm:$0x3]  ;;  %v19291_v6 = vsel %vm19275_vm3, %v13966_v29, %v5581_v45  ;;  %v5537_v29 = vld [vmem:[#allocation2 + $0x40] sm:$0xc] }
 0x2a9   : > { %2076 = vmatpush1.bf16.msra.mxu0 %v16519_v59  ;;  %2040 = vmatprep.mubr.bf16.mxu0 %v23011_v22  ;;  %v13968_v59 = vrot.slane %v5531_v4, 10  ;;  %v13969_v22 = vrot.slane %v5532_v54, 10  ;;  %v5597_v4 = vrot.slane %v19270_v50, 6  ;;  %v5601_v54 = vrot.slane %v19272_v24, 6 }
 0x2aa   : > { %2077 = vmatprep.subr.bf16.mxu0 %v16527_v14  ;;  %v5534_v14 = vld [vmem:[#allocation2 + $0x28] sm:$0xc] }
 0x2ab   : > { %4818 = vmatpush1.bf16.msra.mxu1 %v16423_v47  ;;  %v23017_v47 = vcombine.low %v18769_v18, %v18779_v38  ;;  %v19301_v18 = vld [vmem:[#allocation2 + $0x4c] sm:$0x3]  ;;  %v13971_v45 = vrot.slane %v5534_v14, 10  ;;  %v19332_v38 = vld [vmem:[#allocation2 + $0x64] sm:$0x3] }
 0x2ac   : > { %5384 = vmatprep.subr.bf16.mxu1 %v16434_v5  ;;  %v19287_v5 = vld [vmem:[#allocation2 + $0x3c] sm:$0x3] }
 0x2ad   : > { %2078 = vmatpush1.bf16.msra.mxu0 %v16525_v21  ;;  %v19295_v21 = vsel %vm19275_vm3, %v13967_v63, %v5585_v11  ;;  %v23019_v63 = vld [vmem:[#allocation30_spill] sm:$0xff]  ;;  %v19330_v14 = vsel %vm19275_vm3, %v13971_v45, %v5601_v54  ;;  %v19334_v11 = vld [vmem:[#allocation2 + $0x6c] sm:$0x3]  ;;  %v5617_v54 = vrot.slane %v19301_v18, 6 }
 0x2ae   : > { %4519 = vmatmul.mubr.bf16.gmra.mrb[160].mxu1 %v23012_v17  ;;  %2079 = vmatprep.subr.bf16.mxu0 %v16530_v48  ;;  %v5593_v48 = vrot.slane %v19268_v62, 6  ;;  %v19299_v17 = vld [vmem:[#allocation2 + $0x44] sm:$0x3]  ;;  %23021 = vst [vmem:[#allocation12_spill] sm:$0xff] %v19330_v14  ;;  %v19356_v14 = vld [vmem:[#allocation2 + $0x7c] sm:$0x3] }
 0x2af   : > { %4528 = vmatprep.mubr.bf16.mxu1 %v22901_v19  ;;  %v5613_v45 = vrot.slane %v19299_v17, 6 }
 0x2b0   : > { %2041 = vmatmul.mubr.bf16.gmra.mrb[28].mxu0 %v23013_v23  ;;  %v13970_v23 = vrot.slane %v5533_v25, 10  ;;  %v19314_v20 = vsel %vm19275_vm3, %v13969_v22, %v5593_v48 }
 0x2b1   : > { %2080 = vmatpush1.bf16.msra.mxu0 %v16528_v43  ;;  %2083 = vmatprep.mubr.bf16.mxu0 %v23014_v32  ;;  %v5535_v43 = vld [vmem:[#allocation2 + $0x30] sm:$0xc] }
 0x2b2   : > { %2081 = vmatprep.subr.bf16.mxu0 %v16536_v56  ;;  %v19307_v56 = vsel %vm19275_vm3, %v13968_v59, %v5589_v28  ;;  %v23018_v32 = vld [vmem:[#allocation29_spill] sm:$0xff]  ;;  %v13972_v25 = vrot.slane %v5535_v43, 10  ;;  %v5605_v59 = vrot.slane %v19281_v34, 6  ;;  %v5538_v28 = vld [vmem:[#allocation2 + $0x48] sm:$0xc]  ;;  %v19326_v22 = vsel %vm19275_vm3, %v13970_v23, %v5597_v4 }
 0x2b3   : > { %23020 = vst [vmem:[#allocation11_spill] sm:$0xff] %v19326_v22  ;;  %v5609_v23 = vrot.slane %v19287_v5, 6  ;;  %v13974_v4 = vrot.slane %v5537_v29, 10  ;;  %v5621_v43 = vrot.slane %v19310_v40, 6  ;;  %v23023_v29 = vcombine.low %v18809_v49, %v18827_v44  ;;  %v23027_v49 = vld [vmem:[#allocation32_spill] sm:$0xff] }
 0x2b4   : > { %v19340_v27 = vsel %vm19275_vm3, %v13972_v25, %v5605_v59  ;;  %v23025_v22 = vmov 0  }
 0x2b5   : > { %2082 = vmatpush1.bf16.msra.mxu0 %v16534_v8  ;;  %v5536_v8 = vld [vmem:[#allocation2 + $0x38] sm:$0xc]  ;;  %6981 = vst.msk [vmem:[#allocation3] sm:$0xff] %vm20189_vm12, %v23025_v22  ;;  %6982 = vst.msk [vmem:[#allocation3 + $0x8] sm:$0xff] %vm20189_vm12, %v23025_v22 }
 0x2b6   : > { %4529 = vmatmul.mubr.bf16.gmra.mrb[164].mxu1 %v23017_v47  ;;  %v5539_v47 = vld [vmem:[#allocation2 + $0x50] sm:$0xc]  ;;  %v13973_v48 = vrot.slane %v5536_v8, 10  ;;  %v13975_v8 = vrot.slane %v5538_v28, 10  ;;  %6983 = vst.msk [vmem:[#allocation3 + $0x10] sm:$0xff] %vm20189_vm12, %v23025_v22  ;;  %6984 = vst.msk [vmem:[#allocation3 + $0x70] sm:$0xff] %vm20189_vm12, %v23025_v22 }
 0x2b7   : > { %4538 = vmatprep.mubr.bf16.mxu1 %v22901_v19  ;;  %v13976_v46 = vrot.slane %v5539_v47, 10  ;;  %v5542_v19 = vld [vmem:[#allocation2 + $0x68] sm:$0xc]  ;;  %v19362_v47 = vsel %vm19275_vm3, %v13974_v4, %v5613_v45  ;;  %v5629_v4 = vrot.slane %v19332_v38, 6  ;;  %v23026_v45 = vld [vmem:[#allocation31_spill] sm:$0xff]  ;;  %6985 = vst.msk [vmem:[#allocation3 + $0x78] sm:$0xff] %vm20189_vm12, %v23025_v22 }
 0x2b8   : > { %2084 = vmatmul.mubr.bf16.vlgmr.msra.gmra.mrb[0].mxu0 %v23018_v32  ;;  %v19322_v32 = vld [vmem:[#allocation2 + $0x5c] sm:$0x3]  ;;  %v19349_v31 = vsel %vm19275_vm3, %v13973_v48, %v5609_v23  ;;  %v19366_v48 = vsel %vm19275_vm3, %v13975_v8, %v5617_v54  ;;  %v5544_v23 = vld [vmem:[#allocation2 + $0x78] sm:$0xc]  ;;  %v13978_v54 = vrot.slane %v5541_v60, 10  ;;  %v13979_v28 = vrot.slane %v5542_v19, 10 }
 0x2b9   : > { %2093 = vmatprep.mubr.bf16.mxu0 %v23019_v63  ;;  %v5540_v63 = vld [vmem:[#allocation2 + $0x58] sm:$0xc]  ;;  %23022 = vst [vmem:[#allocation13_spill] sm:$0xff] %v19349_v31  ;;  %v5625_v59 = vrot.slane %v19322_v32, 6  ;;  %23024 = vst [vmem:[#allocation14_spill] sm:$0xff] %v19366_v48  ;;  %v19373_v44 = vsel %vm19275_vm3, %v13976_v46, %v5621_v43  ;;  %v5633_v31 = vrot.slane %v19334_v11, 6 }
 0x2ba   : > { %v13977_v25 = vrot.slane %v5540_v63, 10  ;;  %v5543_v63 = vld [vmem:[#allocation2 + $0x70] sm:$0xc]  ;;  %v5637_v46 = vrot.slane %v19343_v35, 6  ;;  %v13981_v43 = vrot.slane %v5544_v23, 10  ;;  %6986 = vst.msk [vmem:[#allocation3 + $0x80] sm:$0xff] %vm20189_vm12, %v23025_v22 }
 0x2bb   : > { %v13980_v48 = vrot.slane %v5543_v63, 10  ;;  %v19580_v8 = vld [vmem:[#allocation2 + $0x44] sm:$0x7]  ;;  %6988 = vst.msk [vmem:[#allocation3 + $0x58] sm:$0xff] %vm20189_vm12, %v23025_v22  ;;  %6989 = vst.msk [vmem:[#allocation3 + $0x60] sm:$0xff] %vm20189_vm12, %v23025_v22 }
 0x2bc   : > { %23059 = vst [vmem:[#allocation25_spill] sm:$0xff] %v19580_v8  ;;  %6990 = vst.msk [vmem:[#allocation3 + $0x68] sm:$0xff] %vm20189_vm12, %v23025_v22 }
 0x2bd   : > { %v19399_v60 = vsel %vm19275_vm3, %v13980_v48, %v5637_v46  ;;  %v16432_v48 = vld [vmem:[%s22848_s5 + $0x180] ss:$8 sps:$4 sm:$0xff]   ;;  %6991 = vst.msk [vmem:[#allocation3 + $0xc8] sm:$0xff] %vm20189_vm12, %v23025_v22  ;;  %6992 = vst.msk [vmem:[#allocation3 + $0xd0] sm:$0xff] %vm20189_vm12, %v23025_v22 }
 0x2be   : > { %4539 = vmatmul.mubr.bf16.gmra.mrb[168].mxu1 %v23023_v29  ;;  %v19377_v29 = vsel %vm19275_vm3, %v13977_v25, %v5625_v59  ;;  %v5641_v25 = vrot.slane %v19356_v14, 6  ;;  %v19389_v59 = vsel %vm19275_vm3, %v13978_v54, %v5629_v4  ;;  %23030 = vst [vmem:[#allocation17_spill] sm:$0xff] %v19399_v60  ;;  %v23035_v4 = vcombine.low %v18957_v26, %v18961_v3  ;;  %v23036_v54 = vld [vmem:[#allocation35_spill] sm:$0xff]  ;;  %v23037_v46 = vld [vmem:[#allocation36_spill] sm:$0xff]  ;;  %v16461_v3 = vld [vmem:[%s22848_s5 + $0x1b4] ss:$8 sps:$4 sm:$0xff]  }
 0x2bf   : > { %4548 = vmatprep.mubr.bf16.mxu1 %v23025_v22  ;;  %23028 = vst [vmem:[#allocation15_spill] sm:$0xff] %v19389_v59  ;;  %v16450_v26 = vld [vmem:[%s22848_s5 + $0x1a0] ss:$8 sps:$4 sm:$0xff]   ;;  %v6504_v59 = vld [vmem:[#allocation2 + $0x38] sm:$0x8]  ;;  %6993 = vst.msk [vmem:[#allocation3 + $0xd8] sm:$0xff] %vm20189_vm12, %v23025_v22 }
 0x2c0   : > { %2094 = vmatmul.mubr.bf16.gmra.mrb[4].mxu0 %v23026_v45  ;;  %v19393_v45 = vsel %vm19275_vm3, %v13979_v28, %v5633_v31  ;;  %v19403_v63 = vsel %vm19275_vm3, %v13981_v43, %v5641_v25  ;;  %v23033_v31 = vld [vmem:[#allocation33_spill] sm:$0xff]  ;;  %v23034_v28 = vld [vmem:[#allocation34_spill] sm:$0xff]  ;;  %v23038_v43 = vcombine.low %v18973_v52, %v18977_v0  ;;  %v16555_v25 = vld [vmem:[%s22844_s1 + $0x400] ss:$8 sps:$4 sm:$0xff]  }
 0x2c1   : > { %2103 = vmatprep.mubr.bf16.mxu0 %v23027_v49  ;;  %23029 = vst [vmem:[#allocation16_spill] sm:$0xff] %v19393_v45  ;;  %23031 = vst [vmem:[#allocation18_spill] sm:$0xff] %v19403_v63  ;;  %v23032_v49 = vcombine.low %v18876_v58, %v18858_v2  ;;  %v16441_v2 = vld [vmem:[%s22848_s5 + $0x190] ss:$8 sps:$4 sm:$0xff]   ;;  %v16452_v58 = vld [vmem:[%s22848_s5 + $0x1a4] ss:$8 sps:$4 sm:$0xff]  }
 0x2c2   : > { %v16470_v52 = vld [vmem:[%s22848_s5 + $0x1c4] ss:$8 sps:$4 sm:$0xff]   ;;  %v23039_v0 = vld [vmem:[#allocation37_spill] sm:$0xff]  ;;  %v6502_v60 = vld [vmem:[#allocation2 + $0x28] sm:$0x8] }
 0x2c3   : > { %v6503_v45 = vld [vmem:[#allocation2 + $0x30] sm:$0x8] }
 0x2c6   : > { %4549 = vmatmul.mubr.bf16.gmra.mrb[172].mxu1 %v23032_v49  ;;  %v16459_v49 = vld [vmem:[%s22848_s5 + $0x1b0] ss:$8 sps:$4 sm:$0xff]  }
 0x2c7   : > { %4835 = vmatprep.mubr.bf16.mxu1 %v23025_v22 }
 0x2c8   : > { %2104 = vmatmul.mubr.bf16.gmra.mrb[8].mxu0 %v23033_v31  ;;  %v16557_v31 = vld [vmem:[%s22844_s1 + $0x404] ss:$8 sps:$4 sm:$0xff]  }
 0x2c9   : > { %2113 = vmatprep.mubr.bf16.mxu0 %v23034_v28  ;;  %v23040_v28 = vld [vmem:[#allocation38_spill] sm:$0xff]  ;;  %2164 = vmatprep.subr.bf16.mxu0 %v16557_v31  ;;  %v4968_v31 = vshrl.u32 %v18896_v51, 16 }
 0x2ca   : > { %2165 = vmatpush1.bf16.msra.mxu0 %v16555_v25  ;;  %v16497_v25 = vld [vmem:[%s22848_s5 + $0x1f4] ss:$8 sps:$4 sm:$0xff]  }
 0x2ce   : > { %4836 = vmatmul.mubr.bf16.vlgmr.msra.gmra.mrb[144].mxu1 %v23035_v4  ;;  %v23041_v4 = vcombine.low %v18985_v36, %v18998_v33  ;;  %v16566_v36 = vld [vmem:[%s22844_s1 + $0x424] ss:$8 sps:$4 sm:$0xff]  }
 0x2cf   : > { %5385 = vmatpush1.bf16.msra.mxu1 %v16432_v48  ;;  %4845 = vmatprep.mubr.bf16.mxu1 %v23025_v22  ;;  %v16468_v48 = vld [vmem:[%s22848_s5 + $0x1c0] ss:$8 sps:$4 sm:$0xff]   ;;  %v16488_v33 = vld [vmem:[%s22848_s5 + $0x1e4] ss:$8 sps:$4 sm:$0xff]  }
 0x2d0   : > { %5386 = vmatprep.subr.bf16.mxu1 %v16443_v39  ;;  %2114 = vmatmul.mubr.bf16.gmra.mrb[12].mxu0 %v23036_v54  ;;  %v16479_v39 = vld [vmem:[%s22848_s5 + $0x1d4] ss:$8 sps:$4 sm:$0xff]  }
 0x2d1   : > { %2123 = vmatprep.mubr.bf16.mxu0 %v23037_v46  ;;  %v16563_v54 = vld [vmem:[%s22844_s1 + $0x414] ss:$8 sps:$4 sm:$0xff]   ;;  %v23042_v46 = vld [vmem:[#allocation39_spill] sm:$0xff] }
 0x2d2   : > { %2166 = vmatprep.subr.bf16.mxu0 %v16563_v54 }
 0x2d3   : > { %5387 = vmatpush1.bf16.msra.mxu1 %v16441_v2  ;;  %v16561_v2 = vld [vmem:[%s22844_s1 + $0x410] ss:$8 sps:$4 sm:$0xff]  }
 0x2d4   : > { %5388 = vmatprep.subr.bf16.mxu1 %v16452_v58  ;;  %v16477_v58 = vld [vmem:[%s22848_s5 + $0x1d0] ss:$8 sps:$4 sm:$0xff]   ;;  %2167 = vmatpush1.bf16.msra.mxu0 %v16561_v2  ;;  %v4970_v2 = vrot.slane %v4968_v31, 5  ;;  %v23048_v31 = vld [vmem:[#allocation43_spill] sm:$0xff] }
 0x2d5   : > { %2168 = vmatprep.subr.bf16.mxu0 %v16566_v36  ;;  %v23047_v36 = vcombine.low %v19018_v41, %v19022_v10  ;;  %v5022_v41 = vshrl.u32 %v18911_v30, 16 }
 0x2d6   : > { %4846 = vmatmul.mubr.bf16.gmra.mrb[148].mxu1 %v23038_v43  ;;  %v16486_v43 = vld [vmem:[%s22848_s5 + $0x1e0] ss:$8 sps:$4 sm:$0xff]  }
 0x2d7   : > { %4855 = vmatprep.mubr.bf16.mxu1 %v23025_v22  ;;  %5389 = vmatpush1.bf16.msra.mxu1 %v16450_v26  ;;  %v23043_v26 = vld [vmem:[#allocation40_spill] sm:$0xff] }
 0x2d8   : > { %5390 = vmatprep.subr.bf16.mxu1 %v16461_v3  ;;  %2124 = vmatmul.mubr.bf16.gmra.mrb[16].mxu0 %v23039_v0  ;;  %v16564_v3 = vld [vmem:[%s22844_s1 + $0x420] ss:$8 sps:$4 sm:$0xff]   ;;  %v16570_v0 = vld [vmem:[%s22844_s1 + $0x430] ss:$8 sps:$4 sm:$0xff]  }
 0x2d9   : > { %2133 = vmatprep.mubr.bf16.mxu0 %v23040_v28  ;;  %2169 = vmatpush1.bf16.msra.mxu0 %v16564_v3  ;;  %v16495_v28 = vld [vmem:[%s22848_s5 + $0x1f0] ss:$8 sps:$4 sm:$0xff]  }
 0x2db   : > { %5391 = vmatpush1.bf16.msra.mxu1 %v16459_v49  ;;  %v23044_v49 = vcombine.low %v19006_v1, %v19010_v55  ;;  %v4989_v1 = vshll.u32 %v18898_v53, 16  ;;  %v16506_v55 = vld [vmem:[%s22848_s5 + $0x204] ss:$8 sps:$4 sm:$0xff]  }
 0x2dc   : > { %5392 = vmatprep.subr.bf16.mxu1 %v16470_v52  ;;  %v4971_v52 = vshll.u32 %v18896_v51, 16  ;;  %v16572_v51 = vld [vmem:[%s22844_s1 + $0x434] ss:$8 sps:$4 sm:$0xff]  }
 0x2dd   : > { %2170 = vmatprep.subr.bf16.mxu0 %v16572_v51 }
 0x2de   : > { %4856 = vmatmul.mubr.bf16.gmra.mrb[152].mxu1 %v23041_v4  ;;  %v23046_v4 = vld [vmem:[#allocation42_spill] sm:$0xff]  ;;  %2171 = vmatpush1.bf16.msra.mxu0 %v16570_v0 }
 0x2df   : > { %4865 = vmatprep.mubr.bf16.mxu1 %v23025_v22  ;;  %5393 = vmatpush1.bf16.msra.mxu1 %v16468_v48  ;;  %v4986_v48 = vshrl.u32 %v18898_v53, 16  ;;  %v4991_v53 = vrot.slane %v4989_v1, 6 }
 0x2e0   : > { %5394 = vmatprep.subr.bf16.mxu1 %v16479_v39  ;;  %2134 = vmatmul.mubr.bf16.gmra.mrb[20].mxu0 %v23042_v46  ;;  %v23045_v39 = vld [vmem:[#allocation41_spill] sm:$0xff] }
 0x2e1   : > { %2143 = vmatprep.mubr.bf16.mxu0 %v23043_v26  ;;  %v4988_v54 = vrot.slane %v4986_v48, 5  ;;  %v4980_v26 = vshll.u32 %v19257_v9, 16 }
 0x2e3   : > { %5395 = vmatpush1.bf16.msra.mxu1 %v16477_v58  ;;  %v4973_v58 = vrot.slane %v4971_v52, 6  ;;  %v4992_v3 = vor.u32 %v4991_v53, %v4988_v54  ;;  %v5007_v52 = vshll.u32 %v18909_v61, 16  ;;  %v23050_v54 = vcombine.low %v19043_v12, %v19047_v37  ;;  %v19553_v53 = vld [vmem:[#allocation2 + $0xc] sm:$0x7]  ;;  %v6500_v12 = vld [vmem:[#allocation2 + $0x18] sm:$0x8] }
 0x2e4   : > { %5396 = vmatprep.subr.bf16.mxu1 %v16488_v33  ;;  %v4977_v33 = vshrl.u32 %v19257_v9, 16  ;;  %v19530_v9 = vrot.slane %v4980_v26, 6  ;;  %v6497_v26 = vld [vmem:[#allocation2] sm:$0x8]  ;;  %v6554_v19 = vrot.slane %v19553_v53, 7 }
 0x2e5   : > { %v4974_v46 = vor.u32 %v4973_v58, %v4970_v2  ;;  %v19548_v58 = vld [vmem:[#allocation2 + $0x4] sm:$0x7]  ;;  %v14062_v23 = vrot.slane %v6497_v26, 11  ;;  %v14065_v2 = vrot.slane %v6500_v12, 11  ;;  %v19595_v12 = vld [vmem:[#allocation2 + $0x4c] sm:$0x7] }
 0x2e6   : > { %4866 = vmatmul.mubr.bf16.gmra.mrb[156].mxu1 %v23044_v49  ;;  %v5004_v49 = vshrl.u32 %v18909_v61, 16  ;;  %v19526_v10 = vrot.slane %v4977_v33, 5  ;;  %23049 = vst [vmem:[#allocation19_spill] sm:$0xff] %v19548_v58  ;;  %v19557_v33 = vld [vmem:[#allocation2 + $0x1c] sm:$0x7]  ;;  %23062 = vst [vmem:[#allocation28_spill] sm:$0xff] %v19595_v12 }
 0x2e7   : > { %4875 = vmatprep.mubr.bf16.mxu1 %v23025_v22  ;;  %5397 = vmatpush1.bf16.msra.mxu1 %v16486_v43  ;;  %v4995_v43 = vshrl.u32 %v19259_v15, 16  ;;  %v19528_v0 = vrot.slane %v4974_v46, 4  ;;  %23052 = vst [vmem:[#allocation21_spill] sm:$0xff] %v19557_v33  ;;  %v19560_v46 = vld [vmem:[#allocation2 + $0x24] sm:$0x7]  ;;  %v6562_v63 = vrot.slane %v19557_v33, 7 }
 0x2e8   : > { %5398 = vmatprep.subr.bf16.mxu1 %v16497_v25  ;;  %2144 = vmatmul.mubr.bf16.gmra.mrb[24].mxu0 %v23045_v39  ;;  %v4998_v25 = vshll.u32 %v19259_v15, 16  ;;  %v19538_v1 = vrot.slane %v5004_v49, 5  ;;  %v19544_v39 = vrot.slane %v5022_v41, 5  ;;  %23053 = vst [vmem:[#allocation22_spill] sm:$0xff] %v19560_v46  ;;  %v5930_v33 = vld [vmem:[#allocation2 + $0x6c] sm:$0x7] }
 0x2e9   : > { %2153 = vmatprep.mubr.bf16.mxu0 %v23046_v4  ;;  %v19534_v48 = vrot.slane %v4995_v43, 5  ;;  %v5025_v4 = vshll.u32 %v18911_v30, 16  ;;  %v6498_v30 = vld [vmem:[#allocation2 + $0x8] sm:$0x8]  ;;  %v6499_v43 = vld [vmem:[#allocation2 + $0x10] sm:$0x8] }
 0x2ea   : > { %v19536_v15 = vrot.slane %v4998_v25, 6  ;;  %v19567_v25 = vld [vmem:[#allocation2 + $0x2c] sm:$0x7]  ;;  %v14064_v51 = vrot.slane %v6499_v43, 11  ;;  %v5927_v43 = vld [vmem:[#allocation2 + $0x54] sm:$0x7] }
 0x2eb   : > { %5399 = vmatpush1.bf16.msra.mxu1 %v16495_v28  ;;  %v19532_v28 = vrot.slane %v4992_v3, 4  ;;  %v23054_v3 = vld [vmem:[#allocation44_spill] sm:$0xff]  ;;  %v19564_v37 = vrot.slane %v5025_v4, 6  ;;  %v14063_v4 = vrot.slane %v6498_v30, 11 }
 0x2ec   : > { %5772 = vmatprep.subr.bf16.mxu1 %v16506_v55  ;;  %v19542_v55 = vrot.slane %v5007_v52, 6  ;;  %v6501_v52 = vld [vmem:[#allocation2 + $0x20] sm:$0x8] }
 0x2ed   : > { %v19590_v26 = vsel %vm19569_vm5, %v14063_v4, %v6554_v19  ;;  %v14066_v30 = vrot.slane %v6501_v52, 11  ;;  %v19605_v19 = vsel %vm19569_vm5, %v14065_v2, %v6562_v63  ;;  %v6506_v52 = vld [vmem:[#allocation2 + $0x48] sm:$0x8]  ;;  %v23065_v4 = vcombine.low %v19057_v57, %v19061_v13  ;;  %v5929_v63 = vld [vmem:[#allocation2 + $0x64] sm:$0x7] }
 0x2ee   : > { %4876 = vmatmul.mubr.bf16.gmra.mrb[160].mxu1 %v23047_v36  ;;  %v19555_v36 = vld [vmem:[#allocation2 + $0x14] sm:$0x7]  ;;  %23061 = vst [vmem:[#allocation27_spill] sm:$0xff] %v19590_v26  ;;  %23064 = vst [vmem:[#allocation30_spill] sm:$0xff] %v19605_v19  ;;  %v14068_v2 = vrot.slane %v6503_v45, 11  ;;  %v14069_v57 = vrot.slane %v6504_v59, 11 }
 0x2ef   : > { %4885 = vmatprep.mubr.bf16.mxu1 %v23025_v22  ;;  %23051 = vst [vmem:[#allocation20_spill] sm:$0xff] %v19555_v36  ;;  %v6558_v61 = vrot.slane %v19555_v36, 7  ;;  %v14071_v19 = vrot.slane %v6506_v52, 11  ;;  %v5931_v45 = vld [vmem:[#allocation2 + $0x74] sm:$0x7]  ;;  %v5001_v52 = vor.u32 %v19536_v15, %v19534_v48  ;;  %v6590_v59 = vrot.slane %v5927_v43, 7 }
 0x2f0   : > { %2154 = vmatmul.mubr.bf16.gmra.mrb[28].mxu0 %v23048_v31  ;;  %v6550_v31 = vrot.slane %v19548_v58, 7  ;;  %v6566_v58 = vrot.slane %v19560_v46, 7  ;;  %v5928_v46 = vld [vmem:[#allocation2 + $0x5c] sm:$0x7] }
 0x2f1   : > { %2196 = vmatprep.mubr.bf16.mxu0 %v23025_v22 }
 0x2f2   : > { %v19586_v41 = vsel %vm19569_vm5, %v14062_v23, %v6550_v31  ;;  %v19601_v23 = vsel %vm19569_vm5, %v14064_v51, %v6558_v61  ;;  %v6505_v31 = vld [vmem:[#allocation2 + $0x40] sm:$0x8]  ;;  %v19614_v36 = vsel %vm19569_vm5, %v14066_v30, %v6566_v58  ;;  %v14067_v61 = vrot.slane %v6502_v60, 11 }
 0x2f3   : > { %23060 = vst [vmem:[#allocation26_spill] sm:$0xff] %v19586_v41  ;;  %23063 = vst [vmem:[#allocation29_spill] sm:$0xff] %v19601_v23  ;;  %v6570_v51 = vrot.slane %v19567_v25, 7  ;;  %v23067_v41 = vld [vmem:[#allocation45_spill] sm:$0xff]  ;;  %v14070_v60 = vrot.slane %v6505_v31, 11  ;;  %v6582_v30 = vrot.slane %v19580_v8, 7 }
 0x2f4   : > { %23066 = vst [vmem:[#allocation31_spill] sm:$0xff] %v19614_v36  ;;  %v6508_v23 = vld [vmem:[#allocation2 + $0x58] sm:$0x8]  ;;  %v6586_v31 = vrot.slane %v19595_v12, 7  ;;  %v6511_v36 = vld [vmem:[#allocation2 + $0x70] sm:$0x8] }
 0x2f5   : > { %v19624_v58 = vsel %vm19569_vm5, %v14067_v61, %v6570_v51  ;;  %v6509_v61 = vld [vmem:[#allocation2 + $0x60] sm:$0x8]  ;;  %v5932_v51 = vld [vmem:[#allocation2 + $0x7c] sm:$0x7]  ;;  %v6512_v12 = vld [vmem:[#allocation2 + $0x78] sm:$0x8] }
 0x2f6   : > { %4886 = vmatmul.mubr.bf16.gmra.mrb[164].mxu1 %v23050_v54  ;;  %v19575_v54 = vld [vmem:[#allocation2 + $0x34] sm:$0x7]  ;;  %23068 = vst [vmem:[#allocation32_spill] sm:$0xff] %v19624_v58  ;;  %v6510_v58 = vld [vmem:[#allocation2 + $0x68] sm:$0x8]  ;;  %v14074_v43 = vrot.slane %v6509_v61, 11 }
 0x2f7   : > { %4895 = vmatprep.mubr.bf16.mxu1 %v23025_v22  ;;  %23057 = vst [vmem:[#allocation23_spill] sm:$0xff] %v19575_v54  ;;  %v6574_v26 = vrot.slane %v19575_v54, 7  ;;  %v6610_v61 = vrot.slane %v5932_v51, 7  ;;  %v5028_v51 = vor.u32 %v19564_v37, %v19544_v39 }
 0x2f8   : > { %13705 = vmatmul.mubr.msk.bf16.vlgmr.msra.gmra.mrb[0].mxu0 %vm1687_vm0, %v23054_v3  ;;  %v19577_v3 = vld [vmem:[#allocation2 + $0x3c] sm:$0x7] }
 0x2f9   : > { %2206 = vmatprep.mubr.bf16.mxu0 %v23025_v22  ;;  %23058 = vst [vmem:[#allocation24_spill] sm:$0xff] %v19577_v3  ;;  %v6578_v13 = vrot.slane %v19577_v3, 7  ;;  %v19632_v54 = vsel %vm19569_vm5, %v14068_v2, %v6574_v26  ;;  %v19645_v26 = vsel %vm19569_vm5, %v14070_v60, %v6582_v30  ;;  %v19649_v2 = vsel %vm19569_vm5, %v14071_v19, %v6586_v31 }
 0x2fa   : > { %v14098_v48 = vcombine.low %v19645_v26, %v19649_v2  ;;  %v14075_v30 = vrot.slane %v6510_v58, 11  ;;  %v6602_v19 = vrot.slane %v5930_v33, 7  ;;  %v6606_v31 = vrot.slane %v5931_v45, 7 }
 0x2fb   : > { %v5002_v33 = vsel %vm19666_vm8, %v19532_v28, %v5001_v52 }
 0x2fc   : > { %v19682_v45 = vsel %vm19569_vm5, %v14075_v30, %v6602_v19 }
 0x2fe   : > { %4896 = vmatmul.mubr.bf16.gmra.mrb[168].mxu1 %v23065_v4  ;;  %v6507_v4 = vld [vmem:[#allocation2 + $0x50] sm:$0x8] }
 0x2ff   : > { %4905 = vmatprep.mubr.bf16.mxu1 %v23025_v22  ;;  %v14072_v3 = vrot.slane %v6507_v4, 11  ;;  %v6598_v4 = vrot.slane %v5929_v63, 7  ;;  %v14076_v63 = vrot.slane %v6511_v36, 11  ;;  %v23072_v36 = vld [vmem:[#allocation46_spill] sm:$0xff] }
 0x300   : > { %13706 = vmatmul.mubr.msk.bf16.gmra.mrb[4].mxu0 %vm1687_vm0, %v23067_v41  ;;  %v19636_v41 = vsel %vm19569_vm5, %v14069_v57, %v6578_v13  ;;  %v14073_v57 = vrot.slane %v6508_v23, 11  ;;  %v6594_v13 = vrot.slane %v5928_v46, 7  ;;  %v23069_v46 = vcombine.low %v19084_v42, %v19088_v16  ;;  %v17181_v42 = vld [vmem:[#allocation2 + $0x28] sm:$0xe]  ;;  %v16552_v23 = vld [vmem:[%s22848_s5 + $0x290] ss:$8 sps:$4 sm:$0xff]  }
 0x301   : > { %2216 = vmatprep.mubr.bf16.mxu0 %v23025_v22  ;;  %v14097_v8 = vcombine.low %v19632_v54, %v19636_v41  ;;  %v19655_v15 = vsel %vm19569_vm5, %v14072_v3, %v6590_v59  ;;  %v14077_v59 = vrot.slane %v6512_v12, 11  ;;  %v5058_v16 = vshrl.u32 %v17181_v42, 16 }
 0x302   : > { %v19659_v60 = vsel %vm19569_vm5, %v14073_v57, %v6594_v13  ;;  %v19678_v58 = vsel %vm19569_vm5, %v14074_v43, %v6598_v4  ;;  %v5061_v57 = vshll.u32 %v17181_v42, 16  ;;  %v19690_v28 = vsel %vm19569_vm5, %v14076_v63, %v6606_v31 }
 0x303   : > { %v14099_v3 = vcombine.low %v19655_v15, %v19659_v60  ;;  %v14100_v12 = vcombine.low %v19678_v58, %v19682_v45  ;;  %v19694_v52 = vsel %vm19569_vm5, %v14077_v59, %v6610_v61  ;;  %v23073_v13 = vshrl.u32 %v19268_v62, 16 }
 0x304   : > { %v23074_v4 = vshll.u32 %v19268_v62, 16  ;;  %v14101_v19 = vcombine.low %v19690_v28, %v19694_v52  ;;  %v23075_v31 = vor.u32 %v19530_v9, %v19526_v10  ;;  %v16504_v62 = vld [vmem:[%s22848_s5 + $0x200] ss:$8 sps:$4 sm:$0xff]   ;;  %v5010_v59 = vor.u32 %v19542_v55, %v19538_v1  ;;  %v16635_v52 = vld [vmem:[%s22850_s7 + $0x124] ss:$8 sps:$4 sm:$0xff]  }
 0x305   : > { %v5033_v43 = vrot.slane %v23073_v13, 5  ;;  %v23076_v61 = vshrl.u32 %v19266_v7, 16  ;;  %v23077_v10 = vshll.u32 %v19266_v7, 16  ;;  %v5063_v13 = vrot.slane %v5061_v57, 6  ;;  %v16633_v28 = vld [vmem:[%s22850_s7 + $0x120] ss:$8 sps:$4 sm:$0xff]  }
 0x306   : > { %4906 = vmatmul.mubr.bf16.gmra.mrb[172].mxu1 %v23069_v46  ;;  %v5036_v30 = vrot.slane %v23074_v4, 6  ;;  %v4984_v49 = vsel %vm19666_vm8, %v19528_v0, %v23075_v31  ;;  %v17182_v46 = vld [vmem:[#allocation2 + $0x20] sm:$0xe]  ;;  %v16515_v0 = vld [vmem:[%s22848_s5 + $0x214] ss:$8 sps:$4 sm:$0xff]   ;;  %v5070_v4 = vshll.u32 %v19272_v24, 16 }
 0x307   : > { %5416 = vmatprep.mubr.bf16.mxu1 %v23025_v22  ;;  %v5040_v39 = vshrl.u32 %v17182_v46, 16  ;;  %v5043_v37 = vshll.u32 %v17182_v46, 16  ;;  %v13942_v63 = vcombine.low %v4984_v49, %v5002_v33  ;;  %v5015_v42 = vrot.slane %v23076_v61, 5 }
 0x308   : > { %13707 = vmatmul.mubr.msk.bf16.gmra.mrb[8].mxu0 %vm1687_vm0, %v23072_v36  ;;  %v5018_v9 = vrot.slane %v23077_v10, 6  ;;  %v5060_v36 = vrot.slane %v5058_v16, 5  ;;  %v5067_v33 = vshrl.u32 %v19272_v24, 16  ;;  %v5029_v31 = vrot.slane %v5028_v51, 4  ;;  %v16513_v16 = vld [vmem:[%s22848_s5 + $0x210] ss:$8 sps:$4 sm:$0xff]  }
 0x309   : > { %2226 = vmatprep.mubr.bf16.mxu0 %v23025_v22  ;;  %v5037_v49 = vor.u32 %v5036_v30, %v5033_v43  ;;  %v5042_v1 = vrot.slane %v5040_v39, 5  ;;  %v5045_v55 = vrot.slane %v5043_v37, 6  ;;  %v5049_v46 = vshrl.u32 %v19270_v50, 16  ;;  %v16524_v43 = vld [vmem:[%s22848_s5 + $0x224] ss:$8 sps:$4 sm:$0xff]  }
 0x30a   : > { %v5052_v7 = vshll.u32 %v19270_v50, 16  ;;  %v5011_v61 = vrot.slane %v5010_v59, 4  ;;  %v5019_v10 = vor.u32 %v5018_v9, %v5015_v42  ;;  %v5064_v24 = vor.u32 %v5063_v13, %v5060_v36  ;;  %v23078_v30 = vld [vmem:[#allocation47_spill] sm:$0xff]  ;;  %v17183_v39 = vld [vmem:[#allocation2 + $0x38] sm:$0xe] }
 0x30b   : > { %v5069_v57 = vrot.slane %v5067_v33, 5  ;;  %v5072_v51 = vrot.slane %v5070_v4, 6  ;;  %v5038_v50 = vsel %vm19666_vm8, %v5029_v31, %v5037_v49  ;;  %v5094_v37 = vshrl.u32 %v17183_v39, 16  ;;  %v17184_v36 = vld [vmem:[#allocation2 + $0x30] sm:$0xe] }
 0x30c   : > { %v5051_v59 = vrot.slane %v5049_v46, 5  ;;  %v5054_v42 = vrot.slane %v5052_v7, 6  ;;  %v5020_v9 = vsel %vm19666_vm8, %v5011_v61, %v5019_v10  ;;  %v5076_v13 = vshrl.u32 %v17184_v36, 16 }
 0x30d   : > { %v5079_v33 = vshll.u32 %v17184_v36, 16  ;;  %v13943_v4 = vcombine.low %v5020_v9, %v5038_v50  ;;  %v5065_v31 = vrot.slane %v5064_v24, 4  ;;  %v5073_v49 = vor.u32 %v5072_v51, %v5069_v57 }
 0x30e   : > { %5417 = vmatmul.mubr.bf16.vlgmr.msra.gmra.mrb[144].mxu1 %v13942_v63  ;;  %v5097_v63 = vshll.u32 %v17183_v39, 16  ;;  %v5103_v7 = vshrl.u32 %v19287_v5, 16  ;;  %v5106_v61 = vshll.u32 %v19287_v5, 16  ;;  %v5085_v57 = vshrl.u32 %v19281_v34, 16  ;;  %v17185_v5 = vld [vmem:[#allocation2 + $0x48] sm:$0xe] }
 0x30f   : > { %5773 = vmatpush1.bf16.msra.mxu1 %v16504_v62  ;;  %5426 = vmatprep.mubr.bf16.mxu1 %v23025_v22  ;;  %v5046_v62 = vor.u32 %v5045_v55, %v5042_v1  ;;  %v16533_v1 = vld [vmem:[%s22848_s5 + $0x234] ss:$8 sps:$4 sm:$0xff]   ;;  %v5096_v55 = vrot.slane %v5094_v37, 5  ;;  %v5081_v24 = vrot.slane %v5079_v33, 6  ;;  %v5088_v51 = vshll.u32 %v19281_v34, 16 }
 0x310   : > { %5774 = vmatprep.subr.bf16.mxu1 %v16515_v0  ;;  %13708 = vmatmul.mubr.msk.bf16.gmra.mrb[12].mxu0 %vm1687_vm0, %v23078_v30  ;;  %v16522_v0 = vld [vmem:[%s22848_s5 + $0x220] ss:$8 sps:$4 sm:$0xff]   ;;  %v5099_v46 = vrot.slane %v5097_v63, 6  ;;  %v5078_v30 = vrot.slane %v5076_v13, 5  ;;  %v5074_v50 = vsel %vm19666_vm8, %v5065_v31, %v5073_v49  ;;  %v5130_v39 = vshrl.u32 %v17185_v5, 16 }
 0x311   : > { %2236 = vmatprep.mubr.bf16.mxu0 %v23025_v22  ;;  %v5047_v10 = vrot.slane %v5046_v62, 4  ;;  %v5133_v37 = vshll.u32 %v17185_v5, 16  ;;  %v16539_v63 = vld [vmem:[%s22848_s5 + $0x244] ss:$8 sps:$4 sm:$0xff]   ;;  %v5105_v34 = vrot.slane %v5103_v7, 5  ;;  %v5087_v31 = vrot.slane %v5085_v57, 5 }
 0x312   : > { %v23079_v62 = vld [vmem:[#allocation48_spill] sm:$0xff]  ;;  %v5090_v49 = vrot.slane %v5088_v51, 6  ;;  %v5139_v7 = vshrl.u32 %v19301_v18, 16  ;;  %v5121_v51 = vshrl.u32 %v19299_v17, 16 }
 0x313   : > { %5775 = vmatpush1.bf16.msra.mxu1 %v16513_v16  ;;  %v5055_v16 = vor.u32 %v5054_v42, %v5051_v59  ;;  %v5100_v59 = vor.u32 %v5099_v46, %v5096_v55  ;;  %v5108_v42 = vrot.slane %v5106_v61, 6  ;;  %v5132_v55 = vrot.slane %v5130_v39, 5 }
 0x314   : > { %5776 = vmatprep.subr.bf16.mxu1 %v16524_v43  ;;  %v16531_v43 = vld [vmem:[%s22848_s5 + $0x230] ss:$8 sps:$4 sm:$0xff]   ;;  %v5135_v46 = vrot.slane %v5133_v37, 6  ;;  %v5142_v61 = vshll.u32 %v19301_v18, 16  ;;  %v5091_v5 = vor.u32 %v5090_v49, %v5087_v31  ;;  %v5141_v37 = vrot.slane %v5139_v7, 5 }
 0x315   : > { %v5056_v9 = vsel %vm19666_vm8, %v5047_v10, %v5055_v16  ;;  %v16542_v10 = vld [vmem:[%s22848_s5 + $0x254] ss:$8 sps:$4 sm:$0xff]   ;;  %v5101_v16 = vrot.slane %v5100_v59, 4  ;;  %v16540_v18 = vld [vmem:[%s22848_s5 + $0x250] ss:$8 sps:$4 sm:$0xff]  }
 0x316   : > { %5427 = vmatmul.mubr.bf16.gmra.mrb[148].mxu1 %v13943_v4  ;;  %v13944_v33 = vcombine.low %v5056_v9, %v5074_v50  ;;  %v5082_v4 = vor.u32 %v5081_v24, %v5078_v30  ;;  %v5109_v30 = vor.u32 %v5108_v42, %v5105_v34  ;;  %v5136_v39 = vor.u32 %v5135_v46, %v5132_v55  ;;  %v23080_v59 = vld [vmem:[#allocation49_spill] sm:$0xff]  ;;  %v17187_v34 = vld [vmem:[#allocation2 + $0x58] sm:$0xe] }
 0x317   : > { %5436 = vmatprep.mubr.bf16.mxu1 %v23025_v22  ;;  %5777 = vmatpush1.bf16.msra.mxu1 %v16522_v0  ;;  %v17186_v0 = vld [vmem:[#allocation2 + $0x40] sm:$0xe]  ;;  %v5166_v42 = vshrl.u32 %v17187_v34, 16  ;;  %v5169_v9 = vshll.u32 %v17187_v34, 16 }
 0x318   : > { %5778 = vmatprep.subr.bf16.mxu1 %v16533_v1  ;;  %13709 = vmatmul.mubr.msk.bf16.gmra.mrb[16].mxu0 %vm1687_vm0, %v23079_v62  ;;  %v5112_v36 = vshrl.u32 %v17186_v0, 16  ;;  %v5115_v13 = vshll.u32 %v17186_v0, 16  ;;  %v16537_v1 = vld [vmem:[%s22848_s5 + $0x240] ss:$8 sps:$4 sm:$0xff]   ;;  %v5083_v50 = vrot.slane %v5082_v4, 4  ;;  %v5137_v46 = vrot.slane %v5136_v39, 4 }
 0x319   : > { %2246 = vmatprep.mubr.bf16.mxu0 %v23025_v22  ;;  %v16545_v62 = vld [vmem:[%s22848_s5 + $0x264] ss:$8 sps:$4 sm:$0xff]   ;;  %v17188_v4 = vld [vmem:[#allocation2 + $0x50] sm:$0xe] }
 0x31a   : > { %v5114_v24 = vrot.slane %v5112_v36, 5  ;;  %v5117_v57 = vrot.slane %v5115_v13, 6  ;;  %v5123_v36 = vrot.slane %v5121_v51, 5  ;;  %v5148_v31 = vshrl.u32 %v17188_v4, 16  ;;  %v16546_v39 = vld [vmem:[%s22848_s5 + $0x270] ss:$8 sps:$4 sm:$0xff]  }
 0x31b   : > { %5779 = vmatpush1.bf16.msra.mxu1 %v16531_v43  ;;  %v5124_v43 = vshll.u32 %v19299_v17, 16  ;;  %v5110_v17 = vsel %vm19666_vm8, %v5101_v16, %v5109_v30  ;;  %v5151_v49 = vshll.u32 %v17188_v4, 16  ;;  %v5171_v16 = vrot.slane %v5169_v9, 6  ;;  %v17190_v4 = vld [vmem:[#allocation2 + $0x60] sm:$0xe] }
 0x31c   : > { %5780 = vmatprep.subr.bf16.mxu1 %v16539_v63  ;;  %v5144_v63 = vrot.slane %v5142_v61, 6  ;;  %v5118_v0 = vor.u32 %v5117_v57, %v5114_v24  ;;  %v16548_v61 = vld [vmem:[%s22848_s5 + $0x274] ss:$8 sps:$4 sm:$0xff]   ;;  %v5175_v30 = vshrl.u32 %v19322_v32, 16  ;;  %v5178_v24 = vshll.u32 %v19322_v32, 16 }
 0x31d   : > { %v5126_v13 = vrot.slane %v5124_v43, 6  ;;  %v5157_v43 = vshrl.u32 %v19310_v40, 16  ;;  %v17189_v32 = vld [vmem:[#allocation2 + $0x68] sm:$0xe] }
 0x31e   : > { %5437 = vmatmul.mubr.bf16.gmra.mrb[152].mxu1 %v13944_v33  ;;  %v5092_v33 = vsel %vm19666_vm8, %v5083_v50, %v5091_v5  ;;  %v5145_v7 = vor.u32 %v5144_v63, %v5141_v37  ;;  %v5119_v57 = vrot.slane %v5118_v0, 4  ;;  %v5160_v50 = vshll.u32 %v19310_v40, 16  ;;  %v16551_v40 = vld [vmem:[%s22848_s5 + $0x284] ss:$8 sps:$4 sm:$0xff]  }
 0x31f   : > { %5446 = vmatprep.mubr.bf16.mxu1 %v23025_v22  ;;  %5781 = vmatpush1.bf16.msra.mxu1 %v16537_v1  ;;  %v16543_v1 = vld [vmem:[%s22848_s5 + $0x260] ss:$8 sps:$4 sm:$0xff]   ;;  %v13945_v55 = vcombine.low %v5092_v33, %v5110_v17  ;;  %v5127_v51 = vor.u32 %v5126_v13, %v5123_v36  ;;  %v5150_v5 = vrot.slane %v5148_v31, 5  ;;  %v5202_v63 = vshrl.u32 %v17189_v32, 16 }
 0x320   : > { %5782 = vmatprep.subr.bf16.mxu1 %v16542_v10  ;;  %13710 = vmatmul.mubr.msk.bf16.gmra.mrb[20].mxu0 %vm1687_vm0, %v23080_v59  ;;  %v5168_v10 = vrot.slane %v5166_v42, 5  ;;  %v5146_v37 = vsel %vm19666_vm8, %v5137_v46, %v5145_v7  ;;  %v23081_v59 = vld [vmem:[#allocation50_spill] sm:$0xff]  ;;  %v5177_v34 = vrot.slane %v5175_v30, 5  ;;  %v5180_v42 = vrot.slane %v5178_v24, 6 }
 0x321   : > { %2256 = vmatprep.mubr.bf16.mxu0 %v23025_v22  ;;  %v5128_v9 = vsel %vm19666_vm8, %v5119_v57, %v5127_v51  ;;  %v5159_v0 = vrot.slane %v5157_v43, 5  ;;  %v5162_v36 = vrot.slane %v5160_v50, 6  ;;  %v5184_v31 = vshrl.u32 %v17190_v4, 16 }
 0x322   : > { %v5172_v17 = vor.u32 %v5171_v16, %v5168_v10  ;;  %v13946_v13 = vcombine.low %v5128_v9, %v5146_v37  ;;  %v5211_v46 = vshrl.u32 %v19334_v11, 16  ;;  %v5214_v7 = vshll.u32 %v19334_v11, 16  ;;  %v17191_v37 = vld [vmem:[#allocation2 + $0x78] sm:$0xe] }
 0x323   : > { %5783 = vmatpush1.bf16.msra.mxu1 %v16540_v18  ;;  %v5153_v18 = vrot.slane %v5151_v49, 6  ;;  %v5187_v49 = vshll.u32 %v17190_v4, 16  ;;  %v5181_v10 = vor.u32 %v5180_v42, %v5177_v34  ;;  %v5193_v16 = vshrl.u32 %v19332_v38, 16 }
 0x324   : > { %5784 = vmatprep.subr.bf16.mxu1 %v16545_v62  ;;  %v5205_v62 = vshll.u32 %v17189_v32, 16  ;;  %v5196_v30 = vshll.u32 %v19332_v38, 16  ;;  %v5163_v57 = vor.u32 %v5162_v36, %v5159_v0  ;;  %v5186_v51 = vrot.slane %v5184_v31, 5 }
 0x325   : > { %v5154_v33 = vor.u32 %v5153_v18, %v5150_v5  ;;  %v5189_v43 = vrot.slane %v5187_v49, 6  ;;  %v5213_v5 = vrot.slane %v5211_v46, 5  ;;  %v5216_v18 = vrot.slane %v5214_v7, 6 }
 0x326   : > { %5447 = vmatmul.mubr.bf16.gmra.mrb[156].mxu1 %v13945_v55  ;;  %v5207_v55 = vrot.slane %v5205_v62, 6  ;;  %v5238_v32 = vshrl.u32 %v17191_v37, 16  ;;  %v5195_v62 = vrot.slane %v5193_v16, 5  ;;  %v5198_v38 = vrot.slane %v5196_v30, 6 }
 0x327   : > { %5456 = vmatprep.mubr.bf16.mxu1 %v23025_v22  ;;  %5785 = vmatpush1.bf16.msra.mxu1 %v16543_v1  ;;  %v5204_v1 = vrot.slane %v5202_v63, 5  ;;  %v5155_v24 = vrot.slane %v5154_v33, 4  ;;  %v5241_v63 = vshll.u32 %v17191_v37, 16  ;;  %v5217_v36 = vor.u32 %v5216_v18, %v5213_v5 }
 0x328   : > { %5786 = vmatprep.subr.bf16.mxu1 %v16548_v61  ;;  %13711 = vmatmul.mubr.msk.bf16.gmra.mrb[24].mxu0 %vm1687_vm0, %v23081_v59  ;;  %v5173_v61 = vrot.slane %v5172_v17, 4  ;;  %v5190_v59 = vor.u32 %v5189_v43, %v5186_v51  ;;  %v17192_v17 = vld [vmem:[#allocation2 + $0x70] sm:$0xe]  ;;  %v5247_v4 = vshrl.u32 %v19356_v14, 16  ;;  %v5250_v31 = vshll.u32 %v19356_v14, 16 }
 0x329   : > { %2266 = vmatprep.mubr.bf16.mxu0 %v23025_v22  ;;  %v5208_v50 = vor.u32 %v5207_v55, %v5204_v1  ;;  %v5220_v34 = vshrl.u32 %v17192_v17, 16  ;;  %v5223_v42 = vshll.u32 %v17192_v17, 16  ;;  %v5243_v33 = vrot.slane %v5241_v63, 6  ;;  %v16549_v63 = vld [vmem:[%s22848_s5 + $0x280] ss:$8 sps:$4 sm:$0xff]  }
 0x32a   : > { %v5182_v11 = vsel %vm19666_vm8, %v5173_v61, %v5181_v10  ;;  %v5199_v49 = vor.u32 %v5198_v38, %v5195_v62  ;;  %v5229_v1 = vshrl.u32 %v19343_v35, 16  ;;  %v5191_v55 = vrot.slane %v5190_v59, 4  ;;  %v16554_v62 = vld [vmem:[%s22848_s5 + $0x294] ss:$8 sps:$4 sm:$0xff]   ;;  %v16558_v59 = vld [vmem:[%s22848_s5 + $0x2a0] ss:$8 sps:$4 sm:$0xff]  }
 0x32b   : > { %5787 = vmatpush1.bf16.msra.mxu1 %v16546_v39  ;;  %v23082_v39 = vld [vmem:[#allocation51_spill] sm:$0xff]  ;;  %v5209_v0 = vrot.slane %v5208_v50, 4  ;;  %v5222_v46 = vrot.slane %v5220_v34, 5  ;;  %v5225_v7 = vrot.slane %v5223_v42, 6  ;;  %v5232_v61 = vshll.u32 %v19343_v35, 16 }
 0x32c   : > { %6352 = vmatprep.subr.bf16.mxu1 %v16551_v40  ;;  %v5164_v40 = vsel %vm19666_vm8, %v5155_v24, %v5163_v57  ;;  %v5249_v30 = vrot.slane %v5247_v4, 5  ;;  %v5252_v24 = vrot.slane %v5250_v31, 6  ;;  %v5200_v14 = vsel %vm19666_vm8, %v5191_v55, %v5199_v49  ;;  %v16567_v17 = vld [vmem:[%s22848_s5 + $0x2b0] ss:$8 sps:$4 sm:$0xff]   ;;  %v16575_v34 = vld [vmem:[%s22848_s5 + $0x2c4] ss:$8 sps:$4 sm:$0xff]  }
 0x32d   : > { %v13947_v9 = vcombine.low %v5164_v40, %v5182_v11  ;;  %v5218_v10 = vsel %vm19666_vm8, %v5209_v0, %v5217_v36  ;;  %v5226_v57 = vor.u32 %v5225_v7, %v5222_v46  ;;  %v5231_v51 = vrot.slane %v5229_v1, 5  ;;  %v16560_v40 = vld [vmem:[%s22848_s5 + $0x2a4] ss:$8 sps:$4 sm:$0xff]   ;;  %v16573_v42 = vld [vmem:[%s22848_s5 + $0x2c0] ss:$8 sps:$4 sm:$0xff]   ;;  %v23088_v31 = vld [vmem:[#allocation13_spill] sm:$0xff] }
 0x32e   : > { %5457 = vmatmul.mubr.bf16.gmra.mrb[160].mxu1 %v13946_v13  ;;  %v5240_v13 = vrot.slane %v5238_v32, 5  ;;  %v5234_v43 = vrot.slane %v5232_v61, 6  ;;  %v13948_v50 = vcombine.low %v5200_v14, %v5218_v10  ;;  %v5253_v18 = vor.u32 %v5252_v24, %v5249_v30  ;;  %v16576_v36 = vld [vmem:[%s22848_s5 + $0x2d0] ss:$8 sps:$4 sm:$0xff]   ;;  %v16584_v4 = vld [vmem:[%s22848_s5 + $0x2f4] ss:$8 sps:$4 sm:$0xff]  }
 0x32f   : > { %5466 = vmatprep.mubr.bf16.mxu1 %v23025_v22  ;;  %v23083_v38 = vcombine.low %v19291_v6, %v19295_v21  ;;  %v16569_v6 = vld [vmem:[%s22848_s5 + $0x2b4] ss:$8 sps:$4 sm:$0xff]   ;;  %v23084_v21 = vcombine.low %v19307_v56, %v19314_v20  ;;  %v23085_v20 = vld [vmem:[#allocation11_spill] sm:$0xff]  ;;  %v23089_v49 = vcombine.low %v19340_v27, %v23088_v31  ;;  %v16582_v1 = vld [vmem:[%s22848_s5 + $0x2f0] ss:$8 sps:$4 sm:$0xff]   ;;  %v23092_v27 = vcombine.low %v19373_v44, %v19377_v29 }
 0x330   : > { %13712 = vmatmul.mubr.msk.bf16.gmra.mrb[28].mxu0 %vm1687_vm0, %v23082_v39  ;;  %v5244_v16 = vor.u32 %v5243_v33, %v5240_v13  ;;  %v5227_v39 = vrot.slane %v5226_v57, 4  ;;  %v5235_v35 = vor.u32 %v5234_v43, %v5231_v51  ;;  %v16578_v56 = vld [vmem:[%s22848_s5 + $0x2d4] ss:$8 sps:$4 sm:$0xff]   ;;  %v16581_v13 = vld [vmem:[%s22848_s5 + $0x2e4] ss:$8 sps:$4 sm:$0xff]   ;;  %v5963_v43 = vshrl.u32 %v19553_v53, 16 }
 0x331   : > { %v16579_v33 = vld [vmem:[%s22848_s5 + $0x2e0] ss:$8 sps:$4 sm:$0xff]   ;;  %v16587_v55 = vld [vmem:[%s22848_s5 + $0x304] ss:$8 sps:$4 sm:$0xff]   ;;  %v23090_v46 = vld [vmem:[#allocation14_spill] sm:$0xff] }
 0x332   : > { %v5245_v5 = vrot.slane %v5244_v16, 4  ;;  %v5236_v37 = vsel %vm19666_vm8, %v5227_v39, %v5235_v35  ;;  %v23091_v7 = vcombine.low %v19362_v47, %v23090_v46  ;;  %v17193_v61 = vld [vmem:[#allocation2 + $0x8] sm:$0xc]  ;;  %v17194_v30 = vld [vmem:[#allocation2] sm:$0xc]  ;;  %v5966_v47 = vshll.u32 %v19553_v53, 16 }
 0x333   : > { %v5954_v10 = vshrl.u32 %v17193_v61, 16  ;;  %v5957_v16 = vshll.u32 %v17193_v61, 16  ;;  %v5936_v24 = vshrl.u32 %v17194_v30, 16  ;;  %v5939_v14 = vshll.u32 %v17194_v30, 16  ;;  %v23096_v39 = vld [vmem:[#allocation19_spill] sm:$0xff]  ;;  %v23103_v61 = vld [vmem:[#allocation20_spill] sm:$0xff] }
 0x334   : > { %v5254_v11 = vsel %vm19666_vm8, %v5245_v5, %v5253_v18  ;;  %v23094_v5 = vld [vmem:[#allocation16_spill] sm:$0xff]  ;;  %v5945_v35 = vshrl.u32 %v23096_v39, 16  ;;  %v16614_v30 = vld [vmem:[%s22850_s7 + $0xb4] ss:$8 sps:$4 sm:$0xff]  }
 0x335   : > { %v13949_v32 = vcombine.low %v5236_v37, %v5254_v11  ;;  %v5956_v57 = vrot.slane %v5954_v10, 6  ;;  %v5959_v51 = vrot.slane %v5957_v16, 7  ;;  %v5938_v44 = vrot.slane %v5936_v24, 6 }
 0x336   : > { %5467 = vmatmul.mubr.bf16.gmra.mrb[164].mxu1 %v13947_v9  ;;  %v23086_v9 = vld [vmem:[#allocation12_spill] sm:$0xff]  ;;  %v5941_v29 = vrot.slane %v5939_v14, 7  ;;  %v5948_v11 = vshll.u32 %v23096_v39, 16  ;;  %v5947_v53 = vrot.slane %v5945_v35, 6  ;;  %v5981_v10 = vshrl.u32 %v23103_v61, 16 }
 0x337   : > { %5476 = vmatprep.mubr.bf16.mxu1 %v23025_v22  ;;  %v23087_v0 = vcombine.low %v23085_v20, %v23086_v9  ;;  %v5960_v37 = vor.u32 %v5959_v51, %v5956_v57  ;;  %v23097_v9 = vld [vmem:[#allocation21_spill] sm:$0xff]  ;;  %v5984_v16 = vshll.u32 %v23103_v61, 16  ;;  %v17197_v14 = vld [vmem:[#allocation2 + $0x28] sm:$0xc] }
 0x338   : > { %v6026_v57 = vshrl.u32 %v17197_v14, 16  ;;  %v6029_v51 = vshll.u32 %v17197_v14, 16  ;;  %v16618_v61 = vld [vmem:[%s22850_s7 + $0xd0] ss:$8 sps:$4 sm:$0xff]  }
 0x33e   : > { %5477 = vmatmul.mubr.bf16.gmra.mrb[168].mxu1 %v13948_v50  ;;  %v23093_v50 = vld [vmem:[#allocation15_spill] sm:$0xff] }
 0x33f   : > { %5486 = vmatprep.mubr.bf16.mxu1 %v23025_v22  ;;  %v23095_v18 = vcombine.low %v23093_v50, %v23094_v5  ;;  %v16612_v5 = vld [vmem:[%s22850_s7 + $0xb0] ss:$8 sps:$4 sm:$0xff]  }
 0x346   : > { %5487 = vmatmul.mubr.bf16.gmra.mrb[172].mxu1 %v13949_v32  ;;  %v5965_v32 = vrot.slane %v5963_v43, 6 }
 0x347   : > { %5804 = vmatprep.mubr.bf16.mxu1 %v23025_v22 }
 0x34e   : > { %5805 = vmatmul.mubr.bf16.vlgmr.msra.gmra.mrb[144].mxu1 %v23083_v38 }
 0x34f   : > { %6353 = vmatpush1.bf16.msra.mxu1 %v16549_v63  ;;  %5814 = vmatprep.mubr.bf16.mxu1 %v23025_v22  ;;  %v5968_v63 = vrot.slane %v5966_v47, 7 }
 0x350   : > { %6354 = vmatprep.subr.bf16.mxu1 %v16554_v62  ;;  %v17195_v62 = vld [vmem:[#allocation2 + $0x18] sm:$0xc] }
 0x351   : > { %v5990_v38 = vshrl.u32 %v17195_v62, 16 }
 0x353   : > { %6355 = vmatpush1.bf16.msra.mxu1 %v16552_v23  ;;  %v5993_v23 = vshll.u32 %v17195_v62, 16  ;;  %v16617_v62 = vld [vmem:[%s22850_s7 + $0xc4] ss:$8 sps:$4 sm:$0xff]  }
 0x354   : > { %6356 = vmatprep.subr.bf16.mxu1 %v16560_v40  ;;  %v5942_v40 = vor.u32 %v5941_v29, %v5938_v44  ;;  %v17198_v44 = vld [vmem:[#allocation2 + $0x20] sm:$0xc] }
 0x355   : > { %v5995_v20 = vrot.slane %v5993_v23, 7  ;;  %v6008_v29 = vshrl.u32 %v17198_v44, 16  ;;  %v6011_v39 = vshll.u32 %v17198_v44, 16  ;;  %v6028_v23 = vrot.slane %v6026_v57, 6  ;;  %v16591_v57 = vld [vmem:[%s22848_s5 + $0x320] ss:$8 sps:$4 sm:$0xff]  }
 0x356   : > { %5815 = vmatmul.mubr.bf16.gmra.mrb[148].mxu1 %v23084_v21  ;;  %v5943_v31 = vrot.slane %v5942_v40, 4  ;;  %v6031_v40 = vrot.slane %v6029_v51, 7  ;;  %v17200_v51 = vld [vmem:[#allocation2 + $0x30] sm:$0xc]  ;;  %v16596_v44 = vld [vmem:[%s22848_s5 + $0x334] ss:$8 sps:$4 sm:$0xff]  }
 0x357   : > { %5824 = vmatprep.mubr.bf16.mxu1 %v23025_v22  ;;  %6357 = vmatpush1.bf16.msra.mxu1 %v16558_v59  ;;  %v5950_v59 = vrot.slane %v5948_v11, 7  ;;  %v16585_v11 = vld [vmem:[%s22848_s5 + $0x300] ss:$8 sps:$4 sm:$0xff]  }
 0x358   : > { %6358 = vmatprep.subr.bf16.mxu1 %v16569_v6  ;;  %v17196_v6 = vld [vmem:[#allocation2 + $0x10] sm:$0xc] }
 0x359   : > { %v5972_v21 = vshrl.u32 %v17196_v6, 16 }
 0x35b   : > { %6359 = vmatpush1.bf16.msra.mxu1 %v16567_v17  ;;  %v5975_v17 = vshll.u32 %v17196_v6, 16 }
 0x35c   : > { %6360 = vmatprep.subr.bf16.mxu1 %v16575_v34  ;;  %v5961_v34 = vrot.slane %v5960_v37, 4 }
 0x35e   : > { %5825 = vmatmul.mubr.bf16.gmra.mrb[152].mxu1 %v23087_v0  ;;  %v5999_v0 = vshrl.u32 %v23097_v9, 16 }
 0x35f   : > { %5834 = vmatprep.mubr.bf16.mxu1 %v23025_v22  ;;  %6361 = vmatpush1.bf16.msra.mxu1 %v16573_v42  ;;  %v5969_v42 = vor.u32 %v5968_v63, %v5965_v32  ;;  %v5983_v32 = vrot.slane %v5981_v10, 6  ;;  %v5986_v63 = vrot.slane %v5984_v16, 7 }
 0x360   : > { %6362 = vmatprep.subr.bf16.mxu1 %v16578_v56  ;;  %v5992_v56 = vrot.slane %v5990_v38, 6  ;;  %v6001_v47 = vrot.slane %v5999_v0, 6  ;;  %v16590_v38 = vld [vmem:[%s22848_s5 + $0x314] ss:$8 sps:$4 sm:$0xff]  }
 0x361   : > { %v5970_v24 = vsel %vm19932_vm10, %v5961_v34, %v5969_v42  ;;  %v6010_v34 = vrot.slane %v6008_v29, 6  ;;  %v6013_v42 = vrot.slane %v6011_v39, 7  ;;  %v16620_v0 = vld [vmem:[%s22850_s7 + $0xd4] ss:$8 sps:$4 sm:$0xff]  }
 0x362   : > { %v5996_v43 = vor.u32 %v5995_v20, %v5992_v56  ;;  %v23104_v56 = vld [vmem:[#allocation22_spill] sm:$0xff] }
 0x363   : > { %6363 = vmatpush1.bf16.msra.mxu1 %v16576_v36  ;;  %v6002_v36 = vshll.u32 %v23097_v9, 16  ;;  %v6017_v20 = vshrl.u32 %v23104_v56, 16  ;;  %v6020_v9 = vshll.u32 %v23104_v56, 16  ;;  %v6014_v10 = vor.u32 %v6013_v42, %v6010_v34  ;;  %v17201_v34 = vld [vmem:[#allocation2 + $0x48] sm:$0xc] }
 0x364   : > { %6364 = vmatprep.subr.bf16.mxu1 %v16581_v13  ;;  %v23098_v13 = vld [vmem:[#allocation17_spill] sm:$0xff]  ;;  %v5997_v6 = vrot.slane %v5996_v43, 4  ;;  %v6044_v43 = vshrl.u32 %v17200_v51, 16  ;;  %v6098_v42 = vshrl.u32 %v17201_v34, 16  ;;  %v6101_v56 = vshll.u32 %v17201_v34, 16 }
 0x365   : > { %v6004_v50 = vrot.slane %v6002_v36, 7  ;;  %v5987_v36 = vor.u32 %v5986_v63, %v5983_v32  ;;  %v6019_v16 = vrot.slane %v6017_v20, 6  ;;  %v16621_v32 = vld [vmem:[%s22850_s7 + $0xe0] ss:$8 sps:$4 sm:$0xff]   ;;  %v6015_v63 = vrot.slane %v6014_v10, 4 }
 0x366   : > { %5835 = vmatmul.mubr.bf16.gmra.mrb[156].mxu1 %v23089_v49  ;;  %v5951_v49 = vor.u32 %v5950_v59, %v5947_v53  ;;  %v6035_v53 = vshrl.u32 %v19567_v25, 16  ;;  %v6038_v59 = vshll.u32 %v19567_v25, 16  ;;  %v16599_v20 = vld [vmem:[%s22848_s5 + $0x344] ss:$8 sps:$4 sm:$0xff]   ;;  %v6100_v10 = vrot.slane %v6098_v42, 6 }
 0x367   : > { %5844 = vmatprep.mubr.bf16.mxu1 %v23025_v22  ;;  %6365 = vmatpush1.bf16.msra.mxu1 %v16579_v33  ;;  %v23099_v33 = vld [vmem:[#allocation18_spill] sm:$0xff] }
 0x368   : > { %6366 = vmatprep.subr.bf16.mxu1 %v16584_v4  ;;  %v23100_v4 = vcombine.low %v23098_v13, %v23099_v33  ;;  %v16588_v13 = vld [vmem:[%s22848_s5 + $0x310] ss:$8 sps:$4 sm:$0xff]   ;;  %v6032_v33 = vor.u32 %v6031_v40, %v6028_v23  ;;  %v6046_v23 = vrot.slane %v6044_v43, 6 }
 0x36b   : > { %6367 = vmatpush1.bf16.msra.mxu1 %v16582_v1  ;;  %v16609_v1 = vld [vmem:[%s22850_s7 + $0xa0] ss:$8 sps:$4 sm:$0xff]  }
 0x36c   : > { %6741 = vmatprep.subr.bf16.mxu1 %v16587_v55  ;;  %v16611_v55 = vld [vmem:[%s22850_s7 + $0xa4] ss:$8 sps:$4 sm:$0xff]  }
 0x36d   : > { %7362 = vmatprep.subr.bf16.mxu0 %v16611_v55  ;;  %v17199_v55 = vld [vmem:[#allocation2 + $0x38] sm:$0xc] }
 0x36e   : > { %5845 = vmatmul.mubr.bf16.gmra.mrb[160].mxu1 %v23091_v7  ;;  %v5974_v7 = vrot.slane %v5972_v21, 6  ;;  %7363 = vmatpush1.bf16.msra.mxu0 %v16609_v1  ;;  %v6005_v21 = vor.u32 %v6004_v50, %v6001_v47  ;;  %v6047_v47 = vshll.u32 %v17200_v51, 16 }
 0x36f   : > { %5854 = vmatprep.mubr.bf16.mxu1 %v23025_v22  ;;  %7364 = vmatprep.subr.bf16.mxu0 %v16614_v30  ;;  %v6022_v30 = vrot.slane %v6020_v9, 7 }
 0x370   : > { %v6006_v1 = vsel %vm19932_vm10, %v5997_v6, %v6005_v21  ;;  %v6049_v40 = vrot.slane %v6047_v47, 7  ;;  %v16594_v21 = vld [vmem:[%s22848_s5 + $0x330] ss:$8 sps:$4 sm:$0xff]   ;;  %v16627_v47 = vld [vmem:[%s22850_s7 + $0x100] ss:$8 sps:$4 sm:$0xff]  }
 0x372   : > { %7365 = vmatpush1.bf16.msra.mxu0 %v16612_v5  ;;  %v6033_v5 = vrot.slane %v6032_v33, 4  ;;  %v17202_v33 = vld [vmem:[#allocation2 + $0x40] sm:$0xc] }
 0x373   : > { %7366 = vmatprep.subr.bf16.mxu0 %v16617_v62  ;;  %v6023_v62 = vor.u32 %v6022_v30, %v6019_v16  ;;  %v6103_v16 = vrot.slane %v6101_v56, 7  ;;  %v23107_v30 = vld [vmem:[#allocation28_spill] sm:$0xff]  ;;  %v17204_v56 = vld [vmem:[#allocation2 + $0x50] sm:$0xc] }
 0x376   : > { %5855 = vmatmul.mubr.bf16.gmra.mrb[164].mxu1 %v23092_v27  ;;  %v5977_v27 = vrot.slane %v5975_v17, 7  ;;  %v16615_v17 = vld [vmem:[%s22850_s7 + $0xc0] ss:$8 sps:$4 sm:$0xff]  }
 0x377   : > { %5864 = vmatprep.mubr.bf16.mxu1 %v23025_v22  ;;  %7367 = vmatpush1.bf16.msra.mxu0 %v16615_v17 }
 0x378   : > { %v5978_v37 = vor.u32 %v5977_v27, %v5974_v7  ;;  %v6062_v7 = vshrl.u32 %v17199_v55, 16  ;;  %v6065_v27 = vshll.u32 %v17199_v55, 16  ;;  %7368 = vmatprep.subr.bf16.mxu0 %v16620_v0  ;;  %v6050_v55 = vor.u32 %v6049_v40, %v6046_v23  ;;  %v17203_v40 = vld [vmem:[#allocation2 + $0x58] sm:$0xc] }
 0x37a   : > { %v5979_v25 = vrot.slane %v5978_v37, 4  ;;  %v6064_v29 = vrot.slane %v6062_v7, 6  ;;  %v6067_v39 = vrot.slane %v6065_v27, 7 }
 0x37b   : > { %7369 = vmatpush1.bf16.msra.mxu0 %v16618_v61  ;;  %v16597_v61 = vld [vmem:[%s22848_s5 + $0x340] ss:$8 sps:$4 sm:$0xff]  }
 0x37c   : > { %v5988_v14 = vsel %vm19932_vm10, %v5979_v25, %v5987_v36  ;;  %v6068_v9 = vor.u32 %v6067_v39, %v6064_v29  ;;  %v16624_v36 = vld [vmem:[%s22850_s7 + $0xf0] ss:$8 sps:$4 sm:$0xff]   ;;  %v16632_v39 = vld [vmem:[%s22850_s7 + $0x114] ss:$8 sps:$4 sm:$0xff]  }
 0x37d   : > { %v14039_v50 = vcombine.low %v5988_v14, %v6006_v1  ;;  %v6110_v14 = vshll.u32 %v23107_v30, 16 }
 0x37e   : > { %5865 = vmatmul.mubr.bf16.gmra.mrb[168].mxu1 %v23095_v18  ;;  %v5952_v18 = vsel %vm19932_vm10, %v5943_v31, %v5951_v49  ;;  %v6040_v31 = vrot.slane %v6038_v59, 7  ;;  %v16593_v49 = vld [vmem:[%s22848_s5 + $0x324] ss:$8 sps:$4 sm:$0xff]   ;;  %v6069_v51 = vrot.slane %v6068_v9, 4  ;;  %v6119_v9 = vshll.u32 %v17204_v56, 16 }
 0x37f   : > { %5874 = vmatprep.mubr.bf16.mxu1 %v23025_v22  ;;  %v14038_v35 = vcombine.low %v5952_v18, %v5970_v24  ;;  %v16623_v24 = vld [vmem:[%s22850_s7 + $0xe4] ss:$8 sps:$4 sm:$0xff]  }
 0x380   : > { %7370 = vmatprep.subr.bf16.mxu0 %v16623_v24  ;;  %v6107_v24 = vshrl.u32 %v23107_v30, 16 }
 0x381   : > { %7371 = vmatpush1.bf16.msra.mxu0 %v16621_v32  ;;  %v6104_v32 = vor.u32 %v6103_v16, %v6100_v10  ;;  %v6121_v10 = vrot.slane %v6119_v9, 7  ;;  %v17206_v16 = vld [vmem:[#allocation2 + $0x54] sm:$0x7] }
 0x382   : > { %v6125_v30 = vshrl.u32 %v17206_v16, 16 }
 0x386   : > { %5875 = vmatmul.mubr.bf16.gmra.mrb[172].mxu1 %v23100_v4  ;;  %v6037_v4 = vrot.slane %v6035_v53, 6  ;;  %v23106_v53 = vld [vmem:[#allocation23_spill] sm:$0xff] }
 0x387   : > { %6384 = vmatprep.mubr.bf16.mxu1 %v23025_v22  ;;  %v6053_v59 = vshrl.u32 %v23106_v53, 16  ;;  %v6056_v6 = vshll.u32 %v23106_v53, 16  ;;  %v6134_v53 = vshrl.u32 %v17203_v40, 16 }
 0x388   : > { %v6041_v18 = vor.u32 %v6040_v31, %v6037_v4  ;;  %v6080_v4 = vshrl.u32 %v17202_v33, 16  ;;  %v6083_v31 = vshll.u32 %v17202_v33, 16  ;;  %v16608_v33 = vld [vmem:[%s22848_s5 + $0x374] ss:$8 sps:$4 sm:$0xff]  }
 0x389   : > { %v6055_v7 = vrot.slane %v6053_v59, 6  ;;  %v6058_v27 = vrot.slane %v6056_v6, 7  ;;  %v6137_v59 = vshll.u32 %v17203_v40, 16  ;;  %v16630_v6 = vld [vmem:[%s22850_s7 + $0x110] ss:$8 sps:$4 sm:$0xff]  }
 0x38a   : > { %v6042_v17 = vsel %vm19932_vm10, %v6033_v5, %v6041_v18  ;;  %v6085_v5 = vrot.slane %v6083_v31, 7  ;;  %v23108_v18 = vld [vmem:[#allocation25_spill] sm:$0xff] }
 0x38b   : > { %v6092_v29 = vshll.u32 %v23108_v18, 16  ;;  %v6139_v31 = vrot.slane %v6137_v59, 7 }
 0x38d   : > { %v6094_v34 = vrot.slane %v6092_v29, 7  ;;  %v17208_v29 = vld [vmem:[#allocation2 + $0x60] sm:$0xc] }
 0x38e   : > { %6385 = vmatmul.mubr.bf16.vlgmr.msra.gmra.mrb[144].mxu1 %v14038_v35  ;;  %v23105_v35 = vld [vmem:[#allocation24_spill] sm:$0xff] }
 0x38f   : > { %6742 = vmatpush1.bf16.msra.mxu1 %v16585_v11  ;;  %6394 = vmatprep.mubr.bf16.mxu1 %v23025_v22  ;;  %v6071_v11 = vshrl.u32 %v23105_v35, 16  ;;  %v6074_v37 = vshll.u32 %v23105_v35, 16  ;;  %v6051_v35 = vrot.slane %v6050_v55, 4 }
 0x390   : > { %6743 = vmatprep.subr.bf16.mxu1 %v16590_v38  ;;  %v16626_v38 = vld [vmem:[%s22850_s7 + $0xf4] ss:$8 sps:$4 sm:$0xff]  }
 0x391   : > { %v6073_v0 = vrot.slane %v6071_v11, 6  ;;  %v6076_v25 = vrot.slane %v6074_v37, 7  ;;  %7372 = vmatprep.subr.bf16.mxu0 %v16626_v38  ;;  %v6059_v11 = vor.u32 %v6058_v27, %v6055_v7  ;;  %v16600_v37 = vld [vmem:[%s22848_s5 + $0x350] ss:$8 sps:$4 sm:$0xff]   ;;  %v16605_v38 = vld [vmem:[%s22848_s5 + $0x364] ss:$8 sps:$4 sm:$0xff]  }
 0x392   : > { %7373 = vmatpush1.bf16.msra.mxu0 %v16624_v36  ;;  %v6105_v36 = vrot.slane %v6104_v32, 4  ;;  %v6127_v32 = vrot.slane %v6125_v30, 6 }
 0x393   : > { %6744 = vmatpush1.bf16.msra.mxu1 %v16588_v13  ;;  %v6024_v13 = vsel %vm19932_vm10, %v6015_v63, %v6023_v62  ;;  %v6077_v43 = vor.u32 %v6076_v25, %v6073_v0  ;;  %v6109_v63 = vrot.slane %v6107_v24, 6  ;;  %v6112_v62 = vrot.slane %v6110_v14, 7  ;;  %v16603_v0 = vld [vmem:[%s22848_s5 + $0x360] ss:$8 sps:$4 sm:$0xff]   ;;  %v16606_v14 = vld [vmem:[%s22848_s5 + $0x370] ss:$8 sps:$4 sm:$0xff]  }
 0x394   : > { %6745 = vmatprep.subr.bf16.mxu1 %v16593_v49  ;;  %v16629_v49 = vld [vmem:[%s22850_s7 + $0x104] ss:$8 sps:$4 sm:$0xff]   ;;  %v14040_v1 = vcombine.low %v6024_v13, %v6042_v17  ;;  %v6060_v42 = vsel %vm19932_vm10, %v6051_v35, %v6059_v11  ;;  %v6128_v24 = vshll.u32 %v17206_v16, 16  ;;  %v6155_v35 = vshll.u32 %v17208_v29, 16 }
 0x395   : > { %7374 = vmatprep.subr.bf16.mxu0 %v16629_v49  ;;  %v6078_v23 = vsel %vm19932_vm10, %v6069_v51, %v6077_v43  ;;  %v6113_v13 = vor.u32 %v6112_v62, %v6109_v63  ;;  %v17205_v49 = vld [vmem:[#allocation2 + $0x5c] sm:$0x7]  ;;  %v17207_v51 = vld [vmem:[#allocation2 + $0x68] sm:$0xc] }
 0x396   : > { %6395 = vmatmul.mubr.bf16.gmra.mrb[148].mxu1 %v14039_v50  ;;  %v6082_v50 = vrot.slane %v6080_v4, 6  ;;  %7375 = vmatpush1.bf16.msra.mxu0 %v16627_v47  ;;  %v14041_v25 = vcombine.low %v6060_v42, %v6078_v23  ;;  %v6136_v4 = vrot.slane %v6134_v53, 6  ;;  %v6146_v55 = vshll.u32 %v17205_v49, 16  ;;  %v17209_v23 = vld [vmem:[#allocation2 + $0x6c] sm:$0x7] }
 0x397   : > { %6404 = vmatprep.mubr.bf16.mxu1 %v23025_v22  ;;  %6746 = vmatpush1.bf16.msra.mxu1 %v16591_v57  ;;  %v16602_v57 = vld [vmem:[%s22848_s5 + $0x354] ss:$8 sps:$4 sm:$0xff]   ;;  %v6170_v43 = vshrl.u32 %v17207_v51, 16  ;;  %v6173_v47 = vshll.u32 %v17207_v51, 16  ;;  %v6130_v63 = vrot.slane %v6128_v24, 7  ;;  %v6179_v40 = vshrl.u32 %v17209_v23, 16 }
 0x398   : > { %6747 = vmatprep.subr.bf16.mxu1 %v16596_v44  ;;  %v6089_v44 = vshrl.u32 %v23108_v18, 16  ;;  %7376 = vmatprep.subr.bf16.mxu0 %v16632_v39  ;;  %v6148_v18 = vrot.slane %v6146_v55, 7  ;;  %v6152_v39 = vshrl.u32 %v17208_v29, 16  ;;  %v6182_v53 = vshll.u32 %v17209_v23, 16  ;;  %v17213_v51 = vld [vmem:[#allocation2 + $0x7c] sm:$0x7] }
 0x399   : > { %v6172_v62 = vrot.slane %v6170_v43, 6  ;;  %v6131_v9 = vor.u32 %v6130_v63, %v6127_v32  ;;  %v6215_v43 = vshrl.u32 %v17213_v51, 16  ;;  %v17214_v29 = vld [vmem:[#allocation2 + $0x74] sm:$0x7] }
 0x39a   : > { %v6091_v17 = vrot.slane %v6089_v44, 6  ;;  %7377 = vmatpush1.bf16.msra.mxu0 %v16630_v6 }
 0x39b   : > { %6748 = vmatpush1.bf16.msra.mxu1 %v16594_v21  ;;  %v6086_v21 = vor.u32 %v6085_v5, %v6082_v50  ;;  %v6140_v50 = vor.u32 %v6139_v31, %v6136_v4  ;;  %v6217_v32 = vrot.slane %v6215_v43, 6  ;;  %7378 = vmatprep.subr.bf16.mxu0 %v16635_v52 }
 0x39c   : > { %6749 = vmatprep.subr.bf16.mxu1 %v16599_v20  ;;  %v6116_v20 = vshrl.u32 %v17204_v56, 16  ;;  %v6095_v27 = vor.u32 %v6094_v34, %v6091_v17  ;;  %v6157_v17 = vrot.slane %v6155_v35, 7  ;;  %v17210_v34 = vld [vmem:[#allocation2 + $0x64] sm:$0x7]  ;;  %v6200_v35 = vshll.u32 %v17214_v29, 16 }
 0x39d   : > { %v6087_v7 = vrot.slane %v6086_v21, 4  ;;  %v6141_v59 = vrot.slane %v6140_v50, 4  ;;  %v6154_v21 = vrot.slane %v6152_v39, 6  ;;  %v6161_v42 = vshrl.u32 %v17210_v34, 16 }
 0x39e   : > { %6405 = vmatmul.mubr.bf16.gmra.mrb[152].mxu1 %v14040_v1  ;;  %v6143_v1 = vshrl.u32 %v17205_v49, 16  ;;  %v6164_v56 = vshll.u32 %v17210_v34, 16  ;;  %v6197_v39 = vshrl.u32 %v17214_v29, 16  ;;  %v23112_v29 = vld [vmem:[#allocation29_spill] sm:$0xff]  ;;  %7379 = vmatpush1.bf16.msra.mxu0 %v16633_v28 }
 0x39f   : > { %6414 = vmatprep.mubr.bf16.mxu1 %v23025_v22  ;;  %6750 = vmatpush1.bf16.msra.mxu1 %v16597_v61  ;;  %v6118_v61 = vrot.slane %v6116_v20, 6  ;;  %v6096_v44 = vsel %vm19932_vm10, %v6087_v7, %v6095_v27  ;;  %v6158_v49 = vor.u32 %v6157_v17, %v6154_v21  ;;  %v17212_v27 = vld [vmem:[#allocation2 + $0x70] sm:$0xc] }
 0x3a0   : > { %6751 = vmatprep.subr.bf16.mxu1 %v16602_v57  ;;  %v6114_v57 = vsel %vm19932_vm10, %v6105_v36, %v6113_v13  ;;  %v6145_v5 = vrot.slane %v6143_v1, 6  ;;  %v6184_v36 = vrot.slane %v6182_v53, 7  ;;  %v6163_v1 = vrot.slane %v6161_v42, 6 }
 0x3a1   : > { %v14042_v11 = vcombine.low %v6096_v44, %v6114_v57  ;;  %v6166_v55 = vrot.slane %v6164_v56, 7  ;;  %v6159_v50 = vrot.slane %v6158_v49, 4  ;;  %v6199_v23 = vrot.slane %v6197_v39, 6  ;;  %v23113_v39 = vld [vmem:[#allocation30_spill] sm:$0xff] }
 0x3a2   : > { %v6149_v6 = vor.u32 %v6148_v18, %v6145_v5 }
 0x3a3   : > { %6752 = vmatpush1.bf16.msra.mxu1 %v16600_v37  ;;  %v6122_v37 = vor.u32 %v6121_v10, %v6118_v61  ;;  %v6188_v61 = vshrl.u32 %v17212_v27, 16  ;;  %v6191_v10 = vshll.u32 %v17212_v27, 16  ;;  %v6167_v5 = vor.u32 %v6166_v55, %v6163_v1  ;;  %v23109_v55 = vld [vmem:[#allocation26_spill] sm:$0xff] }
 0x3a4   : > { %6753 = vmatprep.subr.bf16.mxu1 %v16605_v38  ;;  %v6175_v38 = vrot.slane %v6173_v47, 7  ;;  %v6150_v13 = vsel %vm19932_vm10, %v6141_v59, %v6149_v6  ;;  %v6218_v47 = vshll.u32 %v17213_v51, 16  ;;  %v637_v59 = vlaneseq }
 0x3a5   : > { %v6123_v20 = vrot.slane %v6122_v37, 4  ;;  %v6190_v18 = vrot.slane %v6188_v61, 6  ;;  %v6193_v44 = vrot.slane %v6191_v10, 7 }
 0x3a6   : > { %6415 = vmatmul.mubr.bf16.gmra.mrb[156].mxu1 %v14041_v25  ;;  %v6181_v25 = vrot.slane %v6179_v40, 6  ;;  %v6220_v63 = vrot.slane %v6218_v47, 7  ;;  %v6202_v40 = vrot.slane %v6200_v35, 7  ;;  %v20072_v42 = vshrl.u32 %v637_v59, 7 }
 0x3a7   : > { %6424 = vmatprep.mubr.bf16.mxu1 %v23025_v22  ;;  %6754 = vmatpush1.bf16.msra.mxu1 %v16603_v0  ;;  %v6176_v0 = vor.u32 %v6175_v38, %v6172_v62  ;;  %v6132_v7 = vsel %vm19932_vm10, %v6123_v20, %v6131_v9  ;;  %v6168_v62 = vsel %vm19932_vm10, %v6159_v50, %v6167_v5 }
 0x3a8   : > { %6755 = vmatprep.subr.bf16.mxu1 %v16608_v33  ;;  %v17211_v33 = vld [vmem:[#allocation2 + $0x78] sm:$0xc]  ;;  %v14043_v16 = vcombine.low %v6132_v7, %v6150_v13  ;;  %v6185_v24 = vor.u32 %v6184_v36, %v6181_v25  ;;  %v6194_v38 = vor.u32 %v6193_v44, %v6190_v18  ;;  %v6221_v21 = vor.u32 %v6220_v63, %v6217_v32  ;;  %v635_v25 = vld [vmem:[%s22845_s2] sm:$0x3] }
 0x3a9   : > { %v6206_v4 = vshrl.u32 %v17211_v33, 16  ;;  %v6209_v31 = vshll.u32 %v17211_v33, 16  ;;  %v6177_v30 = vrot.slane %v6176_v0, 4  ;;  %v6203_v34 = vor.u32 %v6202_v40, %v6199_v23  ;;  %v23110_v7 = vld [vmem:[#allocation27_spill] sm:$0xff] }
 0x3aa   : > { %v6195_v17 = vrot.slane %v6194_v38, 4  ;;  %v20079_v0 = vsub.s32 0, %v20072_v42  ;;  %v20085_v36 = vsub.s32 1, %v20072_v42  ;;  %v23111_v27 = vcombine.low %v23109_v55, %v23110_v7 }
 0x3ab   : > { %6756 = vmatpush1.bf16.msra.mxu1 %v16606_v14  ;;  %v6208_v14 = vrot.slane %v6206_v4, 6  ;;  %v6211_v57 = vrot.slane %v6209_v31, 7  ;;  %v23114_v35 = vcombine.low %v23112_v29, %v23113_v39 }
 0x3ac   : > { %v6204_v20 = vsel %vm19932_vm10, %v6195_v17, %v6203_v34  ;;  %v20089_v13 = vrot.slane %v635_v25, %v20079_v0  ;;  %v20092_v46 = vrot.slane %v635_v25, %v20085_v36 }
 0x3ad   : > { %v6212_v37 = vor.u32 %v6211_v57, %v6208_v14 }
 0x3ae   : > { %6425 = vmatmul.mubr.bf16.gmra.mrb[160].mxu1 %v14042_v11  ;;  %v6186_v11 = vsel %vm19932_vm10, %v6177_v30, %v6185_v24 }
 0x3af   : > { %6434 = vmatprep.mubr.bf16.mxu1 %v23025_v22  ;;  %v14044_v53 = vcombine.low %v6168_v62, %v6186_v11  ;;  %v6213_v6 = vrot.slane %v6212_v37, 4 }
 0x3b1   : > { %v6222_v56 = vsel %vm19932_vm10, %v6213_v6, %v6221_v21 }
 0x3b2   : > { %v14045_v9 = vcombine.low %v6204_v20, %v6222_v56  ;;  %v23115_v56 = vld [vmem:[#allocation31_spill] sm:$0xff]  ;;  %v23116_v20 = vld [vmem:[#allocation32_spill] sm:$0xff] }
 0x3b6   : > { %6435 = vmatmul.mubr.bf16.gmra.mrb[164].mxu1 %v14043_v16 }
 0x3b7   : > { %6444 = vmatprep.mubr.bf16.mxu1 %v23025_v22 }
 0x3be   : > { %6445 = vmatmul.mubr.bf16.gmra.mrb[168].mxu1 %v14044_v53 }
 0x3bf   : > { %6454 = vmatprep.mubr.bf16.mxu1 %v23025_v22 }
 0x3c6   : > { %6455 = vmatmul.mubr.bf16.gmra.mrb[172].mxu1 %v14045_v9  ;;  %v23117_v9 = vcombine.low %v23115_v56, %v23116_v20 }
 0x3c7   : > { %6773 = vmatprep.mubr.bf16.mxu1 %v23025_v22 }
 0x3cb   : > { %v2198_v33 = vpop.f32.mrb[0].mxu0 }
 0x3cc   : > { %v15372_v4 = vadd.f32 %v2198_v33, %v20089_v13  ;;  %v2200_v31 = vpop.f32.mrb[1].mxu0 }
 0x3cd   : > { %v15373_v49 = vadd.f32 %v2200_v31, %v20092_v46  ;;  %v2202_v1 = vpop.f32.mrb[2].mxu0 }
 0x3ce   : > { %6774 = vmatmul.mubr.bf16.vlgmr.msra.gmra.mrb[144].mxu1 %v23111_v27  ;;  %v2277_v61 = vmax.f32 %v15372_v4, 0.0  ;;  %v15374_v10 = vadd.f32 %v2202_v1, %v20089_v13  ;;  %v2204_v16 = vpop.f32.mrb[3].mxu0 }
 0x3cf   : > { %6783 = vmatprep.mubr.bf16.mxu1 %v23025_v22  ;;  %v2278_v30 = vmax.f32 %v15373_v49, 0.0  ;;  %v15375_v24 = vadd.f32 %v2204_v16, %v20092_v46 }
 0x3d0   : > { %v2279_v14 = vmax.f32 %v15374_v10, 0.0 }
 0x3d1   : > { %v2280_v57 = vmax.f32 %v15375_v24, 0.0 }
 0x3d2   : > { %v20102_v51 = vpack.c.bf16 %v2279_v14, %v2277_v61 }
 0x3d3   : > { %v20104_v43 = vpack.c.bf16 %v2280_v57, %v2278_v30  ;;  %v2208_v47 = vpop.f32.mrb[4].mxu0 }
 0x3d4   : > { %v15376_v50 = vadd.f32 %v2208_v47, %v20089_v13  ;;  %v2210_v5 = vpop.f32.mrb[5].mxu0 }
 0x3d5   : > { %v15377_v18 = vadd.f32 %v2210_v5, %v20092_v46  ;;  %v2212_v44 = vpop.f32.mrb[6].mxu0 }
 0x3d6   : > { %6784 = vmatmul.mubr.bf16.gmra.mrb[148].mxu1 %v23114_v35  ;;  %v2281_v11 = vmax.f32 %v15376_v50, 0.0  ;;  %v15378_v37 = vadd.f32 %v2212_v44, %v20089_v13  ;;  %v2214_v32 = vpop.f32.mrb[7].mxu0 }
 0x3d7   : > { %6793 = vmatprep.mubr.bf16.mxu1 %v23025_v22  ;;  %v2282_v63 = vmax.f32 %v15377_v18, 0.0  ;;  %v15379_v62 = vadd.f32 %v2214_v32, %v20092_v46 }
 0x3d8   : > { %v2283_v38 = vmax.f32 %v15378_v37, 0.0 }
 0x3d9   : > { %v2284_v23 = vmax.f32 %v15379_v62, 0.0 }
 0x3da   : > { %v20114_v40 = vpack.c.bf16 %v2283_v38, %v2281_v11 }
 0x3db   : > { %v20116_v53 = vpack.c.bf16 %v2284_v23, %v2282_v63  ;;  %v2218_v59 = vpop.f32.mrb[8].mxu0 }
 0x3dc   : > { %v15380_v6 = vadd.f32 %v2218_v59, %v20089_v13  ;;  %v2220_v21 = vpop.f32.mrb[9].mxu0 }
 0x3dd   : > { %v15381_v17 = vadd.f32 %v2220_v21, %v20092_v46  ;;  %v2222_v34 = vpop.f32.mrb[10].mxu0 }
 0x3de   : > { %6794 = vmatmul.mubr.bf16.gmra.mrb[152].mxu1 %v23117_v9  ;;  %v2285_v25 = vmax.f32 %v15380_v6, 0.0  ;;  %v15382_v33 = vadd.f32 %v2222_v34, %v20089_v13  ;;  %v2224_v4 = vpop.f32.mrb[11].mxu0 }
 0x3df   : > { %6803 = vmatprep.mubr.bf16.mxu1 %v23025_v22  ;;  %v2286_v31 = vmax.f32 %v15381_v17, 0.0  ;;  %v15383_v49 = vadd.f32 %v2224_v4, %v20092_v46 }
 0x3e0   : > { %v2287_v1 = vmax.f32 %v15382_v33, 0.0 }
 0x3e1   : > { %v2288_v55 = vmax.f32 %v15383_v49, 0.0 }
 0x3e2   : > { %v20126_v7 = vpack.c.bf16 %v2287_v1, %v2285_v25 }
 0x3e3   : > { %v20128_v27 = vpack.c.bf16 %v2288_v55, %v2286_v31  ;;  %v2228_v61 = vpop.f32.mrb[12].mxu0 }
 0x3e4   : > { %v15384_v10 = vadd.f32 %v2228_v61, %v20089_v13  ;;  %v2230_v16 = vpop.f32.mrb[13].mxu0 }
 0x3e5   : > { %v15385_v30 = vadd.f32 %v2230_v16, %v20092_v46  ;;  %v2232_v24 = vpop.f32.mrb[14].mxu0 }
 0x3e6   : > { %6804 = vmatmul.mubr.bf16.gmra.mrb[156].mxu1 %v14097_v8  ;;  %v2289_v14 = vmax.f32 %v15384_v10, 0.0  ;;  %v15386_v57 = vadd.f32 %v2232_v24, %v20089_v13  ;;  %v2234_v47 = vpop.f32.mrb[15].mxu0 }
 0x3e7   : > { %6813 = vmatprep.mubr.bf16.mxu1 %v23025_v22  ;;  %v2290_v50 = vmax.f32 %v15385_v30, 0.0  ;;  %v15387_v5 = vadd.f32 %v2234_v47, %v20092_v46 }
 0x3e8   : > { %v2291_v18 = vmax.f32 %v15386_v57, 0.0 }
 0x3e9   : > { %v2292_v44 = vmax.f32 %v15387_v5, 0.0 }
 0x3ea   : > { %v20138_v29 = vpack.c.bf16 %v2291_v18, %v2289_v14 }
 0x3eb   : > { %v20140_v39 = vpack.c.bf16 %v2292_v44, %v2290_v50  ;;  %v2238_v35 = vpop.f32.mrb[16].mxu0 }
 0x3ec   : > { %v15388_v11 = vadd.f32 %v2238_v35, %v20089_v13  ;;  %v2240_v54 = vpop.f32.mrb[17].mxu0 }
 0x3ed   : > { %v15389_v8 = vadd.f32 %v2240_v54, %v20092_v46  ;;  %v2242_v41 = vpop.f32.mrb[18].mxu0 }
 0x3ee   : > { %6814 = vmatmul.mubr.bf16.gmra.mrb[160].mxu1 %v14098_v48  ;;  %v2293_v37 = vmax.f32 %v15388_v11, 0.0  ;;  %v15390_v32 = vadd.f32 %v2242_v41, %v20089_v13  ;;  %v2244_v63 = vpop.f32.mrb[19].mxu0 }
 0x3ef   : > { %6823 = vmatprep.mubr.bf16.mxu1 %v23025_v22  ;;  %v2294_v62 = vmax.f32 %v15389_v8, 0.0  ;;  %v15391_v38 = vadd.f32 %v2244_v63, %v20092_v46 }
 0x3f0   : > { %v2295_v23 = vmax.f32 %v15390_v32, 0.0 }
 0x3f1   : > { %v2296_v59 = vmax.f32 %v15391_v38, 0.0 }
 0x3f2   : > { %v20150_v6 = vpack.c.bf16 %v2295_v23, %v2293_v37  ;;  %v20243_v23 = vld [vmem:[#allocation3 + $0x10] sm:$0xff] }
 0x3f3   : > { %v20152_v21 = vpack.c.bf16 %v2296_v59, %v2294_v62  ;;  %v2248_v17 = vpop.f32.mrb[20].mxu0 }
 0x3f4   : > { %v15392_v34 = vadd.f32 %v2248_v17, %v20089_v13  ;;  %v2250_v26 = vpop.f32.mrb[21].mxu0 }
 0x3f5   : > { %v15393_v2 = vadd.f32 %v2250_v26, %v20092_v46  ;;  %v2252_v48 = vpop.f32.mrb[22].mxu0  ;;  %v16643_v26 = vld [vmem:[%s22850_s7 + $0x4] ss:$8 sps:$4 sm:$0xff]  }
 0x3f6   : > { %6824 = vmatmul.mubr.bf16.gmra.mrb[164].mxu1 %v14099_v3  ;;  %v2297_v56 = vmax.f32 %v15392_v34, 0.0  ;;  %v15394_v20 = vadd.f32 %v2252_v48, %v20089_v13  ;;  %v2254_v9 = vpop.f32.mrb[23].mxu0  ;;  %v16641_v34 = vld [vmem:[%s22850_s7] ss:$8 sps:$4 sm:$0xff]   ;;  %v16647_v48 = vld [vmem:[%s22850_s7 + $0x14] ss:$8 sps:$4 sm:$0xff]  }
 0x3f7   : > { %6833 = vmatprep.mubr.bf16.mxu1 %v23025_v22  ;;  %v2298_v25 = vmax.f32 %v15393_v2, 0.0  ;;  %v15395_v33 = vadd.f32 %v2254_v9, %v20092_v46  ;;  %v16645_v2 = vld [vmem:[%s22850_s7 + $0x10] ss:$8 sps:$4 sm:$0xff]  }
 0x3f8   : > { %v2299_v4 = vmax.f32 %v15394_v20, 0.0  ;;  %v16651_v20 = vld [vmem:[%s22850_s7 + $0x24] ss:$8 sps:$4 sm:$0xff]   ;;  %v16654_v9 = vld [vmem:[%s22850_s7 + $0x30] ss:$8 sps:$4 sm:$0xff]  }
 0x3f9   : > { %v2300_v31 = vmax.f32 %v15395_v33, 0.0  ;;  %v16661_v33 = vld [vmem:[%s22850_s7 + $0x44] ss:$8 sps:$4 sm:$0xff]  }
 0x3fa   : > { %v20162_v49 = vpack.c.bf16 %v2299_v4, %v2297_v56  ;;  %v16649_v56 = vld [vmem:[%s22850_s7 + $0x20] ss:$8 sps:$4 sm:$0xff]  }
 0x3fb   : > { %v20164_v1 = vpack.c.bf16 %v2300_v31, %v2298_v25  ;;  %v2258_v55 = vpop.f32.mrb[24].mxu0  ;;  %v16656_v25 = vld [vmem:[%s22850_s7 + $0x34] ss:$8 sps:$4 sm:$0xff]   ;;  %v16659_v4 = vld [vmem:[%s22850_s7 + $0x40] ss:$8 sps:$4 sm:$0xff]  }
 0x3fc   : > { %v15396_v61 = vadd.f32 %v2258_v55, %v20089_v13  ;;  %v2260_v15 = vpop.f32.mrb[25].mxu0  ;;  %v16664_v31 = vld [vmem:[%s22850_s7 + $0x50] ss:$8 sps:$4 sm:$0xff]   ;;  %v16666_v55 = vld [vmem:[%s22850_s7 + $0x54] ss:$8 sps:$4 sm:$0xff]  }
 0x3fd   : > { %v15397_v60 = vadd.f32 %v2260_v15, %v20092_v46  ;;  %v2262_v3 = vpop.f32.mrb[26].mxu0  ;;  %v16670_v15 = vld [vmem:[%s22850_s7 + $0x64] ss:$8 sps:$4 sm:$0xff]  }
 0x3fe   : > { %6834 = vmatmul.mubr.bf16.gmra.mrb[168].mxu1 %v14100_v12  ;;  %v2301_v10 = vmax.f32 %v15396_v61, 0.0  ;;  %v15398_v16 = vadd.f32 %v2262_v3, %v20089_v13  ;;  %v2264_v30 = vpop.f32.mrb[27].mxu0  ;;  %v16668_v61 = vld [vmem:[%s22850_s7 + $0x60] ss:$8 sps:$4 sm:$0xff]   ;;  %v16674_v3 = vld [vmem:[%s22850_s7 + $0x74] ss:$8 sps:$4 sm:$0xff]  }
 0x3ff   : > { %6843 = vmatprep.mubr.bf16.mxu1 %v23025_v22  ;;  %v2302_v24 = vmax.f32 %v15397_v60, 0.0  ;;  %v15399_v14 = vadd.f32 %v2264_v30, %v20092_v46  ;;  %v16672_v60 = vld [vmem:[%s22850_s7 + $0x70] ss:$8 sps:$4 sm:$0xff]   ;;  %v16684_v30 = vld [vmem:[%s22850_s7 + $0x94] ss:$8 sps:$4 sm:$0xff]  }
 0x400   : > { %v2303_v57 = vmax.f32 %v15398_v16, 0.0  ;;  %v16677_v16 = vld [vmem:[%s22850_s7 + $0x80] ss:$8 sps:$4 sm:$0xff]  }
 0x401   : > { %v2304_v47 = vmax.f32 %v15399_v14, 0.0  ;;  %v16687_v14 = vld [vmem:[%s22850_s7 + $0x144] ss:$8 sps:$4 sm:$0xff]  }
 0x402   : > { %v20174_v50 = vpack.c.bf16 %v2303_v57, %v2301_v10  ;;  %v16679_v10 = vld [vmem:[%s22850_s7 + $0x84] ss:$8 sps:$4 sm:$0xff]   ;;  %v6886_v57 = vld [vmem:[%s22849_s6] sm:$0x3] }
 0x403   : > { %v20176_v5 = vpack.c.bf16 %v2304_v47, %v2302_v24  ;;  %v2268_v18 = vpop.f32.mrb[28].mxu0  ;;  %v16682_v24 = vld [vmem:[%s22850_s7 + $0x90] ss:$8 sps:$4 sm:$0xff]   ;;  %v20317_v47 = vrot.slane %v6886_v57, %v20079_v0 }
 0x404   : > { %v15400_v44 = vadd.f32 %v2268_v18, %v20089_v13  ;;  %v2270_v58 = vpop.f32.mrb[29].mxu0  ;;  %v20320_v18 = vrot.slane %v6886_v57, %v20085_v36 }
 0x405   : > { %v15401_v45 = vadd.f32 %v2270_v58, %v20092_v46  ;;  %v2272_v12 = vpop.f32.mrb[30].mxu0 }
 0x406   : > { %6844 = vmatmul.mubr.bf16.gmra.mrb[172].mxu1 %v14101_v19  ;;  %v2305_v35 = vmax.f32 %v15400_v44, 0.0  ;;  %v15402_v11 = vadd.f32 %v2272_v12, %v20089_v13  ;;  %v2274_v54 = vpop.f32.mrb[31].mxu0  ;;  %v16638_v19 = vld [vmem:[%s22850_s7 + $0x134] ss:$8 sps:$4 sm:$0xff]   ;;  %v16636_v13 = vld [vmem:[%s22850_s7 + $0x130] ss:$8 sps:$4 sm:$0xff]  }
 0x407   : > { %v2306_v8 = vmax.f32 %v15401_v45, 0.0  ;;  %v15403_v41 = vadd.f32 %v2274_v54, %v20092_v46  ;;  %7380 = vmatprep.subr.bf16.mxu0 %v16638_v19  ;;  %v20241_v46 = vld [vmem:[#allocation3 + $0x8] sm:$0xff] }
 0x408   : > { %v2307_v37 = vmax.f32 %v15402_v11, 0.0  ;;  %7381 = vmatpush1.bf16.msra.mxu0 %v16636_v13  ;;  %v14154_v59 = vcombine.low %v20241_v46, %v20243_v23  ;;  %v14155_v17 = vcombine.high %v20241_v46, %v20243_v23 }
 0x409   : > { %v2308_v32 = vmax.f32 %v15403_v41, 0.0  ;;  %7671 = vmatprep.subr.bf16.mxu0 %v16643_v26 }
 0x40a   : > { %v20185_v63 = vpack.c.bf16 %v2307_v37, %v2305_v35  ;;  %14190 = vmatprep.mubr.msk.bf16.mxu0 %vm7337_vm13, %v14155_v17 }
 0x40b   : > { %v20187_v62 = vpack.c.bf16 %v2308_v32, %v2306_v8  ;;  %7395 = vmatmul.mubr.bf16.vlgmr.msra.gmra.mrb[32].mxu0 %v14154_v59 }
 0x40c   : > { %7672 = vmatpush1.bf16.msra.mxu0 %v16641_v34 }
 0x40d   : > { %7673 = vmatprep.subr.bf16.mxu0 %v16647_v48 }
 0x410   : > { %7674 = vmatpush1.bf16.msra.mxu0 %v16645_v2 }
 0x411   : > { %7675 = vmatprep.subr.bf16.mxu0 %v16651_v20 }
 0x414   : > { %7676 = vmatpush1.bf16.msra.mxu0 %v16649_v56 }
 0x415   : > { %7677 = vmatprep.subr.bf16.mxu0 %v16656_v25 }
 0x418   : > { %7678 = vmatpush1.bf16.msra.mxu0 %v16654_v9 }
 0x419   : > { %7679 = vmatprep.subr.bf16.mxu0 %v16661_v33 }
 0x41c   : > { %7680 = vmatpush1.bf16.msra.mxu0 %v16659_v4 }
 0x41d   : > { %7681 = vmatprep.subr.bf16.mxu0 %v16666_v55 }
 0x420   : > { %7682 = vmatpush1.bf16.msra.mxu0 %v16664_v31 }
 0x421   : > { %7683 = vmatprep.subr.bf16.mxu0 %v16670_v15 }
 0x424   : > { %7684 = vmatpush1.bf16.msra.mxu0 %v16668_v61 }
 0x425   : > { %7685 = vmatprep.subr.bf16.mxu0 %v16674_v3 }
 0x428   : > { %7686 = vmatpush1.bf16.msra.mxu0 %v16672_v60 }
 0x429   : > { %7687 = vmatprep.subr.bf16.mxu0 %v16679_v10 }
 0x42c   : > { %7688 = vmatpush1.bf16.msra.mxu0 %v16677_v16 }
 0x42d   : > { %7689 = vmatprep.subr.bf16.mxu0 %v16684_v30 }
 0x430   : > { %7690 = vmatpush1.bf16.msra.mxu0 %v16682_v24 }
 0x431   : > { %8018 = vmatprep.subr.bf16.mxu0 %v16687_v14 }
 0x4a1   : > { %v6775_v44 = vpop.f32.mrb[144].mxu1 }
 0x4a2   : > { %v6898_v58 = vadd.f32 %v20317_v47, %v6775_v44  ;;  %v6777_v45 = vpop.f32.mrb[145].mxu1 }
 0x4a3   : > { %v6899_v12 = vadd.f32 %v20320_v18, %v6777_v45  ;;  %v6779_v35 = vpop.f32.mrb[146].mxu1 }
 0x4a4   : > { %v6930_v11 = vmax.f32 %v6898_v58, 0.0  ;;  %v6900_v54 = vadd.f32 %v20317_v47, %v6779_v35  ;;  %v6781_v8 = vpop.f32.mrb[147].mxu1 }
 0x4a5   : > { %v6931_v41 = vmax.f32 %v6899_v12, 0.0  ;;  %v6901_v37 = vadd.f32 %v20320_v18, %v6781_v8 }
 0x4a6   : > { %v6932_v32 = vmax.f32 %v6900_v54, 0.0 }
 0x4a7   : > { %v14960_v28 = vpack.c.bf16 %v6931_v41, %v6930_v11  ;;  %v6933_v52 = vmax.f32 %v6901_v37, 0.0 }
 0x4a9   : > { %7075 = vst.msk [vmem:[#allocation3 + $0x18] sm:$0xff] %vm20189_vm12, %v14960_v28  ;;  %v14961_v19 = vpack.c.bf16 %v6933_v52, %v6932_v32  ;;  %v6785_v13 = vpop.f32.mrb[148].mxu1 }
 0x4aa   : > { %v6902_v59 = vadd.f32 %v20317_v47, %v6785_v13  ;;  %v6787_v17 = vpop.f32.mrb[149].mxu1 }
 0x4ab   : > { %7076 = vst.msk [vmem:[#allocation3 + $0x20] sm:$0xff] %vm20189_vm12, %v14961_v19  ;;  %v6903_v34 = vadd.f32 %v20320_v18, %v6787_v17  ;;  %v6789_v26 = vpop.f32.mrb[150].mxu1 }
 0x4ac   : > { %v6934_v2 = vmax.f32 %v6902_v59, 0.0  ;;  %v6904_v48 = vadd.f32 %v20317_v47, %v6789_v26  ;;  %v6791_v56 = vpop.f32.mrb[151].mxu1 }
 0x4ad   : > { %v6935_v20 = vmax.f32 %v6903_v34, 0.0  ;;  %v6905_v9 = vadd.f32 %v20320_v18, %v6791_v56 }
 0x4ae   : > { %v6936_v25 = vmax.f32 %v6904_v48, 0.0 }
 0x4af   : > { %v14962_v33 = vpack.c.bf16 %v6935_v20, %v6934_v2  ;;  %v6937_v4 = vmax.f32 %v6905_v9, 0.0 }
 0x4b0   : > { %v20337_v60 = vld [vmem:[#allocation3 + $0x18] sm:$0xff] }
 0x4b1   : > { %7077 = vst.msk [vmem:[#allocation3 + $0x28] sm:$0xff] %vm20189_vm12, %v14962_v33  ;;  %v14963_v31 = vpack.c.bf16 %v6937_v4, %v6936_v25  ;;  %v6795_v55 = vpop.f32.mrb[152].mxu1  ;;  %v20386_v4 = vld [vmem:[#allocation3 + $0x78] sm:$0xff] }
 0x4b2   : > { %v6906_v61 = vadd.f32 %v20317_v47, %v6795_v55  ;;  %v6797_v15 = vpop.f32.mrb[153].mxu1  ;;  %v20339_v3 = vld [vmem:[#allocation3 + $0x20] sm:$0xff] }
 0x4b3   : > { %7078 = vst.msk [vmem:[#allocation3 + $0x30] sm:$0xff] %vm20189_vm12, %v14963_v31  ;;  %v6907_v10 = vadd.f32 %v20320_v18, %v6797_v15  ;;  %v6799_v16 = vpop.f32.mrb[154].mxu1  ;;  %v20346_v30 = vcombine.high %v20337_v60, %v20339_v3  ;;  %v20350_v24 = vcombine.low %v20337_v60, %v20339_v3  ;;  %v20388_v31 = vld [vmem:[#allocation3 + $0x80] sm:$0xff] }
 0x4b4   : > { %v6938_v14 = vmax.f32 %v6906_v61, 0.0  ;;  %v6908_v57 = vadd.f32 %v20317_v47, %v6799_v16  ;;  %v6801_v44 = vpop.f32.mrb[155].mxu1 }
 0x4b5   : > { %v6939_v58 = vmax.f32 %v6907_v10, 0.0  ;;  %v6909_v45 = vadd.f32 %v20320_v18, %v6801_v44  ;;  %14191 = vmatprep.mubr.msk.bf16.mxu0 %vm7337_vm13, %v20346_v30 }
 0x4b6   : > { %v6940_v12 = vmax.f32 %v6908_v57, 0.0  ;;  %7405 = vmatmul.mubr.bf16.gmra.mrb[36].mxu0 %v20350_v24 }
 0x4b7   : > { %v14964_v35 = vpack.c.bf16 %v6939_v58, %v6938_v14  ;;  %v6941_v11 = vmax.f32 %v6909_v45, 0.0 }
 0x4b8   : > { %v20357_v54 = vld [vmem:[#allocation3 + $0x28] sm:$0xff] }
 0x4b9   : > { %7079 = vst.msk [vmem:[#allocation3 + $0x38] sm:$0xff] %vm20189_vm12, %v14964_v35  ;;  %v14965_v8 = vpack.c.bf16 %v6941_v11, %v6940_v12  ;;  %v6805_v41 = vpop.f32.mrb[156].mxu1  ;;  %v20363_v37 = vcombine.low %v20339_v3, %v20357_v54  ;;  %v14163_v12 = vcombine.high %v20386_v4, %v20388_v31 }
 0x4ba   : > { %v6910_v32 = vadd.f32 %v20317_v47, %v6805_v41  ;;  %v6807_v28 = vpop.f32.mrb[157].mxu1  ;;  %v20366_v52 = vld [vmem:[#allocation3 + $0x30] sm:$0xff] }
 0x4bb   : > { %7080 = vst.msk [vmem:[#allocation3 + $0x40] sm:$0xff] %vm20189_vm12, %v14965_v8  ;;  %v6911_v19 = vadd.f32 %v20320_v18, %v6807_v28  ;;  %v6809_v13 = vpop.f32.mrb[158].mxu1  ;;  %v20373_v59 = vcombine.high %v20357_v54, %v20366_v52  ;;  %v20377_v17 = vcombine.low %v20357_v54, %v20366_v52 }
 0x4bc   : > { %v6942_v34 = vmax.f32 %v6910_v32, 0.0  ;;  %v6912_v26 = vadd.f32 %v20317_v47, %v6809_v13  ;;  %v6811_v2 = vpop.f32.mrb[159].mxu1 }
 0x4bd   : > { %v6943_v48 = vmax.f32 %v6911_v19, 0.0  ;;  %v6913_v56 = vadd.f32 %v20320_v18, %v6811_v2  ;;  %14192 = vmatprep.mubr.msk.bf16.mxu0 %vm7337_vm13, %v20373_v59 }
 0x4be   : > { %v6944_v20 = vmax.f32 %v6912_v26, 0.0  ;;  %7415 = vmatmul.mubr.bf16.gmra.mrb[40].mxu0 %v20377_v17 }
 0x4bf   : > { %v14966_v9 = vpack.c.bf16 %v6943_v48, %v6942_v34  ;;  %v6945_v25 = vmax.f32 %v6913_v56, 0.0  ;;  %v14162_v56 = vcombine.low %v20386_v4, %v20388_v31 }
 0x4c0   : > { %v20384_v33 = vld [vmem:[#allocation3 + $0x38] sm:$0xff] }
 0x4c1   : > { %7081 = vst.msk [vmem:[#allocation3 + $0x48] sm:$0xff] %vm20189_vm12, %v14966_v9  ;;  %v14967_v55 = vpack.c.bf16 %v6945_v25, %v6944_v20  ;;  %v6815_v61 = vpop.f32.mrb[160].mxu1  ;;  %v20394_v15 = vcombine.low %v20366_v52, %v20384_v33 }
 0x4c2   : > { %v6914_v10 = vadd.f32 %v20317_v47, %v6815_v61  ;;  %v6817_v16 = vpop.f32.mrb[161].mxu1  ;;  %v20397_v14 = vld [vmem:[#allocation3 + $0x40] sm:$0xff] }
 0x4c3   : > { %7082 = vst.msk [vmem:[#allocation3 + $0x50] sm:$0xff] %vm20189_vm12, %v14967_v55  ;;  %v6915_v57 = vadd.f32 %v20320_v18, %v6817_v16  ;;  %v6819_v44 = vpop.f32.mrb[162].mxu1  ;;  %v20404_v58 = vcombine.high %v20384_v33, %v20397_v14  ;;  %v20408_v45 = vcombine.low %v20384_v33, %v20397_v14 }
 0x4c4   : > { %v6946_v35 = vmax.f32 %v6914_v10, 0.0  ;;  %v6916_v11 = vadd.f32 %v20317_v47, %v6819_v44  ;;  %v6821_v8 = vpop.f32.mrb[163].mxu1 }
 0x4c5   : > { %v6947_v41 = vmax.f32 %v6915_v57, 0.0  ;;  %v6917_v32 = vadd.f32 %v20320_v18, %v6821_v8  ;;  %14193 = vmatprep.mubr.msk.bf16.mxu0 %vm7337_vm13, %v20404_v58 }
 0x4c6   : > { %v6948_v28 = vmax.f32 %v6916_v11, 0.0  ;;  %7425 = vmatmul.mubr.bf16.gmra.mrb[44].mxu0 %v20408_v45 }
 0x4c7   : > { %v14968_v19 = vpack.c.bf16 %v6947_v41, %v6946_v35  ;;  %v6949_v13 = vmax.f32 %v6917_v32, 0.0  ;;  %14194 = vmatprep.mubr.msk.bf16.mxu0 %vm7337_vm13, %v14163_v12 }
 0x4c9   : > { %7083 = vst.msk [vmem:[#allocation3 + $0x88] sm:$0xff] %vm20189_vm12, %v14968_v19  ;;  %v14969_v34 = vpack.c.bf16 %v6949_v13, %v6948_v28  ;;  %v6825_v26 = vpop.f32.mrb[164].mxu1 }
 0x4ca   : > { %v6918_v2 = vadd.f32 %v20317_v47, %v6825_v26  ;;  %v6827_v48 = vpop.f32.mrb[165].mxu1 }
 0x4cb   : > { %7084 = vst.msk [vmem:[#allocation3 + $0x90] sm:$0xff] %vm20189_vm12, %v14969_v34  ;;  %v6919_v20 = vadd.f32 %v20320_v18, %v6827_v48  ;;  %v6829_v9 = vpop.f32.mrb[166].mxu1 }
 0x4cc   : > { %v6950_v25 = vmax.f32 %v6918_v2, 0.0  ;;  %v6920_v55 = vadd.f32 %v20317_v47, %v6829_v9  ;;  %v6831_v61 = vpop.f32.mrb[167].mxu1 }
 0x4cd   : > { %v6951_v10 = vmax.f32 %v6919_v20, 0.0  ;;  %v6921_v16 = vadd.f32 %v20320_v18, %v6831_v61 }
 0x4ce   : > { %v6952_v57 = vmax.f32 %v6920_v55, 0.0  ;;  %7435 = vmatmul.mubr.bf16.gmra.mrb[48].mxu0 %v14162_v56 }
 0x4cf   : > { %v14970_v44 = vpack.c.bf16 %v6951_v10, %v6950_v25  ;;  %v6953_v12 = vmax.f32 %v6921_v16, 0.0 }
 0x4d0   : > { %v20431_v32 = vld [vmem:[#allocation3 + $0x88] sm:$0xff] }
 0x4d1   : > { %7085 = vst.msk [vmem:[#allocation3 + $0x98] sm:$0xff] %vm20189_vm12, %v14970_v44  ;;  %v14971_v35 = vpack.c.bf16 %v6953_v12, %v6952_v57  ;;  %v6835_v11 = vpop.f32.mrb[168].mxu1 }
 0x4d2   : > { %v6922_v8 = vadd.f32 %v20317_v47, %v6835_v11  ;;  %v6837_v41 = vpop.f32.mrb[169].mxu1  ;;  %v20433_v28 = vld [vmem:[#allocation3 + $0x90] sm:$0xff] }
 0x4d3   : > { %7086 = vst.msk [vmem:[#allocation3 + $0xa0] sm:$0xff] %vm20189_vm12, %v14971_v35  ;;  %v6923_v19 = vadd.f32 %v20320_v18, %v6837_v41  ;;  %v6839_v13 = vpop.f32.mrb[170].mxu1  ;;  %v20440_v34 = vcombine.high %v20431_v32, %v20433_v28  ;;  %v20444_v26 = vcombine.low %v20431_v32, %v20433_v28 }
 0x4d4   : > { %v6954_v2 = vmax.f32 %v6922_v8, 0.0  ;;  %v6924_v48 = vadd.f32 %v20317_v47, %v6839_v13  ;;  %v6841_v56 = vpop.f32.mrb[171].mxu1 }
 0x4d5   : > { %v6955_v20 = vmax.f32 %v6923_v19, 0.0  ;;  %v6925_v9 = vadd.f32 %v20320_v18, %v6841_v56  ;;  %14195 = vmatprep.mubr.msk.bf16.mxu0 %vm7337_vm13, %v20440_v34 }
 0x4d6   : > { %v6956_v25 = vmax.f32 %v6924_v48, 0.0  ;;  %7445 = vmatmul.mubr.bf16.gmra.mrb[52].mxu0 %v20444_v26 }
 0x4d7   : > { %v14972_v55 = vpack.c.bf16 %v6955_v20, %v6954_v2  ;;  %v6957_v61 = vmax.f32 %v6925_v9, 0.0 }
 0x4d8   : > { %v20451_v10 = vld [vmem:[#allocation3 + $0x98] sm:$0xff] }
 0x4d9   : > { %7087 = vst.msk [vmem:[#allocation3 + $0xa8] sm:$0xff] %vm20189_vm12, %v14972_v55  ;;  %v14973_v16 = vpack.c.bf16 %v6957_v61, %v6956_v25  ;;  %v6845_v57 = vpop.f32.mrb[172].mxu1  ;;  %v20457_v44 = vcombine.low %v20433_v28, %v20451_v10 }
 0x4da   : > { %v6926_v12 = vadd.f32 %v20317_v47, %v6845_v57  ;;  %v6847_v35 = vpop.f32.mrb[173].mxu1  ;;  %v20460_v11 = vld [vmem:[#allocation3 + $0xa0] sm:$0xff] }
 0x4db   : > { %7088 = vst.msk [vmem:[#allocation3 + $0xb0] sm:$0xff] %vm20189_vm12, %v14973_v16  ;;  %v6927_v8 = vadd.f32 %v20320_v18, %v6847_v35  ;;  %v6849_v41 = vpop.f32.mrb[174].mxu1  ;;  %v20467_v19 = vcombine.high %v20451_v10, %v20460_v11  ;;  %v20471_v13 = vcombine.low %v20451_v10, %v20460_v11  ;;  %v7091_v57 = vld [vmem:[#allocation3] sm:$0xff] }
 0x4dc   : > { %v6958_v2 = vmax.f32 %v6926_v12, 0.0  ;;  %v6928_v48 = vadd.f32 %v20317_v47, %v6849_v41  ;;  %v6851_v56 = vpop.f32.mrb[175].mxu1  ;;  %v14199_v41 = vcombine.high %v7091_v57, %v20241_v46  ;;  %v14198_v38 = vcombine.low %v7091_v57, %v20241_v46  ;;  %v16688_v46 = vld [vmem:[%s22850_s7 + $0x150] ss:$8 sps:$4 sm:$0xff]  }
 0x4dd   : > { %v6959_v20 = vmax.f32 %v6927_v8, 0.0  ;;  %v6929_v9 = vadd.f32 %v20320_v18, %v6851_v56  ;;  %14196 = vmatprep.mubr.msk.bf16.mxu0 %vm7337_vm13, %v20467_v19  ;;  %v20512_v56 = vcombine.high %v20243_v23, %v20337_v60  ;;  %v16694_v57 = vld [vmem:[%s22850_s7 + $0x170] ss:$8 sps:$4 sm:$0xff]  }
 0x4de   : > { %v6960_v25 = vmax.f32 %v6928_v48, 0.0  ;;  %7455 = vmatmul.mubr.bf16.gmra.mrb[56].mxu0 %v20471_v13  ;;  %v16690_v48 = vld [vmem:[%s22850_s7 + $0x154] ss:$8 sps:$4 sm:$0xff]  }
 0x4df   : > { %v14974_v55 = vpack.c.bf16 %v6959_v20, %v6958_v2  ;;  %v6961_v61 = vmax.f32 %v6929_v9, 0.0  ;;  %v16685_v2 = vld [vmem:[%s22850_s7 + $0x140] ss:$8 sps:$4 sm:$0xff]   ;;  %v16693_v20 = vld [vmem:[%s22850_s7 + $0x164] ss:$8 sps:$4 sm:$0xff]  }
 0x4e0   : > { %v20478_v16 = vld [vmem:[#allocation3 + $0xa8] sm:$0xff] }
 0x4e1   : > { %7089 = vst.msk [vmem:[#allocation3 + $0xb8] sm:$0xff] %vm20189_vm12, %v14974_v55  ;;  %v14975_v12 = vpack.c.bf16 %v6961_v61, %v6960_v25  ;;  %v20484_v47 = vcombine.low %v20460_v11, %v20478_v16  ;;  %v16691_v9 = vld [vmem:[%s22850_s7 + $0x160] ss:$8 sps:$4 sm:$0xff]   ;;  %v14200_v25 = vcombine.low %v20243_v23, %v20337_v60  ;;  %v16696_v55 = vld [vmem:[%s22850_s7 + $0x174] ss:$8 sps:$4 sm:$0xff]   ;;  %v20532_v61 = vcombine.high %v20339_v3, %v20357_v54 }
 0x4e2   : > { %v20486_v18 = vld [vmem:[#allocation3 + $0xb0] sm:$0xff]  ;;  %v16699_v23 = vld [vmem:[%s22850_s7 + $0x184] ss:$8 sps:$4 sm:$0xff]   ;;  %v16697_v60 = vld [vmem:[%s22850_s7 + $0x180] ss:$8 sps:$4 sm:$0xff]   ;;  %v20550_v54 = vcombine.high %v20366_v52, %v20384_v33 }
 0x4e3   : > { %7090 = vst.msk [vmem:[#allocation3 + $0xc0] sm:$0xff] %vm20189_vm12, %v14975_v12  ;;  %v20492_v35 = vcombine.high %v20478_v16, %v20486_v18  ;;  %v20496_v8 = vcombine.low %v20478_v16, %v20486_v18  ;;  %v16702_v3 = vld [vmem:[%s22850_s7 + $0x194] ss:$8 sps:$4 sm:$0xff]   ;;  %v16700_v12 = vld [vmem:[%s22850_s7 + $0x190] ss:$8 sps:$4 sm:$0xff]   ;;  %v20563_v52 = vld [vmem:[#allocation3 + $0x40] sm:$0xff] }
 0x4e5   : > { %14197 = vmatprep.mubr.msk.bf16.mxu0 %vm7337_vm13, %v20492_v35 }
 0x4e6   : > { %7465 = vmatmul.mubr.bf16.gmra.mrb[60].mxu0 %v20496_v8 }
 0x4e7   : > { %14234 = vmatprep.mubr.msk.bf16.mxu0 %vm7337_vm13, %v14199_v41  ;;  %v7099_v41 = vld [vmem:[#allocation3 + $0x70] sm:$0xff] }
 0x4e8   : > { %v14207_v33 = vcombine.high %v7099_v41, %v20386_v4 }
 0x4ee   : > { %7704 = vmatmul.mubr.bf16.vlgmr.msra.gmra.mrb[32].mxu0 %v14198_v38  ;;  %v16705_v38 = vld [vmem:[%s22850_s7 + $0x1a4] ss:$8 sps:$4 sm:$0xff]  }
 0x4ef   : > { %14235 = vmatprep.mubr.msk.bf16.mxu0 %vm7337_vm13, %v20512_v56  ;;  %8019 = vmatpush1.bf16.msra.mxu0 %v16685_v2  ;;  %v20561_v2 = vld [vmem:[#allocation3 + $0x48] sm:$0xff] }
 0x4f0   : > { %8020 = vmatprep.subr.bf16.mxu0 %v16690_v48  ;;  %v16703_v48 = vld [vmem:[%s22850_s7 + $0x1a0] ss:$8 sps:$4 sm:$0xff]  }
 0x4f3   : > { %8021 = vmatpush1.bf16.msra.mxu0 %v16688_v46  ;;  %v14521_v46 = vcombine.high %v20563_v52, %v20561_v2 }
 0x4f4   : > { %8022 = vmatprep.subr.bf16.mxu0 %v16693_v20  ;;  %v14520_v20 = vcombine.low %v20563_v52, %v20561_v2 }
 0x4f6   : > { %7714 = vmatmul.mubr.bf16.gmra.mrb[36].mxu0 %v14200_v25 }
 0x4f7   : > { %14236 = vmatprep.mubr.msk.bf16.mxu0 %vm7337_vm13, %v20532_v61  ;;  %8023 = vmatpush1.bf16.msra.mxu0 %v16691_v9  ;;  %v16708_v9 = vld [vmem:[%s22850_s7 + $0x1b4] ss:$8 sps:$4 sm:$0xff]  }
 0x4f8   : > { %8024 = vmatprep.subr.bf16.mxu0 %v16696_v55  ;;  %v16706_v55 = vld [vmem:[%s22850_s7 + $0x1b0] ss:$8 sps:$4 sm:$0xff]  }
 0x4fb   : > { %8025 = vmatpush1.bf16.msra.mxu0 %v16694_v57  ;;  %v16712_v57 = vld [vmem:[%s22850_s7 + $0x1c4] ss:$8 sps:$4 sm:$0xff]  }
 0x4fc   : > { %8026 = vmatprep.subr.bf16.mxu0 %v16699_v23  ;;  %v14206_v23 = vcombine.low %v7099_v41, %v20386_v4  ;;  %v16714_v4 = vld [vmem:[%s22850_s7 + $0x1d0] ss:$8 sps:$4 sm:$0xff]   ;;  %v16719_v41 = vld [vmem:[%s22850_s7 + $0x1e4] ss:$8 sps:$4 sm:$0xff]  }
 0x4fe   : > { %7724 = vmatmul.mubr.bf16.gmra.mrb[40].mxu0 %v20363_v37 }
 0x4ff   : > { %14237 = vmatprep.mubr.msk.bf16.mxu0 %vm7337_vm13, %v20550_v54  ;;  %8027 = vmatpush1.bf16.msra.mxu0 %v16697_v60  ;;  %v16710_v60 = vld [vmem:[%s22850_s7 + $0x1c0] ss:$8 sps:$4 sm:$0xff]  }
 0x500   : > { %8028 = vmatprep.subr.bf16.mxu0 %v16702_v3  ;;  %v16716_v3 = vld [vmem:[%s22850_s7 + $0x1d4] ss:$8 sps:$4 sm:$0xff]  }
 0x503   : > { %8029 = vmatpush1.bf16.msra.mxu0 %v16700_v12  ;;  %v14209_v12 = vcombine.high %v20388_v31, %v20431_v32 }
 0x504   : > { %8030 = vmatprep.subr.bf16.mxu0 %v16705_v38  ;;  %v14208_v38 = vcombine.low %v20388_v31, %v20431_v32  ;;  %v16717_v31 = vld [vmem:[%s22850_s7 + $0x1e0] ss:$8 sps:$4 sm:$0xff]   ;;  %v16722_v32 = vld [vmem:[%s22850_s7 + $0x1f4] ss:$8 sps:$4 sm:$0xff]  }
 0x506   : > { %7734 = vmatmul.mubr.bf16.gmra.mrb[44].mxu0 %v20394_v15 }
 0x507   : > { %14238 = vmatprep.mubr.msk.bf16.mxu0 %vm7337_vm13, %v14207_v33  ;;  %8031 = vmatpush1.bf16.msra.mxu0 %v16703_v48  ;;  %v20604_v33 = vcombine.high %v20433_v28, %v20451_v10  ;;  %v20610_v48 = vcombine.high %v20460_v11, %v20478_v16  ;;  %v16720_v28 = vld [vmem:[%s22850_s7 + $0x1f0] ss:$8 sps:$4 sm:$0xff]   ;;  %v16725_v10 = vld [vmem:[%s22850_s7 + $0x204] ss:$8 sps:$4 sm:$0xff]   ;;  %v16723_v11 = vld [vmem:[%s22850_s7 + $0x200] ss:$8 sps:$4 sm:$0xff]  }
 0x508   : > { %8032 = vmatprep.subr.bf16.mxu0 %v16708_v9  ;;  %v16728_v16 = vld [vmem:[%s22850_s7 + $0x214] ss:$8 sps:$4 sm:$0xff]   ;;  %v16729_v9 = vld [vmem:[%s22850_s7 + $0x220] ss:$8 sps:$4 sm:$0xff]  }
 0x50b   : > { %8033 = vmatpush1.bf16.msra.mxu0 %v16706_v55  ;;  %v16734_v55 = vld [vmem:[%s22850_s7 + $0x234] ss:$8 sps:$4 sm:$0xff]  }
 0x50c   : > { %8034 = vmatprep.subr.bf16.mxu0 %v16712_v57  ;;  %v20655_v57 = vcombine.high %v20397_v14, %v20561_v2 }
 0x50e   : > { %7744 = vmatmul.mubr.bf16.gmra.mrb[48].mxu0 %v14206_v23  ;;  %v16732_v23 = vld [vmem:[%s22850_s7 + $0x230] ss:$8 sps:$4 sm:$0xff]  }
 0x50f   : > { %14239 = vmatprep.mubr.msk.bf16.mxu0 %vm7337_vm13, %v14209_v12  ;;  %8035 = vmatpush1.bf16.msra.mxu0 %v16710_v60  ;;  %v16737_v60 = vld [vmem:[%s22850_s7 + $0x244] ss:$8 sps:$4 sm:$0xff]  }
 0x510   : > { %8036 = vmatprep.subr.bf16.mxu0 %v16716_v3  ;;  %v16735_v3 = vld [vmem:[%s22850_s7 + $0x240] ss:$8 sps:$4 sm:$0xff]  }
 0x513   : > { %8037 = vmatpush1.bf16.msra.mxu0 %v16714_v4  ;;  %v20671_v4 = vcombine.low %v20397_v14, %v20561_v2  ;;  %v16744_v14 = vld [vmem:[%s22850_s7 + $0x264] ss:$8 sps:$4 sm:$0xff]  }
 0x514   : > { %8396 = vmatprep.subr.bf16.mxu0 %v16719_v41  ;;  %v16740_v41 = vld [vmem:[%s22850_s7 + $0x254] ss:$8 sps:$4 sm:$0xff]  }
 0x516   : > { %7754 = vmatmul.mubr.bf16.gmra.mrb[52].mxu0 %v14208_v38 }
 0x517   : > { %14240 = vmatprep.mubr.msk.bf16.mxu0 %vm7337_vm13, %v20604_v33 }
 0x51e   : > { %7764 = vmatmul.mubr.bf16.gmra.mrb[56].mxu0 %v20457_v44 }
 0x51f   : > { %14241 = vmatprep.mubr.msk.bf16.mxu0 %vm7337_vm13, %v20610_v48 }
 0x526   : > { %7774 = vmatmul.mubr.bf16.gmra.mrb[60].mxu0 %v20484_v47 }
 0x527   : > { %14298 = vmatprep.mubr.msk.bf16.mxu0 %vm7337_vm13, %v20512_v56  ;;  %v16726_v56 = vld [vmem:[%s22850_s7 + $0x210] ss:$8 sps:$4 sm:$0xff]  }
 0x52e   : > { %8051 = vmatmul.mubr.bf16.vlgmr.msra.gmra.mrb[32].mxu0 %v14200_v25  ;;  %v16731_v25 = vld [vmem:[%s22850_s7 + $0x224] ss:$8 sps:$4 sm:$0xff]  }
 0x52f   : > { %14299 = vmatprep.mubr.msk.bf16.mxu0 %vm7337_vm13, %v20532_v61  ;;  %8397 = vmatpush1.bf16.msra.mxu0 %v16717_v31  ;;  %v16738_v31 = vld [vmem:[%s22850_s7 + $0x250] ss:$8 sps:$4 sm:$0xff]  }
 0x530   : > { %8398 = vmatprep.subr.bf16.mxu0 %v16722_v32  ;;  %v16742_v32 = vld [vmem:[%s22850_s7 + $0x260] ss:$8 sps:$4 sm:$0xff]  }
 0x533   : > { %8399 = vmatpush1.bf16.msra.mxu0 %v16720_v28  ;;  %v16746_v28 = vld [vmem:[%s22850_s7 + $0x270] ss:$8 sps:$4 sm:$0xff]  }
 0x534   : > { %8400 = vmatprep.subr.bf16.mxu0 %v16725_v10  ;;  %v16751_v10 = vld [vmem:[%s22850_s7 + $0x284] ss:$8 sps:$4 sm:$0xff]  }
 0x536   : > { %8061 = vmatmul.mubr.bf16.gmra.mrb[36].mxu0 %v20363_v37 }
 0x537   : > { %14300 = vmatprep.mubr.msk.bf16.mxu0 %vm7337_vm13, %v20550_v54  ;;  %8401 = vmatpush1.bf16.msra.mxu0 %v16723_v11 }
 0x538   : > { %8402 = vmatprep.subr.bf16.mxu0 %v16728_v16 }
 0x53b   : > { %8403 = vmatpush1.bf16.msra.mxu0 %v16726_v56  ;;  %v16749_v56 = vld [vmem:[%s22850_s7 + $0x280] ss:$8 sps:$4 sm:$0xff]  }
 0x53c   : > { %8404 = vmatprep.subr.bf16.mxu0 %v16731_v25  ;;  %v16754_v25 = vld [vmem:[%s22850_s7 + $0x294] ss:$8 sps:$4 sm:$0xff]  }
 0x53e   : > { %8071 = vmatmul.mubr.bf16.gmra.mrb[40].mxu0 %v20394_v15 }
 0x53f   : > { %14301 = vmatprep.mubr.msk.bf16.mxu0 %vm7337_vm13, %v20655_v57  ;;  %8405 = vmatpush1.bf16.msra.mxu0 %v16729_v9  ;;  %v16755_v9 = vld [vmem:[%s22850_s7 + $0x2a0] ss:$8 sps:$4 sm:$0xff]  }
 0x540   : > { %8406 = vmatprep.subr.bf16.mxu0 %v16734_v55  ;;  %v16765_v55 = vld [vmem:[%s22850_s7 + $0x2c4] ss:$8 sps:$4 sm:$0xff]  }
 0x543   : > { %8407 = vmatpush1.bf16.msra.mxu0 %v16732_v23  ;;  %v20747_v23 = vld [vmem:[#allocation3 + $0x50] sm:$0xff] }
 0x544   : > { %8408 = vmatprep.subr.bf16.mxu0 %v16737_v60  ;;  %v20757_v60 = vcombine.high %v20561_v2, %v20747_v23 }
 0x546   : > { %8081 = vmatmul.mubr.bf16.gmra.mrb[44].mxu0 %v20671_v4 }
 0x547   : > { %14302 = vmatprep.mubr.msk.bf16.mxu0 %vm7337_vm13, %v14209_v12  ;;  %8409 = vmatpush1.bf16.msra.mxu0 %v16735_v3  ;;  %v16748_v12 = vld [vmem:[%s22850_s7 + $0x274] ss:$8 sps:$4 sm:$0xff]   ;;  %v16766_v3 = vld [vmem:[%s22850_s7 + $0x2d0] ss:$8 sps:$4 sm:$0xff]  }
 0x548   : > { %8410 = vmatprep.subr.bf16.mxu0 %v16740_v41  ;;  %v16771_v41 = vld [vmem:[%s22850_s7 + $0x2e4] ss:$8 sps:$4 sm:$0xff]  }
 0x54b   : > { %8411 = vmatpush1.bf16.msra.mxu0 %v16738_v31  ;;  %v16769_v31 = vld [vmem:[%s22850_s7 + $0x2e0] ss:$8 sps:$4 sm:$0xff]  }
 0x54c   : > { %8412 = vmatprep.subr.bf16.mxu0 %v16744_v14  ;;  %v16774_v14 = vld [vmem:[%s22850_s7 + $0x2f4] ss:$8 sps:$4 sm:$0xff]  }
 0x54e   : > { %8091 = vmatmul.mubr.bf16.gmra.mrb[48].mxu0 %v14208_v38  ;;  %v20701_v38 = vld [vmem:[#allocation3 + $0xb8] sm:$0xff] }
 0x54f   : > { %14303 = vmatprep.mubr.msk.bf16.mxu0 %vm7337_vm13, %v20604_v33  ;;  %8413 = vmatpush1.bf16.msra.mxu0 %v16742_v32  ;;  %v20705_v11 = vcombine.high %v20486_v18, %v20701_v38  ;;  %v20712_v16 = vcombine.low %v20486_v18, %v20701_v38  ;;  %v16752_v18 = vld [vmem:[%s22850_s7 + $0x290] ss:$8 sps:$4 sm:$0xff]  }
 0x550   : > { %8414 = vmatprep.subr.bf16.mxu0 %v16748_v12  ;;  %v16772_v32 = vld [vmem:[%s22850_s7 + $0x2f0] ss:$8 sps:$4 sm:$0xff]   ;;  %v16778_v12 = vld [vmem:[%s22850_s7 + $0x304] ss:$8 sps:$4 sm:$0xff]  }
 0x553   : > { %8415 = vmatpush1.bf16.msra.mxu0 %v16746_v28  ;;  %v16776_v28 = vld [vmem:[%s22850_s7 + $0x300] ss:$8 sps:$4 sm:$0xff]  }
 0x554   : > { %8775 = vmatprep.subr.bf16.mxu0 %v16751_v10  ;;  %v16780_v10 = vld [vmem:[%s22850_s7 + $0x310] ss:$8 sps:$4 sm:$0xff]  }
 0x556   : > { %8101 = vmatmul.mubr.bf16.gmra.mrb[52].mxu0 %v20457_v44 }
 0x557   : > { %14304 = vmatprep.mubr.msk.bf16.mxu0 %vm7337_vm13, %v20610_v48 }
 0x55e   : > { %8111 = vmatmul.mubr.bf16.gmra.mrb[56].mxu0 %v20484_v47 }
 0x55f   : > { %14305 = vmatprep.mubr.msk.bf16.mxu0 %vm7337_vm13, %v20705_v11 }
 0x566   : > { %8121 = vmatmul.mubr.bf16.gmra.mrb[60].mxu0 %v20712_v16 }
 0x567   : > { %14362 = vmatprep.mubr.msk.bf16.mxu0 %vm7337_vm13, %v20346_v30  ;;  %v16757_v30 = vld [vmem:[%s22850_s7 + $0x2a4] ss:$8 sps:$4 sm:$0xff]  }
 0x56e   : > { %8429 = vmatmul.mubr.bf16.vlgmr.msra.gmra.mrb[32].mxu0 %v20350_v24  ;;  %v16761_v24 = vld [vmem:[%s22850_s7 + $0x2b4] ss:$8 sps:$4 sm:$0xff]  }
 0x56f   : > { %14363 = vmatprep.mubr.msk.bf16.mxu0 %vm7337_vm13, %v20373_v59  ;;  %8776 = vmatpush1.bf16.msra.mxu0 %v16749_v56  ;;  %v16759_v59 = vld [vmem:[%s22850_s7 + $0x2b0] ss:$8 sps:$4 sm:$0xff]   ;;  %v16785_v56 = vld [vmem:[%s22850_s7 + $0x324] ss:$8 sps:$4 sm:$0xff]  }
 0x570   : > { %8777 = vmatprep.subr.bf16.mxu0 %v16754_v25 }
 0x573   : > { %8778 = vmatpush1.bf16.msra.mxu0 %v16752_v18 }
 0x574   : > { %8779 = vmatprep.subr.bf16.mxu0 %v16757_v30  ;;  %v16783_v30 = vld [vmem:[%s22850_s7 + $0x320] ss:$8 sps:$4 sm:$0xff]  }
 0x576   : > { %8439 = vmatmul.mubr.bf16.gmra.mrb[36].mxu0 %v20377_v17  ;;  %v16763_v17 = vld [vmem:[%s22850_s7 + $0x2c0] ss:$8 sps:$4 sm:$0xff]  }
 0x577   : > { %14364 = vmatprep.mubr.msk.bf16.mxu0 %vm7337_vm13, %v20404_v58  ;;  %8780 = vmatpush1.bf16.msra.mxu0 %v16755_v9  ;;  %v16768_v58 = vld [vmem:[%s22850_s7 + $0x2d4] ss:$8 sps:$4 sm:$0xff]  }
 0x578   : > { %8781 = vmatprep.subr.bf16.mxu0 %v16761_v24  ;;  %v16788_v9 = vld [vmem:[%s22850_s7 + $0x334] ss:$8 sps:$4 sm:$0xff]   ;;  %v16786_v24 = vld [vmem:[%s22850_s7 + $0x330] ss:$8 sps:$4 sm:$0xff]  }
 0x57b   : > { %8782 = vmatpush1.bf16.msra.mxu0 %v16759_v59  ;;  %v16789_v59 = vld [vmem:[%s22850_s7 + $0x340] ss:$8 sps:$4 sm:$0xff]  }
 0x57c   : > { %8783 = vmatprep.subr.bf16.mxu0 %v16765_v55  ;;  %v16799_v55 = vld [vmem:[%s22850_s7 + $0x364] ss:$8 sps:$4 sm:$0xff]  }
 0x57e   : > { %8449 = vmatmul.mubr.bf16.gmra.mrb[40].mxu0 %v20408_v45  ;;  %v20773_v45 = vcombine.low %v20561_v2, %v20747_v23  ;;  %v16902_v2 = vld [vmem:[%s22853_s10 + $0x128] ss:$36 sps:$4 sm:$0xff]  }
 0x57f   : > { %14365 = vmatprep.mubr.msk.bf16.mxu0 %vm7337_vm13, %v20757_v60  ;;  %8784 = vmatpush1.bf16.msra.mxu0 %v16763_v17  ;;  %v20851_v17 = vld [vmem:[#allocation3 + $0x58] sm:$0xff] }
 0x580   : > { %8785 = vmatprep.subr.bf16.mxu0 %v16768_v58  ;;  %v20861_v58 = vcombine.high %v20747_v23, %v20851_v17 }
 0x583   : > { %8786 = vmatpush1.bf16.msra.mxu0 %v16766_v3  ;;  %v16800_v3 = vld [vmem:[%s22850_s7 + $0x370] ss:$8 sps:$4 sm:$0xff]  }
 0x584   : > { %8787 = vmatprep.subr.bf16.mxu0 %v16771_v41  ;;  %v16805_v41 = vld [vmem:[%s22850_s7 + $0x384] ss:$8 sps:$4 sm:$0xff]  }
 0x586   : > { %8459 = vmatmul.mubr.bf16.gmra.mrb[44].mxu0 %v20773_v45 }
 0x587   : > { %14366 = vmatprep.mubr.msk.bf16.mxu0 %vm7337_vm13, %v20440_v34  ;;  %8788 = vmatpush1.bf16.msra.mxu0 %v16769_v31  ;;  %v16782_v34 = vld [vmem:[%s22850_s7 + $0x314] ss:$8 sps:$4 sm:$0xff]   ;;  %v16803_v31 = vld [vmem:[%s22850_s7 + $0x380] ss:$8 sps:$4 sm:$0xff]  }
 0x588   : > { %8789 = vmatprep.subr.bf16.mxu0 %v16774_v14  ;;  %v16808_v14 = vld [vmem:[%s22850_s7 + $0x394] ss:$8 sps:$4 sm:$0xff]  }
 0x58b   : > { %8790 = vmatpush1.bf16.msra.mxu0 %v16772_v32  ;;  %v16806_v32 = vld [vmem:[%s22850_s7 + $0x390] ss:$8 sps:$4 sm:$0xff]  }
 0x58c   : > { %8791 = vmatprep.subr.bf16.mxu0 %v16778_v12  ;;  %v16810_v12 = vld [vmem:[%s22850_s7 + $0x3a0] ss:$8 sps:$4 sm:$0xff]  }
 0x58e   : > { %8469 = vmatmul.mubr.bf16.gmra.mrb[48].mxu0 %v20444_v26  ;;  %v20805_v26 = vld [vmem:[#allocation3 + $0xc0] sm:$0xff] }
 0x58f   : > { %14367 = vmatprep.mubr.msk.bf16.mxu0 %vm7337_vm13, %v20467_v19  ;;  %8792 = vmatpush1.bf16.msra.mxu0 %v16776_v28  ;;  %v20809_v25 = vcombine.high %v20701_v38, %v20805_v26  ;;  %v20816_v18 = vcombine.low %v20701_v38, %v20805_v26  ;;  %v16816_v28 = vld [vmem:[%s22850_s7 + $0x3b0] ss:$8 sps:$4 sm:$0xff]  }
 0x590   : > { %8793 = vmatprep.subr.bf16.mxu0 %v16782_v34  ;;  %v16821_v34 = vld [vmem:[%s22850_s7 + $0x3c4] ss:$8 sps:$4 sm:$0xff]  }
 0x593   : > { %8794 = vmatpush1.bf16.msra.mxu0 %v16780_v10  ;;  %v20918_v10 = vld [vmem:[#allocation3 + $0x30] sm:$0xff] }
 0x594   : > { %9154 = vmatprep.subr.bf16.mxu0 %v16785_v56 }
 0x596   : > { %8479 = vmatmul.mubr.bf16.gmra.mrb[52].mxu0 %v20471_v13 }
 0x597   : > { %14368 = vmatprep.mubr.msk.bf16.mxu0 %vm7337_vm13, %v20492_v35 }
 0x59e   : > { %8489 = vmatmul.mubr.bf16.gmra.mrb[56].mxu0 %v20496_v8 }
 0x59f   : > { %14369 = vmatprep.mubr.msk.bf16.mxu0 %vm7337_vm13, %v20809_v25 }
 0x5a6   : > { %8499 = vmatmul.mubr.bf16.gmra.mrb[60].mxu0 %v20816_v18 }
 0x5a7   : > { %14426 = vmatprep.mubr.msk.bf16.mxu0 %vm7337_vm13, %v20532_v61  ;;  %v16791_v61 = vld [vmem:[%s22850_s7 + $0x344] ss:$8 sps:$4 sm:$0xff]  }
 0x5ae   : > { %8808 = vmatmul.mubr.bf16.vlgmr.msra.gmra.mrb[32].mxu0 %v20363_v37  ;;  %v16795_v37 = vld [vmem:[%s22850_s7 + $0x354] ss:$8 sps:$4 sm:$0xff]  }
 0x5af   : > { %14427 = vmatprep.mubr.msk.bf16.mxu0 %vm7337_vm13, %v20550_v54  ;;  %9155 = vmatpush1.bf16.msra.mxu0 %v16783_v30  ;;  %v16793_v54 = vld [vmem:[%s22850_s7 + $0x350] ss:$8 sps:$4 sm:$0xff]   ;;  %v16869_v30 = vld [vmem:[%s22853_s10] ss:$36 sps:$4 sm:$0xff]  }
 0x5b0   : > { %9156 = vmatprep.subr.bf16.mxu0 %v16788_v9  ;;  %v16872_v9 = vld [vmem:[%s22853_s10 + $0x48] ss:$36 sps:$4 sm:$0xff]  }
 0x5b3   : > { %9157 = vmatpush1.bf16.msra.mxu0 %v16786_v24  ;;  %v16877_v24 = vld [vmem:[%s22853_s10 + $0x94] ss:$36 sps:$4 sm:$0xff]  }
 0x5b4   : > { %9158 = vmatprep.subr.bf16.mxu0 %v16791_v61  ;;  %v16819_v61 = vld [vmem:[%s22850_s7 + $0x3c0] ss:$8 sps:$4 sm:$0xff]  }
 0x5b6   : > { %8818 = vmatmul.mubr.bf16.gmra.mrb[36].mxu0 %v20394_v15  ;;  %v16797_v15 = vld [vmem:[%s22850_s7 + $0x360] ss:$8 sps:$4 sm:$0xff]  }
 0x5b7   : > { %14428 = vmatprep.mubr.msk.bf16.mxu0 %vm7337_vm13, %v20655_v57  ;;  %9159 = vmatpush1.bf16.msra.mxu0 %v16789_v59  ;;  %v16802_v57 = vld [vmem:[%s22850_s7 + $0x374] ss:$8 sps:$4 sm:$0xff]  }
 0x5b8   : > { %9160 = vmatprep.subr.bf16.mxu0 %v16795_v37  ;;  %v20946_v37 = vld [vmem:[#allocation3 + $0x38] sm:$0xff] }
 0x5bb   : > { %9161 = vmatpush1.bf16.msra.mxu0 %v16793_v54  ;;  %v16825_v54 = vld [vmem:[%s22850_s7 + $0x3d4] ss:$8 sps:$4 sm:$0xff]  }
 0x5bc   : > { %9162 = vmatprep.subr.bf16.mxu0 %v16799_v55  ;;  %v14457_v55 = vcombine.high %v20946_v37, %v20563_v52 }
 0x5be   : > { %8828 = vmatmul.mubr.bf16.gmra.mrb[40].mxu0 %v20671_v4  ;;  %v20877_v4 = vcombine.low %v20747_v23, %v20851_v17  ;;  %v16812_v23 = vld [vmem:[%s22850_s7 + $0x3a4] ss:$8 sps:$4 sm:$0xff]  }
 0x5bf   : > { %14429 = vmatprep.mubr.msk.bf16.mxu0 %vm7337_vm13, %v20861_v58  ;;  %9163 = vmatpush1.bf16.msra.mxu0 %v16797_v15  ;;  %v16875_v15 = vld [vmem:[%s22853_s10 + $0x90] ss:$36 sps:$4 sm:$0xff]  }
 0x5c0   : > { %9164 = vmatprep.subr.bf16.mxu0 %v16802_v57  ;;  %v16880_v57 = vld [vmem:[%s22853_s10 + $0xdc] ss:$36 sps:$4 sm:$0xff]  }
 0x5c3   : > { %9165 = vmatpush1.bf16.msra.mxu0 %v16800_v3  ;;  %v16823_v3 = vld [vmem:[%s22850_s7 + $0x3d0] ss:$8 sps:$4 sm:$0xff]  }
 0x5c4   : > { %9166 = vmatprep.subr.bf16.mxu0 %v16805_v41  ;;  %v16829_v41 = vld [vmem:[%s22850_s7 + $0x3e4] ss:$8 sps:$4 sm:$0xff]  }
 0x5c6   : > { %8838 = vmatmul.mubr.bf16.gmra.mrb[44].mxu0 %v20877_v4 }
 0x5c7   : > { %14430 = vmatprep.mubr.msk.bf16.mxu0 %vm7337_vm13, %v20604_v33  ;;  %9167 = vmatpush1.bf16.msra.mxu0 %v16803_v31  ;;  %v16818_v33 = vld [vmem:[%s22850_s7 + $0x3b4] ss:$8 sps:$4 sm:$0xff]  }
 0x5c8   : > { %9168 = vmatprep.subr.bf16.mxu0 %v16808_v14  ;;  %v16878_v31 = vld [vmem:[%s22853_s10 + $0xd8] ss:$36 sps:$4 sm:$0xff]   ;;  %v16889_v14 = vld [vmem:[%s22853_s10 + $0x124] ss:$36 sps:$4 sm:$0xff]  }
 0x5cb   : > { %9169 = vmatpush1.bf16.msra.mxu0 %v16806_v32  ;;  %v16827_v32 = vld [vmem:[%s22850_s7 + $0x3e0] ss:$8 sps:$4 sm:$0xff]  }
 0x5cc   : > { %9170 = vmatprep.subr.bf16.mxu0 %v16812_v23  ;;  %v14456_v23 = vcombine.low %v20946_v37, %v20563_v52  ;;  %v16907_v52 = vld [vmem:[%s22853_s10 + $0x174] ss:$36 sps:$4 sm:$0xff]  }
 0x5ce   : > { %8848 = vmatmul.mubr.bf16.gmra.mrb[48].mxu0 %v20457_v44  ;;  %v20909_v44 = vld [vmem:[#allocation3 + $0xc8] sm:$0xff] }
 0x5cf   : > { %14431 = vmatprep.mubr.msk.bf16.mxu0 %vm7337_vm13, %v20610_v48  ;;  %9171 = vmatpush1.bf16.msra.mxu0 %v16810_v12  ;;  %v20913_v48 = vcombine.high %v20805_v26, %v20909_v44  ;;  %v20922_v56 = vcombine.low %v20805_v26, %v20909_v44  ;;  %v16874_v26 = vld [vmem:[%s22853_s10 + $0x4c] ss:$36 sps:$4 sm:$0xff]   ;;  %v16832_v12 = vld [vmem:[%s22850_s7 + $0x3f4] ss:$8 sps:$4 sm:$0xff]  }
 0x5d0   : > { %9172 = vmatprep.subr.bf16.mxu0 %v16818_v33  ;;  %v16887_v33 = vld [vmem:[%s22853_s10 + $0x120] ss:$36 sps:$4 sm:$0xff]  }
 0x5d3   : > { %9173 = vmatpush1.bf16.msra.mxu0 %v16816_v28  ;;  %v16895_v28 = vld [vmem:[%s22853_s10 + $0x16c] ss:$36 sps:$4 sm:$0xff]  }
 0x5d4   : > { %9533 = vmatprep.subr.bf16.mxu0 %v16821_v34  ;;  %v16830_v34 = vld [vmem:[%s22850_s7 + $0x3f0] ss:$8 sps:$4 sm:$0xff]  }
 0x5d6   : > { %8858 = vmatmul.mubr.bf16.gmra.mrb[52].mxu0 %v20484_v47  ;;  %v8921_v47 = vld [vmem:[#allocation3 + $0x28] sm:$0xff] }
 0x5d7   : > { %14432 = vmatprep.mubr.msk.bf16.mxu0 %vm7337_vm13, %v20705_v11  ;;  %v14455_v11 = vcombine.high %v8921_v47, %v20918_v10  ;;  %v14454_v59 = vcombine.low %v8921_v47, %v20918_v10  ;;  %v20991_v47 = vld [vmem:[#allocation3 + $0x60] sm:$0xff] }
 0x5de   : > { %8868 = vmatmul.mubr.bf16.gmra.mrb[56].mxu0 %v20712_v16  ;;  %v16871_v16 = vld [vmem:[%s22853_s10 + $0x4] ss:$36 sps:$4 sm:$0xff]  }
 0x5df   : > { %14433 = vmatprep.mubr.msk.bf16.mxu0 %vm7337_vm13, %v20913_v48  ;;  %10586 = vmatprep.subr.bf16.mxu1 %v16871_v16  ;;  %v14461_v16 = vcombine.high %v20851_v17, %v20991_v47 }
 0x5e0   : > { %10587 = vmatpush1.bf16.msra.mxu1 %v16869_v30  ;;  %v16893_v30 = vld [vmem:[%s22853_s10 + $0x168] ss:$36 sps:$4 sm:$0xff]  }
 0x5e1   : > { %10588 = vmatprep.subr.bf16.mxu1 %v16874_v26  ;;  %v16835_v26 = vld [vmem:[%s22850_s7 + $0x400] ss:$8 sps:$4 sm:$0xff]  }
 0x5e4   : > { %10589 = vmatpush1.bf16.msra.mxu1 %v16872_v9  ;;  %v16840_v9 = vld [vmem:[%s22850_s7 + $0x414] ss:$8 sps:$4 sm:$0xff]  }
 0x5e5   : > { %10590 = vmatprep.subr.bf16.mxu1 %v16877_v24  ;;  %v16899_v24 = vld [vmem:[%s22853_s10 + $0x1b0] ss:$36 sps:$4 sm:$0xff]  }
 0x5e6   : > { %8878 = vmatmul.mubr.bf16.gmra.mrb[60].mxu0 %v20922_v56 }
 0x5e7   : > { %14490 = vmatprep.mubr.msk.bf16.mxu0 %vm7337_vm13, %v14455_v11  ;;  %v16837_v11 = vld [vmem:[%s22850_s7 + $0x404] ss:$8 sps:$4 sm:$0xff]  }
 0x5e8   : > { %10591 = vmatpush1.bf16.msra.mxu1 %v16875_v15  ;;  %v16916_v15 = vld [vmem:[%s22853_s10 + $0x244] ss:$36 sps:$4 sm:$0xff]  }
 0x5e9   : > { %10592 = vmatprep.subr.bf16.mxu1 %v16880_v57  ;;  %v16841_v57 = vld [vmem:[%s22850_s7 + $0x420] ss:$8 sps:$4 sm:$0xff]  }
 0x5ec   : > { %10593 = vmatpush1.bf16.msra.mxu1 %v16878_v31  ;;  %v16845_v31 = vld [vmem:[%s22850_s7 + $0x430] ss:$8 sps:$4 sm:$0xff]  }
 0x5ed   : > { %10594 = vmatprep.subr.bf16.mxu1 %v16889_v14  ;;  %v16850_v14 = vld [vmem:[%s22850_s7 + $0x444] ss:$8 sps:$4 sm:$0xff]  }
 0x5ee   : > { %9187 = vmatmul.mubr.bf16.vlgmr.msra.gmra.mrb[32].mxu0 %v14454_v59  ;;  %v16838_v59 = vld [vmem:[%s22850_s7 + $0x410] ss:$8 sps:$4 sm:$0xff]  }
 0x5ef   : > { %14491 = vmatprep.mubr.msk.bf16.mxu0 %vm7337_vm13, %v14457_v55  ;;  %9534 = vmatpush1.bf16.msra.mxu0 %v16819_v61  ;;  %v16910_v61 = vld [vmem:[%s22853_s10 + $0x1fc] ss:$36 sps:$4 sm:$0xff]   ;;  %v14460_v55 = vcombine.low %v20851_v17, %v20991_v47 }
 0x5f0   : > { %9535 = vmatprep.subr.bf16.mxu0 %v16825_v54  ;;  %10595 = vmatpush1.bf16.msra.mxu1 %v16887_v33  ;;  %v16843_v54 = vld [vmem:[%s22850_s7 + $0x424] ss:$8 sps:$4 sm:$0xff]  }
 0x5f1   : > { %10596 = vmatprep.subr.bf16.mxu1 %v16895_v28  ;;  %v16914_v17 = vld [vmem:[%s22853_s10 + $0x240] ss:$36 sps:$4 sm:$0xff]   ;;  %v16883_v33 = vld [vmem:[%s22853_s10 + $0xc] ss:$36 sps:$4 sm:$0xff]  }
 0x5f3   : > { %9536 = vmatpush1.bf16.msra.mxu0 %v16823_v3  ;;  %v16847_v3 = vld [vmem:[%s22850_s7 + $0x434] ss:$8 sps:$4 sm:$0xff]  }
 0x5f4   : > { %9537 = vmatprep.subr.bf16.mxu0 %v16829_v41  ;;  %10597 = vmatpush1.bf16.msra.mxu1 %v16893_v30  ;;  %v16922_v41 = vld [vmem:[%s22853_s10 + $0x28c] ss:$36 sps:$4 sm:$0xff]  }
 0x5f5   : > { %v9307_v30 = vld [vmem:[#allocation3 + $0x68] sm:$0xff] }
 0x5f6   : > { %9197 = vmatmul.mubr.bf16.gmra.mrb[36].mxu0 %v14456_v23  ;;  %v16857_v23 = vld [vmem:[%s22850_s7 + $0x454] ss:$8 sps:$4 sm:$0xff]  }
 0x5f7   : > { %14492 = vmatprep.mubr.msk.bf16.mxu0 %vm7337_vm13, %v20757_v60  ;;  %9538 = vmatpush1.bf16.msra.mxu0 %v16827_v32  ;;  %v16901_v60 = vld [vmem:[%s22853_s10 + $0x1b4] ss:$36 sps:$4 sm:$0xff]   ;;  %v16920_v32 = vld [vmem:[%s22853_s10 + $0x288] ss:$36 sps:$4 sm:$0xff]  }
 0x5f8   : > { %9539 = vmatprep.subr.bf16.mxu0 %v16832_v12  ;;  %10598 = vmatprep.subr.bf16.mxu1 %v16901_v60  ;;  %v16855_v12 = vld [vmem:[%s22850_s7 + $0x450] ss:$8 sps:$4 sm:$0xff]  }
 0x5f9   : > { %10599 = vmatpush1.bf16.msra.mxu1 %v16899_v24  ;;  %v16904_v60 = vld [vmem:[%s22853_s10 + $0x12c] ss:$36 sps:$4 sm:$0xff]  }
 0x5fa   : > { %10600 = vmatprep.subr.bf16.mxu1 %v16910_v61  ;;  %v16862_v24 = vld [vmem:[#allocation3 + $0xa4] ss:$8 sps:$4 sm:$0xff]  }
 0x5fb   : > { %9540 = vmatpush1.bf16.msra.mxu0 %v16830_v34  ;;  %v14519_v34 = vcombine.high %v20918_v10, %v20946_v37  ;;  %v16917_v61 = vld [vmem:[%s22853_s10 + $0x200] ss:$36 sps:$4 sm:$0xff]  }
 0x5fc   : > { %9541 = vmatprep.subr.bf16.mxu0 %v16837_v11  ;;  %v16896_v11 = vld [vmem:[%s22853_s10 + $0xe0] ss:$36 sps:$4 sm:$0xff]  }
 0x5fe   : > { %9207 = vmatmul.mubr.bf16.gmra.mrb[40].mxu0 %v20773_v45  ;;  %v16908_v45 = vld [vmem:[%s22853_s10 + $0x1f8] ss:$36 sps:$4 sm:$0xff]  }
 0x5ff   : > { %14493 = vmatprep.mubr.msk.bf16.mxu0 %vm7337_vm13, %v14461_v16  ;;  %9542 = vmatpush1.bf16.msra.mxu0 %v16835_v26  ;;  %v14525_v16 = vcombine.high %v20991_v47, %v9307_v30  ;;  %v14524_v26 = vcombine.low %v20991_v47, %v9307_v30  ;;  %v16925_v47 = vld [vmem:[%s22853_s10 + $0x24c] ss:$36 sps:$4 sm:$0xff]  }
 0x600   : > { %9543 = vmatprep.subr.bf16.mxu0 %v16840_v9  ;;  %10601 = vmatpush1.bf16.msra.mxu1 %v16908_v45  ;;  %v16911_v9 = vld [vmem:[%s22853_s10 + $0x1b8] ss:$36 sps:$4 sm:$0xff]   ;;  %v9310_v45 = vld [vmem:[#allocation3 + $0xb0] sm:$0xff] }
 0x601   : > { %10602 = vmatprep.subr.bf16.mxu1 %v16916_v15  ;;  %v14529_v15 = vcombine.high %v9310_v45, %v20701_v38 }
 0x603   : > { %9544 = vmatpush1.bf16.msra.mxu0 %v16838_v59  ;;  %v16923_v59 = vld [vmem:[%s22853_s10 + $0x248] ss:$36 sps:$4 sm:$0xff]  }
 0x604   : > { %9545 = vmatprep.subr.bf16.mxu0 %v16843_v54  ;;  %10603 = vmatpush1.bf16.msra.mxu1 %v16914_v17  ;;  %v16864_v54 = vld [vmem:[#allocation3 + $0xa0] ss:$8 sps:$4 sm:$0xff]   ;;  %v9315_v17 = vld [vmem:[#allocation3 + $0xd8] sm:$0xff] }
 0x605   : > { %10604 = vmatprep.subr.bf16.mxu1 %v16922_v41 }
 0x606   : > { %9217 = vmatmul.mubr.bf16.gmra.mrb[44].mxu0 %v14460_v55  ;;  %v16928_v55 = vld [vmem:[%s22853_s10 + $0x294] ss:$36 sps:$4 sm:$0xff]  }
 0x607   : > { %14494 = vmatprep.mubr.msk.bf16.mxu0 %vm7337_vm13, %v20467_v19  ;;  %9546 = vmatpush1.bf16.msra.mxu0 %v16841_v57  ;;  %v16848_v19 = vld [vmem:[%s22850_s7 + $0x440] ss:$8 sps:$4 sm:$0xff]   ;;  %v16926_v57 = vld [vmem:[%s22853_s10 + $0x290] ss:$36 sps:$4 sm:$0xff]  }
 0x608   : > { %9547 = vmatprep.subr.bf16.mxu0 %v16847_v3  ;;  %10605 = vmatpush1.bf16.msra.mxu1 %v16920_v32  ;;  %v14528_v3 = vcombine.low %v9310_v45, %v20701_v38  ;;  %v16931_v38 = vld [vmem:[%s22853_s10 + $0x2d4] ss:$36 sps:$4 sm:$0xff]  }
 0x609   : > { %10606 = vmatprep.subr.bf16.mxu1 %v16931_v38  ;;  %v16935_v32 = vld [vmem:[%s22853_s10 + $0x318] ss:$36 sps:$4 sm:$0xff]  }
 0x60b   : > { %9548 = vmatpush1.bf16.msra.mxu0 %v16845_v31 }
 0x60c   : > { %9549 = vmatprep.subr.bf16.mxu0 %v16850_v14  ;;  %v16929_v14 = vld [vmem:[%s22853_s10 + $0x2d0] ss:$36 sps:$4 sm:$0xff]  }
 0x60d   : > { %10607 = vmatpush1.bf16.msra.mxu1 %v16929_v14  ;;  %v16964_v14 = vld [vmem:[%s22853_s10 + $0xac] ss:$36 sps:$4 sm:$0xff]  }
 0x60e   : > { %9227 = vmatmul.mubr.bf16.gmra.mrb[48].mxu0 %v20471_v13  ;;  %v21073_v13 = vld [vmem:[#allocation3 + $0xd0] sm:$0xff] }
 0x60f   : > { %14495 = vmatprep.mubr.msk.bf16.mxu0 %vm7337_vm13, %v20492_v35  ;;  %9550 = vmatpush1.bf16.msra.mxu0 %v16848_v19  ;;  %v14469_v35 = vcombine.high %v20909_v44, %v21073_v13  ;;  %v14468_v28 = vcombine.low %v20909_v44, %v21073_v13  ;;  %v16884_v44 = vld [vmem:[%s22853_s10 + $0x50] ss:$36 sps:$4 sm:$0xff]   ;;  %v14533_v41 = vcombine.high %v21073_v13, %v9315_v17  ;;  %v16937_v19 = vld [vmem:[%s22853_s10 + $0x31c] ss:$36 sps:$4 sm:$0xff]  }
 0x610   : > { %9551 = vmatprep.subr.bf16.mxu0 %v16857_v23  ;;  %v14532_v31 = vcombine.low %v21073_v13, %v9315_v17  ;;  %v16940_v23 = vld [vmem:[%s22853_s10 + $0x324] ss:$36 sps:$4 sm:$0xff]   ;;  %10608 = vmatprep.subr.bf16.mxu1 %v16937_v19  ;;  %v16955_v13 = vld [vmem:[%s22853_s10 + $0x1c] ss:$36 sps:$4 sm:$0xff]  }
 0x611   : > { %10609 = vmatpush1.bf16.msra.mxu1 %v16935_v32 }
 0x613   : > { %9552 = vmatpush1.bf16.msra.mxu0 %v16855_v12  ;;  %v16938_v12 = vld [vmem:[%s22853_s10 + $0x320] ss:$36 sps:$4 sm:$0xff]  }
 0x614   : > { %10699 = vmatprep.subr.bf16.mxu0 %v16883_v33  ;;  %v16943_v33 = vld [vmem:[%s22853_s10 + $0x14] ss:$36 sps:$4 sm:$0xff]  }
 0x615   : > { %10812 = vmatprep.subr.bf16.mxu1 %v16943_v33 }
 0x616   : > { %9237 = vmatmul.mubr.bf16.gmra.mrb[52].mxu0 %v20496_v8  ;;  %v16881_v8 = vld [vmem:[%s22853_s10 + $0x8] ss:$36 sps:$4 sm:$0xff]  }
 0x617   : > { %14496 = vmatprep.mubr.msk.bf16.mxu0 %vm7337_vm13, %v20809_v25  ;;  %v14518_v25 = vcombine.low %v20918_v10, %v20946_v37  ;;  %v16892_v10 = vld [vmem:[%s22853_s10 + $0x9c] ss:$36 sps:$4 sm:$0xff]  }
 0x618   : > { %v16890_v37 = vld [vmem:[%s22853_s10 + $0x98] ss:$36 sps:$4 sm:$0xff]  }
 0x61e   : > { %9247 = vmatmul.mubr.bf16.gmra.mrb[56].mxu0 %v20816_v18  ;;  %v16886_v18 = vld [vmem:[%s22853_s10 + $0x54] ss:$36 sps:$4 sm:$0xff]  }
 0x61f   : > { %14497 = vmatprep.mubr.msk.bf16.mxu0 %vm7337_vm13, %v14469_v35  ;;  %v9678_v35 = vld [vmem:[%s22851_s8] sm:$0x3] }
 0x626   : > { %9257 = vmatmul.mubr.bf16.gmra.mrb[60].mxu0 %v14468_v28  ;;  %v21200_v28 = vrot.slane %v9678_v35, %v20079_v0 }
 0x627   : > { %14554 = vmatprep.mubr.msk.bf16.mxu0 %vm7337_vm13, %v14519_v34  ;;  %v21203_v34 = vrot.slane %v9678_v35, %v20085_v36  ;;  %v16952_v35 = vld [vmem:[%s22853_s10 + $0xec] ss:$36 sps:$4 sm:$0xff]  }
 0x62e   : > { %9566 = vmatmul.mubr.bf16.vlgmr.msra.gmra.mrb[32].mxu0 %v14518_v25 }
 0x62f   : > { %14555 = vmatprep.mubr.msk.bf16.mxu0 %vm7337_vm13, %v14521_v46  ;;  %10700 = vmatpush1.bf16.msra.mxu0 %v16881_v8  ;;  %v16898_v46 = vld [vmem:[%s22853_s10 + $0xe4] ss:$36 sps:$4 sm:$0xff]  }
 0x630   : > { %10701 = vmatprep.subr.bf16.mxu0 %v16886_v18 }
 0x633   : > { %10702 = vmatpush1.bf16.msra.mxu0 %v16884_v44 }
 0x634   : > { %10703 = vmatprep.subr.bf16.mxu0 %v16892_v10 }
 0x636   : > { %9576 = vmatmul.mubr.bf16.gmra.mrb[36].mxu0 %v14520_v20  ;;  %v16905_v20 = vld [vmem:[%s22853_s10 + $0x170] ss:$36 sps:$4 sm:$0xff]  }
 0x637   : > { %14556 = vmatprep.mubr.msk.bf16.mxu0 %vm7337_vm13, %v20861_v58  ;;  %10704 = vmatpush1.bf16.msra.mxu0 %v16890_v37  ;;  %v16913_v58 = vld [vmem:[%s22853_s10 + $0x1bc] ss:$36 sps:$4 sm:$0xff]  }
 0x638   : > { %10705 = vmatprep.subr.bf16.mxu0 %v16898_v46 }
 0x63b   : > { %10706 = vmatpush1.bf16.msra.mxu0 %v16896_v11 }
 0x63c   : > { %10707 = vmatprep.subr.bf16.mxu0 %v16904_v60 }
 0x63e   : > { %9586 = vmatmul.mubr.bf16.gmra.mrb[40].mxu0 %v20877_v4  ;;  %v16919_v4 = vld [vmem:[%s22853_s10 + $0x204] ss:$36 sps:$4 sm:$0xff]  }
 0x63f   : > { %14557 = vmatprep.mubr.msk.bf16.mxu0 %vm7337_vm13, %v14525_v16  ;;  %10708 = vmatpush1.bf16.msra.mxu0 %v16902_v2 }
 0x640   : > { %10709 = vmatprep.subr.bf16.mxu0 %v16907_v52 }
 0x643   : > { %10710 = vmatpush1.bf16.msra.mxu0 %v16905_v20 }
 0x644   : > { %10711 = vmatprep.subr.bf16.mxu0 %v16913_v58 }
 0x646   : > { %9596 = vmatmul.mubr.bf16.gmra.mrb[44].mxu0 %v14524_v26  ;;  %v16941_v26 = vld [vmem:[%s22853_s10 + $0x10] ss:$36 sps:$4 sm:$0xff]  }
 0x647   : > { %14558 = vmatprep.mubr.msk.bf16.mxu0 %vm7337_vm13, %v16862_v24  ;;  %10712 = vmatpush1.bf16.msra.mxu0 %v16911_v9  ;;  %v16953_v9 = vld [vmem:[%s22853_s10 + $0x18] ss:$36 sps:$4 sm:$0xff]  }
 0x648   : > { %10713 = vmatprep.subr.bf16.mxu0 %v16919_v4 }
 0x64b   : > { %10714 = vmatpush1.bf16.msra.mxu0 %v16917_v61  ;;  %v16946_v61 = vld [vmem:[%s22853_s10 + $0x5c] ss:$36 sps:$4 sm:$0xff]  }
 0x64c   : > { %10715 = vmatprep.subr.bf16.mxu0 %v16925_v47  ;;  %v16958_v47 = vld [vmem:[%s22853_s10 + $0x64] ss:$36 sps:$4 sm:$0xff]  }
 0x64e   : > { %9606 = vmatmul.mubr.bf16.gmra.mrb[48].mxu0 %v16864_v54 }
 0x64f   : > { %14559 = vmatprep.mubr.msk.bf16.mxu0 %vm7337_vm13, %v14529_v15  ;;  %10716 = vmatpush1.bf16.msra.mxu0 %v16923_v59 }
 0x650   : > { %10717 = vmatprep.subr.bf16.mxu0 %v16928_v55 }
 0x653   : > { %10718 = vmatpush1.bf16.msra.mxu0 %v16926_v57  ;;  %v16944_v57 = vld [vmem:[%s22853_s10 + $0x58] ss:$36 sps:$4 sm:$0xff]  }
 0x656   : > { %9616 = vmatmul.mubr.bf16.gmra.mrb[52].mxu0 %v14528_v3  ;;  %v16956_v3 = vld [vmem:[%s22853_s10 + $0x60] ss:$36 sps:$4 sm:$0xff]  }
 0x657   : > { %14560 = vmatprep.mubr.msk.bf16.mxu0 %vm7337_vm13, %v20913_v48  ;;  %v16932_v48 = vld [vmem:[%s22853_s10 + $0x2d8] ss:$36 sps:$4 sm:$0xff]  }
 0x65e   : > { %9626 = vmatmul.mubr.bf16.gmra.mrb[56].mxu0 %v20922_v56  ;;  %v16934_v56 = vld [vmem:[%s22853_s10 + $0x2dc] ss:$36 sps:$4 sm:$0xff]  }
 0x65f   : > { %14561 = vmatprep.mubr.msk.bf16.mxu0 %vm7337_vm13, %v14533_v41  ;;  %10719 = vmatprep.subr.bf16.mxu0 %v16934_v56 }
 0x660   : > { %10720 = vmatpush1.bf16.msra.mxu0 %v16932_v48 }
 0x661   : > { %10721 = vmatprep.subr.bf16.mxu0 %v16940_v23  ;;  %v16947_v23 = vld [vmem:[%s22853_s10 + $0xa0] ss:$36 sps:$4 sm:$0xff]  }
 0x664   : > { %10722 = vmatpush1.bf16.msra.mxu0 %v16938_v12  ;;  %v16962_v12 = vld [vmem:[%s22853_s10 + $0xa8] ss:$36 sps:$4 sm:$0xff]  }
 0x665   : > { %10925 = vmatprep.subr.bf16.mxu0 %v16955_v13 }
 0x666   : > { %9636 = vmatmul.mubr.bf16.gmra.mrb[60].mxu0 %v14532_v31  ;;  %v16949_v31 = vld [vmem:[%s22853_s10 + $0xa4] ss:$36 sps:$4 sm:$0xff]  }
 0x701   : > { %v9567_v8 = vpop.f32.mrb[32].mxu0 }
 0x702   : > { %v9690_v25 = vadd.f32 %v21200_v28, %v9567_v8  ;;  %v9569_v18 = vpop.f32.mrb[33].mxu0  ;;  %v16970_v8 = vld [vmem:[%s22853_s10 + $0xf4] ss:$36 sps:$4 sm:$0xff]  }
 0x703   : > { %v9691_v44 = vadd.f32 %v21203_v34, %v9569_v18  ;;  %v9571_v10 = vpop.f32.mrb[34].mxu0 }
 0x704   : > { %v9692_v37 = vadd.f32 %v21200_v28, %v9571_v10  ;;  %v9573_v46 = vpop.f32.mrb[35].mxu0  ;;  %v9722_v30 = vmax.f32 %v9690_v25, 0.0 }
 0x705   : > { %v9693_v11 = vadd.f32 %v21203_v34, %v9573_v46  ;;  %v9723_v16 = vmax.f32 %v9691_v44, 0.0  ;;  %v16950_v46 = vld [vmem:[%s22853_s10 + $0xe8] ss:$36 sps:$4 sm:$0xff]  }
 0x706   : > { %v9724_v60 = vmax.f32 %v9692_v37, 0.0 }
 0x707   : > { %v9725_v2 = vmax.f32 %v9693_v11, 0.0  ;;  %v16968_v11 = vld [vmem:[%s22853_s10 + $0xf0] ss:$36 sps:$4 sm:$0xff]  }
 0x708   : > { %v21209_v52 = vpack.c.bf16 %v9724_v60, %v9722_v30 }
 0x709   : > { %v21211_v20 = vpack.c.bf16 %v9725_v2, %v9723_v16  ;;  %v9577_v58 = vpop.f32.mrb[36].mxu0  ;;  %v16961_v16 = vld [vmem:[%s22853_s10 + $0x134] ss:$36 sps:$4 sm:$0xff]   ;;  %v16976_v2 = vld [vmem:[%s22853_s10 + $0x13c] ss:$36 sps:$4 sm:$0xff]  }
 0x70a   : > { %v9694_v4 = vadd.f32 %v21200_v28, %v9577_v58  ;;  %v9579_v24 = vpop.f32.mrb[37].mxu0 }
 0x70b   : > { %v9695_v59 = vadd.f32 %v21203_v34, %v9579_v24  ;;  %v9581_v54 = vpop.f32.mrb[38].mxu0  ;;  %14670 = vmatprep.mubr.msk.bf16.mxu1 %vm1687_vm0, %v21211_v20  ;;  %14678 = vmatprep.mubr.msk.bf16.mxu0 %vm1687_vm0, %v21211_v20 }
 0x70c   : > { %v9696_v45 = vadd.f32 %v21200_v28, %v9581_v54  ;;  %v9583_v55 = vpop.f32.mrb[39].mxu0  ;;  %10619 = vmatmul.mubr.bf16.vlgmr.msra.gmra.mrb[176].mxu1 %v21209_v52  ;;  %10732 = vmatmul.mubr.bf16.vlgmr.msra.gmra.mrb[64].mxu0 %v21209_v52  ;;  %v9726_v17 = vmax.f32 %v9694_v4, 0.0 }
 0x70d   : > { %v9697_v15 = vadd.f32 %v21203_v34, %v9583_v55  ;;  %10813 = vmatpush1.bf16.msra.mxu1 %v16941_v26  ;;  %10926 = vmatpush1.bf16.msra.mxu0 %v16953_v9  ;;  %v9727_v38 = vmax.f32 %v9695_v59, 0.0  ;;  %v16979_v55 = vld [vmem:[%s22853_s10 + $0x184] ss:$36 sps:$4 sm:$0xff]  }
 0x70e   : > { %v9728_v41 = vmax.f32 %v9696_v45, 0.0  ;;  %10814 = vmatprep.subr.bf16.mxu1 %v16946_v61  ;;  %10927 = vmatprep.subr.bf16.mxu0 %v16958_v47  ;;  %v16959_v61 = vld [vmem:[%s22853_s10 + $0x130] ss:$36 sps:$4 sm:$0xff]   ;;  %v16974_v47 = vld [vmem:[%s22853_s10 + $0x138] ss:$36 sps:$4 sm:$0xff]  }
 0x70f   : > { %v9729_v48 = vmax.f32 %v9697_v15, 0.0  ;;  %v16967_v45 = vld [vmem:[%s22853_s10 + $0x17c] ss:$36 sps:$4 sm:$0xff]  }
 0x710   : > { %v21247_v56 = vpack.c.bf16 %v9728_v41, %v9726_v17 }
 0x711   : > { %v21249_v32 = vpack.c.bf16 %v9729_v48, %v9727_v38  ;;  %v9587_v19 = vpop.f32.mrb[40].mxu0  ;;  %10815 = vmatpush1.bf16.msra.mxu1 %v16944_v57  ;;  %10928 = vmatpush1.bf16.msra.mxu0 %v16956_v3 }
 0x712   : > { %v9698_v33 = vadd.f32 %v21200_v28, %v9587_v19  ;;  %v9589_v13 = vpop.f32.mrb[41].mxu0  ;;  %10816 = vmatprep.subr.bf16.mxu1 %v16949_v31  ;;  %10929 = vmatprep.subr.bf16.mxu0 %v16964_v14  ;;  %v16965_v31 = vld [vmem:[%s22853_s10 + $0x178] ss:$36 sps:$4 sm:$0xff]   ;;  %v16977_v14 = vld [vmem:[%s22853_s10 + $0x180] ss:$36 sps:$4 sm:$0xff]  }
 0x713   : > { %v9699_v25 = vadd.f32 %v21203_v34, %v9589_v13  ;;  %v9591_v18 = vpop.f32.mrb[42].mxu0  ;;  %14671 = vmatprep.mubr.msk.bf16.mxu1 %vm1687_vm0, %v21249_v32  ;;  %14679 = vmatprep.mubr.msk.bf16.mxu0 %vm1687_vm0, %v21249_v32  ;;  %v16973_v19 = vld [vmem:[%s22853_s10 + $0x1c4] ss:$36 sps:$4 sm:$0xff]  }
 0x714   : > { %v9700_v44 = vadd.f32 %v21200_v28, %v9591_v18  ;;  %v9593_v10 = vpop.f32.mrb[43].mxu0  ;;  %10629 = vmatmul.mubr.bf16.gmra.mrb[180].mxu1 %v21247_v56  ;;  %10742 = vmatmul.mubr.bf16.gmra.mrb[68].mxu0 %v21247_v56  ;;  %v9730_v30 = vmax.f32 %v9698_v33, 0.0  ;;  %v16983_v18 = vld [vmem:[%s22853_s10 + $0x1c8] ss:$36 sps:$4 sm:$0xff]  }
 0x715   : > { %v9701_v37 = vadd.f32 %v21203_v34, %v9593_v10  ;;  %10817 = vmatpush1.bf16.msra.mxu1 %v16947_v23  ;;  %10930 = vmatpush1.bf16.msra.mxu0 %v16962_v12  ;;  %v9731_v58 = vmax.f32 %v9699_v25, 0.0  ;;  %v16985_v23 = vld [vmem:[%s22853_s10 + $0x1cc] ss:$36 sps:$4 sm:$0xff]   ;;  %v16971_v25 = vld [vmem:[%s22853_s10 + $0x1c0] ss:$36 sps:$4 sm:$0xff]  }
 0x716   : > { %v9732_v60 = vmax.f32 %v9700_v44, 0.0  ;;  %10818 = vmatprep.subr.bf16.mxu1 %v16952_v35  ;;  %10931 = vmatprep.subr.bf16.mxu0 %v16970_v8 }
 0x717   : > { %v9733_v26 = vmax.f32 %v9701_v37, 0.0  ;;  %v16982_v37 = vld [vmem:[%s22853_s10 + $0x20c] ss:$36 sps:$4 sm:$0xff]  }
 0x718   : > { %v21285_v9 = vpack.c.bf16 %v9732_v60, %v9730_v30 }
 0x719   : > { %v21287_v4 = vpack.c.bf16 %v9733_v26, %v9731_v58  ;;  %v9597_v24 = vpop.f32.mrb[44].mxu0  ;;  %10819 = vmatpush1.bf16.msra.mxu1 %v16950_v46  ;;  %10932 = vmatpush1.bf16.msra.mxu0 %v16968_v11  ;;  %v16991_v46 = vld [vmem:[%s22853_s10 + $0x214] ss:$36 sps:$4 sm:$0xff]   ;;  %v16980_v58 = vld [vmem:[%s22853_s10 + $0x208] ss:$36 sps:$4 sm:$0xff]  }
 0x71a   : > { %v9702_v59 = vadd.f32 %v21200_v28, %v9597_v24  ;;  %v9599_v54 = vpop.f32.mrb[45].mxu0  ;;  %10820 = vmatprep.subr.bf16.mxu1 %v16961_v16  ;;  %10933 = vmatprep.subr.bf16.mxu0 %v16976_v2  ;;  %v16989_v26 = vld [vmem:[%s22853_s10 + $0x210] ss:$36 sps:$4 sm:$0xff]  }
 0x71b   : > { %v9703_v15 = vadd.f32 %v21203_v34, %v9599_v54  ;;  %v9601_v57 = vpop.f32.mrb[46].mxu0  ;;  %14672 = vmatprep.mubr.msk.bf16.mxu1 %vm1687_vm0, %v21287_v4  ;;  %14680 = vmatprep.mubr.msk.bf16.mxu0 %vm1687_vm0, %v21287_v4 }
 0x71c   : > { %v9704_v3 = vadd.f32 %v21200_v28, %v9601_v57  ;;  %v9603_v17 = vpop.f32.mrb[47].mxu0  ;;  %10639 = vmatmul.mubr.bf16.gmra.mrb[184].mxu1 %v21285_v9  ;;  %10752 = vmatmul.mubr.bf16.gmra.mrb[72].mxu0 %v21285_v9  ;;  %v9734_v38 = vmax.f32 %v9702_v59, 0.0  ;;  %v16997_v59 = vld [vmem:[%s22853_s10 + $0x25c] ss:$36 sps:$4 sm:$0xff]  }
 0x71d   : > { %v9705_v41 = vadd.f32 %v21203_v34, %v9603_v17  ;;  %10821 = vmatpush1.bf16.msra.mxu1 %v16959_v61  ;;  %10934 = vmatpush1.bf16.msra.mxu0 %v16974_v47  ;;  %v9735_v12 = vmax.f32 %v9703_v15, 0.0  ;;  %v16988_v47 = vld [vmem:[%s22853_s10 + $0x254] ss:$36 sps:$4 sm:$0xff]  }
 0x71e   : > { %v9736_v48 = vmax.f32 %v9704_v3, 0.0  ;;  %10822 = vmatprep.subr.bf16.mxu1 %v16967_v45  ;;  %10935 = vmatprep.subr.bf16.mxu0 %v16979_v55  ;;  %v16986_v3 = vld [vmem:[%s22853_s10 + $0x250] ss:$36 sps:$4 sm:$0xff]   ;;  %v16995_v17 = vld [vmem:[%s22853_s10 + $0x258] ss:$36 sps:$4 sm:$0xff]  }
 0x71f   : > { %v9737_v33 = vmax.f32 %v9705_v41, 0.0 }
 0x720   : > { %v21323_v13 = vpack.c.bf16 %v9736_v48, %v9734_v38  ;;  %v17000_v38 = vld [vmem:[%s22853_s10 + $0x2a4] ss:$36 sps:$4 sm:$0xff]  }
 0x721   : > { %v21325_v35 = vpack.c.bf16 %v9737_v33, %v9735_v12  ;;  %v9607_v8 = vpop.f32.mrb[48].mxu0  ;;  %10823 = vmatpush1.bf16.msra.mxu1 %v16965_v31  ;;  %10936 = vmatpush1.bf16.msra.mxu0 %v16977_v14  ;;  %v16994_v14 = vld [vmem:[%s22853_s10 + $0x29c] ss:$36 sps:$4 sm:$0xff]  }
 0x722   : > { %v9706_v44 = vadd.f32 %v21200_v28, %v9607_v8  ;;  %v9609_v10 = vpop.f32.mrb[49].mxu0  ;;  %10824 = vmatprep.subr.bf16.mxu1 %v16973_v19  ;;  %10937 = vmatprep.subr.bf16.mxu0 %v16985_v23  ;;  %v16992_v8 = vld [vmem:[%s22853_s10 + $0x298] ss:$36 sps:$4 sm:$0xff]  }
 0x723   : > { %v9707_v11 = vadd.f32 %v21203_v34, %v9609_v10  ;;  %v9611_v30 = vpop.f32.mrb[50].mxu0  ;;  %14673 = vmatprep.mubr.msk.bf16.mxu1 %vm1687_vm0, %v21325_v35  ;;  %14681 = vmatprep.mubr.msk.bf16.mxu0 %vm1687_vm0, %v21325_v35  ;;  %v17003_v10 = vld [vmem:[%s22853_s10 + $0x2e4] ss:$36 sps:$4 sm:$0xff]  }
 0x724   : > { %v9708_v60 = vadd.f32 %v21200_v28, %v9611_v30  ;;  %v9613_v16 = vpop.f32.mrb[51].mxu0  ;;  %10649 = vmatmul.mubr.bf16.gmra.mrb[188].mxu1 %v21323_v13  ;;  %10762 = vmatmul.mubr.bf16.gmra.mrb[76].mxu0 %v21323_v13  ;;  %v9738_v24 = vmax.f32 %v9706_v44, 0.0 }
 0x725   : > { %v9709_v2 = vadd.f32 %v21203_v34, %v9613_v16  ;;  %10825 = vmatpush1.bf16.msra.mxu1 %v16971_v25  ;;  %10938 = vmatpush1.bf16.msra.mxu0 %v16983_v18  ;;  %v9739_v54 = vmax.f32 %v9707_v11, 0.0  ;;  %v16998_v25 = vld [vmem:[%s22853_s10 + $0x2a0] ss:$36 sps:$4 sm:$0xff]  }
 0x726   : > { %v9740_v61 = vmax.f32 %v9708_v60, 0.0  ;;  %10826 = vmatprep.subr.bf16.mxu1 %v16982_v37  ;;  %10939 = vmatprep.subr.bf16.mxu0 %v16991_v46  ;;  %v17006_v37 = vld [vmem:[%s22853_s10 + $0x2ec] ss:$36 sps:$4 sm:$0xff]  }
 0x727   : > { %v9741_v45 = vmax.f32 %v9709_v2, 0.0  ;;  %v17001_v2 = vld [vmem:[%s22853_s10 + $0x2e0] ss:$36 sps:$4 sm:$0xff]  }
 0x728   : > { %v21361_v55 = vpack.c.bf16 %v9740_v61, %v9738_v24  ;;  %v17009_v61 = vld [vmem:[%s22853_s10 + $0x32c] ss:$36 sps:$4 sm:$0xff]  }
 0x729   : > { %v21363_v15 = vpack.c.bf16 %v9741_v45, %v9739_v54  ;;  %v9617_v57 = vpop.f32.mrb[52].mxu0  ;;  %10827 = vmatpush1.bf16.msra.mxu1 %v16980_v58  ;;  %10940 = vmatpush1.bf16.msra.mxu0 %v16989_v26  ;;  %v17004_v58 = vld [vmem:[%s22853_s10 + $0x2e8] ss:$36 sps:$4 sm:$0xff]  }
 0x72a   : > { %v9710_v41 = vadd.f32 %v21200_v28, %v9617_v57  ;;  %v9619_v31 = vpop.f32.mrb[53].mxu0  ;;  %10828 = vmatprep.subr.bf16.mxu1 %v16988_v47  ;;  %10941 = vmatprep.subr.bf16.mxu0 %v16997_v59  ;;  %v17012_v47 = vld [vmem:[%s22853_s10 + $0x334] ss:$36 sps:$4 sm:$0xff]  }
 0x72b   : > { %v9711_v48 = vadd.f32 %v21203_v34, %v9619_v31  ;;  %v9621_v19 = vpop.f32.mrb[54].mxu0  ;;  %14674 = vmatprep.mubr.msk.bf16.mxu1 %vm1687_vm0, %v21363_v15  ;;  %14682 = vmatprep.mubr.msk.bf16.mxu0 %vm1687_vm0, %v21363_v15 }
 0x72c   : > { %v9712_v23 = vadd.f32 %v21200_v28, %v9621_v19  ;;  %v9623_v12 = vpop.f32.mrb[55].mxu0  ;;  %10659 = vmatmul.mubr.bf16.gmra.mrb[192].mxu1 %v21361_v55  ;;  %10772 = vmatmul.mubr.bf16.gmra.mrb[80].mxu0 %v21361_v55  ;;  %v9742_v18 = vmax.f32 %v9710_v41, 0.0  ;;  %v17010_v41 = vld [vmem:[%s22853_s10 + $0x330] ss:$36 sps:$4 sm:$0xff]  }
 0x72d   : > { %v9713_v33 = vadd.f32 %v21203_v34, %v9623_v12  ;;  %10829 = vmatpush1.bf16.msra.mxu1 %v16986_v3  ;;  %10942 = vmatpush1.bf16.msra.mxu0 %v16995_v17  ;;  %v9743_v46 = vmax.f32 %v9711_v48, 0.0  ;;  %v17007_v17 = vld [vmem:[%s22853_s10 + $0x328] ss:$36 sps:$4 sm:$0xff]  }
 0x72e   : > { %v9744_v44 = vmax.f32 %v9712_v23, 0.0  ;;  %10830 = vmatprep.subr.bf16.mxu1 %v16994_v14  ;;  %10943 = vmatprep.subr.bf16.mxu0 %v17000_v38  ;;  %v17018_v38 = vld [vmem:[%s22852_s9 + $0xc] ss:$36 sps:$4 sm:$0xff]  }
 0x72f   : > { %v9745_v11 = vmax.f32 %v9713_v33, 0.0 }
 0x730   : > { %v21399_v30 = vpack.c.bf16 %v9744_v44, %v9742_v18 }
 0x731   : > { %v21401_v60 = vpack.c.bf16 %v9745_v11, %v9743_v46  ;;  %v9627_v16 = vpop.f32.mrb[56].mxu0  ;;  %10831 = vmatpush1.bf16.msra.mxu1 %v16992_v8  ;;  %10944 = vmatpush1.bf16.msra.mxu0 %v16998_v25 }
 0x732   : > { %v9714_v26 = vadd.f32 %v21200_v28, %v9627_v16  ;;  %v9629_v24 = vpop.f32.mrb[57].mxu0  ;;  %10832 = vmatprep.subr.bf16.mxu1 %v17003_v10  ;;  %10945 = vmatprep.subr.bf16.mxu0 %v17006_v37 }
 0x733   : > { %v9715_v59 = vadd.f32 %v21203_v34, %v9629_v24  ;;  %v9631_v54 = vpop.f32.mrb[58].mxu0  ;;  %14675 = vmatprep.mubr.msk.bf16.mxu1 %vm1687_vm0, %v21401_v60  ;;  %14683 = vmatprep.mubr.msk.bf16.mxu0 %vm1687_vm0, %v21401_v60 }
 0x734   : > { %v9716_v45 = vadd.f32 %v21200_v28, %v9631_v54  ;;  %v9633_v57 = vpop.f32.mrb[59].mxu0  ;;  %10669 = vmatmul.mubr.bf16.gmra.mrb[196].mxu1 %v21399_v30  ;;  %10782 = vmatmul.mubr.bf16.gmra.mrb[84].mxu0 %v21399_v30  ;;  %v9746_v31 = vmax.f32 %v9714_v26, 0.0  ;;  %v17026_v54 = vld [vmem:[%s22852_s9 + $0x9c] ss:$36 sps:$4 sm:$0xff]  }
 0x735   : > { %v9717_v3 = vadd.f32 %v21203_v34, %v9633_v57  ;;  %10833 = vmatpush1.bf16.msra.mxu1 %v17001_v2  ;;  %10946 = vmatpush1.bf16.msra.mxu0 %v17004_v58  ;;  %v9747_v48 = vmax.f32 %v9715_v59, 0.0  ;;  %v17020_v59 = vld [vmem:[%s22852_s9 + $0x50] ss:$36 sps:$4 sm:$0xff]   ;;  %v17024_v57 = vld [vmem:[%s22852_s9 + $0x98] ss:$36 sps:$4 sm:$0xff]  }
 0x736   : > { %v9748_v14 = vmax.f32 %v9716_v45, 0.0  ;;  %10834 = vmatprep.subr.bf16.mxu1 %v17009_v61  ;;  %10947 = vmatprep.subr.bf16.mxu0 %v17012_v47  ;;  %v17022_v61 = vld [vmem:[%s22852_s9 + $0x54] ss:$36 sps:$4 sm:$0xff]   ;;  %v17014_v47 = vld [vmem:[%s22853_s10 + $0x68] ss:$36 sps:$4 sm:$0xff]  }
 0x737   : > { %v9749_v19 = vmax.f32 %v9717_v3, 0.0  ;;  %v17015_v45 = vld [vmem:[%s22853_s10 + $0xb0] ss:$36 sps:$4 sm:$0xff]   ;;  %v17030_v3 = vld [vmem:[%s22852_s9 + $0xe4] ss:$36 sps:$4 sm:$0xff]  }
 0x738   : > { %v21434_v23 = vpack.c.bf16 %v9748_v14, %v9746_v31  ;;  %v17033_v31 = vld [vmem:[%s22852_s9 + $0x12c] ss:$36 sps:$4 sm:$0xff]   ;;  %v17023_v14 = vld [vmem:[%s22853_s10 + $0x140] ss:$36 sps:$4 sm:$0xff]  }
 0x739   : > { %v21436_v12 = vpack.c.bf16 %v9749_v19, %v9747_v48  ;;  %v9637_v33 = vpop.f32.mrb[60].mxu0  ;;  %10835 = vmatpush1.bf16.msra.mxu1 %v17007_v17  ;;  %10948 = vmatpush1.bf16.msra.mxu0 %v17010_v41  ;;  %v17019_v17 = vld [vmem:[%s22853_s10 + $0xf8] ss:$36 sps:$4 sm:$0xff]   ;;  %v17028_v41 = vld [vmem:[%s22852_s9 + $0xe0] ss:$36 sps:$4 sm:$0xff]  }
 0x73a   : > { %v9718_v8 = vadd.f32 %v21200_v28, %v9637_v33  ;;  %v9639_v25 = vpop.f32.mrb[61].mxu0  ;;  %11038 = vmatprep.subr.bf16.mxu1 %v23025_v22  ;;  %11824 = vmatprep.subr.bf16.mxu0 %v17018_v38  ;;  %v17031_v38 = vld [vmem:[%s22852_s9 + $0x128] ss:$36 sps:$4 sm:$0xff]   ;;  %v17037_v48 = vld [vmem:[%s22852_s9 + $0x174] ss:$36 sps:$4 sm:$0xff]  }
 0x73b   : > { %v9719_v18 = vadd.f32 %v21203_v34, %v9639_v25  ;;  %v9641_v44 = vpop.f32.mrb[62].mxu0  ;;  %14676 = vmatprep.mubr.msk.bf16.mxu1 %vm1687_vm0, %v21436_v12  ;;  %14684 = vmatprep.mubr.msk.bf16.mxu0 %vm1687_vm0, %v21436_v12  ;;  %v17027_v19 = vld [vmem:[%s22853_s10 + $0x188] ss:$36 sps:$4 sm:$0xff]   ;;  %v17035_v33 = vld [vmem:[%s22852_s9 + $0x170] ss:$36 sps:$4 sm:$0xff]  }
 0x73c   : > { %v9720_v10 = vadd.f32 %v21200_v28, %v9641_v44  ;;  %v9643_v37 = vpop.f32.mrb[63].mxu0  ;;  %10679 = vmatmul.mubr.bf16.gmra.mrb[200].mxu1 %v21434_v23  ;;  %10792 = vmatmul.mubr.bf16.gmra.mrb[88].mxu0 %v21434_v23  ;;  %v9750_v11 = vmax.f32 %v9718_v8, 0.0  ;;  %v17013_v28 = vld [vmem:[%s22853_s10 + $0x20] ss:$36 sps:$4 sm:$0xff]   ;;  %v17034_v25 = vld [vmem:[%s22853_s10 + $0x1d0] ss:$36 sps:$4 sm:$0xff]  }
 0x73d   : > { %v9721_v46 = vadd.f32 %v21203_v34, %v9643_v37  ;;  %v9751_v2 = vmax.f32 %v9719_v18, 0.0  ;;  %v17016_v34 = vld [vmem:[%s22852_s9 + $0x8] ss:$36 sps:$4 sm:$0xff]   ;;  %v17041_v8 = vld [vmem:[%s22852_s9 + $0x1bc] ss:$36 sps:$4 sm:$0xff]  }
 0x73e   : > { %v9752_v16 = vmax.f32 %v9720_v10, 0.0  ;;  %v17039_v18 = vld [vmem:[%s22852_s9 + $0x1b8] ss:$36 sps:$4 sm:$0xff]   ;;  %v17045_v44 = vld [vmem:[%s22852_s9 + $0x204] ss:$36 sps:$4 sm:$0xff]  }
 0x73f   : > { %v9753_v58 = vmax.f32 %v9721_v46, 0.0  ;;  %v17038_v10 = vld [vmem:[%s22853_s10 + $0x218] ss:$36 sps:$4 sm:$0xff]   ;;  %v17043_v37 = vld [vmem:[%s22852_s9 + $0x200] ss:$36 sps:$4 sm:$0xff]  }
 0x740   : > { %v21449_v26 = vpack.c.bf16 %v9752_v16, %v9750_v11  ;;  %v17048_v46 = vld [vmem:[%s22852_s9 + $0x24c] ss:$36 sps:$4 sm:$0xff]   ;;  %v17042_v11 = vld [vmem:[%s22853_s10 + $0x260] ss:$36 sps:$4 sm:$0xff]  }
 0x741   : > { %v21451_v24 = vpack.c.bf16 %v9753_v58, %v9751_v2  ;;  %v17046_v16 = vld [vmem:[%s22852_s9 + $0x248] ss:$36 sps:$4 sm:$0xff]   ;;  %v17052_v2 = vld [vmem:[%s22852_s9 + $0x294] ss:$36 sps:$4 sm:$0xff]  }
 0x742   : > { %v17049_v58 = vld [vmem:[%s22853_s10 + $0x2a8] ss:$36 sps:$4 sm:$0xff]  }
 0x743   : > { %14677 = vmatprep.mubr.msk.bf16.mxu1 %vm1687_vm0, %v21451_v24  ;;  %14685 = vmatprep.mubr.msk.bf16.mxu0 %vm1687_vm0, %v21451_v24 }
 0x744   : > { %10689 = vmatmul.mubr.bf16.gmra.mrb[204].mxu1 %v21449_v26  ;;  %10802 = vmatmul.mubr.bf16.gmra.mrb[92].mxu0 %v21449_v26 }
 0x745   : > { %14686 = vmatprep.mubr.msk.bf16.mxu1 %vm1687_vm0, %v21211_v20  ;;  %14694 = vmatprep.mubr.msk.bf16.mxu0 %vm1687_vm0, %v21211_v20 }
 0x74c   : > { %10845 = vmatmul.mubr.bf16.vlgmr.msra.gmra.mrb[208].mxu1 %v21209_v52  ;;  %10958 = vmatmul.mubr.bf16.vlgmr.msra.gmra.mrb[96].mxu0 %v21209_v52 }
 0x74d   : > { %14687 = vmatprep.mubr.msk.bf16.mxu1 %vm1687_vm0, %v21249_v32  ;;  %14695 = vmatprep.mubr.msk.bf16.mxu0 %vm1687_vm0, %v21249_v32 }
 0x74e   : > { %11039 = vmatpush1.bf16.msra.mxu1 %v17013_v28  ;;  %11825 = vmatpush1.bf16.msra.mxu0 %v17016_v34  ;;  %v17050_v28 = vld [vmem:[%s22852_s9 + $0x290] ss:$36 sps:$4 sm:$0xff]   ;;  %v17056_v34 = vld [vmem:[%s22852_s9 + $0x2dc] ss:$36 sps:$4 sm:$0xff]  }
 0x74f   : > { %11040 = vmatprep.subr.bf16.mxu1 %v23025_v22  ;;  %11826 = vmatprep.subr.bf16.mxu0 %v17022_v61  ;;  %v17053_v61 = vld [vmem:[%s22853_s10 + $0x2f0] ss:$36 sps:$4 sm:$0xff]  }
 0x752   : > { %11041 = vmatpush1.bf16.msra.mxu1 %v17014_v47  ;;  %11827 = vmatpush1.bf16.msra.mxu0 %v17020_v59  ;;  %v17054_v47 = vld [vmem:[%s22852_s9 + $0x2d8] ss:$36 sps:$4 sm:$0xff]   ;;  %v17060_v59 = vld [vmem:[%s22852_s9 + $0x324] ss:$36 sps:$4 sm:$0xff]  }
 0x753   : > { %11042 = vmatprep.subr.bf16.mxu1 %v23025_v22  ;;  %11828 = vmatprep.subr.bf16.mxu0 %v17026_v54  ;;  %v17057_v54 = vld [vmem:[%s22853_s10 + $0x338] ss:$36 sps:$4 sm:$0xff]  }
 0x754   : > { %10855 = vmatmul.mubr.bf16.gmra.mrb[212].mxu1 %v21247_v56  ;;  %10968 = vmatmul.mubr.bf16.gmra.mrb[100].mxu0 %v21247_v56 }
 0x755   : > { %14688 = vmatprep.mubr.msk.bf16.mxu1 %vm1687_vm0, %v21287_v4  ;;  %14696 = vmatprep.mubr.msk.bf16.mxu0 %vm1687_vm0, %v21287_v4 }
 0x756   : > { %11043 = vmatpush1.bf16.msra.mxu1 %v17015_v45  ;;  %11829 = vmatpush1.bf16.msra.mxu0 %v17024_v57  ;;  %v17058_v45 = vld [vmem:[%s22852_s9 + $0x320] ss:$36 sps:$4 sm:$0xff]  }
 0x757   : > { %11044 = vmatprep.subr.bf16.mxu1 %v23025_v22  ;;  %11830 = vmatprep.subr.bf16.mxu0 %v17030_v3  ;;  %v17063_v57 = vld [vmem:[%s22852_s9 + $0x4] ss:$36 sps:$4 sm:$0xff]   ;;  %v17075_v3 = vld [vmem:[%s22852_s9 + $0x1c] ss:$36 sps:$4 sm:$0xff]  }
 0x75a   : > { %11045 = vmatpush1.bf16.msra.mxu1 %v17019_v17  ;;  %11831 = vmatpush1.bf16.msra.mxu0 %v17028_v41  ;;  %v17061_v17 = vld [vmem:[%s22852_s9] ss:$36 sps:$4 sm:$0xff]   ;;  %v17066_v41 = vld [vmem:[%s22852_s9 + $0x4c] ss:$36 sps:$4 sm:$0xff]  }
 0x75b   : > { %11046 = vmatprep.subr.bf16.mxu1 %v23025_v22  ;;  %11832 = vmatprep.subr.bf16.mxu0 %v17033_v31  ;;  %v17073_v31 = vld [vmem:[%s22852_s9 + $0x18] ss:$36 sps:$4 sm:$0xff]  }
 0x75c   : > { %10865 = vmatmul.mubr.bf16.gmra.mrb[216].mxu1 %v21285_v9  ;;  %10978 = vmatmul.mubr.bf16.gmra.mrb[104].mxu0 %v21285_v9 }
 0x75d   : > { %14689 = vmatprep.mubr.msk.bf16.mxu1 %vm1687_vm0, %v21325_v35  ;;  %14697 = vmatprep.mubr.msk.bf16.mxu0 %vm1687_vm0, %v21325_v35 }
 0x75e   : > { %11047 = vmatpush1.bf16.msra.mxu1 %v17023_v14  ;;  %11833 = vmatpush1.bf16.msra.mxu0 %v17031_v38  ;;  %v17064_v14 = vld [vmem:[%s22852_s9 + $0x48] ss:$36 sps:$4 sm:$0xff]   ;;  %v17076_v38 = vld [vmem:[%s22852_s9 + $0x60] ss:$36 sps:$4 sm:$0xff]  }
 0x75f   : > { %11048 = vmatprep.subr.bf16.mxu1 %v23025_v22  ;;  %11834 = vmatprep.subr.bf16.mxu0 %v17037_v48  ;;  %v17084_v48 = vld [vmem:[%s22852_s9 + $0xac] ss:$36 sps:$4 sm:$0xff]  }
 0x762   : > { %11049 = vmatpush1.bf16.msra.mxu1 %v17027_v19  ;;  %11835 = vmatpush1.bf16.msra.mxu0 %v17035_v33  ;;  %v17072_v19 = vld [vmem:[%s22852_s9 + $0xdc] ss:$36 sps:$4 sm:$0xff]   ;;  %v17082_v33 = vld [vmem:[%s22852_s9 + $0xa8] ss:$36 sps:$4 sm:$0xff]  }
 0x763   : > { %11050 = vmatprep.subr.bf16.mxu1 %v23025_v22  ;;  %11836 = vmatprep.subr.bf16.mxu0 %v17041_v8  ;;  %v17090_v8 = vld [vmem:[%s22852_s9 + $0xf4] ss:$36 sps:$4 sm:$0xff]  }
 0x764   : > { %10875 = vmatmul.mubr.bf16.gmra.mrb[220].mxu1 %v21323_v13  ;;  %10988 = vmatmul.mubr.bf16.gmra.mrb[108].mxu0 %v21323_v13 }
 0x765   : > { %14690 = vmatprep.mubr.msk.bf16.mxu1 %vm1687_vm0, %v21363_v15  ;;  %14698 = vmatprep.mubr.msk.bf16.mxu0 %vm1687_vm0, %v21363_v15 }
 0x766   : > { %11051 = vmatpush1.bf16.msra.mxu1 %v17034_v25  ;;  %11837 = vmatpush1.bf16.msra.mxu0 %v17039_v18  ;;  %v17070_v25 = vld [vmem:[%s22852_s9 + $0xd8] ss:$36 sps:$4 sm:$0xff]   ;;  %v17088_v18 = vld [vmem:[%s22852_s9 + $0xf0] ss:$36 sps:$4 sm:$0xff]  }
 0x767   : > { %11052 = vmatprep.subr.bf16.mxu1 %v23025_v22  ;;  %11838 = vmatprep.subr.bf16.mxu0 %v17045_v44  ;;  %v17096_v44 = vld [vmem:[%s22852_s9 + $0x13c] ss:$36 sps:$4 sm:$0xff]  }
 0x76a   : > { %11053 = vmatpush1.bf16.msra.mxu1 %v17038_v10  ;;  %11839 = vmatpush1.bf16.msra.mxu0 %v17043_v37  ;;  %v17087_v10 = vld [vmem:[%s22852_s9 + $0x16c] ss:$36 sps:$4 sm:$0xff]   ;;  %v17094_v37 = vld [vmem:[%s22852_s9 + $0x138] ss:$36 sps:$4 sm:$0xff]  }
 0x76b   : > { %11054 = vmatprep.subr.bf16.mxu1 %v23025_v22  ;;  %11840 = vmatprep.subr.bf16.mxu0 %v17048_v46  ;;  %v17099_v46 = vld [vmem:[%s22852_s9 + $0x184] ss:$36 sps:$4 sm:$0xff]  }
 0x76c   : > { %10885 = vmatmul.mubr.bf16.gmra.mrb[224].mxu1 %v21361_v55  ;;  %10998 = vmatmul.mubr.bf16.gmra.mrb[112].mxu0 %v21361_v55 }
 0x76d   : > { %14691 = vmatprep.mubr.msk.bf16.mxu1 %vm1687_vm0, %v21401_v60  ;;  %14699 = vmatprep.mubr.msk.bf16.mxu0 %vm1687_vm0, %v21401_v60 }
 0x76e   : > { %11055 = vmatpush1.bf16.msra.mxu1 %v17042_v11  ;;  %11841 = vmatpush1.bf16.msra.mxu0 %v17046_v16  ;;  %v17085_v11 = vld [vmem:[%s22852_s9 + $0x168] ss:$36 sps:$4 sm:$0xff]   ;;  %v17097_v16 = vld [vmem:[%s22852_s9 + $0x180] ss:$36 sps:$4 sm:$0xff]  }
 0x76f   : > { %11056 = vmatprep.subr.bf16.mxu1 %v23025_v22  ;;  %11842 = vmatprep.subr.bf16.mxu0 %v17052_v2  ;;  %v17105_v2 = vld [vmem:[%s22852_s9 + $0x1cc] ss:$36 sps:$4 sm:$0xff]  }
 0x772   : > { %11057 = vmatpush1.bf16.msra.mxu1 %v17049_v58  ;;  %11843 = vmatpush1.bf16.msra.mxu0 %v17050_v28  ;;  %v17102_v58 = vld [vmem:[%s22852_s9 + $0x1fc] ss:$36 sps:$4 sm:$0xff]   ;;  %v17103_v28 = vld [vmem:[%s22852_s9 + $0x1c8] ss:$36 sps:$4 sm:$0xff]  }
 0x773   : > { %11058 = vmatprep.subr.bf16.mxu1 %v23025_v22  ;;  %11844 = vmatprep.subr.bf16.mxu0 %v17056_v34  ;;  %v17111_v34 = vld [vmem:[%s22852_s9 + $0x214] ss:$36 sps:$4 sm:$0xff]  }
 0x774   : > { %10895 = vmatmul.mubr.bf16.gmra.mrb[228].mxu1 %v21399_v30  ;;  %11008 = vmatmul.mubr.bf16.gmra.mrb[116].mxu0 %v21399_v30 }
 0x775   : > { %14692 = vmatprep.mubr.msk.bf16.mxu1 %vm1687_vm0, %v21436_v12  ;;  %14700 = vmatprep.mubr.msk.bf16.mxu0 %vm1687_vm0, %v21436_v12 }
 0x776   : > { %11059 = vmatpush1.bf16.msra.mxu1 %v17053_v61  ;;  %11845 = vmatpush1.bf16.msra.mxu0 %v17054_v47  ;;  %v17100_v61 = vld [vmem:[%s22852_s9 + $0x1f8] ss:$36 sps:$4 sm:$0xff]   ;;  %v17109_v47 = vld [vmem:[%s22852_s9 + $0x210] ss:$36 sps:$4 sm:$0xff]  }
 0x777   : > { %11060 = vmatprep.subr.bf16.mxu1 %v23025_v22  ;;  %11846 = vmatprep.subr.bf16.mxu0 %v17060_v59  ;;  %v17117_v59 = vld [vmem:[%s22852_s9 + $0x25c] ss:$36 sps:$4 sm:$0xff]  }
 0x77a   : > { %11061 = vmatpush1.bf16.msra.mxu1 %v17057_v54  ;;  %11847 = vmatpush1.bf16.msra.mxu0 %v17058_v45  ;;  %v17114_v54 = vld [vmem:[%s22852_s9 + $0x28c] ss:$36 sps:$4 sm:$0xff]   ;;  %v17115_v45 = vld [vmem:[%s22852_s9 + $0x258] ss:$36 sps:$4 sm:$0xff]  }
 0x77b   : > { %11711 = vmatprep.subr.bf16.mxu1 %v17063_v57  ;;  %12050 = vmatprep.subr.bf16.mxu0 %v17075_v3  ;;  %v17120_v57 = vld [vmem:[%s22852_s9 + $0x2a4] ss:$36 sps:$4 sm:$0xff]  }
 0x77c   : > { %10905 = vmatmul.mubr.bf16.gmra.mrb[232].mxu1 %v21434_v23  ;;  %11018 = vmatmul.mubr.bf16.gmra.mrb[120].mxu0 %v21434_v23  ;;  %v17112_v3 = vld [vmem:[%s22852_s9 + $0x288] ss:$36 sps:$4 sm:$0xff]  }
 0x77d   : > { %14693 = vmatprep.mubr.msk.bf16.mxu1 %vm1687_vm0, %v21451_v24  ;;  %14701 = vmatprep.mubr.msk.bf16.mxu0 %vm1687_vm0, %v21451_v24 }
 0x784   : > { %10915 = vmatmul.mubr.bf16.gmra.mrb[236].mxu1 %v21449_v26  ;;  %11028 = vmatmul.mubr.bf16.gmra.mrb[124].mxu0 %v21449_v26 }
 0x785   : > { %14702 = vmatprep.mubr.msk.bf16.mxu1 %vm1687_vm0, %v21211_v20  ;;  %14826 = vmatprep.mubr.msk.bf16.mxu0 %vm1687_vm0, %v20104_v43  ;;  %v17078_v20 = vld [vmem:[%s22852_s9 + $0x64] ss:$36 sps:$4 sm:$0xff]  }
 0x78c   : > { %11071 = vmatmul.mubr.bf16.vlgmr.msra.gmra.mrb[240].mxu1 %v21209_v52  ;;  %11857 = vmatmul.mubr.bf16.vlgmr.msra.gmra.mrb[64].mxu0 %v20102_v51  ;;  %v17069_v52 = vld [vmem:[%s22852_s9 + $0x94] ss:$36 sps:$4 sm:$0xff]  }
 0x78d   : > { %14703 = vmatprep.mubr.msk.bf16.mxu1 %vm1687_vm0, %v21249_v32  ;;  %11712 = vmatpush1.bf16.msra.mxu1 %v17061_v17  ;;  %v17067_v32 = vld [vmem:[%s22852_s9 + $0x90] ss:$36 sps:$4 sm:$0xff]  }
 0x78e   : > { %14827 = vmatprep.mubr.msk.bf16.mxu0 %vm1687_vm0, %v20116_v53  ;;  %11713 = vmatprep.subr.bf16.mxu1 %v17066_v41  ;;  %v17123_v17 = vld [vmem:[%s22852_s9 + $0x2d4] ss:$36 sps:$4 sm:$0xff]   ;;  %v17126_v41 = vld [vmem:[%s22852_s9 + $0x2ec] ss:$36 sps:$4 sm:$0xff]  }
 0x78f   : > { %12051 = vmatpush1.bf16.msra.mxu0 %v17073_v31  ;;  %v17124_v31 = vld [vmem:[%s22852_s9 + $0x2e8] ss:$36 sps:$4 sm:$0xff]  }
 0x790   : > { %12052 = vmatprep.subr.bf16.mxu0 %v17078_v20  ;;  %v17129_v20 = vld [vmem:[%s22852_s9 + $0x31c] ss:$36 sps:$4 sm:$0xff]  }
 0x791   : > { %11714 = vmatpush1.bf16.msra.mxu1 %v17064_v14  ;;  %v17132_v14 = vld [vmem:[%s22852_s9 + $0x334] ss:$36 sps:$4 sm:$0xff]  }
 0x792   : > { %11715 = vmatprep.subr.bf16.mxu1 %v17069_v52  ;;  %v17127_v52 = vld [vmem:[%s22852_s9 + $0x318] ss:$36 sps:$4 sm:$0xff]  }
 0x793   : > { %12053 = vmatpush1.bf16.msra.mxu0 %v17076_v38  ;;  %v17135_v38 = vld [vmem:[%s22852_s9 + $0x14] ss:$36 sps:$4 sm:$0xff]  }
 0x794   : > { %11079 = vmatmul.mubr.bf16.gmra.mrb[244].mxu1 %v21247_v56  ;;  %11867 = vmatmul.mubr.bf16.gmra.mrb[68].mxu0 %v20114_v40  ;;  %v17081_v56 = vld [vmem:[%s22852_s9 + $0x124] ss:$36 sps:$4 sm:$0xff]  }
 0x795   : > { %14704 = vmatprep.mubr.msk.bf16.mxu1 %vm1687_vm0, %v21287_v4  ;;  %14828 = vmatprep.mubr.msk.bf16.mxu0 %vm1687_vm0, %v20128_v27  ;;  %v17079_v4 = vld [vmem:[%s22852_s9 + $0x120] ss:$36 sps:$4 sm:$0xff]  }
 0x796   : > { %11716 = vmatpush1.bf16.msra.mxu1 %v17067_v32  ;;  %12054 = vmatprep.subr.bf16.mxu0 %v17084_v48  ;;  %v17141_v32 = vld [vmem:[%s22852_s9 + $0xa4] ss:$36 sps:$4 sm:$0xff]  }
 0x797   : > { %11717 = vmatprep.subr.bf16.mxu1 %v17072_v19  ;;  %12055 = vmatpush1.bf16.msra.mxu0 %v17082_v33  ;;  %v21850_v48 = vld [vmem:[%s22852_s9 + $0x68] ss:$36 sps:$4 sm:$0xff]   ;;  %v17139_v19 = vld [vmem:[%s22852_s9 + $0xa0] ss:$36 sps:$4 sm:$0xff]  }
 0x798   : > { %12056 = vmatprep.subr.bf16.mxu0 %v17090_v8  ;;  %v17144_v33 = vld [vmem:[%s22852_s9 + $0xec] ss:$36 sps:$4 sm:$0xff]  }
 0x799   : > { %v21863_v8 = vld [vmem:[%s22852_s9 + $0xb0] ss:$36 sps:$4 sm:$0xff]  }
 0x79a   : > { %11718 = vmatpush1.bf16.msra.mxu1 %v17070_v25  ;;  %v17142_v25 = vld [vmem:[%s22852_s9 + $0xe8] ss:$36 sps:$4 sm:$0xff]  }
 0x79b   : > { %11719 = vmatprep.subr.bf16.mxu1 %v17081_v56  ;;  %12057 = vmatpush1.bf16.msra.mxu0 %v17088_v18  ;;  %v17149_v56 = vld [vmem:[%s22852_s9 + $0x134] ss:$36 sps:$4 sm:$0xff]  }
 0x79c   : > { %11087 = vmatmul.mubr.bf16.gmra.mrb[248].mxu1 %v21285_v9  ;;  %11877 = vmatmul.mubr.bf16.gmra.mrb[72].mxu0 %v20126_v7  ;;  %v17093_v9 = vld [vmem:[%s22852_s9 + $0x1b4] ss:$36 sps:$4 sm:$0xff]  }
 0x79d   : > { %14705 = vmatprep.mubr.msk.bf16.mxu1 %vm1687_vm0, %v21325_v35  ;;  %14829 = vmatprep.mubr.msk.bf16.mxu0 %vm1687_vm0, %v20140_v39  ;;  %v17091_v35 = vld [vmem:[%s22852_s9 + $0x1b0] ss:$36 sps:$4 sm:$0xff]   ;;  %v21882_v18 = vld [vmem:[%s22852_s9 + $0xf8] ss:$36 sps:$4 sm:$0xff]  }
 0x79e   : > { %11720 = vmatpush1.bf16.msra.mxu1 %v17079_v4  ;;  %12058 = vmatprep.subr.bf16.mxu0 %v17096_v44  ;;  %v17147_v4 = vld [vmem:[%s22852_s9 + $0x130] ss:$36 sps:$4 sm:$0xff]   ;;  %v17153_v44 = vld [vmem:[%s22852_s9 + $0x17c] ss:$36 sps:$4 sm:$0xff]  }
 0x79f   : > { %11721 = vmatprep.subr.bf16.mxu1 %v17087_v10  ;;  %12059 = vmatpush1.bf16.msra.mxu0 %v17094_v37  ;;  %v21895_v10 = vld [vmem:[%s22852_s9 + $0x140] ss:$36 sps:$4 sm:$0xff]   ;;  %v17151_v37 = vld [vmem:[%s22852_s9 + $0x178] ss:$36 sps:$4 sm:$0xff]  }
 0x7a0   : > { %12060 = vmatprep.subr.bf16.mxu0 %v17099_v46  ;;  %v17157_v46 = vld [vmem:[%s22852_s9 + $0x1c4] ss:$36 sps:$4 sm:$0xff]  }
 0x7a2   : > { %11722 = vmatpush1.bf16.msra.mxu1 %v17085_v11  ;;  %v21914_v11 = vld [vmem:[%s22852_s9 + $0x188] ss:$36 sps:$4 sm:$0xff]  }
 0x7a3   : > { %11723 = vmatprep.subr.bf16.mxu1 %v17093_v9  ;;  %12061 = vmatpush1.bf16.msra.mxu0 %v17097_v16  ;;  %v17155_v9 = vld [vmem:[%s22852_s9 + $0x1c0] ss:$36 sps:$4 sm:$0xff]   ;;  %v17162_v16 = vld [vmem:[%s22852_s9 + $0x20c] ss:$36 sps:$4 sm:$0xff]  }
 0x7a4   : > { %11095 = vmatmul.mubr.bf16.gmra.mrb[252].mxu1 %v21323_v13  ;;  %11887 = vmatmul.mubr.bf16.gmra.mrb[76].mxu0 %v20138_v29  ;;  %v17108_v13 = vld [vmem:[%s22852_s9 + $0x244] ss:$36 sps:$4 sm:$0xff]  }
 0x7a5   : > { %14706 = vmatprep.mubr.msk.bf16.mxu1 %vm1687_vm0, %v21363_v15  ;;  %14830 = vmatprep.mubr.msk.bf16.mxu0 %vm1687_vm0, %v20152_v21  ;;  %v17106_v15 = vld [vmem:[%s22852_s9 + $0x240] ss:$36 sps:$4 sm:$0xff]  }
 0x7a6   : > { %11724 = vmatpush1.bf16.msra.mxu1 %v17091_v35  ;;  %12062 = vmatprep.subr.bf16.mxu0 %v17105_v2  ;;  %v21927_v35 = vld [vmem:[%s22852_s9 + $0x1d0] ss:$36 sps:$4 sm:$0xff]   ;;  %v17160_v2 = vld [vmem:[%s22852_s9 + $0x208] ss:$36 sps:$4 sm:$0xff]  }
 0x7a7   : > { %11725 = vmatprep.subr.bf16.mxu1 %v17102_v58  ;;  %12063 = vmatpush1.bf16.msra.mxu0 %v17103_v28  ;;  %v17166_v58 = vld [vmem:[%s22852_s9 + $0x254] ss:$36 sps:$4 sm:$0xff]  }
 0x7a8   : > { %12064 = vmatprep.subr.bf16.mxu0 %v17111_v34  ;;  %v21946_v28 = vld [vmem:[%s22852_s9 + $0x218] ss:$36 sps:$4 sm:$0xff]   ;;  %v17164_v34 = vld [vmem:[%s22852_s9 + $0x250] ss:$36 sps:$4 sm:$0xff]  }
 0x7aa   : > { %11726 = vmatpush1.bf16.msra.mxu1 %v17100_v61  ;;  %v17170_v61 = vld [vmem:[%s22852_s9 + $0x29c] ss:$36 sps:$4 sm:$0xff]  }
 0x7ab   : > { %11727 = vmatprep.subr.bf16.mxu1 %v17108_v13  ;;  %12065 = vmatpush1.bf16.msra.mxu0 %v17109_v47  ;;  %v21959_v13 = vld [vmem:[%s22852_s9 + $0x260] ss:$36 sps:$4 sm:$0xff]   ;;  %v17168_v47 = vld [vmem:[%s22852_s9 + $0x298] ss:$36 sps:$4 sm:$0xff]  }
 0x7ac   : > { %11103 = vmatmul.mubr.bf16.gmra.mrb[0].mxu1 %v21361_v55  ;;  %11897 = vmatmul.mubr.bf16.gmra.mrb[80].mxu0 %v20150_v6  ;;  %v17118_v55 = vld [vmem:[%s22852_s9 + $0x2a0] ss:$36 sps:$4 sm:$0xff]  }
 0x7ad   : > { %14707 = vmatprep.mubr.msk.bf16.mxu1 %vm1687_vm0, %v21401_v60  ;;  %14831 = vmatprep.mubr.msk.bf16.mxu0 %vm1687_vm0, %v20164_v1  ;;  %v17121_v60 = vld [vmem:[%s22852_s9 + $0x2d0] ss:$36 sps:$4 sm:$0xff]  }
 0x7ae   : > { %11728 = vmatpush1.bf16.msra.mxu1 %v17106_v15  ;;  %12066 = vmatprep.subr.bf16.mxu0 %v17117_v59  ;;  %v21975_v15 = vld [vmem:[%s22852_s9 + $0x2a8] ss:$36 sps:$4 sm:$0xff]  }
 0x7af   : > { %11729 = vmatprep.subr.bf16.mxu1 %v17114_v54  ;;  %12067 = vmatpush1.bf16.msra.mxu0 %v17115_v45  ;;  %v17175_v59 = vld [vmem:[%s22852_s9 + $0x2e4] ss:$36 sps:$4 sm:$0xff]   ;;  %v21988_v45 = vld [vmem:[%s22852_s9 + $0x2f0] ss:$36 sps:$4 sm:$0xff]  }
 0x7b0   : > { %12068 = vmatprep.subr.bf16.mxu0 %v17120_v57  ;;  %v17173_v54 = vld [vmem:[%s22852_s9 + $0x2e0] ss:$36 sps:$4 sm:$0xff]   ;;  %v17179_v57 = vld [vmem:[%s22852_s9 + $0x32c] ss:$36 sps:$4 sm:$0xff]  }
 0x7b2   : > { %11730 = vmatpush1.bf16.msra.mxu1 %v17112_v3  ;;  %v17177_v3 = vld [vmem:[%s22852_s9 + $0x328] ss:$36 sps:$4 sm:$0xff]  }
 0x7b3   : > { %12069 = vmatpush1.bf16.msra.mxu0 %v17118_v55  ;;  %11731 = vmatprep.subr.bf16.mxu1 %v17123_v17  ;;  %v17180_v55 = vld [vmem:[%s22852_s9 + $0x338] ss:$36 sps:$4 sm:$0xff]  }
 0x7b4   : > { %11111 = vmatmul.mubr.bf16.gmra.mrb[4].mxu1 %v21399_v30  ;;  %11907 = vmatmul.mubr.bf16.gmra.mrb[84].mxu0 %v20162_v49  ;;  %v17130_v30 = vld [vmem:[%s22852_s9 + $0x330] ss:$36 sps:$4 sm:$0xff]  }
 0x7b5   : > { %14708 = vmatprep.mubr.msk.bf16.mxu1 %vm1687_vm0, %v21436_v12  ;;  %14832 = vmatprep.mubr.msk.bf16.mxu0 %vm1687_vm0, %v20176_v5  ;;  %v17138_v12 = vld [vmem:[%s22852_s9 + $0x5c] ss:$36 sps:$4 sm:$0xff]  }
 0x7b6   : > { %11732 = vmatpush1.bf16.msra.mxu1 %v17121_v60  ;;  %12070 = vmatprep.subr.bf16.mxu0 %v17126_v41 }
 0x7b7   : > { %12071 = vmatpush1.bf16.msra.mxu0 %v17124_v31  ;;  %11733 = vmatprep.subr.bf16.mxu1 %v17129_v20 }
 0x7b8   : > { %12072 = vmatprep.subr.bf16.mxu0 %v17132_v14 }
 0x7ba   : > { %11734 = vmatpush1.bf16.msra.mxu1 %v17127_v52 }
 0x7bb   : > { %12073 = vmatpush1.bf16.msra.mxu0 %v17130_v30  ;;  %11937 = vmatprep.subr.bf16.mxu1 %v17135_v38 }
 0x7bc   : > { %11119 = vmatmul.mubr.bf16.gmra.mrb[8].mxu1 %v21434_v23  ;;  %11917 = vmatmul.mubr.bf16.gmra.mrb[88].mxu0 %v20174_v50  ;;  %v17133_v23 = vld [vmem:[%s22852_s9 + $0x10] ss:$36 sps:$4 sm:$0xff]  }
 0x7bd   : > { %14709 = vmatprep.mubr.msk.bf16.mxu1 %vm1687_vm0, %v21451_v24  ;;  %14833 = vmatprep.mubr.msk.bf16.mxu0 %vm1687_vm0, %v20187_v62  ;;  %v17136_v24 = vld [vmem:[%s22852_s9 + $0x58] ss:$36 sps:$4 sm:$0xff]  }
 0x7be   : > { %12163 = vmatprep.subr.bf16.mxu0 %v23025_v22 }
 0x7c4   : > { %11127 = vmatmul.mubr.bf16.gmra.mrb[12].mxu1 %v21449_v26  ;;  %11927 = vmatmul.mubr.bf16.gmra.mrb[92].mxu0 %v20185_v63  ;;  %v21832_v26 = vld [vmem:[%s22852_s9 + $0x20] ss:$36 sps:$4 sm:$0xff]  }
 0x7c5   : > { %14818 = vmatprep.mubr.msk.bf16.mxu1 %vm1687_vm0, %v20104_v43  ;;  %14842 = vmatprep.mubr.msk.bf16.mxu0 %vm1687_vm0, %v20104_v43 }
 0x7cc   : > { %11744 = vmatmul.mubr.bf16.vlgmr.msra.gmra.mrb[176].mxu1 %v20102_v51  ;;  %12083 = vmatmul.mubr.bf16.vlgmr.msra.gmra.mrb[96].mxu0 %v20102_v51 }
 0x7cd   : > { %14819 = vmatprep.mubr.msk.bf16.mxu1 %vm1687_vm0, %v20116_v53  ;;  %11938 = vmatpush1.bf16.msra.mxu1 %v17133_v23 }
 0x7ce   : > { %14843 = vmatprep.mubr.msk.bf16.mxu0 %vm1687_vm0, %v20116_v53  ;;  %11939 = vmatprep.subr.bf16.mxu1 %v17138_v12 }
 0x7cf   : > { %12164 = vmatpush1.bf16.msra.mxu0 %v21832_v26 }
 0x7d0   : > { %12165 = vmatprep.subr.bf16.mxu0 %v23025_v22 }
 0x7d1   : > { %11940 = vmatpush1.bf16.msra.mxu1 %v17136_v24 }
 0x7d2   : > { %11941 = vmatprep.subr.bf16.mxu1 %v17141_v32 }
 0x7d3   : > { %12166 = vmatpush1.bf16.msra.mxu0 %v21850_v48 }
 0x7d4   : > { %11754 = vmatmul.mubr.bf16.gmra.mrb[180].mxu1 %v20114_v40  ;;  %12093 = vmatmul.mubr.bf16.gmra.mrb[100].mxu0 %v20114_v40 }
 0x7d5   : > { %14820 = vmatprep.mubr.msk.bf16.mxu1 %vm1687_vm0, %v20128_v27  ;;  %14844 = vmatprep.mubr.msk.bf16.mxu0 %vm1687_vm0, %v20128_v27 }
 0x7d6   : > { %11942 = vmatpush1.bf16.msra.mxu1 %v17139_v19  ;;  %12167 = vmatprep.subr.bf16.mxu0 %v23025_v22 }
 0x7d7   : > { %11943 = vmatprep.subr.bf16.mxu1 %v17144_v33  ;;  %12168 = vmatpush1.bf16.msra.mxu0 %v21863_v8 }
 0x7d8   : > { %12169 = vmatprep.subr.bf16.mxu0 %v23025_v22 }
 0x7da   : > { %11944 = vmatpush1.bf16.msra.mxu1 %v17142_v25 }
 0x7db   : > { %11945 = vmatprep.subr.bf16.mxu1 %v17149_v56  ;;  %12170 = vmatpush1.bf16.msra.mxu0 %v21882_v18 }
 0x7dc   : > { %11764 = vmatmul.mubr.bf16.gmra.mrb[184].mxu1 %v20126_v7  ;;  %12103 = vmatmul.mubr.bf16.gmra.mrb[104].mxu0 %v20126_v7 }
 0x7dd   : > { %14821 = vmatprep.mubr.msk.bf16.mxu1 %vm1687_vm0, %v20140_v39  ;;  %14845 = vmatprep.mubr.msk.bf16.mxu0 %vm1687_vm0, %v20140_v39 }
 0x7de   : > { %11946 = vmatpush1.bf16.msra.mxu1 %v17147_v4  ;;  %12171 = vmatprep.subr.bf16.mxu0 %v23025_v22 }
 0x7df   : > { %11947 = vmatprep.subr.bf16.mxu1 %v17153_v44  ;;  %12172 = vmatpush1.bf16.msra.mxu0 %v21895_v10 }
 0x7e0   : > { %12173 = vmatprep.subr.bf16.mxu0 %v23025_v22 }
 0x7e2   : > { %11948 = vmatpush1.bf16.msra.mxu1 %v17151_v37  ;;  %v17218_v37 = vld [vmem:[%s17508_s18 + $0x74] sm:$0xff] }
 0x7e3   : > { %11949 = vmatprep.subr.bf16.mxu1 %v17157_v46  ;;  %12174 = vmatpush1.bf16.msra.mxu0 %v21914_v11  ;;  %v12482_v46 = vunpack.c.l.bf16 %v17218_v37 }
 0x7e4   : > { %11774 = vmatmul.mubr.bf16.gmra.mrb[188].mxu1 %v20138_v29  ;;  %12113 = vmatmul.mubr.bf16.gmra.mrb[108].mxu0 %v20138_v29 }
 0x7e5   : > { %14822 = vmatprep.mubr.msk.bf16.mxu1 %vm1687_vm0, %v20152_v21  ;;  %14846 = vmatprep.mubr.msk.bf16.mxu0 %vm1687_vm0, %v20152_v21 }
 0x7e6   : > { %11950 = vmatpush1.bf16.msra.mxu1 %v17155_v9  ;;  %12175 = vmatprep.subr.bf16.mxu0 %v23025_v22 }
 0x7e7   : > { %11951 = vmatprep.subr.bf16.mxu1 %v17162_v16  ;;  %12176 = vmatpush1.bf16.msra.mxu0 %v21927_v35 }
 0x7e8   : > { %12177 = vmatprep.subr.bf16.mxu0 %v23025_v22 }
 0x7ea   : > { %11952 = vmatpush1.bf16.msra.mxu1 %v17160_v2 }
 0x7eb   : > { %11953 = vmatprep.subr.bf16.mxu1 %v17166_v58  ;;  %12178 = vmatpush1.bf16.msra.mxu0 %v21946_v28 }
 0x7ec   : > { %11784 = vmatmul.mubr.bf16.gmra.mrb[192].mxu1 %v20150_v6  ;;  %12123 = vmatmul.mubr.bf16.gmra.mrb[112].mxu0 %v20150_v6 }
 0x7ed   : > { %14823 = vmatprep.mubr.msk.bf16.mxu1 %vm1687_vm0, %v20164_v1  ;;  %14847 = vmatprep.mubr.msk.bf16.mxu0 %vm1687_vm0, %v20164_v1 }
 0x7ee   : > { %11954 = vmatpush1.bf16.msra.mxu1 %v17164_v34  ;;  %12179 = vmatprep.subr.bf16.mxu0 %v23025_v22 }
 0x7ef   : > { %11955 = vmatprep.subr.bf16.mxu1 %v17170_v61  ;;  %12180 = vmatpush1.bf16.msra.mxu0 %v21959_v13 }
 0x7f0   : > { %12181 = vmatprep.subr.bf16.mxu0 %v23025_v22 }
 0x7f2   : > { %11956 = vmatpush1.bf16.msra.mxu1 %v17168_v47 }
 0x7f3   : > { %12182 = vmatpush1.bf16.msra.mxu0 %v21975_v15  ;;  %11957 = vmatprep.subr.bf16.mxu1 %v17175_v59 }
 0x7f4   : > { %11794 = vmatmul.mubr.bf16.gmra.mrb[196].mxu1 %v20162_v49  ;;  %12133 = vmatmul.mubr.bf16.gmra.mrb[116].mxu0 %v20162_v49 }
 0x7f5   : > { %14824 = vmatprep.mubr.msk.bf16.mxu1 %vm1687_vm0, %v20176_v5  ;;  %14848 = vmatprep.mubr.msk.bf16.mxu0 %vm1687_vm0, %v20176_v5 }
 0x7f6   : > { %11958 = vmatpush1.bf16.msra.mxu1 %v17173_v54  ;;  %12183 = vmatprep.subr.bf16.mxu0 %v23025_v22 }
 0x7f7   : > { %12184 = vmatpush1.bf16.msra.mxu0 %v21988_v45  ;;  %11959 = vmatprep.subr.bf16.mxu1 %v17179_v57  ;;  %v17219_v57 = vld [vmem:[%s17508_s18 + $0x98] sm:$0xff] }
 0x7f8   : > { %12185 = vmatprep.subr.bf16.mxu0 %v23025_v22 }
 0x7fa   : > { %11960 = vmatpush1.bf16.msra.mxu1 %v17177_v3  ;;  %v12491_v3 = vunpack.c.l.bf16 %v17219_v57 }
 0x7fb   : > { %12186 = vmatpush1.bf16.msra.mxu0 %v17180_v55  ;;  %15348 = vmatprep.subr.bf16.mxu1 %v23025_v22 }
 0x7fc   : > { %11804 = vmatmul.mubr.bf16.gmra.mrb[200].mxu1 %v20174_v50  ;;  %12143 = vmatmul.mubr.bf16.gmra.mrb[120].mxu0 %v20174_v50 }
 0x7fd   : > { %14825 = vmatprep.mubr.msk.bf16.mxu1 %vm1687_vm0, %v20187_v62  ;;  %14849 = vmatprep.mubr.msk.bf16.mxu0 %vm1687_vm0, %v20187_v62 }
 0x804   : > { %11814 = vmatmul.mubr.bf16.gmra.mrb[204].mxu1 %v20185_v63  ;;  %12153 = vmatmul.mubr.bf16.gmra.mrb[124].mxu0 %v20185_v63 }
 0x805   : > { %14834 = vmatprep.mubr.msk.bf16.mxu1 %vm1687_vm0, %v20104_v43  ;;  %14850 = vmatprep.mubr.msk.bf16.mxu0 %vm1687_vm0, %v20104_v43  ;;  %v12278_v43 = vsub.s32 3, %v20072_v42 }
 0x80c   : > { %11970 = vmatmul.mubr.bf16.vlgmr.msra.gmra.mrb[208].mxu1 %v20102_v51  ;;  %12196 = vmatmul.mubr.bf16.vlgmr.msra.gmra.mrb[128].mxu0 %v20102_v51  ;;  %v22087_v51 = vld [vmem:[%s22854_s11] sm:$0xff] }
 0x80d   : > { %14835 = vmatprep.mubr.msk.bf16.mxu1 %vm1687_vm0, %v20116_v53  ;;  %15360 = vmatpush1.bf16.msra.mxu1 %v21832_v26 }
 0x80e   : > { %14851 = vmatprep.mubr.msk.bf16.mxu0 %vm1687_vm0, %v20116_v53  ;;  %15349 = vmatprep.subr.bf16.mxu1 %v23025_v22  ;;  %v22097_v53 = vrot.slane %v22087_v51, %v12278_v43 }
 0x811   : > { %15361 = vmatpush1.bf16.msra.mxu1 %v21850_v48  ;;  %v17217_v48 = vld [vmem:[%s17508_s18 + $0x50] sm:$0xff] }
 0x812   : > { %15350 = vmatprep.subr.bf16.mxu1 %v23025_v22  ;;  %v12473_v19 = vunpack.c.l.bf16 %v17217_v48 }
 0x814   : > { %11980 = vmatmul.mubr.bf16.gmra.mrb[212].mxu1 %v20114_v40  ;;  %12204 = vmatmul.mubr.bf16.gmra.mrb[132].mxu0 %v20114_v40 }
 0x815   : > { %14836 = vmatprep.mubr.msk.bf16.mxu1 %vm1687_vm0, %v20128_v27  ;;  %14852 = vmatprep.mubr.msk.bf16.mxu0 %vm1687_vm0, %v20128_v27 }
 0x816   : > { %15362 = vmatpush1.bf16.msra.mxu1 %v21863_v8 }
 0x817   : > { %15351 = vmatprep.subr.bf16.mxu1 %v23025_v22 }
 0x81a   : > { %15363 = vmatpush1.bf16.msra.mxu1 %v21882_v18  ;;  %v12474_v18 = vunpack.c.h.bf16 %v17217_v48  ;;  %v17221_v48 = vld [vmem:[%s17508_s18 + $0xe0] sm:$0xff] }
 0x81b   : > { %15352 = vmatprep.subr.bf16.mxu1 %v23025_v22 }
 0x81c   : > { %11990 = vmatmul.mubr.bf16.gmra.mrb[216].mxu1 %v20126_v7  ;;  %12212 = vmatmul.mubr.bf16.gmra.mrb[136].mxu0 %v20126_v7  ;;  %v17215_v7 = vld [vmem:[%s17508_s18 + $0x8] sm:$0xff] }
 0x81d   : > { %14837 = vmatprep.mubr.msk.bf16.mxu1 %vm1687_vm0, %v20140_v39  ;;  %14853 = vmatprep.mubr.msk.bf16.mxu0 %vm1687_vm0, %v20140_v39  ;;  %v12455_v27 = vunpack.c.l.bf16 %v17215_v7 }
 0x81e   : > { %15364 = vmatpush1.bf16.msra.mxu1 %v21895_v10 }
 0x81f   : > { %15353 = vmatprep.subr.bf16.mxu1 %v23025_v22 }
 0x822   : > { %15365 = vmatpush1.bf16.msra.mxu1 %v21914_v11 }
 0x823   : > { %15354 = vmatprep.subr.bf16.mxu1 %v23025_v22 }
 0x824   : > { %12000 = vmatmul.mubr.bf16.gmra.mrb[220].mxu1 %v20138_v29  ;;  %12220 = vmatmul.mubr.bf16.gmra.mrb[140].mxu0 %v20138_v29 }
 0x825   : > { %14838 = vmatprep.mubr.msk.bf16.mxu1 %vm1687_vm0, %v20152_v21 }
 0x826   : > { %15366 = vmatpush1.bf16.msra.mxu1 %v21927_v35  ;;  %v12483_v35 = vunpack.c.h.bf16 %v17218_v37 }
 0x827   : > { %15355 = vmatprep.subr.bf16.mxu1 %v23025_v22 }
 0x82a   : > { %15367 = vmatpush1.bf16.msra.mxu1 %v21946_v28 }
 0x82b   : > { %15356 = vmatprep.subr.bf16.mxu1 %v23025_v22 }
 0x82c   : > { %12010 = vmatmul.mubr.bf16.gmra.mrb[224].mxu1 %v20150_v6 }
 0x82d   : > { %14839 = vmatprep.mubr.msk.bf16.mxu1 %vm1687_vm0, %v20164_v1 }
 0x82e   : > { %15368 = vmatpush1.bf16.msra.mxu1 %v21959_v13 }
 0x82f   : > { %15357 = vmatprep.subr.bf16.mxu1 %v23025_v22 }
 0x832   : > { %15369 = vmatpush1.bf16.msra.mxu1 %v21975_v15 }
 0x833   : > { %15358 = vmatprep.subr.bf16.mxu1 %v23025_v22 }
 0x834   : > { %12020 = vmatmul.mubr.bf16.gmra.mrb[228].mxu1 %v20162_v49 }
 0x835   : > { %14840 = vmatprep.mubr.msk.bf16.mxu1 %vm1687_vm0, %v20176_v5 }
 0x836   : > { %15370 = vmatpush1.bf16.msra.mxu1 %v21988_v45 }
 0x837   : > { %15359 = vmatprep.subr.bf16.mxu1 %v23025_v22  ;;  %v12274_v22 = vsub.s32 2, %v20072_v42 }
 0x839   : > { %v22092_v40 = vrot.slane %v22087_v51, %v12274_v22 }
 0x83a   : > { %15371 = vmatpush1.bf16.msra.mxu1 %v17180_v55 }
 0x83c   : > { %12030 = vmatmul.mubr.bf16.gmra.mrb[232].mxu1 %v20174_v50 }
 0x83d   : > { %14841 = vmatprep.mubr.msk.bf16.mxu1 %vm1687_vm0, %v20187_v62 }
 0x844   : > { %12040 = vmatmul.mubr.bf16.gmra.mrb[236].mxu1 %v20185_v63 }
 0x845   : > { %14854 = vmatprep.mubr.msk.bf16.mxu1 %vm1687_vm0, %v20152_v21 }
 0x84c   : > { %12228 = vmatmul.mubr.bf16.vlgmr.msra.gmra.mrb[16].mxu1 %v20150_v6  ;;  %v12456_v6 = vunpack.c.h.bf16 %v17215_v7 }
 0x84d   : > { %14855 = vmatprep.mubr.msk.bf16.mxu1 %vm1687_vm0, %v20164_v1 }
 0x854   : > { %12236 = vmatmul.mubr.bf16.gmra.mrb[20].mxu1 %v20162_v49 }
 0x855   : > { %14856 = vmatprep.mubr.msk.bf16.mxu1 %vm1687_vm0, %v20176_v5 }
 0x85c   : > { %12244 = vmatmul.mubr.bf16.gmra.mrb[24].mxu1 %v20174_v50  ;;  %v17216_v50 = vld [vmem:[%s17508_s18 + $0x2c] sm:$0xff] }
 0x85d   : > { %14857 = vmatprep.mubr.msk.bf16.mxu1 %vm1687_vm0, %v20187_v62  ;;  %v12464_v5 = vunpack.c.l.bf16 %v17216_v50  ;;  %v12465_v41 = vunpack.c.h.bf16 %v17216_v50  ;;  %vm13337_vm0 = vcmask 519168  }
 0x85f   : > { %v22100_v29 = vpop.f32.mrb[240].mxu1  ;;  %v11858_v39 = vpop.f32.mrb[64].mxu0 }
 0x860   : > { %v12311_v21 = vadd.f32 %v22092_v40, %v11858_v39  ;;  %v11074_v49 = vpop.f32.mrb[241].mxu1  ;;  %v11860_v1 = vpop.f32.mrb[65].mxu0 }
 0x861   : > { %v12312_v17 = vadd.f32 %v22097_v53, %v11860_v1  ;;  %v22106_v62 = vpop.f32.mrb[242].mxu1  ;;  %v11862_v60 = vpop.f32.mrb[66].mxu0  ;;  %v17220_v49 = vld [vmem:[%s17508_s18 + $0xbc] sm:$0xff] }
 0x862   : > { %v12599_v31 = vadd.f32 %v12455_v27, %v12311_v21  ;;  %v12320_v20 = vadd.f32 %v22092_v40, %v11862_v60  ;;  %v11077_v14 = vpop.f32.mrb[243].mxu1  ;;  %v11864_v52 = vpop.f32.mrb[67].mxu0  ;;  %v12492_v27 = vunpack.c.h.bf16 %v17219_v57  ;;  %v12500_v1 = vunpack.c.l.bf16 %v17220_v49 }
 0x863   : > { %v12600_v30 = vadd.f32 %v12456_v6, %v12312_v17  ;;  %v12321_v38 = vadd.f32 %v22097_v53, %v11864_v52 }
 0x864   : > { %v12743_v23 = vmax.f32 %v12599_v31, 0.0  ;;  %v12608_v12 = vadd.f32 %v12464_v5, %v12320_v20  ;;  %12252 = vmatmul.mubr.bf16.gmra.mrb[28].mxu1 %v20185_v63 }
 0x865   : > { %v12744_v26 = vmax.f32 %v12600_v30, 0.0  ;;  %v12609_v24 = vadd.f32 %v12465_v41, %v12321_v38  ;;  %v12501_v41 = vunpack.c.h.bf16 %v17220_v49 }
 0x866   : > { %v12752_v32 = vmax.f32 %v12608_v12, 0.0 }
 0x867   : > { %v14977_v33 = vpack.c.bf16 %v12744_v26, %v12743_v23  ;;  %v12753_v8 = vmax.f32 %v12609_v24, 0.0  ;;  %v22114_v25 = vpop.f32.mrb[244].mxu1  ;;  %v11868_v56 = vpop.f32.mrb[68].mxu0 }
 0x868   : > { %v12329_v4 = vadd.f32 %v22092_v40, %v11868_v56  ;;  %v11082_v44 = vpop.f32.mrb[245].mxu1  ;;  %v11870_v10 = vpop.f32.mrb[69].mxu0 }
 0x869   : > { %13334 = vst [vmem:[%s22118_s14 + $0x8] sm:$0xff] %v14977_v33  ;;  %v14982_v63 = vpack.c.bf16 %v12753_v8, %v12752_v32  ;;  %v12330_v11 = vadd.f32 %v22097_v53, %v11870_v10  ;;  %v22122_v9 = vpop.f32.mrb[246].mxu1  ;;  %v11872_v16 = vpop.f32.mrb[70].mxu0 }
 0x86a   : > { %v12617_v2 = vadd.f32 %v12473_v19, %v12329_v4  ;;  %v12338_v58 = vadd.f32 %v22092_v40, %v11872_v16  ;;  %v11085_v28 = vpop.f32.mrb[247].mxu1  ;;  %v11874_v34 = vpop.f32.mrb[71].mxu0  ;;  %v12509_v19 = vunpack.c.l.bf16 %v17221_v48  ;;  %v12510_v4 = vunpack.c.h.bf16 %v17221_v48 }
 0x86b   : > { %13340 = vst [vmem:[%s22118_s14 + $0x2c] sm:$0xff] %v14982_v63  ;;  %v12618_v61 = vadd.f32 %v12474_v18, %v12330_v11  ;;  %v12339_v13 = vadd.f32 %v22097_v53, %v11874_v34 }
 0x86c   : > { %v12761_v47 = vmax.f32 %v12617_v2, 0.0  ;;  %v12626_v15 = vadd.f32 %v12482_v46, %v12338_v58  ;;  %v17222_v46 = vld [vmem:[%s17508_s18 + $0x104] sm:$0xff] }
 0x86d   : > { %v12762_v59 = vmax.f32 %v12618_v61, 0.0  ;;  %v12627_v54 = vadd.f32 %v12483_v35, %v12339_v13  ;;  %v12518_v63 = vunpack.c.l.bf16 %v17222_v46  ;;  %v12519_v58 = vunpack.c.h.bf16 %v17222_v46 }
 0x86e   : > { %v12770_v45 = vmax.f32 %v12626_v15, 0.0 }
 0x86f   : > { %v14987_v55 = vpack.c.bf16 %v12762_v59, %v12761_v47  ;;  %v12771_v22 = vmax.f32 %v12627_v54, 0.0  ;;  %v22128_v43 = vpop.f32.mrb[248].mxu1  ;;  %v11878_v7 = vpop.f32.mrb[72].mxu0 }
 0x870   : > { %v12347_v39 = vadd.f32 %v22092_v40, %v11878_v7  ;;  %v11090_v6 = vpop.f32.mrb[249].mxu1  ;;  %v11880_v21 = vpop.f32.mrb[73].mxu0 }
 0x871   : > { %13345 = vst [vmem:[%s22118_s14 + $0x50] sm:$0xff] %v14987_v55  ;;  %v14992_v50 = vpack.c.bf16 %v12771_v22, %v12770_v45  ;;  %v12348_v5 = vadd.f32 %v22097_v53, %v11880_v21  ;;  %v22134_v17 = vpop.f32.mrb[250].mxu1  ;;  %v11882_v60 = vpop.f32.mrb[74].mxu0  ;;  %v17223_v55 = vld [vmem:[%s17508_s18 + $0x128] sm:$0xff] }
 0x872   : > { %v12635_v31 = vadd.f32 %v12491_v3, %v12347_v39  ;;  %v12356_v20 = vadd.f32 %v22092_v40, %v11882_v60  ;;  %v11093_v14 = vpop.f32.mrb[251].mxu1  ;;  %v11884_v52 = vpop.f32.mrb[75].mxu0  ;;  %v12527_v22 = vunpack.c.l.bf16 %v17223_v55  ;;  %v12528_v21 = vunpack.c.h.bf16 %v17223_v55 }
 0x873   : > { %13350 = vst [vmem:[%s22118_s14 + $0x74] sm:$0xff] %v14992_v50  ;;  %v12636_v30 = vadd.f32 %v12492_v27, %v12348_v5  ;;  %v12357_v38 = vadd.f32 %v22097_v53, %v11884_v52  ;;  %v17224_v5 = vld [vmem:[%s17508_s18 + $0x14c] sm:$0xff] }
 0x874   : > { %v12779_v23 = vmax.f32 %v12635_v31, 0.0  ;;  %v12644_v12 = vadd.f32 %v12500_v1, %v12356_v20  ;;  %v12536_v60 = vunpack.c.l.bf16 %v17224_v5  ;;  %v12537_v52 = vunpack.c.h.bf16 %v17224_v5 }
 0x875   : > { %v12780_v26 = vmax.f32 %v12636_v30, 0.0  ;;  %v12645_v24 = vadd.f32 %v12501_v41, %v12357_v38 }
 0x876   : > { %v12788_v32 = vmax.f32 %v12644_v12, 0.0 }
 0x877   : > { %v14997_v33 = vpack.c.bf16 %v12780_v26, %v12779_v23  ;;  %v12789_v8 = vmax.f32 %v12645_v24, 0.0  ;;  %v22140_v56 = vpop.f32.mrb[252].mxu1  ;;  %v11888_v18 = vpop.f32.mrb[76].mxu0 }
 0x878   : > { %v12365_v44 = vadd.f32 %v22092_v40, %v11888_v18  ;;  %v11098_v10 = vpop.f32.mrb[253].mxu1  ;;  %v11890_v37 = vpop.f32.mrb[77].mxu0  ;;  %v17225_v18 = vld [vmem:[%s17508_s18 + $0x170] sm:$0xff] }
 0x879   : > { %13355 = vst [vmem:[%s22118_s14 + $0x98] sm:$0xff] %v14997_v33  ;;  %v15002_v11 = vpack.c.bf16 %v12789_v8, %v12788_v32  ;;  %v12366_v16 = vadd.f32 %v22097_v53, %v11890_v37  ;;  %v22146_v35 = vpop.f32.mrb[254].mxu1  ;;  %v11892_v2 = vpop.f32.mrb[78].mxu0 }
 0x87a   : > { %v12653_v28 = vadd.f32 %v12509_v19, %v12365_v44  ;;  %v12374_v34 = vadd.f32 %v22092_v40, %v11892_v2  ;;  %v11101_v61 = vpop.f32.mrb[255].mxu1  ;;  %v11894_v13 = vpop.f32.mrb[79].mxu0 }
 0x87b   : > { %13360 = vst [vmem:[%s22118_s14 + $0xbc] sm:$0xff] %v15002_v11  ;;  %v12654_v47 = vadd.f32 %v12510_v4, %v12366_v16  ;;  %v12375_v15 = vadd.f32 %v22097_v53, %v11894_v13  ;;  %v12545_v4 = vunpack.c.l.bf16 %v17225_v18  ;;  %v22169_v61 = vld [vmem:[%s17508_s18 + $0x1b8] sm:$0xff] }
 0x87c   : > { %v12797_v59 = vmax.f32 %v12653_v28, 0.0  ;;  %v12662_v54 = vadd.f32 %v12518_v63, %v12374_v34  ;;  %v12546_v63 = vunpack.c.h.bf16 %v17225_v18  ;;  %v12563_v13 = vunpack.c.l.bf16 %v22169_v61 }
 0x87d   : > { %v12798_v45 = vmax.f32 %v12654_v47, 0.0  ;;  %v12663_v57 = vadd.f32 %v12519_v58, %v12375_v15  ;;  %v17226_v58 = vld [vmem:[%s17508_s18 + $0x194] sm:$0xff] }
 0x87e   : > { %v12806_v3 = vmax.f32 %v12662_v54, 0.0  ;;  %v12554_v28 = vunpack.c.l.bf16 %v17226_v58  ;;  %v12555_v34 = vunpack.c.h.bf16 %v17226_v58  ;;  %v22222_v58 = vld [vmem:[%s17508_s18 + $0x24] sm:$0xff] }
 0x87f   : > { %v15007_v7 = vpack.c.bf16 %v12798_v45, %v12797_v59  ;;  %v12807_v27 = vmax.f32 %v12663_v57, 0.0  ;;  %v22152_v39 = vpop.f32.mrb[0].mxu1  ;;  %v11898_v6 = vpop.f32.mrb[80].mxu0  ;;  %v12564_v45 = vunpack.c.h.bf16 %v22169_v61  ;;  %v22178_v57 = vld [vmem:[%s17508_s18 + $0x1dc] sm:$0xff] }
 0x880   : > { %v12383_v49 = vadd.f32 %v22092_v40, %v11898_v6  ;;  %v11106_v1 = vpop.f32.mrb[1].mxu1  ;;  %v11900_v50 = vpop.f32.mrb[81].mxu0  ;;  %v12573_v6 = vunpack.c.h.bf16 %v22178_v57 }
 0x881   : > { %13365 = vst [vmem:[%s22118_s14 + $0xe0] sm:$0xff] %v15007_v7  ;;  %v15012_v41 = vpack.c.bf16 %v12807_v27, %v12806_v3  ;;  %v12384_v31 = vadd.f32 %v22097_v53, %v11900_v50  ;;  %v22158_v20 = vpop.f32.mrb[2].mxu1  ;;  %v11902_v14 = vpop.f32.mrb[82].mxu0  ;;  %v12572_v3 = vunpack.c.l.bf16 %v22178_v57  ;;  %v22283_v57 = vld [vmem:[%s17508_s18 + $0xcc] sm:$0xff] }
 0x882   : > { %v12671_v30 = vadd.f32 %v12527_v22, %v12383_v49  ;;  %v12392_v38 = vadd.f32 %v22092_v40, %v11902_v14  ;;  %v11109_v23 = vpop.f32.mrb[3].mxu1  ;;  %v11904_v12 = vpop.f32.mrb[83].mxu0  ;;  %v22192_v14 = vld [vmem:[%s17508_s18 + $0x224] sm:$0xff] }
 0x883   : > { %13370 = vst [vmem:[%s22118_s14 + $0x104] sm:$0xff] %v15012_v41  ;;  %v12672_v26 = vadd.f32 %v12528_v21, %v12384_v31  ;;  %v12393_v24 = vadd.f32 %v22097_v53, %v11904_v12  ;;  %v22184_v21 = vld [vmem:[%s17508_s18 + $0x200] sm:$0xff]  ;;  %v22198_v12 = vrot.slane %v22087_v51, %v20079_v0 }
 0x884   : > { %v12815_v32 = vmax.f32 %v12671_v30, 0.0  ;;  %v12680_v48 = vadd.f32 %v12536_v60, %v12392_v38  ;;  %v12581_v49 = vunpack.c.l.bf16 %v22184_v21  ;;  %v12582_v5 = vunpack.c.h.bf16 %v22184_v21 }
 0x885   : > { %v12816_v19 = vmax.f32 %v12672_v26, 0.0  ;;  %v12681_v33 = vadd.f32 %v12537_v52, %v12393_v24  ;;  %v12290_v60 = vsub.s32 6, %v20072_v42  ;;  %v12590_v52 = vunpack.c.l.bf16 %v22192_v14 }
 0x886   : > { %v12824_v8 = vmax.f32 %v12680_v48, 0.0  ;;  %v12591_v30 = vunpack.c.h.bf16 %v22192_v14  ;;  %v12294_v26 = vsub.s32 7, %v20072_v42 }
 0x887   : > { %v15017_v44 = vpack.c.bf16 %v12816_v19, %v12815_v32  ;;  %v12825_v10 = vmax.f32 %v12681_v33, 0.0  ;;  %v22164_v37 = vpop.f32.mrb[4].mxu1  ;;  %v11908_v46 = vpop.f32.mrb[84].mxu0  ;;  %v22202_v32 = vld [vmem:[%s17508_s18] sm:$0xff]  ;;  %v22206_v19 = vld [vmem:[%s17508_s18 + $0x18] sm:$0xff] }
 0x888   : > { %v12401_v11 = vadd.f32 %v22092_v40, %v11908_v46  ;;  %v11114_v16 = vpop.f32.mrb[5].mxu1  ;;  %v11910_v2 = vpop.f32.mrb[85].mxu0  ;;  %v12453_v48 = vunpack.c.l.bf16 %v22202_v32  ;;  %v12459_v33 = vunpack.c.l.bf16 %v22206_v19  ;;  %v12454_v46 = vunpack.c.h.bf16 %v22202_v32 }
 0x889   : > { %13375 = vst [vmem:[%s22118_s14 + $0x128] sm:$0xff] %v15017_v44  ;;  %v15022_v47 = vpack.c.bf16 %v12825_v10, %v12824_v8  ;;  %v12402_v15 = vadd.f32 %v22097_v53, %v11910_v2  ;;  %v22174_v59 = vpop.f32.mrb[6].mxu1  ;;  %v11912_v54 = vpop.f32.mrb[86].mxu0  ;;  %v22211_v8 = vrot.slane %v22087_v51, %v20085_v36  ;;  %v22216_v10 = vrot.slane %v22087_v51, %v12290_v60 }
 0x88a   : > { %v12689_v55 = vadd.f32 %v12545_v4, %v12401_v11  ;;  %v12410_v22 = vadd.f32 %v22092_v40, %v11912_v54  ;;  %v11117_v7 = vpop.f32.mrb[7].mxu1  ;;  %v11914_v27 = vpop.f32.mrb[87].mxu0  ;;  %v12460_v2 = vunpack.c.h.bf16 %v22206_v19  ;;  %v12462_v36 = vunpack.c.l.bf16 %v22222_v58 }
 0x88b   : > { %13380 = vst [vmem:[%s22118_s14 + $0x14c] sm:$0xff] %v15022_v47  ;;  %v12690_v1 = vadd.f32 %v12546_v63, %v12402_v15  ;;  %v12411_v50 = vadd.f32 %v22097_v53, %v11914_v27  ;;  %v23120_v32 = vunpack.c.h.bf16 %v22222_v58 }
 0x88c   : > { %v12833_v41 = vmax.f32 %v12689_v55, 0.0  ;;  %v12698_v31 = vadd.f32 %v12554_v28, %v12410_v22  ;;  %v22226_v28 = vld [vmem:[%s17508_s18 + $0x3c] sm:$0xff]  ;;  %v22234_v55 = vrot.slane %v22087_v51, %v12294_v26 }
 0x88d   : > { %v12834_v38 = vmax.f32 %v12690_v1, 0.0  ;;  %v12699_v23 = vadd.f32 %v12555_v34, %v12411_v50  ;;  %v12468_v34 = vunpack.c.l.bf16 %v22226_v28  ;;  %v22293_v26 = vld [vmem:[%s17508_s18 + $0xd8] sm:$0xff]  ;;  %v23121_v19 = vunpack.c.h.bf16 %v22226_v28 }
 0x88e   : > { %v12842_v24 = vmax.f32 %v12698_v31, 0.0 }
 0x88f   : > { %v15027_v0 = vpack.c.bf16 %v12834_v38, %v12833_v41  ;;  %v12843_v18 = vmax.f32 %v12699_v23, 0.0  ;;  %v22213_v4 = vpop.f32.mrb[8].mxu1  ;;  %v11918_v44 = vpop.f32.mrb[88].mxu0  ;;  %v22240_v41 = vld [vmem:[%s17508_s18 + $0x48] sm:$0xff]  ;;  %v22246_v23 = vld [vmem:[%s17508_s18 + $0x60] sm:$0xff] }
 0x890   : > { %v12419_v63 = vadd.f32 %v22092_v40, %v11918_v44  ;;  %v11122_v11 = vpop.f32.mrb[9].mxu1  ;;  %v11920_v16 = vpop.f32.mrb[89].mxu0  ;;  %v22254_v44 = vld [vmem:[%s17508_s18 + $0x6c] sm:$0xff] }
 0x891   : > { %13385 = vst [vmem:[%s22118_s14 + $0x170] sm:$0xff] %v15027_v0  ;;  %v15032_v61 = vpack.c.bf16 %v12843_v18, %v12842_v24  ;;  %v12420_v47 = vadd.f32 %v22097_v53, %v11920_v16  ;;  %v22231_v15 = vpop.f32.mrb[10].mxu1  ;;  %v11922_v54 = vpop.f32.mrb[90].mxu0  ;;  %v22260_v16 = vld [vmem:[%s17508_s18 + $0x84] sm:$0xff] }
 0x892   : > { %v12707_v7 = vadd.f32 %v12563_v13, %v12419_v63  ;;  %v12428_v27 = vadd.f32 %v22092_v40, %v11922_v54  ;;  %v11125_v1 = vpop.f32.mrb[11].mxu1  ;;  %v11924_v50 = vpop.f32.mrb[91].mxu0 }
 0x893   : > { %13390 = vst [vmem:[%s22118_s14 + $0x194] sm:$0xff] %v15032_v61  ;;  %v12708_v38 = vadd.f32 %v12564_v45, %v12420_v47  ;;  %v12429_v51 = vadd.f32 %v22097_v53, %v11924_v50  ;;  %v22270_v1 = vld [vmem:[%s17508_s18 + $0xa8] sm:$0xff] }
 0x894   : > { %v12851_v24 = vmax.f32 %v12707_v7, 0.0  ;;  %v12716_v0 = vadd.f32 %v12572_v3, %v12428_v27  ;;  %v22266_v7 = vld [vmem:[%s17508_s18 + $0x90] sm:$0xff] }
 0x895   : > { %v12852_v63 = vmax.f32 %v12708_v38, 0.0  ;;  %v12717_v11 = vadd.f32 %v12573_v6, %v12429_v51  ;;  %v22279_v27 = vld [vmem:[%s17508_s18 + $0xb4] sm:$0xff] }
 0x896   : > { %v12860_v54 = vmax.f32 %v12716_v0, 0.0 }
 0x897   : > { %v15037_v6 = vpack.c.bf16 %v12852_v63, %v12851_v24  ;;  %v12861_v50 = vmax.f32 %v12717_v11, 0.0  ;;  %v22273_v38 = vpop.f32.mrb[12].mxu1  ;;  %v11928_v51 = vpop.f32.mrb[92].mxu0 }
 0x898   : > { %v12437_v3 = vadd.f32 %v22092_v40, %v11928_v51  ;;  %v11130_v61 = vpop.f32.mrb[13].mxu1  ;;  %v11930_v45 = vpop.f32.mrb[93].mxu0 }
 0x899   : > { %13395 = vst [vmem:[%s22118_s14 + $0x1b8] sm:$0xff] %v15037_v6  ;;  %v15042_v11 = vpack.c.bf16 %v12861_v50, %v12860_v54  ;;  %v12438_v0 = vadd.f32 %v22097_v53, %v11930_v45  ;;  %v22289_v47 = vpop.f32.mrb[14].mxu1  ;;  %v11932_v61 = vpop.f32.mrb[94].mxu0  ;;  %v22300_v50 = vld [vmem:[%s17508_s18 + $0xf0] sm:$0xff] }
 0x89a   : > { %v12725_v24 = vadd.f32 %v12581_v49, %v12437_v3  ;;  %v12446_v63 = vadd.f32 %v22092_v40, %v11932_v61  ;;  %v11133_v6 = vpop.f32.mrb[15].mxu1  ;;  %v11934_v54 = vpop.f32.mrb[95].mxu0  ;;  %v22310_v3 = vld [vmem:[%s17508_s18 + $0xfc] sm:$0xff]  ;;  %v22316_v45 = vld [vmem:[%s17508_s18 + $0x114] sm:$0xff] }
 0x89b   : > { %13400 = vst [vmem:[%s22118_s14 + $0x1dc] sm:$0xff] %v15042_v11  ;;  %v12726_v51 = vadd.f32 %v12582_v5, %v12438_v0  ;;  %v12447_v18 = vadd.f32 %v22097_v53, %v11934_v54  ;;  %v22324_v54 = vld [vmem:[%s17508_s18 + $0x120] sm:$0xff] }
 0x89c   : > { %v12869_v61 = vmax.f32 %v12725_v24, 0.0  ;;  %v12734_v6 = vadd.f32 %v12590_v52, %v12446_v63  ;;  %v22328_v52 = vld [vmem:[%s17508_s18 + $0x138] sm:$0xff] }
 0x89d   : > { %v12870_v5 = vmax.f32 %v12726_v51, 0.0  ;;  %v12735_v53 = vadd.f32 %v12591_v30, %v12447_v18  ;;  %v22334_v18 = vld [vmem:[%s17508_s18 + $0x144] sm:$0xff]  ;;  %v22338_v24 = vld [vmem:[%s17508_s18 + $0x15c] sm:$0xff] }
 0x89e   : > { %v12878_v40 = vmax.f32 %v12734_v6, 0.0  ;;  %v22349_v6 = vld [vmem:[%s17508_s18 + $0x168] sm:$0xff] }
 0x89f   : > { %v15047_v21 = vpack.c.bf16 %v12870_v5, %v12869_v61  ;;  %v12879_v14 = vmax.f32 %v12735_v53, 0.0  ;;  %v11745_v49 = vpop.f32.mrb[176].mxu1  ;;  %v12084_v30 = vpop.f32.mrb[96].mxu0 }
 0x8a0   : > { %v12309_v63 = vadd.f32 %v22198_v12, %v11745_v49  ;;  %v12315_v11 = vadd.f32 %v22216_v10, %v12084_v30  ;;  %v11747_v13 = vpop.f32.mrb[177].mxu1  ;;  %v12086_v31 = vpop.f32.mrb[97].mxu0 }
 0x8a1   : > { %13405 = vst [vmem:[%s22118_s14 + $0x200] sm:$0xff] %v15047_v21  ;;  %v15052_v53 = vpack.c.bf16 %v12879_v14, %v12878_v40  ;;  %v12310_v51 = vadd.f32 %v22211_v8, %v11747_v13  ;;  %v12316_v0 = vadd.f32 %v22234_v55, %v12086_v31  ;;  %v11749_v60 = vpop.f32.mrb[178].mxu1  ;;  %v12088_v22 = vpop.f32.mrb[98].mxu0 }
 0x8a2   : > { %v12597_v30 = vadd.f32 %v12453_v48, %v12309_v63  ;;  %v12603_v61 = vadd.f32 %v12459_v33, %v12315_v11  ;;  %v12318_v5 = vadd.f32 %v22198_v12, %v11749_v60  ;;  %v12324_v40 = vadd.f32 %v22216_v10, %v12088_v22  ;;  %v11751_v21 = vpop.f32.mrb[179].mxu1  ;;  %v12090_v13 = vpop.f32.mrb[99].mxu0 }
 0x8a3   : > { %13410 = vst [vmem:[%s22118_s14 + $0x224] sm:$0xff] %v15052_v53  ;;  %v12598_v31 = vadd.f32 %v12454_v46, %v12310_v51  ;;  %v12604_v14 = vadd.f32 %v12460_v2, %v12316_v0  ;;  %v12319_v49 = vadd.f32 %v22211_v8, %v11751_v21  ;;  %v12325_v48 = vadd.f32 %v22234_v55, %v12090_v13  ;;  %v22374_v21 = vld [vmem:[%s17508_s18 + $0x180] sm:$0xff] }
 0x8a4   : > { %v12741_v63 = vmax.f32 %v12597_v30, 0.0  ;;  %v12747_v33 = vmax.f32 %v12603_v61, 0.0  ;;  %v12606_v60 = vadd.f32 %v12462_v36, %v12318_v5  ;;  %v12612_v22 = vadd.f32 %v12468_v34, %v12324_v40 }
 0x8a5   : > { %v12742_v11 = vmax.f32 %v12598_v31, 0.0  ;;  %v12748_v53 = vmax.f32 %v12604_v14, 0.0  ;;  %v12607_v46 = vadd.f32 %v23120_v32, %v12319_v49  ;;  %v12613_v2 = vadd.f32 %v23121_v19, %v12325_v48 }
 0x8a6   : > { %v12750_v0 = vmax.f32 %v12606_v60, 0.0  ;;  %v12756_v51 = vmax.f32 %v12612_v22, 0.0  ;;  %v12549_v61 = vunpack.c.l.bf16 %v22374_v21  ;;  %v12544_v36 = vunpack.c.h.bf16 %v22349_v6  ;;  %v22382_v60 = vld [vmem:[%s17508_s18 + $0x18c] sm:$0xff] }
 0x8a7   : > { %v14976_v34 = vpack.c.bf16 %v12742_v11, %v12741_v63  ;;  %v14979_v5 = vpack.c.bf16 %v12748_v53, %v12747_v33  ;;  %v12751_v30 = vmax.f32 %v12607_v46, 0.0  ;;  %v12757_v40 = vmax.f32 %v12613_v2, 0.0  ;;  %v11755_v58 = vpop.f32.mrb[180].mxu1  ;;  %v12094_v49 = vpop.f32.mrb[100].mxu0 }
 0x8a8   : > { %v12327_v28 = vadd.f32 %v22198_v12, %v11755_v58  ;;  %v12333_v13 = vadd.f32 %v22216_v10, %v12094_v49  ;;  %v11757_v31 = vpop.f32.mrb[181].mxu1  ;;  %v12096_v14 = vpop.f32.mrb[101].mxu0  ;;  %v23122_v19 = vunpack.c.l.bf16 %v22240_v41  ;;  %v23123_v58 = vunpack.c.l.bf16 %v22246_v23 }
 0x8a9   : > { %13333 = vst [vmem:[%s22118_s14] sm:$0xff] %v14976_v34  ;;  %13336 = vst [vmem:[%s22118_s14 + $0x18] sm:$0xff] %v14979_v5  ;;  %v14981_v63 = vpack.c.bf16 %v12751_v30, %v12750_v0  ;;  %v14984_v33 = vpack.c.bf16 %v12757_v40, %v12756_v51  ;;  %v12328_v11 = vadd.f32 %v22211_v8, %v11757_v31  ;;  %v11759_v32 = vpop.f32.mrb[182].mxu1  ;;  %v12098_v46 = vpop.f32.mrb[102].mxu0  ;;  %v23124_v0 = vunpack.c.h.bf16 %v22240_v41 }
 0x8aa   : > { %v12334_v53 = vadd.f32 %v22234_v55, %v12096_v14  ;;  %v12615_v2 = vadd.f32 %v23122_v19, %v12327_v28  ;;  %v12621_v49 = vadd.f32 %v23123_v58, %v12333_v13  ;;  %v12336_v48 = vadd.f32 %v22198_v12, %v11759_v32  ;;  %v11761_v34 = vpop.f32.mrb[183].mxu1  ;;  %v12100_v5 = vpop.f32.mrb[103].mxu0 }
 0x8ab   : > { %v12342_v22 = vadd.f32 %v22216_v10, %v12098_v46  ;;  %13339 = vst [vmem:[%s22118_s14 + $0x24] sm:$0xff] %v14981_v63  ;;  %13342 = vst [vmem:[%s22118_s14 + $0x3c] sm:$0xff] %v14984_v33  ;;  %v12616_v51 = vadd.f32 %v23124_v0, %v12328_v11  ;;  %v23125_v30 = vunpack.c.h.bf16 %v22246_v23  ;;  %v12337_v28 = vadd.f32 %v22211_v8, %v11761_v34 }
 0x8ac   : > { %v12343_v31 = vadd.f32 %v22234_v55, %v12100_v5  ;;  %v12759_v13 = vmax.f32 %v12615_v2, 0.0  ;;  %v12765_v14 = vmax.f32 %v12621_v49, 0.0  ;;  %v23126_v32 = vunpack.c.l.bf16 %v22254_v44  ;;  %v22412_v5 = vld [vmem:[%s17508_s18 + $0x1a4] sm:$0xff] }
 0x8ad   : > { %v12622_v40 = vadd.f32 %v23125_v30, %v12334_v53  ;;  %v23127_v19 = vunpack.c.l.bf16 %v22260_v16  ;;  %v12760_v58 = vmax.f32 %v12616_v51, 0.0  ;;  %v23128_v41 = vunpack.c.h.bf16 %v22254_v44 }
 0x8ae   : > { %v12624_v46 = vadd.f32 %v23126_v32, %v12336_v48  ;;  %v23129_v23 = vunpack.c.h.bf16 %v22260_v16  ;;  %v12558_v2 = vunpack.c.l.bf16 %v22412_v5  ;;  %v12553_v48 = vunpack.c.h.bf16 %v22382_v60 }
 0x8af   : > { %v12630_v63 = vadd.f32 %v23127_v19, %v12342_v22  ;;  %v12766_v33 = vmax.f32 %v12622_v40, 0.0  ;;  %v12625_v11 = vadd.f32 %v23128_v41, %v12337_v28  ;;  %v14986_v22 = vpack.c.bf16 %v12760_v58, %v12759_v13  ;;  %v11765_v44 = vpop.f32.mrb[184].mxu1  ;;  %v12104_v40 = vpop.f32.mrb[104].mxu0  ;;  %v22420_v19 = vld [vmem:[%s17508_s18 + $0x1b0] sm:$0xff] }
 0x8b0   : > { %v12631_v53 = vadd.f32 %v23129_v23, %v12343_v31  ;;  %v12768_v0 = vmax.f32 %v12624_v46, 0.0  ;;  %v12345_v16 = vadd.f32 %v22198_v12, %v11765_v44  ;;  %v12351_v28 = vadd.f32 %v22216_v10, %v12104_v40  ;;  %v11767_v31 = vpop.f32.mrb[185].mxu1  ;;  %v12106_v32 = vpop.f32.mrb[105].mxu0 }
 0x8b1   : > { %v12774_v34 = vmax.f32 %v12630_v63, 0.0  ;;  %v14989_v49 = vpack.c.bf16 %v12766_v33, %v12765_v14  ;;  %v12769_v51 = vmax.f32 %v12625_v11, 0.0  ;;  %13344 = vst [vmem:[%s22118_s14 + $0x48] sm:$0xff] %v14986_v22  ;;  %v12346_v58 = vadd.f32 %v22211_v8, %v11767_v31  ;;  %v11769_v41 = vpop.f32.mrb[186].mxu1  ;;  %v12108_v11 = vpop.f32.mrb[106].mxu0 }
 0x8b2   : > { %v12775_v30 = vmax.f32 %v12631_v53, 0.0  ;;  %v12352_v33 = vadd.f32 %v22234_v55, %v12106_v32  ;;  %v23130_v23 = vunpack.c.l.bf16 %v22266_v7  ;;  %v23131_v44 = vunpack.c.l.bf16 %v22270_v1  ;;  %v11771_v22 = vpop.f32.mrb[187].mxu1 }
 0x8b3   : > { %13347 = vst [vmem:[%s22118_s14 + $0x60] sm:$0xff] %v14989_v49  ;;  %v14991_v13 = vpack.c.bf16 %v12769_v51, %v12768_v0  ;;  %v12354_v46 = vadd.f32 %v22198_v12, %v11769_v41  ;;  %v12360_v63 = vadd.f32 %v22216_v10, %v12108_v11  ;;  %v12110_v49 = vpop.f32.mrb[107].mxu0  ;;  %v23132_v0 = vunpack.c.h.bf16 %v22266_v7 }
 0x8b4   : > { %v14994_v14 = vpack.c.bf16 %v12775_v30, %v12774_v34  ;;  %v12633_v53 = vadd.f32 %v23130_v23, %v12345_v16  ;;  %v12639_v40 = vadd.f32 %v23131_v44, %v12351_v28  ;;  %v23133_v51 = vunpack.c.h.bf16 %v22270_v1 }
 0x8b5   : > { %13349 = vst [vmem:[%s22118_s14 + $0x6c] sm:$0xff] %v14991_v13  ;;  %v12634_v34 = vadd.f32 %v23132_v0, %v12346_v58  ;;  %v12355_v16 = vadd.f32 %v22211_v8, %v11771_v22  ;;  %v12361_v31 = vadd.f32 %v22234_v55, %v12110_v49  ;;  %v23134_v41 = vunpack.c.l.bf16 %v22279_v27  ;;  %v22450_v49 = vld [vmem:[%s17508_s18 + $0x1c8] sm:$0xff] }
 0x8b6   : > { %13352 = vst [vmem:[%s22118_s14 + $0x84] sm:$0xff] %v14994_v14  ;;  %v12640_v30 = vadd.f32 %v23133_v51, %v12352_v33  ;;  %v12777_v28 = vmax.f32 %v12633_v53, 0.0  ;;  %v12783_v32 = vmax.f32 %v12639_v40, 0.0  ;;  %v23135_v23 = vunpack.c.l.bf16 %v22283_v57 }
 0x8b7   : > { %v12642_v11 = vadd.f32 %v23134_v41, %v12354_v46  ;;  %v12778_v44 = vmax.f32 %v12634_v34, 0.0  ;;  %v23136_v7 = vunpack.c.h.bf16 %v22279_v27  ;;  %v23137_v1 = vunpack.c.h.bf16 %v22283_v57  ;;  %v11775_v27 = vpop.f32.mrb[188].mxu1 }
 0x8b8   : > { %v12648_v13 = vadd.f32 %v23135_v23, %v12360_v63  ;;  %v12784_v14 = vmax.f32 %v12640_v30, 0.0  ;;  %v12567_v53 = vunpack.c.l.bf16 %v22450_v49  ;;  %v12562_v46 = vunpack.c.h.bf16 %v22420_v19  ;;  %v12114_v30 = vpop.f32.mrb[108].mxu0  ;;  %v22458_v23 = vld [vmem:[%s17508_s18 + $0x1d4] sm:$0xff] }
 0x8b9   : > { %v12643_v58 = vadd.f32 %v23136_v7, %v12355_v16  ;;  %v12649_v33 = vadd.f32 %v23137_v1, %v12361_v31  ;;  %v12786_v0 = vmax.f32 %v12642_v11, 0.0  ;;  %v14996_v63 = vpack.c.bf16 %v12778_v44, %v12777_v28  ;;  %v11777_v31 = vpop.f32.mrb[189].mxu1  ;;  %v12116_v41 = vpop.f32.mrb[109].mxu0 }
 0x8ba   : > { %v12792_v22 = vmax.f32 %v12648_v13, 0.0  ;;  %v14999_v40 = vpack.c.bf16 %v12784_v14, %v12783_v32  ;;  %v12363_v57 = vadd.f32 %v22198_v12, %v11775_v27  ;;  %v12369_v16 = vadd.f32 %v22216_v10, %v12114_v30  ;;  %v11779_v7 = vpop.f32.mrb[190].mxu1 }
 0x8bb   : > { %v12787_v34 = vmax.f32 %v12643_v58, 0.0  ;;  %v12793_v51 = vmax.f32 %v12649_v33, 0.0  ;;  %13354 = vst [vmem:[%s22118_s14 + $0x90] sm:$0xff] %v14996_v63  ;;  %v12364_v44 = vadd.f32 %v22211_v8, %v11777_v31  ;;  %v12370_v14 = vadd.f32 %v22234_v55, %v12116_v41  ;;  %v12118_v58 = vpop.f32.mrb[110].mxu0  ;;  %v11781_v63 = vpop.f32.mrb[191].mxu1 }
 0x8bc   : > { %13357 = vst [vmem:[%s22118_s14 + $0xa8] sm:$0xff] %v14999_v40  ;;  %v23138_v1 = vunpack.c.l.bf16 %v22293_v26  ;;  %v23139_v27 = vunpack.c.l.bf16 %v22300_v50  ;;  %v12372_v11 = vadd.f32 %v22198_v12, %v11779_v7  ;;  %v12378_v13 = vadd.f32 %v22216_v10, %v12118_v58  ;;  %v12120_v40 = vpop.f32.mrb[111].mxu0 }
 0x8bd   : > { %v15001_v28 = vpack.c.bf16 %v12787_v34, %v12786_v0  ;;  %v15004_v32 = vpack.c.bf16 %v12793_v51, %v12792_v22  ;;  %v23140_v0 = vunpack.c.h.bf16 %v22293_v26  ;;  %v23141_v34 = vunpack.c.h.bf16 %v22300_v50 }
 0x8be   : > { %v12651_v33 = vadd.f32 %v23138_v1, %v12363_v57  ;;  %v12657_v30 = vadd.f32 %v23139_v27, %v12369_v16  ;;  %v12373_v57 = vadd.f32 %v22211_v8, %v11781_v63  ;;  %v12379_v31 = vadd.f32 %v22234_v55, %v12120_v40  ;;  %v22488_v40 = vld [vmem:[%s17508_s18 + $0x1ec] sm:$0xff] }
 0x8bf   : > { %13359 = vst [vmem:[%s22118_s14 + $0xb4] sm:$0xff] %v15001_v28  ;;  %13362 = vst [vmem:[%s22118_s14 + $0xcc] sm:$0xff] %v15004_v32  ;;  %v12652_v22 = vadd.f32 %v23140_v0, %v12364_v44  ;;  %v12658_v51 = vadd.f32 %v23141_v34, %v12370_v14  ;;  %v23142_v7 = vunpack.c.l.bf16 %v22310_v3  ;;  %v23143_v1 = vunpack.c.l.bf16 %v22316_v45 }
 0x8c0   : > { %v12795_v16 = vmax.f32 %v12651_v33, 0.0  ;;  %v12801_v41 = vmax.f32 %v12657_v30, 0.0  ;;  %v23144_v26 = vunpack.c.h.bf16 %v22310_v3  ;;  %v23145_v50 = vunpack.c.h.bf16 %v22316_v45  ;;  %v11785_v3 = vpop.f32.mrb[192].mxu1 }
 0x8c1   : > { %v12660_v58 = vadd.f32 %v23142_v7, %v12372_v11  ;;  %v12666_v28 = vadd.f32 %v23143_v1, %v12378_v13  ;;  %v12796_v27 = vmax.f32 %v12652_v22, 0.0  ;;  %v12802_v32 = vmax.f32 %v12658_v51, 0.0  ;;  %v12124_v51 = vpop.f32.mrb[112].mxu0  ;;  %v22496_v1 = vld [vmem:[%s17508_s18 + $0x1f8] sm:$0xff] }
 0x8c2   : > { %v12661_v44 = vadd.f32 %v23144_v26, %v12373_v57  ;;  %v12667_v14 = vadd.f32 %v23145_v50, %v12379_v31  ;;  %v12576_v33 = vunpack.c.l.bf16 %v22488_v40  ;;  %v12571_v11 = vunpack.c.h.bf16 %v22458_v23  ;;  %v11787_v31 = vpop.f32.mrb[193].mxu1  ;;  %v12126_v7 = vpop.f32.mrb[113].mxu0 }
 0x8c3   : > { %v12804_v0 = vmax.f32 %v12660_v58, 0.0  ;;  %v12810_v63 = vmax.f32 %v12666_v28, 0.0  ;;  %v15006_v13 = vpack.c.bf16 %v12796_v27, %v12795_v16  ;;  %v15009_v30 = vpack.c.bf16 %v12802_v32, %v12801_v41  ;;  %v11789_v26 = vpop.f32.mrb[194].mxu1 }
 0x8c4   : > { %v12805_v22 = vmax.f32 %v12661_v44, 0.0  ;;  %v12811_v34 = vmax.f32 %v12667_v14, 0.0  ;;  %v12381_v45 = vadd.f32 %v22198_v12, %v11785_v3  ;;  %v12387_v57 = vadd.f32 %v22216_v10, %v12124_v51  ;;  %v12128_v44 = vpop.f32.mrb[114].mxu0 }
 0x8c5   : > { %13364 = vst [vmem:[%s22118_s14 + $0xd8] sm:$0xff] %v15006_v13  ;;  %13367 = vst [vmem:[%s22118_s14 + $0xf0] sm:$0xff] %v15009_v30  ;;  %v12382_v27 = vadd.f32 %v22211_v8, %v11787_v31  ;;  %v12388_v32 = vadd.f32 %v22234_v55, %v12126_v7  ;;  %v23146_v50 = vunpack.c.l.bf16 %v22324_v54  ;;  %v23147_v3 = vunpack.c.l.bf16 %v22328_v52  ;;  %v11791_v13 = vpop.f32.mrb[195].mxu1  ;;  %v12130_v30 = vpop.f32.mrb[115].mxu0 }
 0x8c6   : > { %v15011_v16 = vpack.c.bf16 %v12805_v22, %v12804_v0  ;;  %v15014_v41 = vpack.c.bf16 %v12811_v34, %v12810_v63  ;;  %v12390_v58 = vadd.f32 %v22198_v12, %v11789_v26  ;;  %v12396_v28 = vadd.f32 %v22216_v10, %v12128_v44 }
 0x8c7   : > { %v12669_v14 = vadd.f32 %v23146_v50, %v12381_v45  ;;  %v12675_v51 = vadd.f32 %v23147_v3, %v12387_v57  ;;  %v23148_v0 = vunpack.c.h.bf16 %v22324_v54  ;;  %v23149_v22 = vunpack.c.h.bf16 %v22328_v52 }
 0x8c8   : > { %13369 = vst [vmem:[%s22118_s14 + $0xfc] sm:$0xff] %v15011_v16  ;;  %13372 = vst [vmem:[%s22118_s14 + $0x114] sm:$0xff] %v15014_v41  ;;  %v12391_v45 = vadd.f32 %v22211_v8, %v11791_v13  ;;  %v12397_v31 = vadd.f32 %v22234_v55, %v12130_v30  ;;  %v23150_v26 = vunpack.c.l.bf16 %v22334_v18  ;;  %v23151_v50 = vunpack.c.l.bf16 %v22338_v24  ;;  %v22526_v30 = vld [vmem:[%s17508_s18 + $0x210] sm:$0xff] }
 0x8c9   : > { %v12670_v63 = vadd.f32 %v23148_v0, %v12382_v27  ;;  %v12676_v34 = vadd.f32 %v23149_v22, %v12388_v32  ;;  %v12813_v57 = vmax.f32 %v12669_v14, 0.0  ;;  %v12819_v7 = vmax.f32 %v12675_v51, 0.0 }
 0x8ca   : > { %v12678_v44 = vadd.f32 %v23150_v26, %v12390_v58  ;;  %v12684_v16 = vadd.f32 %v23151_v50, %v12396_v28  ;;  %v23152_v54 = vunpack.c.h.bf16 %v22334_v18  ;;  %v23153_v52 = vunpack.c.h.bf16 %v22338_v24  ;;  %v11795_v18 = vpop.f32.mrb[196].mxu1  ;;  %v22534_v50 = vld [vmem:[%s17508_s18 + $0x21c] sm:$0xff] }
 0x8cb   : > { %v12814_v3 = vmax.f32 %v12670_v63, 0.0  ;;  %v12820_v41 = vmax.f32 %v12676_v34, 0.0  ;;  %v12585_v14 = vunpack.c.l.bf16 %v22526_v30  ;;  %v12580_v58 = vunpack.c.h.bf16 %v22496_v1  ;;  %v12134_v34 = vpop.f32.mrb[116].mxu0 }
 0x8cc   : > { %v12679_v27 = vadd.f32 %v23152_v54, %v12391_v45  ;;  %v12685_v32 = vadd.f32 %v23153_v52, %v12397_v31  ;;  %v12822_v0 = vmax.f32 %v12678_v44, 0.0  ;;  %v12828_v13 = vmax.f32 %v12684_v16, 0.0  ;;  %v11797_v31 = vpop.f32.mrb[197].mxu1  ;;  %v12136_v26 = vpop.f32.mrb[117].mxu0 }
 0x8cd   : > { %v15016_v28 = vpack.c.bf16 %v12814_v3, %v12813_v57  ;;  %v15019_v51 = vpack.c.bf16 %v12820_v41, %v12819_v7  ;;  %v12399_v24 = vadd.f32 %v22198_v12, %v11795_v18  ;;  %v12405_v45 = vadd.f32 %v22216_v10, %v12134_v34  ;;  %v11799_v54 = vpop.f32.mrb[198].mxu1 }
 0x8ce   : > { %v12823_v63 = vmax.f32 %v12679_v27, 0.0  ;;  %v12829_v22 = vmax.f32 %v12685_v32, 0.0  ;;  %v12586_v44 = vunpack.c.h.bf16 %v22526_v30  ;;  %v12400_v3 = vadd.f32 %v22211_v8, %v11797_v31  ;;  %v12138_v27 = vpop.f32.mrb[118].mxu0 }
 0x8cf   : > { %13374 = vst [vmem:[%s22118_s14 + $0x120] sm:$0xff] %v15016_v28  ;;  %13377 = vst [vmem:[%s22118_s14 + $0x138] sm:$0xff] %v15019_v51  ;;  %v12406_v41 = vadd.f32 %v22234_v55, %v12136_v26  ;;  %v23154_v52 = vunpack.c.l.bf16 %v22349_v6  ;;  %v12693_v18 = vadd.f32 %v12549_v61, %v12405_v45  ;;  %v12408_v34 = vadd.f32 %v22198_v12, %v11799_v54  ;;  %v11801_v28 = vpop.f32.mrb[199].mxu1  ;;  %v12140_v51 = vpop.f32.mrb[119].mxu0 }
 0x8d0   : > { %v15021_v57 = vpack.c.bf16 %v12823_v63, %v12822_v0  ;;  %v15024_v7 = vpack.c.bf16 %v12829_v22, %v12828_v13  ;;  %v12414_v16 = vadd.f32 %v22216_v10, %v12138_v27  ;;  %v12688_v0 = vadd.f32 %v12544_v36, %v12400_v3  ;;  %v22564_v27 = vld [vmem:[%s17508_s18 + $0x234] sm:$0xff] }
 0x8d1   : > { %v12687_v32 = vadd.f32 %v23154_v52, %v12399_v24  ;;  %v23155_v13 = vunpack.c.h.bf16 %v22374_v21  ;;  %v12409_v22 = vadd.f32 %v22211_v8, %v11801_v28  ;;  %v12415_v24 = vadd.f32 %v22234_v55, %v12140_v51  ;;  %v11805_v28 = vpop.f32.mrb[200].mxu1 }
 0x8d2   : > { %13379 = vst [vmem:[%s22118_s14 + $0x144] sm:$0xff] %v15021_v57  ;;  %13382 = vst [vmem:[%s22118_s14 + $0x15c] sm:$0xff] %v15024_v7  ;;  %v12837_v45 = vmax.f32 %v12693_v18, 0.0  ;;  %v23156_v31 = vunpack.c.l.bf16 %v22382_v60  ;;  %v12702_v57 = vadd.f32 %v12558_v2, %v12414_v16  ;;  %v12832_v54 = vmax.f32 %v12688_v0, 0.0  ;;  %v12144_v60 = vpop.f32.mrb[120].mxu0  ;;  %v11807_v51 = vpop.f32.mrb[201].mxu1 }
 0x8d3   : > { %v12694_v63 = vadd.f32 %v23155_v13, %v12406_v41  ;;  %v12831_v61 = vmax.f32 %v12687_v32, 0.0  ;;  %v12697_v6 = vadd.f32 %v12553_v48, %v12409_v22  ;;  %v23157_v21 = vunpack.c.h.bf16 %v22412_v5  ;;  %v12146_v0 = vpop.f32.mrb[121].mxu0 }
 0x8d4   : > { %v12696_v26 = vadd.f32 %v23156_v31, %v12408_v34  ;;  %v12846_v41 = vmax.f32 %v12702_v57, 0.0  ;;  %v12594_v52 = vunpack.c.l.bf16 %v22564_v27  ;;  %v12589_v32 = vunpack.c.h.bf16 %v22534_v50  ;;  %v11809_v31 = vpop.f32.mrb[202].mxu1 }
 0x8d5   : > { %v12838_v7 = vmax.f32 %v12694_v63, 0.0  ;;  %v12703_v36 = vadd.f32 %v23157_v21, %v12415_v24  ;;  %v15026_v18 = vpack.c.bf16 %v12832_v54, %v12831_v61  ;;  %v12841_v16 = vmax.f32 %v12697_v6, 0.0  ;;  %v11811_v21 = vpop.f32.mrb[203].mxu1 }
 0x8d6   : > { %v12840_v3 = vmax.f32 %v12696_v26, 0.0  ;;  %v12417_v48 = vadd.f32 %v22198_v12, %v11805_v28  ;;  %v12423_v5 = vadd.f32 %v22216_v10, %v12144_v60  ;;  %v12282_v13 = vsub.s32 4, %v20072_v42  ;;  %v12148_v26 = vpop.f32.mrb[122].mxu0 }
 0x8d7   : > { %v15029_v2 = vpack.c.bf16 %v12838_v7, %v12837_v45  ;;  %v12847_v34 = vmax.f32 %v12703_v36, 0.0  ;;  %v12286_v63 = vsub.s32 5, %v20072_v42  ;;  %13384 = vst [vmem:[%s22118_s14 + $0x168] sm:$0xff] %v15026_v18  ;;  %v12418_v61 = vadd.f32 %v22211_v8, %v11807_v51  ;;  %v12150_v36 = vpop.f32.mrb[123].mxu0 }
 0x8d8   : > { %v15031_v22 = vpack.c.bf16 %v12841_v16, %v12840_v3  ;;  %v12424_v45 = vadd.f32 %v22234_v55, %v12146_v0  ;;  %v23158_v57 = vunpack.c.l.bf16 %v22420_v19  ;;  %v12711_v7 = vadd.f32 %v12567_v53, %v12423_v5 }
 0x8d9   : > { %13387 = vst [vmem:[%s22118_s14 + $0x180] sm:$0xff] %v15029_v2  ;;  %v15034_v24 = vpack.c.bf16 %v12847_v34, %v12846_v41  ;;  %v12426_v6 = vadd.f32 %v22198_v12, %v11809_v31  ;;  %v12432_v42 = vadd.f32 %v22216_v10, %v12148_v26  ;;  %v12706_v3 = vadd.f32 %v12562_v46, %v12418_v61  ;;  %v22600_v61 = vld [vmem:[%s17508_s18 + $0x10] sm:$0xff] }
 0x8da   : > { %v12705_v54 = vadd.f32 %v23158_v57, %v12417_v48  ;;  %13389 = vst [vmem:[%s22118_s14 + $0x18c] sm:$0xff] %v15031_v22  ;;  %v23159_v41 = vunpack.c.h.bf16 %v22450_v49  ;;  %v12427_v2 = vadd.f32 %v22211_v8, %v11811_v21  ;;  %v12433_v16 = vadd.f32 %v22234_v55, %v12150_v36 }
 0x8db   : > { %13392 = vst [vmem:[%s22118_s14 + $0x1a4] sm:$0xff] %v15034_v24  ;;  %v12855_v34 = vmax.f32 %v12711_v7, 0.0  ;;  %v23160_v28 = vunpack.c.l.bf16 %v22458_v23  ;;  %v12720_v48 = vadd.f32 %v12576_v33, %v12432_v42  ;;  %v12850_v5 = vmax.f32 %v12706_v3, 0.0  ;;  %v12154_v23 = vpop.f32.mrb[124].mxu0  ;;  %v17264_v42 = vld [vmem:[%s22854_s11] sm:$0xff] }
 0x8dc   : > { %v12712_v18 = vadd.f32 %v23159_v41, %v12424_v45  ;;  %v12849_v53 = vmax.f32 %v12705_v54, 0.0  ;;  %v12715_v19 = vadd.f32 %v12571_v11, %v12427_v2  ;;  %v23161_v49 = vunpack.c.h.bf16 %v22488_v40  ;;  %v11815_v54 = vpop.f32.mrb[204].mxu1 }
 0x8dd   : > { %v12714_v60 = vadd.f32 %v23160_v28, %v12426_v6  ;;  %v12864_v22 = vmax.f32 %v12720_v48, 0.0  ;;  %v12595_v24 = vunpack.c.h.bf16 %v22564_v27  ;;  %v12457_v45 = vunpack.c.l.bf16 %v22600_v61  ;;  %v11817_v7 = vpop.f32.mrb[205].mxu1  ;;  %v12156_v6 = vpop.f32.mrb[125].mxu0 }
 0x8de   : > { %v12856_v51 = vmax.f32 %v12712_v18, 0.0  ;;  %v12721_v46 = vadd.f32 %v23161_v49, %v12433_v16  ;;  %v15036_v31 = vpack.c.bf16 %v12850_v5, %v12849_v53  ;;  %v12859_v26 = vmax.f32 %v12715_v19, 0.0  ;;  %v11819_v16 = vpop.f32.mrb[206].mxu1  ;;  %v12158_v53 = vpop.f32.mrb[126].mxu0 }
 0x8df   : > { %v12858_v0 = vmax.f32 %v12714_v60, 0.0  ;;  %v12435_v11 = vadd.f32 %v22198_v12, %v11815_v54  ;;  %v12441_v40 = vadd.f32 %v22216_v10, %v12154_v23  ;;  %v22608_v21 = vrot.slane %v17264_v42, %v12282_v13  ;;  %v11821_v48 = vpop.f32.mrb[207].mxu1  ;;  %v12160_v5 = vpop.f32.mrb[127].mxu0 }
 0x8e0   : > { %v15039_v33 = vpack.c.bf16 %v12856_v51, %v12855_v34  ;;  %v12865_v57 = vmax.f32 %v12721_v46, 0.0  ;;  %v22610_v36 = vrot.slane %v17264_v42, %v12286_v63  ;;  %13394 = vst [vmem:[%s22118_s14 + $0x1b0] sm:$0xff] %v15036_v31  ;;  %v12436_v18 = vadd.f32 %v22211_v8, %v11817_v7  ;;  %v11971_v23 = vpop.f32.mrb[208].mxu1 }
 0x8e1   : > { %v15041_v3 = vpack.c.bf16 %v12859_v26, %v12858_v0  ;;  %v12442_v2 = vadd.f32 %v22234_v55, %v12156_v6  ;;  %v23162_v34 = vunpack.c.l.bf16 %v22496_v1  ;;  %v12729_v13 = vadd.f32 %v12585_v14, %v12441_v40  ;;  %v11973_v40 = vpop.f32.mrb[209].mxu1  ;;  %v17266_v6 = vld [vmem:[%s17508_s18 + $0x34] sm:$0xff] }
 0x8e2   : > { %13397 = vst [vmem:[%s22118_s14 + $0x1c8] sm:$0xff] %v15039_v33  ;;  %v15044_v41 = vpack.c.bf16 %v12865_v57, %v12864_v22  ;;  %v12444_v63 = vadd.f32 %v22198_v12, %v11819_v16  ;;  %v12450_v60 = vadd.f32 %v22216_v10, %v12158_v53  ;;  %v12724_v51 = vadd.f32 %v12580_v58, %v12436_v18  ;;  %v11975_v53 = vpop.f32.mrb[210].mxu1 }
 0x8e3   : > { %v12723_v28 = vadd.f32 %v23162_v34, %v12435_v11  ;;  %13399 = vst [vmem:[%s22118_s14 + $0x1d4] sm:$0xff] %v15041_v3  ;;  %v12730_v19 = vadd.f32 %v12586_v44, %v12442_v2  ;;  %v12445_v49 = vadd.f32 %v22211_v8, %v11821_v48  ;;  %v12451_v46 = vadd.f32 %v22234_v55, %v12160_v5  ;;  %v17265_v8 = vld [vmem:[%s17508_s18 + $0x20] sm:$0xf]  ;;  %v12197_v11 = vpop.f32.mrb[128].mxu0  ;;  %v17267_v3 = vld [vmem:[%s17508_s18 + $0x44] sm:$0xf] }
 0x8e4   : > { %13402 = vst [vmem:[%s22118_s14 + $0x1ec] sm:$0xff] %v15044_v41  ;;  %v12873_v0 = vmax.f32 %v12729_v13, 0.0  ;;  %v23163_v12 = vunpack.c.l.bf16 %v22534_v50  ;;  %v12738_v22 = vadd.f32 %v12594_v52, %v12450_v60  ;;  %v12868_v31 = vmax.f32 %v12724_v51, 0.0  ;;  %v22641_v50 = vld [vmem:[%s22854_s11 + $0x8] ss:$0 sm:$0xff]  ;;  %v12199_v7 = vpop.f32.mrb[129].mxu0 }
 0x8e5   : > { %v12867_v14 = vmax.f32 %v12723_v28, 0.0  ;;  %v12874_v33 = vmax.f32 %v12730_v19, 0.0  ;;  %v12733_v1 = vadd.f32 %v12589_v32, %v12445_v49  ;;  %v12739_v58 = vadd.f32 %v12595_v24, %v12451_v46  ;;  %v12200_v34 = vpop.f32.mrb[130].mxu0  ;;  %v11977_v48 = vpop.f32.mrb[211].mxu1 }
 0x8e6   : > { %v12732_v10 = vadd.f32 %v23163_v12, %v12444_v63  ;;  %v12882_v44 = vmax.f32 %v12738_v22, 0.0  ;;  %v12461_v55 = vunpack.c.l.bf16 %v17265_v8  ;;  %v12458_v26 = vunpack.c.h.bf16 %v22600_v61  ;;  %v12202_v5 = vpop.f32.mrb[131].mxu0  ;;  %v17268_v12 = vld [vmem:[%s17508_s18 + $0x58] sm:$0xff] }
 0x8e7   : > { %v15046_v57 = vpack.c.bf16 %v12868_v31, %v12867_v14  ;;  %v15049_v54 = vpack.c.bf16 %v12874_v33, %v12873_v0  ;;  %v12877_v27 = vmax.f32 %v12733_v1, 0.0  ;;  %v12883_v52 = vmax.f32 %v12739_v58, 0.0  ;;  %v17269_v33 = vld [vmem:[%s17508_s18 + $0x68] sm:$0xf]  ;;  %v12205_v8 = vpop.f32.mrb[132].mxu0 }
 0x8e8   : > { %v12876_v30 = vmax.f32 %v12732_v10, 0.0  ;;  %v12313_v32 = vadd.f32 %v22608_v21, %v11971_v23  ;;  %v12198_v24 = vadd.f32 %v12197_v11, %v22100_v29  ;;  %v12466_v42 = vunpack.c.l.bf16 %v17266_v6 }
 0x8e9   : > { %v12470_v41 = vunpack.c.l.bf16 %v17267_v3  ;;  %13404 = vst [vmem:[%s22118_s14 + $0x1f8] sm:$0xff] %v15046_v57  ;;  %13407 = vst [vmem:[%s22118_s14 + $0x210] sm:$0xff] %v15049_v54  ;;  %v15054_v2 = vpack.c.bf16 %v12883_v52, %v12882_v44  ;;  %v12314_v16 = vadd.f32 %v22610_v36, %v11973_v40  ;;  %v12467_v28 = vunpack.c.h.bf16 %v17266_v6  ;;  %v11981_v44 = vpop.f32.mrb[212].mxu1 }
 0x8ea   : > { %v15051_v18 = vpack.c.bf16 %v12877_v27, %v12876_v30  ;;  %v12601_v29 = vadd.f32 %v12457_v45, %v12313_v32  ;;  %v12317_v13 = vadd.f32 %v22641_v50, %v12198_v24  ;;  %v12322_v63 = vadd.f32 %v22608_v21, %v11975_v53  ;;  %v11983_v11 = vpop.f32.mrb[213].mxu1  ;;  %v12207_v32 = vpop.f32.mrb[133].mxu0 }
 0x8eb   : > { %v12201_v60 = vadd.f32 %v12200_v34, %v22106_v62  ;;  %13412 = vst [vmem:[%s22118_s14 + $0x234] sm:$0xff] %v15054_v2  ;;  %v12602_v51 = vadd.f32 %v12458_v26, %v12314_v16  ;;  %v12323_v19 = vadd.f32 %v22610_v36, %v11977_v48  ;;  %v12475_v10 = vunpack.c.l.bf16 %v17268_v12  ;;  %v17270_v26 = vld [vmem:[%s17508_s18 + $0x7c] sm:$0xff]  ;;  %v11985_v7 = vpop.f32.mrb[214].mxu1  ;;  %v12208_v6 = vpop.f32.mrb[134].mxu0 }
 0x8ec   : > { %13409 = vst [vmem:[%s22118_s14 + $0x21c] sm:$0xff] %v15051_v18  ;;  %v12745_v49 = vmax.f32 %v12601_v29, 0.0  ;;  %v12605_v46 = vadd.f32 %v12461_v55, %v12317_v13  ;;  %v12610_v14 = vadd.f32 %v12466_v42, %v12322_v63  ;;  %v12479_v1 = vunpack.c.l.bf16 %v17269_v33  ;;  %v11987_v2 = vpop.f32.mrb[215].mxu1  ;;  %v12210_v16 = vpop.f32.mrb[135].mxu0  ;;  %v17274_v33 = vld [vmem:[%s17508_s18 + $0xc4] sm:$0xff] }
 0x8ed   : > { %v12326_v61 = vadd.f32 %v22641_v50, %v12201_v60  ;;  %v12746_v45 = vmax.f32 %v12602_v51, 0.0  ;;  %v12611_v0 = vadd.f32 %v12467_v28, %v12323_v19  ;;  %v12476_v55 = vunpack.c.h.bf16 %v17268_v12  ;;  %v17271_v28 = vld [vmem:[%s17508_s18 + $0x8c] sm:$0xf] }
 0x8ee   : > { %v12749_v62 = vmax.f32 %v12605_v46, 0.0  ;;  %v12754_v22 = vmax.f32 %v12610_v14, 0.0  ;;  %v12484_v57 = vunpack.c.l.bf16 %v17270_v26  ;;  %v12331_v52 = vadd.f32 %v22608_v21, %v11981_v44 }
 0x8ef   : > { %v12614_v31 = vadd.f32 %v12470_v41, %v12326_v61  ;;  %v14978_v58 = vpack.c.bf16 %v12746_v45, %v12745_v49  ;;  %v12755_v30 = vmax.f32 %v12611_v0, 0.0  ;;  %v12206_v23 = vadd.f32 %v12205_v8, %v22114_v25  ;;  %v17272_v49 = vld [vmem:[%s17508_s18 + $0xa0] sm:$0xff] }
 0x8f0   : > { %v14980_v54 = vpack.c.bf16 %v12749_v62, %v12749_v62  ;;  %v12332_v40 = vadd.f32 %v22610_v36, %v11983_v11  ;;  %v12485_v42 = vunpack.c.h.bf16 %v17270_v26  ;;  %v12619_v41 = vadd.f32 %v12475_v10, %v12331_v52  ;;  %v17275_v26 = vld [vmem:[%s17508_s18 + $0xd4] sm:$0xf] }
 0x8f1   : > { %v12758_v27 = vmax.f32 %v12614_v31, 0.0  ;;  %13335 = vst [vmem:[%s22118_s14 + $0x10] sm:$0xff] %v14978_v58  ;;  %v14983_v24 = vpack.c.bf16 %v12755_v30, %v12754_v22  ;;  %v12335_v18 = vadd.f32 %v22641_v50, %v12206_v23  ;;  %v12340_v25 = vadd.f32 %v22608_v21, %v11985_v7  ;;  %v11991_v22 = vpop.f32.mrb[216].mxu1  ;;  %v12213_v31 = vpop.f32.mrb[136].mxu0 }
 0x8f2   : > { %13338 = vst.msk [vmem:[%s22118_s14 + $0x20] sm:$0xf] %vm13337_vm0, %v14980_v54  ;;  %v12620_v53 = vadd.f32 %v12476_v55, %v12332_v40  ;;  %v12209_v34 = vadd.f32 %v12208_v6, %v22122_v9  ;;  %v12488_v29 = vunpack.c.l.bf16 %v17271_v28  ;;  %v12341_v13 = vadd.f32 %v22610_v36, %v11987_v2  ;;  %v17273_v9 = vld [vmem:[%s17508_s18 + $0xb0] sm:$0xf]  ;;  %v11993_v8 = vpop.f32.mrb[217].mxu1  ;;  %v12215_v55 = vpop.f32.mrb[137].mxu0 }
 0x8f3   : > { %v14985_v3 = vpack.c.bf16 %v12758_v27, %v12758_v27  ;;  %13341 = vst [vmem:[%s22118_s14 + $0x34] sm:$0xff] %v14983_v24  ;;  %v12763_v63 = vmax.f32 %v12619_v41, 0.0  ;;  %v12623_v60 = vadd.f32 %v12479_v1, %v12335_v18  ;;  %v12628_v48 = vadd.f32 %v12484_v57, %v12340_v25  ;;  %v11995_v23 = vpop.f32.mrb[218].mxu1  ;;  %v12216_v11 = vpop.f32.mrb[138].mxu0 }
 0x8f4   : > { %v12764_v5 = vmax.f32 %v12620_v53, 0.0  ;;  %v12344_v51 = vadd.f32 %v22641_v50, %v12209_v34  ;;  %v12629_v19 = vadd.f32 %v12485_v42, %v12341_v13  ;;  %v12493_v46 = vunpack.c.l.bf16 %v17272_v49  ;;  %v11997_v6 = vpop.f32.mrb[219].mxu1  ;;  %v12218_v42 = vpop.f32.mrb[139].mxu0 }
 0x8f5   : > { %13343 = vst.msk [vmem:[%s22118_s14 + $0x44] sm:$0xf] %vm13337_vm0, %v14985_v3  ;;  %v12767_v14 = vmax.f32 %v12623_v60, 0.0  ;;  %v12772_v61 = vmax.f32 %v12628_v48, 0.0  ;;  %v12497_v45 = vunpack.c.l.bf16 %v17273_v9  ;;  %v12494_v0 = vunpack.c.h.bf16 %v17272_v49  ;;  %v17277_v48 = vld [vmem:[%s17508_s18 + $0xf8] sm:$0xf] }
 0x8f6   : > { %v14988_v12 = vpack.c.bf16 %v12764_v5, %v12763_v63  ;;  %v12632_v10 = vadd.f32 %v12488_v29, %v12344_v51  ;;  %v12773_v62 = vmax.f32 %v12629_v19, 0.0  ;;  %v12502_v1 = vunpack.c.l.bf16 %v17274_v33  ;;  %v17276_v29 = vld [vmem:[%s17508_s18 + $0xe8] sm:$0xff] }
 0x8f7   : > { %v14990_v58 = vpack.c.bf16 %v12767_v14, %v12767_v14  ;;  %v12349_v30 = vadd.f32 %v22608_v21, %v11991_v22  ;;  %v12214_v44 = vadd.f32 %v12213_v31, %v22128_v43  ;;  %v12506_v57 = vunpack.c.l.bf16 %v17275_v26  ;;  %v12001_v49 = vpop.f32.mrb[220].mxu1 }
 0x8f8   : > { %13346 = vst [vmem:[%s22118_s14 + $0x58] sm:$0xff] %v14988_v12  ;;  %v12776_v54 = vmax.f32 %v12632_v10, 0.0  ;;  %v14993_v27 = vpack.c.bf16 %v12773_v62, %v12772_v61  ;;  %v12350_v52 = vadd.f32 %v22610_v36, %v11993_v8  ;;  %v12503_v32 = vunpack.c.h.bf16 %v17274_v33  ;;  %v17278_v61 = vld [vmem:[%s17508_s18 + $0x10c] sm:$0xff]  ;;  %v12003_v62 = vpop.f32.mrb[221].mxu1 }
 0x8f9   : > { %13348 = vst.msk [vmem:[%s22118_s14 + $0x68] sm:$0xf] %vm13337_vm0, %v14990_v58  ;;  %v12637_v24 = vadd.f32 %v12493_v46, %v12349_v30  ;;  %v12353_v40 = vadd.f32 %v22641_v50, %v12214_v44  ;;  %v12358_v43 = vadd.f32 %v22608_v21, %v11995_v23  ;;  %v12217_v7 = vadd.f32 %v12216_v11, %v22134_v17  ;;  %v12221_v46 = vpop.f32.mrb[140].mxu0 }
 0x8fa   : > { %v14995_v3 = vpack.c.bf16 %v12776_v54, %v12776_v54  ;;  %13351 = vst [vmem:[%s22118_s14 + $0x7c] sm:$0xff] %v14993_v27  ;;  %v12638_v41 = vadd.f32 %v12494_v0, %v12350_v52  ;;  %v12359_v18 = vadd.f32 %v22610_v36, %v11997_v6  ;;  %v12511_v17 = vunpack.c.l.bf16 %v17276_v29  ;;  %v12223_v22 = vpop.f32.mrb[141].mxu0  ;;  %v17279_v52 = vld [vmem:[%s17508_s18 + $0x11c] sm:$0xf] }
 0x8fb   : > { %v12781_v25 = vmax.f32 %v12637_v24, 0.0  ;;  %v12641_v2 = vadd.f32 %v12497_v45, %v12353_v40  ;;  %v12646_v16 = vadd.f32 %v12502_v1, %v12358_v43  ;;  %v12362_v53 = vadd.f32 %v22641_v50, %v12217_v7  ;;  %v12005_v1 = vpop.f32.mrb[222].mxu1  ;;  %v12224_v58 = vpop.f32.mrb[142].mxu0  ;;  %v17282_v22 = vld [vmem:[%s17508_s18 + $0x178] sm:$0xff] }
 0x8fc   : > { %13353 = vst.msk [vmem:[%s22118_s14 + $0x8c] sm:$0xf] %vm13337_vm0, %v14995_v3  ;;  %v12782_v34 = vmax.f32 %v12638_v41, 0.0  ;;  %v12647_v28 = vadd.f32 %v12503_v32, %v12359_v18  ;;  %v12515_v5 = vunpack.c.l.bf16 %v17277_v48  ;;  %v12512_v14 = vunpack.c.h.bf16 %v17276_v29  ;;  %v12007_v26 = vpop.f32.mrb[223].mxu1  ;;  %v17280_v41 = vld [vmem:[%s17508_s18 + $0x130] sm:$0xff] }
 0x8fd   : > { %v12785_v13 = vmax.f32 %v12641_v2, 0.0  ;;  %v12790_v63 = vmax.f32 %v12646_v16, 0.0  ;;  %v12650_v60 = vadd.f32 %v12506_v57, %v12362_v53  ;;  %v12520_v9 = vunpack.c.l.bf16 %v17278_v61  ;;  %v12226_v57 = vpop.f32.mrb[143].mxu0 }
 0x8fe   : > { %v14998_v51 = vpack.c.bf16 %v12782_v34, %v12781_v25  ;;  %v12791_v19 = vmax.f32 %v12647_v28, 0.0  ;;  %v12367_v12 = vadd.f32 %v22608_v21, %v12001_v49  ;;  %v12222_v10 = vadd.f32 %v12221_v46, %v22140_v56 }
 0x8ff   : > { %v15000_v45 = vpack.c.bf16 %v12785_v13, %v12785_v13  ;;  %v12794_v0 = vmax.f32 %v12650_v60, 0.0  ;;  %v12368_v33 = vadd.f32 %v22610_v36, %v12003_v62  ;;  %v12521_v30 = vunpack.c.h.bf16 %v17278_v61  ;;  %v12011_v16 = vpop.f32.mrb[224].mxu1 }
 0x900   : > { %13356 = vst [vmem:[%s22118_s14 + $0xa0] sm:$0xff] %v14998_v51  ;;  %v15003_v31 = vpack.c.bf16 %v12791_v19, %v12790_v63  ;;  %v12655_v8 = vadd.f32 %v12511_v17, %v12367_v12  ;;  %v12371_v55 = vadd.f32 %v22641_v50, %v12222_v10  ;;  %v12376_v56 = vadd.f32 %v22608_v21, %v12005_v1  ;;  %v12013_v29 = vpop.f32.mrb[225].mxu1  ;;  %v17281_v17 = vld [vmem:[%s17508_s18 + $0x154] sm:$0xff] }
 0x901   : > { %13358 = vst.msk [vmem:[%s22118_s14 + $0xb0] sm:$0xf] %vm13337_vm0, %v15000_v45  ;;  %v15005_v44 = vpack.c.bf16 %v12794_v0, %v12794_v0  ;;  %v12656_v54 = vadd.f32 %v12512_v14, %v12368_v33  ;;  %v12225_v27 = vadd.f32 %v12224_v58, %v22146_v35  ;;  %v12524_v23 = vunpack.c.l.bf16 %v17279_v52 }
 0x902   : > { %13361 = vst [vmem:[%s22118_s14 + $0xc4] sm:$0xff] %v15003_v31  ;;  %v12377_v11 = vadd.f32 %v22610_v36, %v12007_v26  ;;  %v12799_v32 = vmax.f32 %v12655_v8, 0.0  ;;  %v12659_v24 = vadd.f32 %v12515_v5, %v12371_v55  ;;  %v12664_v40 = vadd.f32 %v12520_v9, %v12376_v56  ;;  %v12015_v5 = vpop.f32.mrb[226].mxu1  ;;  %v17283_v55 = vld [vmem:[%s17508_s18 + $0x19c] sm:$0xff] }
 0x903   : > { %13363 = vst.msk [vmem:[%s22118_s14 + $0xd4] sm:$0xf] %vm13337_vm0, %v15005_v44  ;;  %v12800_v43 = vmax.f32 %v12656_v54, 0.0  ;;  %v12380_v7 = vadd.f32 %v22641_v50, %v12225_v27  ;;  %v12529_v18 = vunpack.c.l.bf16 %v17280_v41  ;;  %v12530_v53 = vunpack.c.h.bf16 %v17280_v41  ;;  %v12017_v46 = vpop.f32.mrb[227].mxu1 }
 0x904   : > { %v12665_v6 = vadd.f32 %v12521_v30, %v12377_v11  ;;  %v12803_v42 = vmax.f32 %v12659_v24, 0.0  ;;  %v12808_v3 = vmax.f32 %v12664_v40, 0.0  ;;  %v12385_v28 = vadd.f32 %v22608_v21, %v12011_v16 }
 0x905   : > { %v15008_v35 = vpack.c.bf16 %v12800_v43, %v12799_v32  ;;  %v12668_v25 = vadd.f32 %v12524_v23, %v12380_v7  ;;  %v12538_v13 = vunpack.c.l.bf16 %v17281_v17  ;;  %v12386_v48 = vadd.f32 %v22610_v36, %v12013_v29 }
 0x906   : > { %v12809_v2 = vmax.f32 %v12665_v6, 0.0  ;;  %v15010_v34 = vpack.c.bf16 %v12803_v42, %v12803_v42  ;;  %v12539_v51 = vunpack.c.h.bf16 %v17281_v17  ;;  %v12673_v19 = vadd.f32 %v12529_v18, %v12385_v28 }
 0x907   : > { %13366 = vst [vmem:[%s22118_s14 + $0xe8] sm:$0xff] %v15008_v35  ;;  %v12812_v63 = vmax.f32 %v12668_v25, 0.0  ;;  %v12394_v49 = vadd.f32 %v22608_v21, %v12015_v5  ;;  %v12674_v61 = vadd.f32 %v12530_v53, %v12386_v48  ;;  %v12395_v9 = vadd.f32 %v22610_v36, %v12017_v46  ;;  %v12021_v58 = vpop.f32.mrb[228].mxu1 }
 0x908   : > { %v15013_v60 = vpack.c.bf16 %v12809_v2, %v12808_v3  ;;  %13368 = vst.msk [vmem:[%s22118_s14 + $0xf8] sm:$0xf] %vm13337_vm0, %v15010_v34  ;;  %v12817_v45 = vmax.f32 %v12673_v19, 0.0  ;;  %v12547_v31 = vunpack.c.l.bf16 %v17282_v22  ;;  %v12548_v30 = vunpack.c.h.bf16 %v17282_v22  ;;  %v12023_v8 = vpop.f32.mrb[229].mxu1  ;;  %v17284_v3 = vld [vmem:[%s17508_s18 + $0x1c0] sm:$0xff] }
 0x909   : > { %v15015_v14 = vpack.c.bf16 %v12812_v63, %v12812_v63  ;;  %v12682_v0 = vadd.f32 %v12538_v13, %v12394_v49  ;;  %v12818_v12 = vmax.f32 %v12674_v61, 0.0  ;;  %v12683_v10 = vadd.f32 %v12539_v51, %v12395_v9  ;;  %v12025_v54 = vpop.f32.mrb[230].mxu1  ;;  %v17285_v34 = vld [vmem:[%s17508_s18 + $0x1e4] sm:$0xff] }
 0x90a   : > { %13371 = vst [vmem:[%s22118_s14 + $0x10c] sm:$0xff] %v15013_v60  ;;  %v12403_v44 = vadd.f32 %v22608_v21, %v12021_v58  ;;  %v12556_v56 = vunpack.c.l.bf16 %v17283_v55  ;;  %v12404_v57 = vadd.f32 %v22610_v36, %v12023_v8  ;;  %v12557_v27 = vunpack.c.h.bf16 %v17283_v55  ;;  %v12027_v11 = vpop.f32.mrb[231].mxu1 }
 0x90b   : > { %13373 = vst.msk [vmem:[%s22118_s14 + $0x11c] sm:$0xf] %vm13337_vm0, %v15015_v14  ;;  %v12826_v62 = vmax.f32 %v12682_v0, 0.0  ;;  %v15018_v33 = vpack.c.bf16 %v12818_v12, %v12817_v45  ;;  %v12827_v1 = vmax.f32 %v12683_v10, 0.0  ;;  %v12412_v23 = vadd.f32 %v22608_v21, %v12025_v54  ;;  %v17286_v45 = vld [vmem:[%s17508_s18 + $0x208] sm:$0xff] }
 0x90c   : > { %v12691_v52 = vadd.f32 %v12547_v31, %v12403_v44  ;;  %v12692_v32 = vadd.f32 %v12548_v30, %v12404_v57  ;;  %v12413_v24 = vadd.f32 %v22610_v36, %v12027_v11  ;;  %v12565_v41 = vunpack.c.l.bf16 %v17284_v3 }
 0x90d   : > { %13376 = vst [vmem:[%s22118_s14 + $0x130] sm:$0xff] %v15018_v33  ;;  %v15023_v26 = vpack.c.bf16 %v12827_v1, %v12826_v62  ;;  %v12700_v43 = vadd.f32 %v12556_v56, %v12412_v23  ;;  %v12566_v2 = vunpack.c.h.bf16 %v17284_v3  ;;  %v12574_v28 = vunpack.c.l.bf16 %v17285_v34  ;;  %v17287_v1 = vld [vmem:[%s17508_s18 + $0x22c] sm:$0xff] }
 0x90e   : > { %v12835_v40 = vmax.f32 %v12691_v52, 0.0  ;;  %v12836_v7 = vmax.f32 %v12692_v32, 0.0  ;;  %v12701_v6 = vadd.f32 %v12557_v27, %v12413_v24  ;;  %v12575_v63 = vunpack.c.h.bf16 %v17285_v34 }
 0x90f   : > { %13381 = vst [vmem:[%s22118_s14 + $0x154] sm:$0xff] %v15023_v26  ;;  %v12844_v42 = vmax.f32 %v12700_v43, 0.0  ;;  %v12031_v25 = vpop.f32.mrb[232].mxu1  ;;  %v12583_v0 = vunpack.c.l.bf16 %v17286_v45  ;;  %v12584_v22 = vunpack.c.h.bf16 %v17286_v45  ;;  %v12592_v58 = vunpack.c.l.bf16 %v17287_v1 }
 0x910   : > { %v15028_v18 = vpack.c.bf16 %v12836_v7, %v12835_v40  ;;  %v12845_v35 = vmax.f32 %v12701_v6, 0.0  ;;  %v12421_v16 = vadd.f32 %v22608_v21, %v12031_v25  ;;  %v12033_v53 = vpop.f32.mrb[233].mxu1  ;;  %v12593_v55 = vunpack.c.h.bf16 %v17287_v1  ;;  %v17289_v25 = vld [vmem:[%s17508_s18 + $0x164] sm:$0xf] }
 0x911   : > { %v12422_v17 = vadd.f32 %v22610_v36, %v12033_v53  ;;  %v12035_v13 = vpop.f32.mrb[234].mxu1 }
 0x912   : > { %13386 = vst [vmem:[%s22118_s14 + $0x178] sm:$0xff] %v15028_v18  ;;  %v15033_v29 = vpack.c.bf16 %v12845_v35, %v12844_v42  ;;  %v12709_v60 = vadd.f32 %v12565_v41, %v12421_v16  ;;  %v12430_v48 = vadd.f32 %v22608_v21, %v12035_v13  ;;  %v12037_v5 = vpop.f32.mrb[235].mxu1  ;;  %v17288_v42 = vld [vmem:[%s17508_s18 + $0x140] sm:$0xf] }
 0x913   : > { %v12710_v51 = vadd.f32 %v12566_v2, %v12422_v17  ;;  %v12431_v19 = vadd.f32 %v22610_v36, %v12037_v5  ;;  %v12542_v2 = vunpack.c.l.bf16 %v17289_v25 }
 0x914   : > { %13391 = vst [vmem:[%s22118_s14 + $0x19c] sm:$0xff] %v15033_v29  ;;  %v12853_v49 = vmax.f32 %v12709_v60, 0.0  ;;  %v12718_v46 = vadd.f32 %v12574_v28, %v12430_v48  ;;  %v17290_v60 = vld [vmem:[%s17508_s18 + $0x188] sm:$0xf] }
 0x915   : > { %v12854_v14 = vmax.f32 %v12710_v51, 0.0  ;;  %v12719_v61 = vadd.f32 %v12575_v63, %v12431_v19  ;;  %v12551_v48 = vunpack.c.l.bf16 %v17290_v60 }
 0x916   : > { %v12862_v9 = vmax.f32 %v12718_v46, 0.0  ;;  %v17291_v46 = vld [vmem:[%s17508_s18 + $0x1ac] sm:$0xf] }
 0x917   : > { %v15038_v12 = vpack.c.bf16 %v12854_v14, %v12853_v49  ;;  %v12863_v10 = vmax.f32 %v12719_v61, 0.0  ;;  %v12041_v62 = vpop.f32.mrb[236].mxu1  ;;  %v12560_v14 = vunpack.c.l.bf16 %v17291_v46 }
 0x918   : > { %v12439_v31 = vadd.f32 %v22608_v21, %v12041_v62  ;;  %v12043_v33 = vpop.f32.mrb[237].mxu1 }
 0x919   : > { %13396 = vst [vmem:[%s22118_s14 + $0x1c0] sm:$0xff] %v15038_v12  ;;  %v15043_v30 = vpack.c.bf16 %v12863_v10, %v12862_v9  ;;  %v12440_v44 = vadd.f32 %v22610_v36, %v12043_v33  ;;  %v12045_v8 = vpop.f32.mrb[238].mxu1 }
 0x91a   : > { %v12727_v56 = vadd.f32 %v12583_v0, %v12439_v31  ;;  %v12448_v26 = vadd.f32 %v22608_v21, %v12045_v8  ;;  %v12047_v57 = vpop.f32.mrb[239].mxu1  ;;  %v12533_v21 = vunpack.c.l.bf16 %v17288_v42  ;;  %v17292_v31 = vld [vmem:[%s17508_s18 + $0x1d0] sm:$0xf]  ;;  %v17293_v8 = vld [vmem:[%s17508_s18 + $0x1f4] sm:$0xf] }
 0x91b   : > { %13401 = vst [vmem:[%s22118_s14 + $0x1e4] sm:$0xff] %v15043_v30  ;;  %v12728_v54 = vadd.f32 %v12584_v22, %v12440_v44  ;;  %v12449_v27 = vadd.f32 %v22610_v36, %v12047_v57  ;;  %v17295_v42 = vld [vmem:[%s17508_s18 + $0x23c] sm:$0xf] }
 0x91c   : > { %v12871_v52 = vmax.f32 %v12727_v56, 0.0  ;;  %v12736_v23 = vadd.f32 %v12592_v58, %v12448_v26 }
 0x91d   : > { %v12872_v11 = vmax.f32 %v12728_v54, 0.0  ;;  %v12737_v32 = vadd.f32 %v12593_v55, %v12449_v27  ;;  %v12578_v55 = vunpack.c.l.bf16 %v17293_v8 }
 0x91e   : > { %v12880_v24 = vmax.f32 %v12736_v23, 0.0 }
 0x91f   : > { %v15048_v40 = vpack.c.bf16 %v12872_v11, %v12871_v52  ;;  %v12881_v43 = vmax.f32 %v12737_v32, 0.0  ;;  %v12229_v7 = vpop.f32.mrb[16].mxu1 }
 0x920   : > { %v12230_v6 = vadd.f32 %v12229_v7, %v22152_v39  ;;  %v12231_v3 = vpop.f32.mrb[17].mxu1 }
 0x921   : > { %13406 = vst [vmem:[%s22118_s14 + $0x208] sm:$0xff] %v15048_v40  ;;  %v15053_v41 = vpack.c.bf16 %v12881_v43, %v12880_v24  ;;  %v12232_v18 = vpop.f32.mrb[18].mxu1 }
 0x922   : > { %v12389_v36 = vadd.f32 %v22641_v50, %v12230_v6  ;;  %v12233_v35 = vadd.f32 %v12232_v18, %v22158_v20  ;;  %v12234_v16 = vpop.f32.mrb[19].mxu1 }
 0x923   : > { %13411 = vst [vmem:[%s22118_s14 + $0x22c] sm:$0xff] %v15053_v41 }
 0x924   : > { %v12677_v53 = vadd.f32 %v12533_v21, %v12389_v36  ;;  %v12398_v39 = vadd.f32 %v22641_v50, %v12233_v35  ;;  %v12596_v21 = vunpack.c.l.bf16 %v17295_v42 }
 0x926   : > { %v12821_v34 = vmax.f32 %v12677_v53, 0.0  ;;  %v12686_v28 = vadd.f32 %v12542_v2, %v12398_v39 }
 0x927   : > { %v12237_v29 = vpop.f32.mrb[20].mxu1 }
 0x928   : > { %v15020_v17 = vpack.c.bf16 %v12821_v34, %v12821_v34  ;;  %v12830_v13 = vmax.f32 %v12686_v28, 0.0  ;;  %v12238_v63 = vadd.f32 %v12237_v29, %v22164_v37  ;;  %v12239_v20 = vpop.f32.mrb[21].mxu1 }
 0x929   : > { %v12240_v5 = vpop.f32.mrb[22].mxu1 }
 0x92a   : > { %13378 = vst.msk [vmem:[%s22118_s14 + $0x140] sm:$0xf] %vm13337_vm0, %v15020_v17  ;;  %v15025_v51 = vpack.c.bf16 %v12830_v13, %v12830_v13  ;;  %v12407_v19 = vadd.f32 %v22641_v50, %v12238_v63  ;;  %v12241_v49 = vadd.f32 %v12240_v5, %v22174_v59  ;;  %v12242_v61 = vpop.f32.mrb[23].mxu1  ;;  %v12569_v59 = vunpack.c.l.bf16 %v17292_v31 }
 0x92c   : > { %13383 = vst.msk [vmem:[%s22118_s14 + $0x164] sm:$0xf] %vm13337_vm0, %v15025_v51  ;;  %v12695_v9 = vadd.f32 %v12551_v48, %v12407_v19  ;;  %v12416_v37 = vadd.f32 %v22641_v50, %v12241_v49 }
 0x92e   : > { %v12839_v45 = vmax.f32 %v12695_v9, 0.0  ;;  %v12704_v0 = vadd.f32 %v12560_v14, %v12416_v37 }
 0x92f   : > { %v12245_v12 = vpop.f32.mrb[24].mxu1 }
 0x930   : > { %v15030_v10 = vpack.c.bf16 %v12839_v45, %v12839_v45  ;;  %v12848_v62 = vmax.f32 %v12704_v0, 0.0  ;;  %v12246_v22 = vadd.f32 %v12245_v12, %v22213_v4  ;;  %v12247_v33 = vpop.f32.mrb[25].mxu1 }
 0x931   : > { %v12248_v1 = vpop.f32.mrb[26].mxu1 }
 0x932   : > { %13388 = vst.msk [vmem:[%s22118_s14 + $0x188] sm:$0xf] %vm13337_vm0, %v15030_v10  ;;  %v15035_v58 = vpack.c.bf16 %v12848_v62, %v12848_v62  ;;  %v12425_v30 = vadd.f32 %v22641_v50, %v12246_v22  ;;  %v12249_v44 = vadd.f32 %v12248_v1, %v22231_v15  ;;  %v12250_v56 = vpop.f32.mrb[27].mxu1  ;;  %v17294_v15 = vld [vmem:[%s17508_s18 + $0x218] sm:$0xf]  ;;  %s22792_s18 = scalar_lea.hbm %s22855_s12, %s16046_s15 }
 0x933   : > { %v12587_v32 = vunpack.c.l.bf16 %v17294_v15 }
 0x934   : > { %13393 = vst.msk [vmem:[%s22118_s14 + $0x1ac] sm:$0xf] %vm13337_vm0, %v15035_v58  ;;  %v12713_v26 = vadd.f32 %v12569_v59, %v12425_v30  ;;  %v12434_v4 = vadd.f32 %v22641_v50, %v12249_v44 }
 0x936   : > { %v12857_v57 = vmax.f32 %v12713_v26, 0.0  ;;  %v12722_v54 = vadd.f32 %v12578_v55, %v12434_v4 }
 0x937   : > { %v12253_v27 = vpop.f32.mrb[28].mxu1 }
 0x938   : > { %v15040_v52 = vpack.c.bf16 %v12857_v57, %v12857_v57  ;;  %v12866_v23 = vmax.f32 %v12722_v54, 0.0  ;;  %v12254_v11 = vadd.f32 %v12253_v27, %v22273_v38  ;;  %v12255_v24 = vpop.f32.mrb[29].mxu1 }
 0x939   : > { %v12256_v40 = vpop.f32.mrb[30].mxu1 }
 0x93a   : > { %13398 = vst.msk [vmem:[%s22118_s14 + $0x1d0] sm:$0xf] %vm13337_vm0, %v15040_v52  ;;  %v15045_v43 = vpack.c.bf16 %v12866_v23, %v12866_v23  ;;  %v12443_v7 = vadd.f32 %v22641_v50, %v12254_v11  ;;  %v12257_v6 = vadd.f32 %v12256_v40, %v22289_v47  ;;  %v12258_v3 = vpop.f32.mrb[31].mxu1 }
 0x93c   : > { %13403 = vst.msk [vmem:[%s22118_s14 + $0x1f4] sm:$0xf] %vm13337_vm0, %v15045_v43  ;;  %v12731_v38 = vadd.f32 %v12587_v32, %v12443_v7  ;;  %v12452_v41 = vadd.f32 %v22641_v50, %v12257_v6 }
 0x93e   : > { %v12875_v18 = vmax.f32 %v12731_v38, 0.0  ;;  %v12740_v36 = vadd.f32 %v12596_v21, %v12452_v41 }
 0x940   : > { %v15050_v35 = vpack.c.bf16 %v12875_v18, %v12875_v18  ;;  %v12884_v25 = vmax.f32 %v12740_v36, 0.0 }
 0x942   : > { %13408 = vst.msk [vmem:[%s22118_s14 + $0x218] sm:$0xf] %vm13337_vm0, %v15050_v35  ;;  %v15055_v47 = vpack.c.bf16 %v12884_v25, %v12884_v25 }
 0x944   : > { %13413 = vst.msk [vmem:[%s22118_s14 + $0x23c] sm:$0xf] %vm13337_vm0, %v15055_v47 }
 0x945   : > { %17309 = shalt.err (!%p17306_p3)
}
 0x946   : > { %s17310_s23 = scalar_lea.hbm %s22792_s18, 9216  ;;  %s17314_s29 = scalar_lea.hbm %s22855_s12, 18432 }
 0x947   : > { %p17311_p4 = scmp.ne.s32.totalorder %s22792_s18, %s17310_s23  ;;  %p17315_p9 = scmp.lt.u32.totalorder %s22792_s18, %s22855_s12 }
 0x948   : > { %p17316_p10 = scmp.lt.u32.totalorder %s17314_s29, %s17310_s23  ;;  %p17318_p12 = scmp.lt.u32.totalorder %s17310_s23, %s22792_s18 }
 0x949   : > { %p17312_p7 = pnand %p17311_p4, %p17467_p5 }
 0x94a   : > { %p17317_p11 = por %p17316_p10, %p17315_p9 }
 0x94b   : > { %p17313_p8 = pneg %p17312_p7 }
 0x94c   : > { %p17319_p13 = por %p17318_p12, %p17317_p11 }
 0x94e   : > { %p17320_p0 = pnand %p17319_p13, %p17313_p8 }
 0x950   : > { %17323 = shalt.err (!%p17320_p0)
}
 0x951   : > { %s17362_s30 = smov 576   ;;  %s17363_s17 = smov 36  }
 0x952   : > { %16047 = dma.vmem_to_hbm [thread:$0]  (%p17467_p5), %s22796_s16, 9216, %s22792_s18, %s22802_s25, %s17362_s30, %s17362_s30, %s17363_s17  }
 0x953 PF: > { %p16053_p1 = scmp.ge.s32.totalorder %s17358_s24, 2  ;;  %s13444_s20 = sand.u32 1, %s17346_s21  }
 0x954   : > { %s13445_s26 = scalar_lea.sflag [#allocation5], %s13444_s20 }
 0x955   : > { %p16050_p2 = pnand %p16053_p1, %p17471_p6 }
 0x957   : > { %17341 = dma.done.wait (!%p16050_p2), %s13445_s26, 9216  }
 0x958   : > { %17343 = vsyncadd (!%p16050_p2), %s13445_s26, 4294958080  ;;  %s23165_s24 = sld [smem:[#allocation8_spill]]  ;;  %s23166_s23 = sld [smem:[#allocation7_spill]] }
 0x959   : > { %s23167_s14 = sld [smem:[#allocation9_spill]]  ;;  %s23168_s21 = smov %s17350_s22 }
 0x95e   : > { %p22_p3 = scmp.ge.s32.totalorder %s23165_s24, 4   ;;  %s23169_s22 = smov %s23166_s23 }
 0x95f   : > { %s23170_s23 = smov %s23167_s14 }
 0x960   :  { %24 = sbr.rel (!%p22_p3) target bundleno = 3 (0x3), region = 122 }
 0x967   :  { %13450 = vsyncpa [#allocation5], 1 }
 0x968   :  { %13452 = vsyncpa [#allocation5 + $0x1], 1 }

</bundles_post_ra>
